<compile_context>
chip_gen: v5e
topology: v5e:2x2
jax: 0.10.0
libtpu: 0.0.40
codegen_flags: <defaults>
</compile_context>

<pallas_src>
import jax
import jax.numpy as jnp
from jax.experimental import pallas as pl
from jax.experimental.pallas import tpu as pltpu


def _mlac_kernel(xp_ref, v1_ref, v2_ref, w0_ref, w1_ref, w2_ref, bias_ref,
                 mrel_ref, reln_ref, relsq_ref, dist_ref):
    f32, bf16 = jnp.float32, jnp.bfloat16
    xp = xp_ref[...]                      # (TB, sl+2, d): x_concat, seq-padded
    tb, slp, d = xp.shape
    sl = slp - 2
    dc = w0_ref.shape[1]
    m = tb * sl

    xc = xp[:, 1:sl + 1, :]               # (TB, sl, d) un-padded positions

    # ---- entity-level attention: alpha over the sequence axis -------------
    # a_k[t, s] = x_embed[t, s] . (We_k @ e_k); We_k@e_k precomputed in wrapper
    # and zero-padded over the position-embedding lanes.
    a1 = jnp.sum(xc * v1_ref[...], axis=2, keepdims=True)     # (TB, sl, 1)
    a2 = jnp.sum(xc * v2_ref[...], axis=2, keepdims=True)

    def softmax_seq(a):                   # softmax along the sequence axis
        mx = jnp.max(a, axis=1, keepdims=True)
        e = jnp.exp(a - mx)
        return e * pl.reciprocal(jnp.sum(e, axis=1, keepdims=True), approx=True)

    alpha = 0.5 * (softmax_seq(a1) + softmax_seq(a2))          # (TB, sl, 1)

    # ---- Conv2d(1, dc, (1, k*d), stride (1, k*d)) == 3 shifted matmuls -----
    x_prev = xp[:, 0:sl, :].reshape(m, d).astype(bf16)         # x_concat[s-1]
    x_mid = xp[:, 1:sl + 1, :].reshape(m, d).astype(bf16)      # x_concat[s]
    x_next = xp[:, 2:sl + 2, :].reshape(m, d).astype(bf16)     # x_concat[s+1]
    y = (jnp.dot(x_prev, w0_ref[...], preferred_element_type=f32)
         + jnp.dot(x_mid, w1_ref[...], preferred_element_type=f32)
         + jnp.dot(x_next, w2_ref[...], preferred_element_type=f32))
    conv = alpha * y.reshape(tb, sl, dc) + bias_ref[...].reshape(1, 1, dc)
    r3 = jnp.tanh(conv)                   # (TB, sl, dc) == R_star^T per example

    # ---- relation-level attention (softmax over the filter axis) ----------
    g = jnp.dot(r3.reshape(m, dc).astype(bf16), mrel_ref[...],
                preferred_element_type=f32)                    # (m, dc)
    gm = jnp.max(g, axis=1, keepdims=True)
    ge = jnp.exp(g - gm)
    ap3 = (ge * pl.reciprocal(jnp.sum(ge, axis=1, keepdims=True),
                              approx=True)).reshape(tb, sl, dc)

    # wo[t, i] = max_j sum_s R_star^T[t, s, i] * AP[t, s, j]   (MaxPool over j)
    # dc is small (32): unroll over j on the VPU (plain broadcast/mul/reduce)
    # instead of a per-example batched matmul.
    wo = jnp.sum(ap3[:, :, 0:1] * r3, axis=1)                  # (TB, dc), j = 0
    for j in range(1, dc):
        wo = jnp.maximum(wo, jnp.sum(ap3[:, :, j:j + 1] * r3, axis=1))

    # ---- F.normalize (eps=1e-12) + distances to normalized relation rows ---
    inv_n = pl.reciprocal(
        jnp.maximum(jnp.sqrt(jnp.sum(wo * wo, axis=1, keepdims=True)), 1e-12),
        approx=True)
    wo_n = wo * inv_n                                          # (TB, dc)
    cross = jax.lax.dot_general(wo_n, reln_ref[...], (((1,), (1,)), ((), ())),
                                preferred_element_type=f32)    # (TB, nr)
    wo_sq = jnp.sum(wo_n * wo_n, axis=1, keepdims=True)        # (TB, 1)
    dist_sq = jnp.maximum(wo_sq + relsq_ref[...] - 2.0 * cross, 0.0)
    dist_ref[...] = jnp.sqrt(dist_sq)                          # (TB, nr)


def make_params(key, vocab, dw, dp, npos, k, dc, nr):
    d = dw + 2 * dp
    kd = k * d
    ks = jax.random.split(key, 9)
    word_emb = jax.random.normal(ks[0], (vocab, dw), jnp.float32) * 0.1
    word_emb = word_emb.at[0].set(0.0)                 # padding_idx = 0
    dist1_emb = jax.random.normal(ks[1], (npos, dp), jnp.float32) * 0.1
    dist2_emb = jax.random.normal(ks[2], (npos, dp), jnp.float32) * 0.1
    We1 = jax.random.normal(ks[3], (dw, dw), jnp.float32)
    We2 = jax.random.normal(ks[4], (dw, dw), jnp.float32)
    conv_w = jax.random.normal(ks[5], (dc, kd), jnp.float32) / jnp.sqrt(float(kd))
    conv_b = jax.random.normal(ks[6], (1, dc), jnp.float32) * 0.01
    U = jax.random.normal(ks[7], (dc, nr), jnp.float32)
    rel_w = jax.random.normal(ks[8], (nr, dc), jnp.float32) * 0.1
    return dict(word_emb=word_emb, dist1_emb=dist1_emb, dist2_emb=dist2_emb,
                We1=We1, We2=We2, conv_w=conv_w, conv_b=conv_b, U=U, rel_w=rel_w)


def mlac_forward(params, x, e1, e2, dist1, dist2, block_b=32):
    """Eval-mode forward. Returns (predict, all_distance)."""
    f32, bf16 = jnp.float32, jnp.bfloat16
    word_emb = params["word_emb"]
    xe = word_emb[x]                            # (b, sl, dw)  embedding gathers
    d1 = params["dist1_emb"][dist1]             # (b, sl, dp)
    d2 = params["dist2_emb"][dist2]             # (b, sl, dp)
    xc = jnp.concatenate([xe, d1, d2], axis=2)  # (b, sl, d)
    b, sl, d = xc.shape
    dw = xe.shape[-1]
    dc, nr = params["U"].shape

    # ---- batch-invariant precomputes hoisted out of the kernel -------------
    v1 = word_emb[e1] @ params["We1"].T         # (b, dw):  We1 @ e1 per example
    v2 = word_emb[e2] @ params["We2"].T
    v1p = jnp.pad(v1, ((0, 0), (0, d - dw)))[:, None, :].astype(f32)  # (b,1,d)
    v2p = jnp.pad(v2, ((0, 0), (0, d - dw)))[:, None, :].astype(f32)

    conv_w = params["conv_w"]                   # (dc, 3*d)
    w0 = conv_w[:, 0:d].T.astype(bf16)          # applies to x_concat[s-1]
    w1 = conv_w[:, d:2 * d].T.astype(bf16)      # applies to x_concat[s]
    w2 = conv_w[:, 2 * d:3 * d].T.astype(bf16)  # applies to x_concat[s+1]
    conv_b = params["conv_b"].astype(f32)       # (1, dc)

    m_rel = (params["U"] @ params["rel_w"]).astype(bf16)        # (dc, dc)
    rel_w = params["rel_w"]
    rel_n = (rel_w / jnp.maximum(
        jnp.sqrt(jnp.sum(rel_w * rel_w, axis=1, keepdims=True)), 1e-12)
             ).astype(f32)                                      # (nr, dc)
    rel_sq = jnp.sum(rel_n * rel_n, axis=1)[None, :].astype(f32)  # (1, nr)

    # batch tile: multiple of 8; 32 keeps M = TB*sl >= 256 and leaves >= 2 grid
    # steps (two v7x TensorCores) at realistic batch sizes.
    tb = min(block_b, max(8, ((b + 7) // 8) * 8))
    tb = ((tb + 7) // 8) * 8
    b_pad = ((b + tb - 1) // tb) * tb

    xp = jnp.pad(xc, ((0, b_pad - b), (1, 1), (0, 0))).astype(f32)  # (b_pad, sl+2, d)
    v1p = jnp.pad(v1p, ((0, b_pad - b), (0, 0), (0, 0)))
    v2p = jnp.pad(v2p, ((0, b_pad - b), (0, 0), (0, 0)))

    grid_spec = pltpu.PrefetchScalarGridSpec(
        num_scalar_prefetch=0,
        grid=(b_pad // tb,),
        in_specs=[
            pl.BlockSpec((tb, sl + 2, d), lambda i: (i, 0, 0)),  # padded x_concat
            pl.BlockSpec((tb, 1, d), lambda i: (i, 0, 0)),       # We1 @ e1
            pl.BlockSpec((tb, 1, d), lambda i: (i, 0, 0)),       # We2 @ e2
            pl.BlockSpec((d, dc), lambda i: (0, 0)),             # conv W (s-1)
            pl.BlockSpec((d, dc), lambda i: (0, 0)),             # conv W (s)
            pl.BlockSpec((d, dc), lambda i: (0, 0)),             # conv W (s+1)
            pl.BlockSpec((1, dc), lambda i: (0, 0)),             # conv bias
            pl.BlockSpec((dc, dc), lambda i: (0, 0)),            # U @ rel_w
            pl.BlockSpec((nr, dc), lambda i: (0, 0)),            # normalized rel emb
            pl.BlockSpec((1, nr), lambda i: (0, 0)),             # ||rel_n||^2
        ],
        out_specs=pl.BlockSpec((tb, nr), lambda i: (i, 0)),
    )

    dist = pl.pallas_call(
        _mlac_kernel,
        out_shape=jax.ShapeDtypeStruct((b_pad, nr), f32),
        grid_spec=grid_spec,
        compiler_params=pltpu.CompilerParams(dimension_semantics=("parallel",)),
    )(xp, v1p, v2p, w0, w1, w2, conv_b, m_rel, rel_n, rel_sq)

    all_distance = dist[:b]                     # (b, nr)
    predict = jnp.argmin(all_distance, axis=1)  # eval-mode module output
    return predict, all_distance


if __name__ == "__main__":
    # opt: embedding_dim=32, position_embedding_dim=8, num_positions=16,
    #      sliding_window=3, num_filters=32, num_relations=8, vocab_size=32
    b, sl = 2, 8
    vocab, dw, dp, npos = 32, 32, 8, 16
    k, dc, nr = 3, 32, 8

    key = jax.random.PRNGKey(0)
    pkey, xkey, ekey, d1key, d2key = jax.random.split(key, 5)
    params = make_params(pkey, vocab, dw, dp, npos, k, dc, nr)

    x = jax.random.randint(xkey, (b, sl), 0, vocab, dtype=jnp.int32)
    ents = jax.random.randint(ekey, (2, b), 1, vocab, dtype=jnp.int32)
    e1, e2 = ents[0], ents[1]
    dist1 = jax.random.randint(d1key, (b, sl), 0, npos, dtype=jnp.int32)
    dist2 = jax.random.randint(d2key, (b, sl), 0, npos, dtype=jnp.int32)

    predict, all_distance = mlac_forward(params, x, e1, e2, dist1, dist2)
    jax.block_until_ready((predict, all_distance))
    print("KERNEL_OK")
</pallas_src>

<mosaic_0001>
module attributes {stable_mosaic.version = 11 : i64} {
  func.func @_mlac_kernel(%arg0: i32, %arg1: memref<8x10x48xf32, #tpu.memory_space<vmem>>, %arg2: memref<8x1x48xf32, #tpu.memory_space<vmem>>, %arg3: memref<8x1x48xf32, #tpu.memory_space<vmem>>, %arg4: memref<48x32xbf16, #tpu.memory_space<vmem>>, %arg5: memref<48x32xbf16, #tpu.memory_space<vmem>>, %arg6: memref<48x32xbf16, #tpu.memory_space<vmem>>, %arg7: memref<1x32xf32, #tpu.memory_space<vmem>>, %arg8: memref<32x32xbf16, #tpu.memory_space<vmem>>, %arg9: memref<8x32xf32, #tpu.memory_space<vmem>>, %arg10: memref<1x8xf32, #tpu.memory_space<vmem>>, %arg11: memref<8x8xf32, #tpu.memory_space<vmem>>) attributes {dimension_semantics = [#tpu.dimension_semantics<parallel>], iteration_bounds = array<i64: 1>, scalar_prefetch = 0 : i64, scratch_operands = 0 : i64, tpu.core_type = #tpu.core_type<tc>, window_params = [{transform_indices = @transform_0, window_bounds = array<i64: 8, 10, 48>}, {transform_indices = @transform_1, window_bounds = array<i64: 8, 1, 48>}, {transform_indices = @transform_2, window_bounds = array<i64: 8, 1, 48>}, {pipeline_mode = #tpu.pipeline_mode<synchronous>, transform_indices = @transform_3, window_bounds = array<i64: 48, 32>}, {pipeline_mode = #tpu.pipeline_mode<synchronous>, transform_indices = @transform_4, window_bounds = array<i64: 48, 32>}, {pipeline_mode = #tpu.pipeline_mode<synchronous>, transform_indices = @transform_5, window_bounds = array<i64: 48, 32>}, {pipeline_mode = #tpu.pipeline_mode<synchronous>, transform_indices = @transform_6, window_bounds = array<i64: 1, 32>}, {pipeline_mode = #tpu.pipeline_mode<synchronous>, transform_indices = @transform_7, window_bounds = array<i64: 32, 32>}, {pipeline_mode = #tpu.pipeline_mode<synchronous>, transform_indices = @transform_8, window_bounds = array<i64: 8, 32>}, {pipeline_mode = #tpu.pipeline_mode<synchronous>, transform_indices = @transform_9, window_bounds = array<i64: 1, 8>}, {transform_indices = @transform_10, window_bounds = array<i64: 8, 8>}]} {
    %c0 = arith.constant 0 : index
    %c0_0 = arith.constant 0 : index
    %c0_1 = arith.constant 0 : index
    %0 = vector.load %arg1[%c0, %c0_0, %c0_1] : memref<8x10x48xf32, #tpu.memory_space<vmem>>, vector<8x10x48xf32>
    %1 = vector.extract_strided_slice %0 {offsets = [0, 1, 0], sizes = [8, 8, 48], strides = [1, 1, 1]} : vector<8x10x48xf32> to vector<8x8x48xf32>
    %c0_2 = arith.constant 0 : index
    %c0_3 = arith.constant 0 : index
    %c0_4 = arith.constant 0 : index
    %2 = vector.load %arg2[%c0_2, %c0_3, %c0_4] : memref<8x1x48xf32, #tpu.memory_space<vmem>>, vector<8x1x48xf32>
    %3 = vector.broadcast %2 : vector<8x1x48xf32> to vector<8x8x48xf32>
    %4 = arith.mulf %1, %3 : vector<8x8x48xf32>
    %cst = arith.constant dense<0.000000e+00> : vector<8x8xf32>
    %5 = vector.multi_reduction <add>, %4, %cst [2] : vector<8x8x48xf32> to vector<8x8xf32>
    %6 = vector.shape_cast %5 : vector<8x8xf32> to vector<8x8x1xf32>
    %c0_5 = arith.constant 0 : index
    %c0_6 = arith.constant 0 : index
    %c0_7 = arith.constant 0 : index
    %7 = vector.load %arg3[%c0_5, %c0_6, %c0_7] : memref<8x1x48xf32, #tpu.memory_space<vmem>>, vector<8x1x48xf32>
    %8 = vector.broadcast %7 : vector<8x1x48xf32> to vector<8x8x48xf32>
    %9 = arith.mulf %1, %8 : vector<8x8x48xf32>
    %cst_8 = arith.constant dense<0.000000e+00> : vector<8x8xf32>
    %10 = vector.multi_reduction <add>, %9, %cst_8 [2] : vector<8x8x48xf32> to vector<8x8xf32>
    %11 = vector.shape_cast %10 : vector<8x8xf32> to vector<8x8x1xf32>
    %cst_9 = arith.constant dense<0xFF800000> : vector<8x1xf32>
    %12 = vector.multi_reduction <maximumf>, %6, %cst_9 [1] : vector<8x8x1xf32> to vector<8x1xf32>
    %13 = vector.shape_cast %12 : vector<8x1xf32> to vector<8x1x1xf32>
    %14 = vector.broadcast %13 : vector<8x1x1xf32> to vector<8x8x1xf32>
    %15 = arith.subf %6, %14 : vector<8x8x1xf32>
    %16 = math.exp %15 : vector<8x8x1xf32>
    %cst_10 = arith.constant dense<0.000000e+00> : vector<8x1xf32>
    %17 = vector.multi_reduction <add>, %16, %cst_10 [1] : vector<8x8x1xf32> to vector<8x1xf32>
    %18 = vector.shape_cast %17 : vector<8x1xf32> to vector<8x1x1xf32>
    %19 = tpu.reciprocal %18 {approx = true} : vector<8x1x1xf32> -> vector<8x1x1xf32>
    %20 = vector.broadcast %19 : vector<8x1x1xf32> to vector<8x8x1xf32>
    %21 = arith.mulf %16, %20 : vector<8x8x1xf32>
    %cst_11 = arith.constant dense<0xFF800000> : vector<8x1xf32>
    %22 = vector.multi_reduction <maximumf>, %11, %cst_11 [1] : vector<8x8x1xf32> to vector<8x1xf32>
    %23 = vector.shape_cast %22 : vector<8x1xf32> to vector<8x1x1xf32>
    %24 = vector.broadcast %23 : vector<8x1x1xf32> to vector<8x8x1xf32>
    %25 = arith.subf %11, %24 : vector<8x8x1xf32>
    %26 = math.exp %25 : vector<8x8x1xf32>
    %cst_12 = arith.constant dense<0.000000e+00> : vector<8x1xf32>
    %27 = vector.multi_reduction <add>, %26, %cst_12 [1] : vector<8x8x1xf32> to vector<8x1xf32>
    %28 = vector.shape_cast %27 : vector<8x1xf32> to vector<8x1x1xf32>
    %29 = tpu.reciprocal %28 {approx = true} : vector<8x1x1xf32> -> vector<8x1x1xf32>
    %30 = vector.broadcast %29 : vector<8x1x1xf32> to vector<8x8x1xf32>
    %31 = arith.mulf %26, %30 : vector<8x8x1xf32>
    %32 = arith.addf %21, %31 : vector<8x8x1xf32>
    %cst_13 = arith.constant 5.000000e-01 : f32
    %33 = vector.broadcast %cst_13 : f32 to vector<8x8x1xf32>
    %34 = arith.mulf %33, %32 : vector<8x8x1xf32>
    %35 = vector.extract_strided_slice %0 {offsets = [0, 0, 0], sizes = [8, 8, 48], strides = [1, 1, 1]} : vector<8x10x48xf32> to vector<8x8x48xf32>
    %36 = vector.shape_cast %35 : vector<8x8x48xf32> to vector<64x48xf32>
    %37 = arith.truncf %36 : vector<64x48xf32> to vector<64x48xbf16>
    %38 = vector.extract_strided_slice %0 {offsets = [0, 1, 0], sizes = [8, 8, 48], strides = [1, 1, 1]} : vector<8x10x48xf32> to vector<8x8x48xf32>
    %39 = vector.shape_cast %38 : vector<8x8x48xf32> to vector<64x48xf32>
    %40 = arith.truncf %39 : vector<64x48xf32> to vector<64x48xbf16>
    %41 = vector.extract_strided_slice %0 {offsets = [0, 2, 0], sizes = [8, 8, 48], strides = [1, 1, 1]} : vector<8x10x48xf32> to vector<8x8x48xf32>
    %42 = vector.shape_cast %41 : vector<8x8x48xf32> to vector<64x48xf32>
    %43 = arith.truncf %42 : vector<64x48xf32> to vector<64x48xbf16>
    %c0_14 = arith.constant 0 : index
    %c0_15 = arith.constant 0 : index
    %44 = vector.load %arg4[%c0_14, %c0_15] : memref<48x32xbf16, #tpu.memory_space<vmem>>, vector<48x32xbf16>
    %cst_16 = arith.constant dense<0.000000e+00> : vector<64x32xf32>
    %45 = tpu.matmul %37, %44, %cst_16 {dimension_numbers = #tpu.dot_dimension_numbers<[1], [0], [0], [1], [0, 0, 1, 1], [], []>} : vector<64x48xbf16>, vector<48x32xbf16>, vector<64x32xf32> -> vector<64x32xf32>
    %c0_17 = arith.constant 0 : index
    %c0_18 = arith.constant 0 : index
    %46 = vector.load %arg5[%c0_17, %c0_18] : memref<48x32xbf16, #tpu.memory_space<vmem>>, vector<48x32xbf16>
    %cst_19 = arith.constant dense<0.000000e+00> : vector<64x32xf32>
    %47 = tpu.matmul %40, %46, %cst_19 {dimension_numbers = #tpu.dot_dimension_numbers<[1], [0], [0], [1], [0, 0, 1, 1], [], []>} : vector<64x48xbf16>, vector<48x32xbf16>, vector<64x32xf32> -> vector<64x32xf32>
    %48 = arith.addf %45, %47 : vector<64x32xf32>
    %c0_20 = arith.constant 0 : index
    %c0_21 = arith.constant 0 : index
    %49 = vector.load %arg6[%c0_20, %c0_21] : memref<48x32xbf16, #tpu.memory_space<vmem>>, vector<48x32xbf16>
    %cst_22 = arith.constant dense<0.000000e+00> : vector<64x32xf32>
    %50 = tpu.matmul %43, %49, %cst_22 {dimension_numbers = #tpu.dot_dimension_numbers<[1], [0], [0], [1], [0, 0, 1, 1], [], []>} : vector<64x48xbf16>, vector<48x32xbf16>, vector<64x32xf32> -> vector<64x32xf32>
    %51 = arith.addf %48, %50 : vector<64x32xf32>
    %52 = vector.shape_cast %51 : vector<64x32xf32> to vector<8x8x32xf32>
    %53 = vector.broadcast %34 : vector<8x8x1xf32> to vector<8x8x32xf32>
    %54 = arith.mulf %53, %52 : vector<8x8x32xf32>
    %c0_23 = arith.constant 0 : index
    %c0_24 = arith.constant 0 : index
    %55 = vector.load %arg7[%c0_23, %c0_24] : memref<1x32xf32, #tpu.memory_space<vmem>>, vector<1x32xf32>
    %56 = vector.shape_cast %55 : vector<1x32xf32> to vector<1x1x32xf32>
    %57 = vector.broadcast %56 : vector<1x1x32xf32> to vector<8x8x32xf32>
    %58 = arith.addf %54, %57 : vector<8x8x32xf32>
    %59 = math.tanh %58 : vector<8x8x32xf32>
    %60 = vector.shape_cast %59 : vector<8x8x32xf32> to vector<64x32xf32>
    %61 = arith.truncf %60 : vector<64x32xf32> to vector<64x32xbf16>
    %c0_25 = arith.constant 0 : index
    %c0_26 = arith.constant 0 : index
    %62 = vector.load %arg8[%c0_25, %c0_26] : memref<32x32xbf16, #tpu.memory_space<vmem>>, vector<32x32xbf16>
    %cst_27 = arith.constant dense<0.000000e+00> : vector<64x32xf32>
    %63 = tpu.matmul %61, %62, %cst_27 {dimension_numbers = #tpu.dot_dimension_numbers<[1], [0], [0], [1], [0, 0, 1, 1], [], []>} : vector<64x32xbf16>, vector<32x32xbf16>, vector<64x32xf32> -> vector<64x32xf32>
    %cst_28 = arith.constant dense<0xFF800000> : vector<64xf32>
    %64 = vector.multi_reduction <maximumf>, %63, %cst_28 [1] : vector<64x32xf32> to vector<64xf32>
    %65 = vector.shape_cast %64 : vector<64xf32> to vector<64x1xf32>
    %66 = vector.broadcast %65 : vector<64x1xf32> to vector<64x32xf32>
    %67 = arith.subf %63, %66 : vector<64x32xf32>
    %68 = math.exp %67 : vector<64x32xf32>
    %cst_29 = arith.constant dense<0.000000e+00> : vector<64xf32>
    %69 = vector.multi_reduction <add>, %68, %cst_29 [1] : vector<64x32xf32> to vector<64xf32>
    %70 = vector.shape_cast %69 : vector<64xf32> to vector<64x1xf32>
    %71 = tpu.reciprocal %70 {approx = true} : vector<64x1xf32> -> vector<64x1xf32>
    %72 = vector.broadcast %71 : vector<64x1xf32> to vector<64x32xf32>
    %73 = arith.mulf %68, %72 : vector<64x32xf32>
    %74 = vector.shape_cast %73 : vector<64x32xf32> to vector<8x8x32xf32>
    %75 = vector.extract_strided_slice %74 {offsets = [0, 0, 0], sizes = [8, 8, 1], strides = [1, 1, 1]} : vector<8x8x32xf32> to vector<8x8x1xf32>
    %76 = vector.broadcast %75 : vector<8x8x1xf32> to vector<8x8x32xf32>
    %77 = arith.mulf %76, %59 : vector<8x8x32xf32>
    %cst_30 = arith.constant dense<0.000000e+00> : vector<8x32xf32>
    %78 = vector.multi_reduction <add>, %77, %cst_30 [1] : vector<8x8x32xf32> to vector<8x32xf32>
    %79 = vector.extract_strided_slice %74 {offsets = [0, 0, 1], sizes = [8, 8, 1], strides = [1, 1, 1]} : vector<8x8x32xf32> to vector<8x8x1xf32>
    %80 = vector.broadcast %79 : vector<8x8x1xf32> to vector<8x8x32xf32>
    %81 = arith.mulf %80, %59 : vector<8x8x32xf32>
    %cst_31 = arith.constant dense<0.000000e+00> : vector<8x32xf32>
    %82 = vector.multi_reduction <add>, %81, %cst_31 [1] : vector<8x8x32xf32> to vector<8x32xf32>
    %83 = arith.maximumf %78, %82 : vector<8x32xf32>
    %84 = vector.extract_strided_slice %74 {offsets = [0, 0, 2], sizes = [8, 8, 1], strides = [1, 1, 1]} : vector<8x8x32xf32> to vector<8x8x1xf32>
    %85 = vector.broadcast %84 : vector<8x8x1xf32> to vector<8x8x32xf32>
    %86 = arith.mulf %85, %59 : vector<8x8x32xf32>
    %cst_32 = arith.constant dense<0.000000e+00> : vector<8x32xf32>
    %87 = vector.multi_reduction <add>, %86, %cst_32 [1] : vector<8x8x32xf32> to vector<8x32xf32>
    %88 = arith.maximumf %83, %87 : vector<8x32xf32>
    %89 = vector.extract_strided_slice %74 {offsets = [0, 0, 3], sizes = [8, 8, 1], strides = [1, 1, 1]} : vector<8x8x32xf32> to vector<8x8x1xf32>
    %90 = vector.broadcast %89 : vector<8x8x1xf32> to vector<8x8x32xf32>
    %91 = arith.mulf %90, %59 : vector<8x8x32xf32>
    %cst_33 = arith.constant dense<0.000000e+00> : vector<8x32xf32>
    %92 = vector.multi_reduction <add>, %91, %cst_33 [1] : vector<8x8x32xf32> to vector<8x32xf32>
    %93 = arith.maximumf %88, %92 : vector<8x32xf32>
    %94 = vector.extract_strided_slice %74 {offsets = [0, 0, 4], sizes = [8, 8, 1], strides = [1, 1, 1]} : vector<8x8x32xf32> to vector<8x8x1xf32>
    %95 = vector.broadcast %94 : vector<8x8x1xf32> to vector<8x8x32xf32>
    %96 = arith.mulf %95, %59 : vector<8x8x32xf32>
    %cst_34 = arith.constant dense<0.000000e+00> : vector<8x32xf32>
    %97 = vector.multi_reduction <add>, %96, %cst_34 [1] : vector<8x8x32xf32> to vector<8x32xf32>
    %98 = arith.maximumf %93, %97 : vector<8x32xf32>
    %99 = vector.extract_strided_slice %74 {offsets = [0, 0, 5], sizes = [8, 8, 1], strides = [1, 1, 1]} : vector<8x8x32xf32> to vector<8x8x1xf32>
    %100 = vector.broadcast %99 : vector<8x8x1xf32> to vector<8x8x32xf32>
    %101 = arith.mulf %100, %59 : vector<8x8x32xf32>
    %cst_35 = arith.constant dense<0.000000e+00> : vector<8x32xf32>
    %102 = vector.multi_reduction <add>, %101, %cst_35 [1] : vector<8x8x32xf32> to vector<8x32xf32>
    %103 = arith.maximumf %98, %102 : vector<8x32xf32>
    %104 = vector.extract_strided_slice %74 {offsets = [0, 0, 6], sizes = [8, 8, 1], strides = [1, 1, 1]} : vector<8x8x32xf32> to vector<8x8x1xf32>
    %105 = vector.broadcast %104 : vector<8x8x1xf32> to vector<8x8x32xf32>
    %106 = arith.mulf %105, %59 : vector<8x8x32xf32>
    %cst_36 = arith.constant dense<0.000000e+00> : vector<8x32xf32>
    %107 = vector.multi_reduction <add>, %106, %cst_36 [1] : vector<8x8x32xf32> to vector<8x32xf32>
    %108 = arith.maximumf %103, %107 : vector<8x32xf32>
    %109 = vector.extract_strided_slice %74 {offsets = [0, 0, 7], sizes = [8, 8, 1], strides = [1, 1, 1]} : vector<8x8x32xf32> to vector<8x8x1xf32>
    %110 = vector.broadcast %109 : vector<8x8x1xf32> to vector<8x8x32xf32>
    %111 = arith.mulf %110, %59 : vector<8x8x32xf32>
    %cst_37 = arith.constant dense<0.000000e+00> : vector<8x32xf32>
    %112 = vector.multi_reduction <add>, %111, %cst_37 [1] : vector<8x8x32xf32> to vector<8x32xf32>
    %113 = arith.maximumf %108, %112 : vector<8x32xf32>
    %114 = vector.extract_strided_slice %74 {offsets = [0, 0, 8], sizes = [8, 8, 1], strides = [1, 1, 1]} : vector<8x8x32xf32> to vector<8x8x1xf32>
    %115 = vector.broadcast %114 : vector<8x8x1xf32> to vector<8x8x32xf32>
    %116 = arith.mulf %115, %59 : vector<8x8x32xf32>
    %cst_38 = arith.constant dense<0.000000e+00> : vector<8x32xf32>
    %117 = vector.multi_reduction <add>, %116, %cst_38 [1] : vector<8x8x32xf32> to vector<8x32xf32>
    %118 = arith.maximumf %113, %117 : vector<8x32xf32>
    %119 = vector.extract_strided_slice %74 {offsets = [0, 0, 9], sizes = [8, 8, 1], strides = [1, 1, 1]} : vector<8x8x32xf32> to vector<8x8x1xf32>
    %120 = vector.broadcast %119 : vector<8x8x1xf32> to vector<8x8x32xf32>
    %121 = arith.mulf %120, %59 : vector<8x8x32xf32>
    %cst_39 = arith.constant dense<0.000000e+00> : vector<8x32xf32>
    %122 = vector.multi_reduction <add>, %121, %cst_39 [1] : vector<8x8x32xf32> to vector<8x32xf32>
    %123 = arith.maximumf %118, %122 : vector<8x32xf32>
    %124 = vector.extract_strided_slice %74 {offsets = [0, 0, 10], sizes = [8, 8, 1], strides = [1, 1, 1]} : vector<8x8x32xf32> to vector<8x8x1xf32>
    %125 = vector.broadcast %124 : vector<8x8x1xf32> to vector<8x8x32xf32>
    %126 = arith.mulf %125, %59 : vector<8x8x32xf32>
    %cst_40 = arith.constant dense<0.000000e+00> : vector<8x32xf32>
    %127 = vector.multi_reduction <add>, %126, %cst_40 [1] : vector<8x8x32xf32> to vector<8x32xf32>
    %128 = arith.maximumf %123, %127 : vector<8x32xf32>
    %129 = vector.extract_strided_slice %74 {offsets = [0, 0, 11], sizes = [8, 8, 1], strides = [1, 1, 1]} : vector<8x8x32xf32> to vector<8x8x1xf32>
    %130 = vector.broadcast %129 : vector<8x8x1xf32> to vector<8x8x32xf32>
    %131 = arith.mulf %130, %59 : vector<8x8x32xf32>
    %cst_41 = arith.constant dense<0.000000e+00> : vector<8x32xf32>
    %132 = vector.multi_reduction <add>, %131, %cst_41 [1] : vector<8x8x32xf32> to vector<8x32xf32>
    %133 = arith.maximumf %128, %132 : vector<8x32xf32>
    %134 = vector.extract_strided_slice %74 {offsets = [0, 0, 12], sizes = [8, 8, 1], strides = [1, 1, 1]} : vector<8x8x32xf32> to vector<8x8x1xf32>
    %135 = vector.broadcast %134 : vector<8x8x1xf32> to vector<8x8x32xf32>
    %136 = arith.mulf %135, %59 : vector<8x8x32xf32>
    %cst_42 = arith.constant dense<0.000000e+00> : vector<8x32xf32>
    %137 = vector.multi_reduction <add>, %136, %cst_42 [1] : vector<8x8x32xf32> to vector<8x32xf32>
    %138 = arith.maximumf %133, %137 : vector<8x32xf32>
    %139 = vector.extract_strided_slice %74 {offsets = [0, 0, 13], sizes = [8, 8, 1], strides = [1, 1, 1]} : vector<8x8x32xf32> to vector<8x8x1xf32>
    %140 = vector.broadcast %139 : vector<8x8x1xf32> to vector<8x8x32xf32>
    %141 = arith.mulf %140, %59 : vector<8x8x32xf32>
    %cst_43 = arith.constant dense<0.000000e+00> : vector<8x32xf32>
    %142 = vector.multi_reduction <add>, %141, %cst_43 [1] : vector<8x8x32xf32> to vector<8x32xf32>
    %143 = arith.maximumf %138, %142 : vector<8x32xf32>
    %144 = vector.extract_strided_slice %74 {offsets = [0, 0, 14], sizes = [8, 8, 1], strides = [1, 1, 1]} : vector<8x8x32xf32> to vector<8x8x1xf32>
    %145 = vector.broadcast %144 : vector<8x8x1xf32> to vector<8x8x32xf32>
    %146 = arith.mulf %145, %59 : vector<8x8x32xf32>
    %cst_44 = arith.constant dense<0.000000e+00> : vector<8x32xf32>
    %147 = vector.multi_reduction <add>, %146, %cst_44 [1] : vector<8x8x32xf32> to vector<8x32xf32>
    %148 = arith.maximumf %143, %147 : vector<8x32xf32>
    %149 = vector.extract_strided_slice %74 {offsets = [0, 0, 15], sizes = [8, 8, 1], strides = [1, 1, 1]} : vector<8x8x32xf32> to vector<8x8x1xf32>
    %150 = vector.broadcast %149 : vector<8x8x1xf32> to vector<8x8x32xf32>
    %151 = arith.mulf %150, %59 : vector<8x8x32xf32>
    %cst_45 = arith.constant dense<0.000000e+00> : vector<8x32xf32>
    %152 = vector.multi_reduction <add>, %151, %cst_45 [1] : vector<8x8x32xf32> to vector<8x32xf32>
    %153 = arith.maximumf %148, %152 : vector<8x32xf32>
    %154 = vector.extract_strided_slice %74 {offsets = [0, 0, 16], sizes = [8, 8, 1], strides = [1, 1, 1]} : vector<8x8x32xf32> to vector<8x8x1xf32>
    %155 = vector.broadcast %154 : vector<8x8x1xf32> to vector<8x8x32xf32>
    %156 = arith.mulf %155, %59 : vector<8x8x32xf32>
    %cst_46 = arith.constant dense<0.000000e+00> : vector<8x32xf32>
    %157 = vector.multi_reduction <add>, %156, %cst_46 [1] : vector<8x8x32xf32> to vector<8x32xf32>
    %158 = arith.maximumf %153, %157 : vector<8x32xf32>
    %159 = vector.extract_strided_slice %74 {offsets = [0, 0, 17], sizes = [8, 8, 1], strides = [1, 1, 1]} : vector<8x8x32xf32> to vector<8x8x1xf32>
    %160 = vector.broadcast %159 : vector<8x8x1xf32> to vector<8x8x32xf32>
    %161 = arith.mulf %160, %59 : vector<8x8x32xf32>
    %cst_47 = arith.constant dense<0.000000e+00> : vector<8x32xf32>
    %162 = vector.multi_reduction <add>, %161, %cst_47 [1] : vector<8x8x32xf32> to vector<8x32xf32>
    %163 = arith.maximumf %158, %162 : vector<8x32xf32>
    %164 = vector.extract_strided_slice %74 {offsets = [0, 0, 18], sizes = [8, 8, 1], strides = [1, 1, 1]} : vector<8x8x32xf32> to vector<8x8x1xf32>
    %165 = vector.broadcast %164 : vector<8x8x1xf32> to vector<8x8x32xf32>
    %166 = arith.mulf %165, %59 : vector<8x8x32xf32>
    %cst_48 = arith.constant dense<0.000000e+00> : vector<8x32xf32>
    %167 = vector.multi_reduction <add>, %166, %cst_48 [1] : vector<8x8x32xf32> to vector<8x32xf32>
    %168 = arith.maximumf %163, %167 : vector<8x32xf32>
    %169 = vector.extract_strided_slice %74 {offsets = [0, 0, 19], sizes = [8, 8, 1], strides = [1, 1, 1]} : vector<8x8x32xf32> to vector<8x8x1xf32>
    %170 = vector.broadcast %169 : vector<8x8x1xf32> to vector<8x8x32xf32>
    %171 = arith.mulf %170, %59 : vector<8x8x32xf32>
    %cst_49 = arith.constant dense<0.000000e+00> : vector<8x32xf32>
    %172 = vector.multi_reduction <add>, %171, %cst_49 [1] : vector<8x8x32xf32> to vector<8x32xf32>
    %173 = arith.maximumf %168, %172 : vector<8x32xf32>
    %174 = vector.extract_strided_slice %74 {offsets = [0, 0, 20], sizes = [8, 8, 1], strides = [1, 1, 1]} : vector<8x8x32xf32> to vector<8x8x1xf32>
    %175 = vector.broadcast %174 : vector<8x8x1xf32> to vector<8x8x32xf32>
    %176 = arith.mulf %175, %59 : vector<8x8x32xf32>
    %cst_50 = arith.constant dense<0.000000e+00> : vector<8x32xf32>
    %177 = vector.multi_reduction <add>, %176, %cst_50 [1] : vector<8x8x32xf32> to vector<8x32xf32>
    %178 = arith.maximumf %173, %177 : vector<8x32xf32>
    %179 = vector.extract_strided_slice %74 {offsets = [0, 0, 21], sizes = [8, 8, 1], strides = [1, 1, 1]} : vector<8x8x32xf32> to vector<8x8x1xf32>
    %180 = vector.broadcast %179 : vector<8x8x1xf32> to vector<8x8x32xf32>
    %181 = arith.mulf %180, %59 : vector<8x8x32xf32>
    %cst_51 = arith.constant dense<0.000000e+00> : vector<8x32xf32>
    %182 = vector.multi_reduction <add>, %181, %cst_51 [1] : vector<8x8x32xf32> to vector<8x32xf32>
    %183 = arith.maximumf %178, %182 : vector<8x32xf32>
    %184 = vector.extract_strided_slice %74 {offsets = [0, 0, 22], sizes = [8, 8, 1], strides = [1, 1, 1]} : vector<8x8x32xf32> to vector<8x8x1xf32>
    %185 = vector.broadcast %184 : vector<8x8x1xf32> to vector<8x8x32xf32>
    %186 = arith.mulf %185, %59 : vector<8x8x32xf32>
    %cst_52 = arith.constant dense<0.000000e+00> : vector<8x32xf32>
    %187 = vector.multi_reduction <add>, %186, %cst_52 [1] : vector<8x8x32xf32> to vector<8x32xf32>
    %188 = arith.maximumf %183, %187 : vector<8x32xf32>
    %189 = vector.extract_strided_slice %74 {offsets = [0, 0, 23], sizes = [8, 8, 1], strides = [1, 1, 1]} : vector<8x8x32xf32> to vector<8x8x1xf32>
    %190 = vector.broadcast %189 : vector<8x8x1xf32> to vector<8x8x32xf32>
    %191 = arith.mulf %190, %59 : vector<8x8x32xf32>
    %cst_53 = arith.constant dense<0.000000e+00> : vector<8x32xf32>
    %192 = vector.multi_reduction <add>, %191, %cst_53 [1] : vector<8x8x32xf32> to vector<8x32xf32>
    %193 = arith.maximumf %188, %192 : vector<8x32xf32>
    %194 = vector.extract_strided_slice %74 {offsets = [0, 0, 24], sizes = [8, 8, 1], strides = [1, 1, 1]} : vector<8x8x32xf32> to vector<8x8x1xf32>
    %195 = vector.broadcast %194 : vector<8x8x1xf32> to vector<8x8x32xf32>
    %196 = arith.mulf %195, %59 : vector<8x8x32xf32>
    %cst_54 = arith.constant dense<0.000000e+00> : vector<8x32xf32>
    %197 = vector.multi_reduction <add>, %196, %cst_54 [1] : vector<8x8x32xf32> to vector<8x32xf32>
    %198 = arith.maximumf %193, %197 : vector<8x32xf32>
    %199 = vector.extract_strided_slice %74 {offsets = [0, 0, 25], sizes = [8, 8, 1], strides = [1, 1, 1]} : vector<8x8x32xf32> to vector<8x8x1xf32>
    %200 = vector.broadcast %199 : vector<8x8x1xf32> to vector<8x8x32xf32>
    %201 = arith.mulf %200, %59 : vector<8x8x32xf32>
    %cst_55 = arith.constant dense<0.000000e+00> : vector<8x32xf32>
    %202 = vector.multi_reduction <add>, %201, %cst_55 [1] : vector<8x8x32xf32> to vector<8x32xf32>
    %203 = arith.maximumf %198, %202 : vector<8x32xf32>
    %204 = vector.extract_strided_slice %74 {offsets = [0, 0, 26], sizes = [8, 8, 1], strides = [1, 1, 1]} : vector<8x8x32xf32> to vector<8x8x1xf32>
    %205 = vector.broadcast %204 : vector<8x8x1xf32> to vector<8x8x32xf32>
    %206 = arith.mulf %205, %59 : vector<8x8x32xf32>
    %cst_56 = arith.constant dense<0.000000e+00> : vector<8x32xf32>
    %207 = vector.multi_reduction <add>, %206, %cst_56 [1] : vector<8x8x32xf32> to vector<8x32xf32>
    %208 = arith.maximumf %203, %207 : vector<8x32xf32>
    %209 = vector.extract_strided_slice %74 {offsets = [0, 0, 27], sizes = [8, 8, 1], strides = [1, 1, 1]} : vector<8x8x32xf32> to vector<8x8x1xf32>
    %210 = vector.broadcast %209 : vector<8x8x1xf32> to vector<8x8x32xf32>
    %211 = arith.mulf %210, %59 : vector<8x8x32xf32>
    %cst_57 = arith.constant dense<0.000000e+00> : vector<8x32xf32>
    %212 = vector.multi_reduction <add>, %211, %cst_57 [1] : vector<8x8x32xf32> to vector<8x32xf32>
    %213 = arith.maximumf %208, %212 : vector<8x32xf32>
    %214 = vector.extract_strided_slice %74 {offsets = [0, 0, 28], sizes = [8, 8, 1], strides = [1, 1, 1]} : vector<8x8x32xf32> to vector<8x8x1xf32>
    %215 = vector.broadcast %214 : vector<8x8x1xf32> to vector<8x8x32xf32>
    %216 = arith.mulf %215, %59 : vector<8x8x32xf32>
    %cst_58 = arith.constant dense<0.000000e+00> : vector<8x32xf32>
    %217 = vector.multi_reduction <add>, %216, %cst_58 [1] : vector<8x8x32xf32> to vector<8x32xf32>
    %218 = arith.maximumf %213, %217 : vector<8x32xf32>
    %219 = vector.extract_strided_slice %74 {offsets = [0, 0, 29], sizes = [8, 8, 1], strides = [1, 1, 1]} : vector<8x8x32xf32> to vector<8x8x1xf32>
    %220 = vector.broadcast %219 : vector<8x8x1xf32> to vector<8x8x32xf32>
    %221 = arith.mulf %220, %59 : vector<8x8x32xf32>
    %cst_59 = arith.constant dense<0.000000e+00> : vector<8x32xf32>
    %222 = vector.multi_reduction <add>, %221, %cst_59 [1] : vector<8x8x32xf32> to vector<8x32xf32>
    %223 = arith.maximumf %218, %222 : vector<8x32xf32>
    %224 = vector.extract_strided_slice %74 {offsets = [0, 0, 30], sizes = [8, 8, 1], strides = [1, 1, 1]} : vector<8x8x32xf32> to vector<8x8x1xf32>
    %225 = vector.broadcast %224 : vector<8x8x1xf32> to vector<8x8x32xf32>
    %226 = arith.mulf %225, %59 : vector<8x8x32xf32>
    %cst_60 = arith.constant dense<0.000000e+00> : vector<8x32xf32>
    %227 = vector.multi_reduction <add>, %226, %cst_60 [1] : vector<8x8x32xf32> to vector<8x32xf32>
    %228 = arith.maximumf %223, %227 : vector<8x32xf32>
    %229 = vector.extract_strided_slice %74 {offsets = [0, 0, 31], sizes = [8, 8, 1], strides = [1, 1, 1]} : vector<8x8x32xf32> to vector<8x8x1xf32>
    %230 = vector.broadcast %229 : vector<8x8x1xf32> to vector<8x8x32xf32>
    %231 = arith.mulf %230, %59 : vector<8x8x32xf32>
    %cst_61 = arith.constant dense<0.000000e+00> : vector<8x32xf32>
    %232 = vector.multi_reduction <add>, %231, %cst_61 [1] : vector<8x8x32xf32> to vector<8x32xf32>
    %233 = arith.maximumf %228, %232 : vector<8x32xf32>
    %234 = arith.mulf %233, %233 : vector<8x32xf32>
    %cst_62 = arith.constant dense<0.000000e+00> : vector<8xf32>
    %235 = vector.multi_reduction <add>, %234, %cst_62 [1] : vector<8x32xf32> to vector<8xf32>
    %236 = vector.shape_cast %235 : vector<8xf32> to vector<8x1xf32>
    %237 = math.sqrt %236 : vector<8x1xf32>
    %cst_63 = arith.constant 9.99999996E-13 : f32
    %238 = vector.broadcast %cst_63 : f32 to vector<8x1xf32>
    %239 = arith.maximumf %237, %238 : vector<8x1xf32>
    %240 = tpu.reciprocal %239 {approx = true} : vector<8x1xf32> -> vector<8x1xf32>
    %241 = vector.broadcast %240 : vector<8x1xf32> to vector<8x32xf32>
    %242 = arith.mulf %233, %241 : vector<8x32xf32>
    %c0_64 = arith.constant 0 : index
    %c0_65 = arith.constant 0 : index
    %243 = vector.load %arg9[%c0_64, %c0_65] : memref<8x32xf32, #tpu.memory_space<vmem>>, vector<8x32xf32>
    %cst_66 = arith.constant dense<0.000000e+00> : vector<8x8xf32>
    %244 = tpu.matmul %242, %243, %cst_66 {dimension_numbers = #tpu.dot_dimension_numbers<[1], [1], [0], [0], [0, 0, 1, 0], [], []>} : vector<8x32xf32>, vector<8x32xf32>, vector<8x8xf32> -> vector<8x8xf32>
    %245 = arith.mulf %242, %242 : vector<8x32xf32>
    %cst_67 = arith.constant dense<0.000000e+00> : vector<8xf32>
    %246 = vector.multi_reduction <add>, %245, %cst_67 [1] : vector<8x32xf32> to vector<8xf32>
    %247 = vector.shape_cast %246 : vector<8xf32> to vector<8x1xf32>
    %c0_68 = arith.constant 0 : index
    %c0_69 = arith.constant 0 : index
    %248 = vector.load %arg10[%c0_68, %c0_69] : memref<1x8xf32, #tpu.memory_space<vmem>>, vector<1x8xf32>
    %249 = vector.broadcast %247 : vector<8x1xf32> to vector<8x8xf32>
    %250 = vector.broadcast %248 : vector<1x8xf32> to vector<8x8xf32>
    %251 = arith.addf %249, %250 : vector<8x8xf32>
    %cst_70 = arith.constant 2.000000e+00 : f32
    %252 = vector.broadcast %cst_70 : f32 to vector<8x8xf32>
    %253 = arith.mulf %252, %244 : vector<8x8xf32>
    %254 = arith.subf %251, %253 : vector<8x8xf32>
    %cst_71 = arith.constant 0.000000e+00 : f32
    %255 = vector.broadcast %cst_71 : f32 to vector<8x8xf32>
    %256 = arith.maximumf %254, %255 : vector<8x8xf32>
    %257 = math.sqrt %256 : vector<8x8xf32>
    %c0_72 = arith.constant 0 : index
    %c0_73 = arith.constant 0 : index
    %258 = vector.load %arg11[%c0_72, %c0_73] : memref<8x8xf32, #tpu.memory_space<vmem>>, vector<8x8xf32>
    tpu.vector_store %arg11[%c0_72, %c0_73], %257 {strides = array<i32>} : memref<8x8xf32, #tpu.memory_space<vmem>>, vector<8x8xf32>,
    return
  }
  func.func @transform_0(%arg0: i32) -> (i32, i32, i32) {
    %c0_i32 = arith.constant 0 : i32
    %c0_i32_0 = arith.constant 0 : i32
    %c0_i32_1 = arith.constant 0 : i32
    return %arg0, %c0_i32, %c0_i32_0 : i32, i32, i32
  }
  func.func @transform_1(%arg0: i32) -> (i32, i32, i32) {
    %c0_i32 = arith.constant 0 : i32
    %c0_i32_0 = arith.constant 0 : i32
    %c0_i32_1 = arith.constant 0 : i32
    return %arg0, %c0_i32, %c0_i32_0 : i32, i32, i32
  }
  func.func @transform_2(%arg0: i32) -> (i32, i32, i32) {
    %c0_i32 = arith.constant 0 : i32
    %c0_i32_0 = arith.constant 0 : i32
    %c0_i32_1 = arith.constant 0 : i32
    return %arg0, %c0_i32, %c0_i32_0 : i32, i32, i32
  }
  func.func @transform_3(%arg0: i32) -> (i32, i32) {
    %c0_i32 = arith.constant 0 : i32
    %c0_i32_0 = arith.constant 0 : i32
    %c0_i32_1 = arith.constant 0 : i32
    return %c0_i32, %c0_i32_0 : i32, i32
  }
  func.func @transform_4(%arg0: i32) -> (i32, i32) {
    %c0_i32 = arith.constant 0 : i32
    %c0_i32_0 = arith.constant 0 : i32
    %c0_i32_1 = arith.constant 0 : i32
    return %c0_i32, %c0_i32_0 : i32, i32
  }
  func.func @transform_5(%arg0: i32) -> (i32, i32) {
    %c0_i32 = arith.constant 0 : i32
    %c0_i32_0 = arith.constant 0 : i32
    %c0_i32_1 = arith.constant 0 : i32
    return %c0_i32, %c0_i32_0 : i32, i32
  }
  func.func @transform_6(%arg0: i32) -> (i32, i32) {
    %c0_i32 = arith.constant 0 : i32
    %c0_i32_0 = arith.constant 0 : i32
    %c0_i32_1 = arith.constant 0 : i32
    return %c0_i32, %c0_i32_0 : i32, i32
  }
  func.func @transform_7(%arg0: i32) -> (i32, i32) {
    %c0_i32 = arith.constant 0 : i32
    %c0_i32_0 = arith.constant 0 : i32
    %c0_i32_1 = arith.constant 0 : i32
    return %c0_i32, %c0_i32_0 : i32, i32
  }
  func.func @transform_8(%arg0: i32) -> (i32, i32) {
    %c0_i32 = arith.constant 0 : i32
    %c0_i32_0 = arith.constant 0 : i32
    %c0_i32_1 = arith.constant 0 : i32
    return %c0_i32, %c0_i32_0 : i32, i32
  }
  func.func @transform_9(%arg0: i32) -> (i32, i32) {
    %c0_i32 = arith.constant 0 : i32
    %c0_i32_0 = arith.constant 0 : i32
    %c0_i32_1 = arith.constant 0 : i32
    return %c0_i32, %c0_i32_0 : i32, i32
  }
  func.func @transform_10(%arg0: i32) -> (i32, i32) {
    %c0_i32 = arith.constant 0 : i32
    %c0_i32_0 = arith.constant 0 : i32
    return %arg0, %c0_i32 : i32, i32
  }
}

</mosaic_0001>

<bundles_post_ra>
// kernel: tpu_custom_call.1
= control target key start
LH: loop header
LB: loop body
LE: loop exit
PB: predicated region body
PF: predicated region fallthrough
CT: control target
= control target key end

     0   :  { %vm101_vm0 = vcmask 392193   ;;  %vm105_vm1 = vcmask 385024   ;;  %s8109_s0 = inlined_call_operand.vmem [shape: f32[8,10,48], index: 0, kind: input, shape index: {}]   ;;  %s8110_s1 = inlined_call_operand.vmem [shape: f32[8,1,48], index: 1, kind: input, shape index: {}]   ;;  %s8111_s2 = inlined_call_operand.vmem [shape: f32[8,1,48], index: 2, kind: input, shape index: {}]   ;;  %s8112_s3 = inlined_call_operand.vmem [shape: bf16[48,32], index: 3, kind: input, shape index: {}]   ;;  %s8113_s4 = inlined_call_operand.vmem [shape: bf16[48,32], index: 4, kind: input, shape index: {}]   ;;  %s8114_s5 = inlined_call_operand.vmem [shape: bf16[48,32], index: 5, kind: input, shape index: {}]   ;;  %s8115_s6 = inlined_call_operand.vmem [shape: f32[1,32], index: 6, kind: input, shape index: {}]   ;;  %s8116_s7 = inlined_call_operand.vmem [shape: bf16[32,32], index: 7, kind: input, shape index: {}]   ;;  %s8117_s8 = inlined_call_operand.vmem [shape: f32[8,32], index: 8, kind: input, shape index: {}]   ;;  %s8118_s9 = inlined_call_operand.vmem [shape: f32[1,8], index: 9, kind: input, shape index: {}]   ;;  %s8119_s10 = inlined_call_operand.hbm [shape: f32[8,8], index: 10, kind: output, shape index: {}]  }
   0x1   :  { %v5472_v0 = vld [vmem:[%s8109_s0 + $0x20] sm:$0xff]  ;;  %v5480_v2 = vld [vmem:[%s8109_s0 + $0x10] sm:$0xff]  ;;  %v5498_v8 = vld [vmem:[%s8109_s0 + $0x28] sm:$0x3] }
   0x2   :  { %v5171_v1 = vld [vmem:[%s8110_s1 + $0x2] ss:$0 sm:$0xff]  ;;  %v5172_v3 = vld [vmem:[%s8110_s1 + $0x1] ss:$0 sm:$0xff]  ;;  %v5173_v6 = vld [vmem:[%s8110_s1] ss:$0 sm:$0xff] }
   0x3   :  { %v89_v4 = vmul.f32 %v5171_v1, %v5472_v0  ;;  %v5489_v5 = vld [vmem:[%s8109_s0] sm:$0xff]  ;;  %v87_v7 = vmul.f32 %v5172_v3, %v5480_v2  ;;  %v5505_v11 = vld [vmem:[%s8109_s0 + $0x18] sm:$0x3]  ;;  %v5511_v13 = vld [vmem:[%s8109_s0 + $0x8] sm:$0x3]  ;;  %v90_v15 = vmul.f32 %v5171_v1, %v5498_v8 }
   0x4   :  { %v85_v10 = vmul.f32 %v5173_v6, %v5489_v5  ;;  %v88_v16 = vmul.f32 %v5172_v3, %v5505_v11  ;;  %v86_v17 = vmul.f32 %v5173_v6, %v5511_v13  ;;  %v5174_v19 = vld [vmem:[%s8110_s1 + $0x4] ss:$0 sm:$0xff]  ;;  %v5175_v22 = vld [vmem:[%s8110_s1 + $0x3] ss:$0 sm:$0xff]  ;;  %v5534_v24 = vld [vmem:[%s8109_s0 + $0x38] sm:$0x3] }
   0x5   :  { %v115_v9 = vsel %vm101_vm0, %v89_v4, 0.0  ;;  %v109_v12 = vsel %vm101_vm0, %v87_v7, 0.0  ;;  %v118_v18 = vsel %vm105_vm1, %v90_v15, 0.0  ;;  %v5525_v21 = vld [vmem:[%s8109_s0 + $0x40] sm:$0xff]  ;;  %v5539_v25 = vld [vmem:[%s8109_s0 + $0x30] sm:$0xff]  ;;  %v92_v27 = vmul.f32 %v5175_v22, %v5534_v24 }
   0x6   :  { %116 = vadd.xlane.f32.xlu2 %v115_v9  ;;  %110 = vadd.xlane.f32.xlu1 %v109_v12  ;;  %v102_v14 = vsel %vm101_vm0, %v85_v10, 0.0  ;;  %v112_v20 = vsel %vm105_vm1, %v88_v16, 0.0  ;;  %v106_v23 = vsel %vm105_vm1, %v86_v17, 0.0  ;;  %v93_v26 = vmul.f32 %v5174_v19, %v5525_v21  ;;  %v4923_v28 = vld [vmem:[%s8114_s5 + $0x10] sm:$0xff] }
   0x7   :  { %103 = vadd.xlane.f32.xlu0 %v102_v14  ;;  %v91_v29 = vmul.f32 %v5175_v22, %v5539_v25  ;;  %1027 = vmatpush.bf16.msra.mxu2 %v4923_v28 }
   0xe   :  { %119 = vadd.xlane.f32.xlu2 %v118_v18  ;;  %113 = vadd.xlane.f32.xlu1 %v112_v20 }
   0xf   :  { %107 = vadd.xlane.f32.xlu0 %v106_v23 }
  0x10   :  { %15 = vsyncpa [#allocation3], 0  ;;  %v127_v30 = vsel %vm101_vm0, %v93_v26, 0.0  ;;  %v5176_v31 = vld [vmem:[%s8110_s1 + $0x5] ss:$0 sm:$0xff]  ;;  %v124_v32 = vsel %vm105_vm1, %v92_v27, 0.0  ;;  %v762_v16 = vpack.c.bf16 %v5480_v2, %v5489_v5 }
  0x11   :  { %v5555_v33 = vld [vmem:[%s8109_s0 + $0x58] sm:$0x3]  ;;  %v121_v34 = vsel %vm101_vm0, %v91_v29, 0.0  ;;  %v5561_v35 = vld [vmem:[%s8109_s0 + $0x50] sm:$0xff]  ;;  %v5566_v36 = vld [vmem:[%s8109_s0 + $0x48] sm:$0x3] }
  0x12   :  { %v96_v37 = vmul.f32 %v5176_v31, %v5555_v33  ;;  %v95_v38 = vmul.f32 %v5176_v31, %v5561_v35  ;;  %v4920_v39 = vld [vmem:[%s8113_s4 + $0x10] sm:$0xff]  ;;  %v4922_v41 = vld [vmem:[%s8114_s5 + $0x8] sm:$0xff]  ;;  %v94_v42 = vmul.f32 %v5174_v19, %v5566_v36  ;;  %v5177_v43 = vld [vmem:[%s8110_s1 + $0x7] ss:$0 sm:$0xff]  ;;  %v819_v54 = vrot.slane %v5489_v5, 2  ;;  %s5413_s14 = smov [#allocation2]  }
  0x13   :  { %v4917_v40 = vld [vmem:[%s8112_s3 + $0x10] sm:$0xff]  ;;  %903 = vmatpush.bf16.msra.mxu0 %v4920_v39  ;;  %v4919_v44 = vld [vmem:[%s8113_s4 + $0x8] sm:$0xff]  ;;  %v5178_v47 = vld [vmem:[%s8110_s1 + $0x6] ss:$0 sm:$0xff]  ;;  %1028 = vmatpush.bf16.msra.mxu2 %v4922_v41  ;;  %v820_v55 = vrot.slane %v5511_v13, 2  ;;  %vm818_vm2 = vcmask 1045504  }
  0x14   :  { %962 = vmatpush.bf16.msra.mxu1 %v4917_v40  ;;  %v136_v45 = vsel %vm105_vm1, %v96_v37, 0.0  ;;  %v5590_v46 = vld [vmem:[%s8109_s0 + $0x70] sm:$0xff]  ;;  %v4916_v48 = vld [vmem:[%s8112_s3 + $0x8] sm:$0xff]  ;;  %v133_v49 = vsel %vm101_vm0, %v95_v38, 0.0  ;;  %v5607_v51 = vld [vmem:[%s8109_s0 + $0x60] sm:$0xff]  ;;  %v130_v53 = vsel %vm105_vm1, %v94_v42, 0.0 }
  0x15   :  { %v5602_v50 = vld [vmem:[%s8109_s0 + $0x68] sm:$0x3]  ;;  %v4921_v52 = vld [vmem:[%s8114_s5] sm:$0xff]  ;;  %v99_v56 = vmul.f32 %v5177_v43, %v5590_v46  ;;  %v822_v57 = vrot.slane %v5480_v2, 2  ;;  %v823_v58 = vrot.slane %v5505_v11, 2  ;;  %v97_v60 = vmul.f32 %v5178_v47, %v5607_v51  ;;  %s4842_s15 = sshll.u32 %s5413_s14, 4  ;;  %s4843_s15 = int_to_ptr.vmem [resolvable:$true] %s4842_s15 }
  0x16   :  { %128 = vadd.xlane.f32.xlu2 %v127_v30  ;;  %125 = vadd.xlane.f32.xlu1 %v124_v32  ;;  %v98_v59 = vmul.f32 %v5178_v47, %v5602_v50  ;;  %v821_v61 = vsel %vm818_vm2, %v819_v54, %v820_v55  ;;  %vm885_vm3 = vcmask 392192   ;;  %v4918_v63 = vld [vmem:[%s8113_s4] sm:$0xff]  ;;  %vm385_vm4 = vcmask 1046528   ;;  %v5646_v20 = vld [vmem:[%s8109_s0 + $0x78] sm:$0x3]  ;;  %s4844_s4 = sshll.u32 %s8119_s10, 4  ;;  %s4845_s4 = int_to_ptr.hbm [resolvable:$true] %s4844_s4 }
  0x17   :  { %122 = vadd.xlane.f32.xlu0 %v121_v34  ;;  %904 = vmatpush.bf16.msra.mxu0 %v4919_v44  ;;  %v824_v62 = vsel %vm818_vm2, %v822_v57, %v823_v58  ;;  %v4915_v1 = vld [vmem:[%s8112_s3] sm:$0xff]  ;;  %v782_v3 = vrot.slane %v5489_v5, 1  ;;  %v783_v6 = vrot.slane %v5511_v13, 1  ;;  %v785_v7 = vrot.slane %v5480_v2, 1 }
  0x18   :  { %963 = vmatpush.bf16.msra.mxu1 %v4916_v48  ;;  %1029 = vmatpush.bf16.msra.mxu2 %v4921_v52  ;;  %v851_v4 = vpack.c.bf16 %v824_v62, %v821_v61  ;;  %v786_v9 = vrot.slane %v5505_v11, 1  ;;  %v145_v10 = vsel %vm101_vm0, %v99_v56, 0.0  ;;  %v5179_v12 = vld [vmem:[%s8111_s2] ss:$0 sm:$0xff]  ;;  %v142_v17 = vsel %vm105_vm1, %v98_v59, 0.0 }
  0x19   :  { %v784_v14 = vsel %vm385_vm4, %v782_v3, %v783_v6  ;;  %v139_v19 = vsel %vm101_vm0, %v97_v60, 0.0  ;;  %v184_v22 = vmul.f32 %v5179_v12, %v5511_v13  ;;  %v183_v23 = vmul.f32 %v5179_v12, %v5489_v5  ;;  %v5180_v28 = vld [vmem:[%s8111_s2 + $0x2] ss:$0 sm:$0xff]  ;;  %v5181_v29 = vld [vmem:[%s8111_s2 + $0x1] ss:$0 sm:$0xff] }
  0x1a   :  { %v787_v15 = vsel %vm385_vm4, %v785_v7, %v786_v9  ;;  %v100_v26 = vmul.f32 %v5177_v43, %v5646_v20  ;;  %v825_v31 = vrot.slane %v5472_v0, 2  ;;  %v826_v5 = vrot.slane %v5498_v8, 2  ;;  %v5183_v62 = vld [vmem:[%s8111_s2 + $0x5] ss:$0 sm:$0xff] }
  0x1b   :  { %905 = vmatpush.bf16.msra.mxu0 %v4918_v63  ;;  %4897 = vmatmul.msk.bf16.vlgmr.msra.gmra.mxu2 %vm885_vm3, %v851_v4  ;;  %v814_v18 = vpack.c.bf16 %v787_v15, %v784_v14  ;;  %v202_v27 = vsel %vm105_vm1, %v184_v22, 0.0  ;;  %v199_v30 = vsel %vm101_vm0, %v183_v23, 0.0  ;;  %v828_v32 = vrot.slane %v5539_v25, 2 }
  0x1c   :  { %964 = vmatpush.bf16.msra.mxu1 %v4915_v1  ;;  %v148_v13 = vsel %vm105_vm1, %v100_v26, 0.0  ;;  %v829_v34 = vrot.slane %v5534_v24, 2  ;;  %v187_v37 = vmul.f32 %v5180_v28, %v5472_v0  ;;  %v186_v38 = vmul.f32 %v5181_v29, %v5505_v11  ;;  %v5182_v11 = vld [vmem:[%s8111_s2 + $0x3] ss:$0 sm:$0xff] }
  0x1d   :  { %v827_v39 = vsel %vm818_vm2, %v825_v31, %v826_v5  ;;  %v788_v41 = vrot.slane %v5472_v0, 1  ;;  %v789_v42 = vrot.slane %v5498_v8, 1  ;;  %v791_v43 = vrot.slane %v5539_v25, 1 }
  0x1e   :  { %137 = vadd.xlane.f32.xlu2 %v136_v45  ;;  %134 = vadd.xlane.f32.xlu1 %v133_v49  ;;  %v830_v40 = vsel %vm818_vm2, %v828_v32, %v829_v34  ;;  %v185_v44 = vmul.f32 %v5181_v29, %v5480_v2  ;;  %v792_v47 = vrot.slane %v5534_v24, 1  ;;  %v211_v49 = vsel %vm101_vm0, %v187_v37, 0.0 }
  0x1f   :  { %131 = vadd.xlane.f32.xlu0 %v130_v53  ;;  %4865 = vmatmul.msk.bf16.vlgmr.msra.gmra.mxu0 %vm885_vm3, %v814_v18  ;;  %v852_v45 = vpack.c.bf16 %v830_v40, %v827_v39  ;;  %v790_v48 = vsel %vm385_vm4, %v788_v41, %v789_v42  ;;  %v763_v53 = vpack.c.bf16 %v5539_v25, %v5472_v0  ;;  %v208_v2 = vsel %vm105_vm1, %v186_v38, 0.0  ;;  %v5185_v18 = vld [vmem:[%s8111_s2 + $0x6] ss:$0 sm:$0xff]  ;;  %v5186_v39 = vld [vmem:[%s8111_s2 + $0x7] ss:$0 sm:$0xff] }
  0x20   :  { %4881 = vmatmul.msk.bf16.vlgmr.msra.gmra.mxu1 %vm885_vm3, %v762_v16  ;;  %v793_v52 = vsel %vm385_vm4, %v791_v43, %v792_v47  ;;  %v205_v55 = vsel %vm101_vm0, %v185_v44, 0.0  ;;  %v190_v56 = vmul.f32 %v5182_v11, %v5534_v24  ;;  %v189_v57 = vmul.f32 %v5182_v11, %v5539_v25 }
  0x21   :  { %v815_v54 = vpack.c.bf16 %v793_v52, %v790_v48  ;;  %v831_v58 = vrot.slane %v5525_v21, 2  ;;  %v832_v0 = vrot.slane %v5566_v36, 2  ;;  %v834_v59 = vrot.slane %v5561_v35, 2 }
  0x22   :  { %v835_v60 = vrot.slane %v5555_v33, 2  ;;  %v188_v61 = vmul.f32 %v5180_v28, %v5498_v8  ;;  %v220_v24 = vsel %vm105_vm1, %v190_v56, 0.0  ;;  %v794_v25 = vrot.slane %v5525_v21, 1  ;;  %v5184_v8 = vld [vmem:[%s8111_s2 + $0x4] ss:$0 sm:$0xff] }
  0x23   :  { %v795_v63 = vrot.slane %v5566_v36, 1  ;;  %v797_v1 = vrot.slane %v5561_v35, 1  ;;  %v798_v3 = vrot.slane %v5555_v33, 1  ;;  %v217_v4 = vsel %vm101_vm0, %v189_v57, 0.0 }
  0x24   :  { %v833_v6 = vsel %vm818_vm2, %v831_v58, %v832_v0  ;;  %v836_v7 = vsel %vm818_vm2, %v834_v59, %v835_v60  ;;  %v214_v9 = vsel %vm105_vm1, %v188_v61, 0.0  ;;  %v192_v16 = vmul.f32 %v5184_v8, %v5566_v36 }
  0x25   :  { %v853_v12 = vpack.c.bf16 %v836_v7, %v833_v6  ;;  %v796_v14 = vsel %vm385_vm4, %v794_v25, %v795_v63  ;;  %v799_v15 = vsel %vm385_vm4, %v797_v1, %v798_v3  ;;  %v764_v23 = vpack.c.bf16 %v5561_v35, %v5525_v21 }
  0x26   :  { %146 = vadd.xlane.f32.xlu2 %v145_v10  ;;  %143 = vadd.xlane.f32.xlu1 %v142_v17  ;;  %v193_v10 = vmul.f32 %v5183_v62, %v5561_v35  ;;  %v191_v17 = vmul.f32 %v5184_v8, %v5525_v21  ;;  %v226_v26 = vsel %vm105_vm1, %v192_v16, 0.0  ;;  %v196_v36 = vmul.f32 %v5185_v18, %v5602_v50 }
  0x27   :  { %140 = vadd.xlane.f32.xlu0 %v139_v19  ;;  %v816_v19 = vpack.c.bf16 %v799_v15, %v796_v14  ;;  %v195_v28 = vmul.f32 %v5185_v18, %v5607_v51  ;;  %v837_v29 = vrot.slane %v5607_v51, 2  ;;  %v840_v21 = vrot.slane %v5590_v46, 2 }
  0x28   :  { %v229_v22 = vsel %vm101_vm0, %v193_v10, 0.0  ;;  %v841_v35 = vrot.slane %v5646_v20, 2  ;;  %v238_v31 = vsel %vm105_vm1, %v196_v36, 0.0  ;;  %v800_v5 = vrot.slane %v5607_v51, 1 }
  0x29   :  { %v801_v32 = vrot.slane %v5602_v50, 1  ;;  %v803_v34 = vrot.slane %v5590_v46, 1  ;;  %v804_v37 = vrot.slane %v5646_v20, 1  ;;  %v235_v38 = vsel %vm101_vm0, %v195_v28, 0.0 }
  0x2a   :  { %v198_v44 = vmul.f32 %v5186_v39, %v5646_v20  ;;  %v765_v11 = vpack.c.bf16 %v5590_v46, %v5607_v51  ;;  %vm247_vm5 = vcmask 1047553   ;;  %vm249_vm6 = vcmask 1040384  }
  0x2b   :  { %4898 = vmatmul.msk.bf16.gmra.mxu2 %vm885_vm3, %v852_v45  ;;  %v805_v43 = vsel %vm385_vm4, %v803_v34, %v804_v37  ;;  %v197_v45 = vmul.f32 %v5186_v39, %v5590_v46  ;;  %vm1203_vm7 = vcmask 261120   ;;  %vm4677_vm8 = vcmask 1041409  }
  0x2c   :  { %v244_v48 = vsel %vm105_vm1, %v198_v44, 0.0  ;;  %vm4679_vm9 = vcmask 1042434   ;;  %vm4681_vm10 = vcmask 1043459   ;;  %vm4683_vm11 = vcmask 1044484  }
  0x2d   :  { %vm4685_vm12 = vcmask 1045509   ;;  %vm4687_vm13 = vcmask 1046534   ;;  %vm4689_vm14 = vcmask 1047559  }
  0x2e   :  { %203 = vadd.xlane.f32.xlu2 %v202_v27  ;;  %200 = vadd.xlane.f32.xlu1 %v199_v30  ;;  %v223_v27 = vsel %vm101_vm0, %v191_v17, 0.0  ;;  %v838_v30 = vrot.slane %v5602_v50, 2  ;;  %v802_v50 = vsel %vm385_vm4, %v800_v5, %v801_v32 }
  0x2f   :  { %149 = vadd.xlane.f32.xlu0 %v148_v13  ;;  %4866 = vmatmul.msk.bf16.gmra.mxu0 %vm885_vm3, %v815_v54  ;;  %v194_v13 = vmul.f32 %v5183_v62, %v5555_v33  ;;  %v842_v33 = vsel %vm818_vm2, %v840_v21, %v841_v35  ;;  %v817_v47 = vpack.c.bf16 %v805_v43, %v802_v50 }
  0x30   :  { %4882 = vmatmul.msk.bf16.gmra.mxu1 %vm885_vm3, %v763_v53  ;;  %v839_v40 = vsel %vm818_vm2, %v837_v29, %v838_v30  ;;  %vm4835_vm2 = vcmask 64512  }
  0x31   :  { %v232_v41 = vsel %vm105_vm1, %v194_v13, 0.0  ;;  %v854_v42 = vpack.c.bf16 %v842_v33, %v839_v40 }
  0x36   :  { %212 = vadd.xlane.f32.xlu2 %v211_v49  ;;  %209 = vadd.xlane.f32.xlu1 %v208_v2  ;;  %v241_v49 = vsel %vm101_vm0, %v197_v45, 0.0 }
  0x37   :  { %206 = vadd.xlane.f32.xlu0 %v205_v55 }
  0x3b   :  { %4899 = vmatmul.msk.bf16.gmra.mxu2 %vm885_vm3, %v853_v12 }
  0x3e   :  { %221 = vadd.xlane.f32.xlu2 %v220_v24  ;;  %218 = vadd.xlane.f32.xlu1 %v217_v4 }
  0x3f   :  { %215 = vadd.xlane.f32.xlu0 %v214_v9  ;;  %4867 = vmatmul.msk.bf16.gmra.mxu0 %vm885_vm3, %v816_v19 }
  0x40   :  { %4883 = vmatmul.msk.bf16.gmra.mxu1 %vm885_vm3, %v764_v23 }
  0x46   :  { %230 = vadd.xlane.f32.xlu2 %v229_v22  ;;  %227 = vadd.xlane.f32.xlu1 %v226_v26 }
  0x47   :  { %224 = vadd.xlane.f32.xlu0 %v223_v27 }
  0x4b   :  { %4900 = vmatmul.msk.bf16.gmra.mxu2 %vm885_vm3, %v854_v42 }
  0x4e   :  { %239 = vadd.xlane.f32.xlu2 %v238_v31  ;;  %236 = vadd.xlane.f32.xlu1 %v235_v38 }
  0x4f   :  { %233 = vadd.xlane.f32.xlu0 %v232_v41  ;;  %4868 = vmatmul.msk.bf16.gmra.mxu0 %vm885_vm3, %v817_v47 }
  0x50   :  { %4884 = vmatmul.msk.bf16.gmra.mxu1 %vm885_vm3, %v765_v11 }
  0x56   :  { %245 = vadd.xlane.f32.xlu1 %v244_v48 }
  0x57   :  { %242 = vadd.xlane.f32.xlu0 %v241_v49 }
  0x79   :  { %v117_v52 = vpop.xlane.xlu2 %116  ;;  %v111_v20 = vpop.xlane.xlu1 %110 }
  0x7a   :  { %v104_v53 = vpop.xlane.xlu0 %103  ;;  %v267_v2 = vsel %vm247_vm5, %v117_v52, -inf  ;;  %v258_v55 = vsel %vm247_vm5, %v111_v20, -inf }
  0x7b   :  { %v248_v0 = vsel %vm247_vm5, %v104_v53, -inf }
  0x81   :  { %v120_v54 = vpop.xlane.xlu2 %119  ;;  %v114_v51 = vpop.xlane.xlu1 %113 }
  0x82   :  { %v268_v46 = vsel %vm249_vm6, %v120_v54, -inf  ;;  %v259_v57 = vsel %vm249_vm6, %v114_v51, -inf  ;;  %v108_v58 = vpop.xlane.xlu0 %107 }
  0x83   :  { %v269_v56 = vmax.f32 %v267_v2, %v268_v46  ;;  %v260_v59 = vmax.f32 %v258_v55, %v259_v57  ;;  %v250_v60 = vsel %vm249_vm6, %v108_v58, -inf }
  0x84   :  { %v251_v24 = vmax.f32 %v248_v0, %v250_v60 }
  0x85   :  { %v270_v61 = vrot.slane %v269_v56, 4  ;;  %v261_v62 = vrot.slane %v260_v59, 4 }
  0x86   :  { %v252_v63 = vrot.slane %v251_v24, 4 }
  0x87   :  { %v271_v25 = vmax.f32 %v269_v56, %v270_v61  ;;  %v262_v1 = vmax.f32 %v260_v59, %v261_v62 }
  0x88   :  { %v253_v4 = vmax.f32 %v251_v24, %v252_v63 }
  0x89   :  { %v272_v3 = vrot.slane %v271_v25, 2  ;;  %v5762_v8 = vpop.xlane.xlu2 %128  ;;  %v263_v6 = vrot.slane %v262_v1, 2  ;;  %v5764_v7 = vpop.xlane.xlu1 %125 }
  0x8a   :  { %v254_v10 = vrot.slane %v253_v4, 2  ;;  %v277_v12 = vsel %vm249_vm6, %v5764_v7, -inf  ;;  %v5768_v14 = vpop.xlane.xlu0 %122  ;;  %v285_v5 = vsel %vm247_vm5, %v5762_v8, -inf }
  0x8b   :  { %v273_v9 = vmax.f32 %v271_v25, %v272_v3  ;;  %v264_v15 = vmax.f32 %v262_v1, %v263_v6  ;;  %v276_v16 = vsel %vm247_vm5, %v5768_v14, -inf }
  0x8c   :  { %v255_v18 = vmax.f32 %v253_v4, %v254_v10  ;;  %v278_v19 = vmax.f32 %v276_v16, %v277_v12 }
  0x8d   :  { %v274_v17 = vrot.slane %v273_v9, 1  ;;  %v265_v22 = vrot.slane %v264_v15, 1 }
  0x8e   :  { %v256_v26 = vrot.slane %v255_v18, 1  ;;  %v279_v27 = vrot.slane %v278_v19, 4 }
  0x8f   :  { %v275_v23 = vmax.f32 %v273_v9, %v274_v17  ;;  %v266_v36 = vmax.f32 %v264_v15, %v265_v22 }
  0x90   :  { %v257_v30 = vmax.f32 %v255_v18, %v256_v26  ;;  %v280_v21 = vmax.f32 %v278_v19, %v279_v27 }
  0x91   :  { %v325_v28 = vsub.f32 %v117_v52, %v275_v23  ;;  %v326_v29 = vsub.f32 %v120_v54, %v275_v23  ;;  %v5772_v35 = vpop.xlane.xlu2 %137  ;;  %v323_v13 = vsub.f32 %v111_v20, %v266_v36  ;;  %v324_v31 = vsub.f32 %v114_v51, %v266_v36  ;;  %v5778_v34 = vpop.xlane.xlu1 %134 }
  0x92   :  { %v295_v32 = vsel %vm249_vm6, %v5772_v35, -inf  ;;  %v321_v39 = vsub.f32 %v104_v53, %v257_v30  ;;  %v322_v40 = vsub.f32 %v108_v58, %v257_v30  ;;  %v5780_v33 = vpop.xlane.xlu0 %131  ;;  %v281_v50 = vrot.slane %v280_v21, 2 }
  0x93   :  { %v345_v37 = vmul.f32 1.442695, %v325_v28  ;;  %v347_v38 = vmul.f32 1.442695, %v326_v29  ;;  %v341_v41 = vmul.f32 1.442695, %v323_v13 }
  0x94   :  { %v343_v42 = vmul.f32 1.442695, %v324_v31  ;;  %v294_v43 = vsel %vm247_vm5, %v5778_v34, -inf  ;;  %v337_v44 = vmul.f32 1.442695, %v321_v39  ;;  %v282_v11 = vmax.f32 %v280_v21, %v281_v50 }
  0x95   :  { %5189 = vpow2.f32 %v345_v37  ;;  %v296_v45 = vmax.f32 %v294_v43, %v295_v32  ;;  %v339_v47 = vmul.f32 1.442695, %v322_v40  ;;  %v286_v48 = vsel %vm249_vm6, %v5780_v33, -inf }
  0x96   :  { %5191 = vpow2.f32 %v347_v38  ;;  %v287_v52 = vmax.f32 %v285_v5, %v286_v48  ;;  %v283_v20 = vrot.slane %v282_v11, 1 }
  0x97   :  { %5193 = vpow2.f32 %v341_v41  ;;  %v297_v49 = vrot.slane %v296_v45, 4 }
  0x98   :  { %5195 = vpow2.f32 %v343_v42  ;;  %v288_v2 = vrot.slane %v287_v52, 4  ;;  %v284_v46 = vmax.f32 %v282_v11, %v283_v20 }
  0x99   :  { %5197 = vpow2.f32 %v337_v44  ;;  %v298_v53 = vmax.f32 %v296_v45, %v297_v49  ;;  %v5786_v54 = vpop.xlane.xlu2 %146  ;;  %v5788_v51 = vpop.xlane.xlu1 %143 }
  0x9a   :  { %5199 = vpow2.f32 %v339_v47  ;;  %v289_v57 = vmax.f32 %v287_v52, %v288_v2  ;;  %v304_v58 = vsel %vm249_vm6, %v5788_v51, -inf  ;;  %v5794_v0 = vpop.xlane.xlu0 %140  ;;  %v327_v60 = vsub.f32 %v5768_v14, %v284_v46 }
  0x9b   :  { %v5790_v55 = vpop.eup %5189  ;;  %v299_v56 = vrot.slane %v298_v53, 2  ;;  %v328_v61 = vsub.f32 %v5764_v7, %v284_v46  ;;  %v303_v24 = vsel %vm247_vm5, %v5794_v0, -inf  ;;  %v312_v29 = vsel %vm247_vm5, %v5786_v54, -inf }
  0x9c   :  { %v5796_v59 = vpop.eup %5191  ;;  %v392_v25 = vrot.slane %v5790_v55, 1  ;;  %v290_v1 = vrot.slane %v289_v57, 2  ;;  %v305_v3 = vmax.f32 %v303_v24, %v304_v58  ;;  %v349_v10 = vmul.f32 1.442695, %v327_v60 }
  0x9d   :  { %v5802_v62 = vpop.eup %5193  ;;  %v300_v63 = vmax.f32 %v298_v53, %v299_v56  ;;  %v393_v6 = vrot.slane %v5796_v59, 1  ;;  %v351_v12 = vmul.f32 1.442695, %v328_v61 }
  0x9e   :  { %v5805_v4 = vpop.eup %5195  ;;  %v389_v9 = vrot.slane %v5802_v62, 1  ;;  %v291_v16 = vmax.f32 %v289_v57, %v290_v1  ;;  %5201 = vpow2.f32 %v349_v10  ;;  %v306_v19 = vrot.slane %v305_v3, 4 }
  0x9f   :  { %v5809_v14 = vpop.eup %5197  ;;  %v390_v7 = vrot.slane %v5805_v4, 1  ;;  %v301_v15 = vrot.slane %v300_v63, 1  ;;  %5203 = vpow2.f32 %v351_v12  ;;  %v394_v36 = vsel %vm385_vm4, %v392_v25, %v393_v6 }
  0xa0   :  { %v5812_v17 = vpop.eup %5199  ;;  %v386_v18 = vrot.slane %v5809_v14, 1  ;;  %v292_v28 = vrot.slane %v291_v16, 1  ;;  %v307_v30 = vmax.f32 %v305_v3, %v306_v19 }
  0xa1   :  { %v391_v22 = vsel %vm385_vm4, %v389_v9, %v390_v7  ;;  %v387_v23 = vrot.slane %v5812_v17, 1  ;;  %v302_v26 = vmax.f32 %v300_v63, %v301_v15  ;;  %v5817_v27 = vpop.xlane.xlu2 %203  ;;  %v5822_v21 = vpop.xlane.xlu1 %200 }
  0xa2   :  { %v424_v13 = vrot.slane %v391_v22, 4  ;;  %v5827_v37 = vpop.xlane.xlu0 %149  ;;  %v293_v39 = vmax.f32 %v291_v16, %v292_v28  ;;  %v308_v40 = vrot.slane %v307_v30, 2  ;;  %v491_v41 = vsel %vm249_vm6, %v5817_v27, -inf }
  0xa3   :  { %v388_v31 = vsel %vm385_vm4, %v386_v18, %v387_v23  ;;  %v331_v5 = vsub.f32 %v5778_v34, %v302_v26  ;;  %v332_v32 = vsub.f32 %v5772_v35, %v302_v26  ;;  %v490_v43 = vsel %vm247_vm5, %v5822_v21, -inf }
  0xa4   :  { %v418_v38 = vrot.slane %v388_v31, 4  ;;  %v313_v44 = vsel %vm249_vm6, %v5827_v37, -inf  ;;  %v5835_v45 = vpop.eup %5201  ;;  %v329_v35 = vsub.f32 %v5762_v8, %v293_v39  ;;  %v330_v47 = vsub.f32 %v5780_v33, %v293_v39 }
  0xa5   :  { %v357_v42 = vmul.f32 1.442695, %v331_v5  ;;  %v359_v50 = vmul.f32 1.442695, %v332_v32  ;;  %v309_v11 = vmax.f32 %v307_v30, %v308_v40  ;;  %v5839_v48 = vpop.eup %5203  ;;  %v395_v49 = vrot.slane %v5835_v45, 1 }
  0xa6   :  { %v419_v34 = vadd.f32 %v418_v38, %v388_v31  ;;  %v492_v52 = vmax.f32 %v490_v43, %v491_v41  ;;  %v314_v20 = vmax.f32 %v312_v29, %v313_v44  ;;  %v396_v53 = vrot.slane %v5839_v48, 1 }
  0xa7   :  { %5205 = vpow2.f32 %v357_v42  ;;  %v353_v2 = vmul.f32 1.442695, %v329_v35  ;;  %v355_v46 = vmul.f32 1.442695, %v330_v47  ;;  %v310_v56 = vrot.slane %v309_v11, 1 }
  0xa8   :  { %5207 = vpow2.f32 %v359_v50  ;;  %v493_v57 = vrot.slane %v492_v52, 4  ;;  %v315_v58 = vrot.slane %v314_v20, 4  ;;  %v420_v8 = vrot.slane %v419_v34, 2 }
  0xa9   :  { %v5843_v60 = vpop.xlane.xlu2 %212  ;;  %v430_v33 = vrot.slane %v394_v36, 4  ;;  %5209 = vpow2.f32 %v353_v2  ;;  %v5845_v61 = vpop.xlane.xlu1 %209  ;;  %v5847_v24 = vadd.f32 %v424_v13, %v391_v22  ;;  %v311_v25 = vmax.f32 %v309_v11, %v310_v56 }
  0xaa   :  { %5211 = vpow2.f32 %v355_v46  ;;  %v494_v63 = vmax.f32 %v492_v52, %v493_v57  ;;  %v5849_v1 = vpop.xlane.xlu0 %206  ;;  %v316_v3 = vmax.f32 %v314_v20, %v315_v58  ;;  %v500_v6 = vsel %vm249_vm6, %v5845_v61, -inf }
  0xab   :  { %v499_v9 = vsel %vm247_vm5, %v5849_v1, -inf  ;;  %v421_v10 = vadd.f32 %v420_v8, %v419_v34  ;;  %v397_v7 = vsel %vm385_vm4, %v395_v49, %v396_v53  ;;  %v333_v15 = vsub.f32 %v5794_v0, %v311_v25 }
  0xac   :  { %v334_v16 = vsub.f32 %v5788_v51, %v311_v25  ;;  %v495_v18 = vrot.slane %v494_v63, 2  ;;  %v5862_v22 = vadd.f32 %v430_v33, %v394_v36  ;;  %v317_v23 = vrot.slane %v316_v3, 2 }
  0xad   :  { %v5855_v12 = vpop.eup %5205  ;;  %v508_v26 = vsel %vm247_vm5, %v5843_v60, -inf  ;;  %v501_v28 = vmax.f32 %v499_v9, %v500_v6  ;;  %v361_v29 = vmul.f32 1.442695, %v333_v15  ;;  %v426_v31 = vrot.slane %v5847_v24, 2 }
  0xae   :  { %v5860_v19 = vpop.eup %5207  ;;  %v363_v30 = vmul.f32 1.442695, %v334_v16  ;;  %v496_v13 = vmax.f32 %v494_v63, %v495_v18  ;;  %v436_v0 = vrot.slane %v397_v7, 4  ;;  %v318_v32 = vmax.f32 %v316_v3, %v317_v23 }
  0xaf   :  { %v5867_v5 = vpop.eup %5209  ;;  %v502_v51 = vrot.slane %v501_v28, 4  ;;  %v422_v38 = vrot.slane %v421_v10, 1  ;;  %v401_v36 = vrot.slane %v5855_v12, 1  ;;  %v402_v40 = vrot.slane %v5860_v19, 1 }
  0xb0   :  { %v5869_v39 = vpop.eup %5211  ;;  %5213 = vpow2.f32 %v361_v29  ;;  %v497_v41 = vrot.slane %v496_v13, 1  ;;  %v398_v50 = vrot.slane %v5867_v5, 1  ;;  %v319_v44 = vrot.slane %v318_v32, 1 }
  0xb1   :  { %v5873_v42 = vpop.xlane.xlu2 %221  ;;  %v399_v43 = vrot.slane %v5869_v39, 1  ;;  %5215 = vpow2.f32 %v363_v30  ;;  %v5877_v34 = vpop.xlane.xlu1 %218  ;;  %v503_v47 = vmax.f32 %v501_v28, %v502_v51  ;;  %v5885_v20 = vadd.f32 %v436_v0, %v397_v7 }
  0xb2   :  { %v498_v35 = vmax.f32 %v496_v13, %v497_v41  ;;  %v518_v11 = vsel %vm249_vm6, %v5873_v42, -inf  ;;  %v517_v49 = vsel %vm247_vm5, %v5877_v34, -inf  ;;  %v5883_v52 = vpop.xlane.xlu0 %215  ;;  %v320_v53 = vmax.f32 %v318_v32, %v319_v44 }
  0xb3   :  { %v519_v2 = vmax.f32 %v517_v49, %v518_v11  ;;  %v5887_v46 = vadd.f32 %v422_v38, %v421_v10  ;;  %v403_v56 = vsel %vm385_vm4, %v401_v36, %v402_v40  ;;  %v504_v8 = vrot.slane %v503_v47, 2 }
  0xb4   :  { %v562_v57 = vsub.f32 %v5822_v21, %v498_v35  ;;  %v563_v58 = vsub.f32 %v5817_v27, %v498_v35  ;;  %v335_v33 = vsub.f32 %v5786_v54, %v320_v53  ;;  %v336_v25 = vsub.f32 %v5827_v37, %v320_v53 }
  0xb5   :  { %v520_v63 = vrot.slane %v519_v2, 4  ;;  %v509_v3 = vsel %vm249_vm6, %v5883_v52, -inf  ;;  %v400_v9 = vsel %vm385_vm4, %v398_v50, %v399_v43  ;;  %v505_v15 = vmax.f32 %v503_v47, %v504_v8 }
  0xb6   :  { %v5896_v6 = vpop.eup %5213  ;;  %v578_v10 = vmul.f32 1.442695, %v562_v57  ;;  %v580_v7 = vmul.f32 1.442695, %v563_v58  ;;  %v365_v21 = vmul.f32 1.442695, %v335_v33  ;;  %v510_v28 = vmax.f32 %v508_v26, %v509_v3  ;;  %v966_v3 = vpop.f32.mrf.mxu1 }
  0xb7   :  { %v5899_v16 = vpop.eup %5215  ;;  %v404_v27 = vrot.slane %v5896_v6, 1  ;;  %v367_v18 = vmul.f32 1.442695, %v336_v25  ;;  %v521_v54 = vmax.f32 %v519_v2, %v520_v63  ;;  %v506_v23 = vrot.slane %v505_v15, 1  ;;  %v907_v63 = vpop.f32.mrf.mxu0 }
  0xb8   :  { %v405_v37 = vrot.slane %v5899_v16, 1  ;;  %5217 = vpow2.f32 %v578_v10  ;;  %v448_v30 = vrot.slane %v403_v56, 4  ;;  %v442_v13 = vrot.slane %v400_v9, 4 }
  0xb9   :  { %v5903_v29 = vpop.xlane.xlu2 %230  ;;  %5219 = vpow2.f32 %v580_v7  ;;  %v522_v0 = vrot.slane %v521_v54, 2  ;;  %v5905_v32 = vpop.xlane.xlu1 %227  ;;  %v507_v38 = vmax.f32 %v505_v15, %v506_v23  ;;  %v511_v36 = vrot.slane %v510_v28, 4 }
  0xba   :  { %v406_v51 = vsel %vm385_vm4, %v404_v27, %v405_v37  ;;  %5221 = vpow2.f32 %v365_v21  ;;  %v5908_v40 = vpop.xlane.xlu0 %224  ;;  %v527_v26 = vsel %vm249_vm6, %v5905_v32, -inf  ;;  %v5913_v50 = vadd.f32 %v426_v31, %v5847_v24 }
  0xbb   :  { %5223 = vpow2.f32 %v367_v18  ;;  %v523_v41 = vmax.f32 %v521_v54, %v522_v0  ;;  %v564_v43 = vsub.f32 %v5849_v1, %v507_v38  ;;  %v565_v44 = vsub.f32 %v5845_v61, %v507_v38 }
  0xbc   :  { %v512_v35 = vmax.f32 %v510_v28, %v511_v36  ;;  %v526_v47 = vsel %vm247_vm5, %v5908_v40, -inf  ;;  %v5919_v11 = vadd.f32 %v448_v30, %v403_v56  ;;  %v454_v49 = vrot.slane %v406_v51, 4 }
  0xbd   :  { %v524_v53 = vrot.slane %v523_v41, 1  ;;  %v528_v2 = vmax.f32 %v526_v47, %v527_v26  ;;  %v5923_v58 = vadd.f32 %v442_v13, %v400_v9  ;;  %v582_v8 = vmul.f32 1.442695, %v564_v43 }
  0xbe   :  { %v5921_v57 = vpop.eup %5217  ;;  %v584_v24 = vmul.f32 1.442695, %v565_v44  ;;  %v513_v31 = vrot.slane %v512_v35, 2  ;;  %v535_v25 = vsel %vm247_vm5, %v5903_v29, -inf  ;;  %v5935_v27 = vadd.f32 %v966_v3, %v907_v63 }
  0xbf   :  { %v5925_v33 = vpop.eup %5219  ;;  %v626_v61 = vrot.slane %v5921_v57, 1  ;;  %v525_v1 = vmax.f32 %v523_v41, %v524_v53  ;;  %v529_v56 = vrot.slane %v528_v2, 4  ;;  %5225 = vpow2.f32 %v582_v8 }
  0xc0   :  { %v5930_v10 = vpop.eup %5221  ;;  %v627_v7 = vrot.slane %v5925_v33, 1  ;;  %v514_v9 = vmax.f32 %v512_v35, %v513_v31  ;;  %v5939_v18 = vadd.f32 %v454_v49, %v406_v51  ;;  %5227 = vpow2.f32 %v584_v24 }
  0xc1   :  { %v5933_v15 = vpop.xlane.xlu2 %239  ;;  %v5937_v21 = vpop.eup %5223  ;;  %v568_v54 = vsub.f32 %v5877_v34, %v525_v1  ;;  %v569_v37 = vsub.f32 %v5873_v42, %v525_v1  ;;  %v530_v13 = vmax.f32 %v528_v2, %v529_v56  ;;  %5229 = vrcp.f32 %v5887_v46 }
  0xc2   :  { %v5943_v23 = vpop.xlane.xlu1 %236  ;;  %v628_v28 = vsel %vm385_vm4, %v626_v61, %v627_v7  ;;  %v515_v30 = vrot.slane %v514_v9, 1  ;;  %v545_v51 = vsel %vm249_vm6, %v5933_v15, -inf  ;;  %v407_v41 = vrot.slane %v5930_v10, 1  ;;  %v5952_v43 = vpop.xlane.xlu0 %233 }
  0xc3   :  { %v658_v0 = vrot.slane %v628_v28, 4  ;;  %v590_v38 = vmul.f32 1.442695, %v568_v54  ;;  %v592_v36 = vmul.f32 1.442695, %v569_v37  ;;  %v531_v34 = vrot.slane %v530_v13, 2 }
  0xc4   :  { %v516_v26 = vmax.f32 %v514_v9, %v515_v30  ;;  %v544_v42 = vsel %vm247_vm5, %v5943_v23, -inf  ;;  %v408_v35 = vrot.slane %v5937_v21, 1  ;;  %v536_v61 = vsel %vm249_vm6, %v5952_v43, -inf }
  0xc5   :  { %v659_v44 = vadd.f32 %v658_v0, %v628_v28  ;;  %5231 = vpow2.f32 %v590_v38  ;;  %v546_v46 = vmax.f32 %v544_v42, %v545_v51  ;;  %v5955_v47 = vpop.eup %5225  ;;  %v532_v2 = vmax.f32 %v530_v13, %v531_v34  ;;  %v1031_v51 = vpop.f32.mrf.mxu2 }
  0xc6   :  { %5233 = vpow2.f32 %v592_v36  ;;  %v566_v49 = vsub.f32 %v5843_v60, %v516_v26  ;;  %v567_v53 = vsub.f32 %v5883_v52, %v516_v26  ;;  %v5959_v8 = vpop.eup %5227  ;;  %v629_v24 = vrot.slane %v5955_v47, 1 }
  0xc7   :  { %v547_v31 = vrot.slane %v546_v46, 4  ;;  %v428_v1 = vrot.slane %v5913_v50, 1  ;;  %v5230_v56 = vpop.eup %5229  ;;  %v630_v63 = vrot.slane %v5959_v8, 1  ;;  %v533_v9 = vrot.slane %v532_v2, 1 }
  0xc8   :  { %v586_v3 = vmul.f32 1.442695, %v566_v49  ;;  %v588_v7 = vmul.f32 1.442695, %v567_v53  ;;  %v5967_v60 = vsel %vm385_vm4, %v407_v41, %v408_v35  ;;  %v537_v54 = vmax.f32 %v535_v25, %v536_v61 }
  0xc9   :  { %v548_v52 = vmax.f32 %v546_v46, %v547_v31  ;;  %v432_v37 = vrot.slane %v5862_v22, 2  ;;  %v631_v28 = vsel %vm385_vm4, %v629_v24, %v630_v63  ;;  %v534_v30 = vmax.f32 %v532_v2, %v533_v9 }
  0xca   :  { %5235 = vpow2.f32 %v586_v3  ;;  %v660_v13 = vrot.slane %v659_v44, 2  ;;  %v538_v36 = vrot.slane %v537_v54, 4  ;;  %v429_v26 = vadd.f32 %v428_v1, %v5913_v50 }
  0xcb   :  { %v5971_v0 = vpop.eup %5231  ;;  %5237 = vpow2.f32 %v588_v7  ;;  %v549_v38 = vrot.slane %v548_v52, 2  ;;  %v664_v41 = vrot.slane %v631_v28, 4  ;;  %v570_v25 = vsub.f32 %v5908_v40, %v534_v30  ;;  %v5983_v7 = vpop.xlane.xlu1 %245 }
  0xcc   :  { %v5974_v34 = vpop.eup %5233  ;;  %v571_v42 = vsub.f32 %v5905_v32, %v534_v30  ;;  %v661_v35 = vadd.f32 %v660_v13, %v659_v44  ;;  %v635_v49 = vrot.slane %v5971_v0, 1  ;;  %v539_v2 = vmax.f32 %v537_v54, %v538_v36  ;;  %v5990_v54 = vpop.xlane.xlu0 %242 }
  0xcd   :  { %v550_v53 = vmax.f32 %v548_v52, %v549_v38  ;;  %v636_v24 = vrot.slane %v5974_v34, 1  ;;  %v594_v31 = vmul.f32 1.442695, %v570_v25  ;;  %v474_v3 = vmul.f32 %v5230_v56, %v5809_v14 }
  0xce   :  { %v596_v61 = vmul.f32 1.442695, %v571_v42  ;;  %v662_v63 = vrot.slane %v661_v35, 1  ;;  %v540_v1 = vrot.slane %v539_v2, 2  ;;  %v475_v40 = vmul.f32 %v5230_v56, %v5812_v17  ;;  %v909_v17 = vpop.f32.mrf.mxu0  ;;  %v968_v56 = vpop.f32.mrf.mxu1 }
  0xcf   :  { %v551_v50 = vrot.slane %v550_v53, 1  ;;  %v665_v44 = vadd.f32 %v664_v41, %v631_v28  ;;  %5239 = vpow2.f32 %v594_v31  ;;  %v5988_v52 = vadd.f32 %v1031_v51, %v5935_v27 }
  0xd0   :  { %v5985_v32 = vpop.eup %5235  ;;  %v663_v9 = vadd.f32 %v662_v63, %v661_v35  ;;  %5241 = vpow2.f32 %v596_v61  ;;  %v541_v38 = vmax.f32 %v539_v2, %v540_v1  ;;  %v637_v36 = vsel %vm385_vm4, %v635_v49, %v636_v24 }
  0xd1   :  { %v5992_v30 = vpop.eup %5237  ;;  %v632_v13 = vrot.slane %v5985_v32, 1  ;;  %v552_v14 = vmax.f32 %v550_v53, %v551_v50  ;;  %v554_v27 = vsel %vm249_vm6, %v5983_v7, -inf  ;;  %v553_v42 = vsel %vm247_vm5, %v5990_v54, -inf  ;;  %v1033_v50 = vpop.f32.mrf.mxu2 }
  0xd2   :  { %v633_v28 = vrot.slane %v5992_v30, 1  ;;  %5243 = vrcp.f32 %v663_v9  ;;  %v542_v25 = vrot.slane %v541_v38, 1  ;;  %v969_v53 = vadd.f32 %v968_v56, %v909_v17 }
  0xd3   :  { %v574_v51 = vsub.f32 %v5943_v23, %v552_v14  ;;  %v575_v41 = vsub.f32 %v5933_v15, %v552_v14  ;;  %v555_v2 = vmax.f32 %v553_v42, %v554_v27  ;;  %v666_v31 = vrot.slane %v665_v44, 2 }
  0xd4   :  { %v634_v35 = vsel %vm385_vm4, %v632_v13, %v633_v28  ;;  %v676_v49 = vrot.slane %v637_v36, 4  ;;  %v543_v63 = vmax.f32 %v541_v38, %v542_v25  ;;  %v1067_v23 = vrot.slane %v5988_v52, 7 }
  0xd5   :  { %v602_v24 = vmul.f32 1.442695, %v574_v51  ;;  %v604_v61 = vmul.f32 1.442695, %v575_v41  ;;  %v6004_v1 = vpop.eup %5239  ;;  %v556_v9 = vrot.slane %v555_v2, 4  ;;  %5245 = vrcp.f32 %v429_v26 }
  0xd6   :  { %v667_v15 = vadd.f32 %v666_v31, %v665_v44  ;;  %v6007_v14 = vpop.eup %5241  ;;  %v670_v46 = vrot.slane %v634_v35, 4  ;;  %v638_v13 = vrot.slane %v6004_v1, 1  ;;  %v572_v17 = vsub.f32 %v5903_v29, %v543_v63 }
  0xd7   :  { %5247 = vpow2.f32 %v602_v24  ;;  %v639_v28 = vrot.slane %v6007_v14, 1  ;;  %v573_v38 = vsub.f32 %v5952_v43, %v543_v63  ;;  %v557_v27 = vmax.f32 %v555_v2, %v556_v9  ;;  %v912_v24 = vpop.f32.mrf.mxu0 }
  0xd8   :  { %v5244_v56 = vpop.eup %5243  ;;  %5249 = vpow2.f32 %v604_v61  ;;  %v598_v51 = vmul.f32 1.442695, %v572_v17  ;;  %v668_v44 = vrot.slane %v667_v15, 1  ;;  %v6015_v42 = vadd.f32 %v1033_v50, %v969_v53  ;;  %v971_v61 = vpop.f32.mrf.mxu1 }
  0xd9   :  { %v714_v52 = vmul.f32 %v5244_v56, %v5921_v57  ;;  %v715_v26 = vmul.f32 %v5244_v56, %v5925_v33  ;;  %v600_v41 = vmul.f32 1.442695, %v573_v38  ;;  %v558_v25 = vrot.slane %v557_v27, 2 }
  0xda   :  { %v433_v29 = vadd.f32 %v432_v37, %v5862_v22  ;;  %v6021_v31 = vsel %vm385_vm4, %v638_v13, %v639_v28  ;;  %5251 = vpow2.f32 %v598_v51  ;;  %v8229_v33 = vrot.slane %v5967_v60, 4 }
  0xdb   :  { %v730_v43 = vadd.f32 %v714_v52, %v474_v3  ;;  %v731_v2 = vadd.f32 %v715_v26, %v475_v40  ;;  %v5246_v57 = vpop.eup %5245  ;;  %v671_v53 = vadd.f32 %v670_v46, %v634_v35  ;;  %5253 = vpow2.f32 %v600_v41  ;;  %v6033_v3 = vld [vmem:[%s8115_s6] ss:$0 sm:$0xff] }
  0xdc   :  { %v6026_v63 = vadd.f32 %v8229_v33, %v5967_v60  ;;  %v559_v50 = vmax.f32 %v557_v27, %v558_v25  ;;  %v677_v22 = vadd.f32 %v676_v49, %v637_v36  ;;  %v669_v40 = vadd.f32 %v668_v44, %v667_v15  ;;  %v1036_v49 = vpop.f32.mrf.mxu2 }
  0xdd   :  { %v6028_v9 = vpop.eup %5247  ;;  %v746_v37 = vmul.f32 0.5, %v730_v43  ;;  %v747_v13 = vmul.f32 0.5, %v731_v2  ;;  %v682_v56 = vrot.slane %v6021_v31, 4  ;;  %v1068_v46 = vrot.slane %v6015_v42, 7 }
  0xde   :  { %v6035_v17 = vpop.eup %5249  ;;  %v560_v60 = vrot.slane %v559_v50, 1  ;;  %v434_v35 = vrot.slane %v433_v29, 1  ;;  %v476_v36 = vmul.f32 %v5246_v57, %v5802_v62  ;;  %5255 = vrcp.f32 %v669_v40 }
  0xdf   :  { %v1083_v28 = vmul.f32 %v1067_v23, %v746_v37  ;;  %v1084_v38 = vmul.f32 %v1067_v23, %v747_v13  ;;  %v644_v27 = vrot.slane %v6028_v9, 1  ;;  %v972_v52 = vadd.f32 %v971_v61, %v912_v24 }
  0xe0   :  { %v561_v51 = vmax.f32 %v559_v50, %v560_v60  ;;  %v672_v26 = vrot.slane %v671_v53, 2  ;;  %v6041_v15 = vpop.eup %5251  ;;  %v645_v44 = vrot.slane %v6035_v17, 1  ;;  %v435_v43 = vadd.f32 %v434_v35, %v433_v29 }
  0xe1   :  { %v1103_v41 = vadd.f32 %v6033_v3, %v1083_v28  ;;  %v1104_v25 = vadd.f32 %v6033_v3, %v1084_v38  ;;  %v6046_v2 = vpop.eup %5253  ;;  %v641_v62 = vrot.slane %v6041_v15, 1  ;;  %v477_v24 = vmul.f32 %v5246_v57, %v5805_v4  ;;  %v914_v28 = vpop.f32.mrf.mxu0 }
  0xe2   :  { %v576_v23 = vsub.f32 %v5990_v54, %v561_v51  ;;  %v577_v33 = vsub.f32 %v5983_v7, %v561_v51  ;;  %v642_v61 = vrot.slane %v6046_v2, 1  ;;  %v673_v50 = vadd.f32 %v672_v26, %v671_v53  ;;  %v973_v4 = vpop.f32.mrf.mxu1 }
  0xe3   :  { %5257 = vtanh.f32 %v1103_v41  ;;  %v438_v37 = vrot.slane %v5885_v20, 2  ;;  %v6054_v29 = vadd.f32 %v1036_v49, %v972_v52  ;;  %v646_v35 = vsel %vm385_vm4, %v644_v27, %v645_v44 }
  0xe4   :  { %5259 = vtanh.f32 %v1104_v25  ;;  %v606_v13 = vmul.f32 1.442695, %v576_v23  ;;  %v608_v40 = vmul.f32 1.442695, %v577_v33  ;;  %v5256_v60 = vpop.eup %5255  ;;  %v643_v54 = vsel %vm385_vm4, %v641_v62, %v642_v61  ;;  %v1038_v23 = vpop.f32.mrf.mxu2 }
  0xe5   :  { %5261 = vrcp.f32 %v435_v43  ;;  %v674_v7 = vrot.slane %v673_v50, 1  ;;  %v688_v57 = vrot.slane %v643_v54, 4  ;;  %v716_v53 = vmul.f32 %v5256_v60, %v5955_v47 }
  0xe6   :  { %5263 = vpow2.f32 %v606_v13  ;;  %v717_v38 = vmul.f32 %v5256_v60, %v5959_v8  ;;  %v439_v49 = vadd.f32 %v438_v37, %v5885_v20  ;;  %v678_v52 = vrot.slane %v677_v22, 2 }
  0xe7   :  { %5265 = vpow2.f32 %v608_v40  ;;  %v675_v51 = vadd.f32 %v674_v7, %v673_v50  ;;  %v683_v26 = vadd.f32 %v682_v56, %v6021_v31  ;;  %v732_v27 = vadd.f32 %v716_v53, %v476_v36 }
  0xe8   :  { %v733_v44 = vadd.f32 %v717_v38, %v477_v24  ;;  %v974_v41 = vadd.f32 %v973_v4, %v914_v28  ;;  %v440_v43 = vrot.slane %v439_v49, 1  ;;  %v679_v62 = vadd.f32 %v678_v52, %v677_v22 }
  0xe9   :  { %v5258_v25 = vpop.eup %5257  ;;  %5267 = vrcp.f32 %v675_v51  ;;  %v444_v33 = vrot.slane %v5923_v58, 2  ;;  %v694_v61 = vrot.slane %v646_v35, 4  ;;  %v748_v8 = vmul.f32 0.5, %v732_v27  ;;  %v917_v42 = vpop.f32.mrf.mxu0 }
  0xea   :  { %v5260_v47 = vpop.eup %5259  ;;  %v749_v13 = vmul.f32 0.5, %v733_v44  ;;  %v1069_v50 = vrot.slane %v6054_v29, 7  ;;  %v6064_v37 = vadd.f32 %v688_v57, %v643_v54  ;;  %v441_v31 = vadd.f32 %v440_v43, %v439_v49 }
  0xeb   :  { %v5262_v20 = vpop.eup %5261  ;;  %v680_v56 = vrot.slane %v679_v62, 1  ;;  %v445_v36 = vadd.f32 %v444_v33, %v5923_v58  ;;  %v1151_v40 = vrot.slane %v5258_v25, 1  ;;  %v1085_v22 = vmul.f32 %v1068_v46, %v748_v8 }
  0xec   :  { %v6067_v24 = vpop.eup %5263  ;;  %v1086_v60 = vmul.f32 %v1068_v46, %v749_v13  ;;  %v6073_v7 = vadd.f32 %v1038_v23, %v974_v41  ;;  %v1152_v29 = vrot.slane %v5260_v47, 1  ;;  %v478_v54 = vmul.f32 %v5262_v20, %v5790_v55  ;;  %v976_v46 = vpop.f32.mrf.mxu1  ;;  %v4925_v47 = vld [vmem:[%s8116_s7 + $0x8] sm:$0xff] }
  0xed   :  { %v6075_v28 = vpop.eup %5265  ;;  %5269 = vrcp.f32 %v441_v31  ;;  %v681_v4 = vadd.f32 %v680_v56, %v679_v62  ;;  %v647_v58 = vrot.slane %v6067_v24, 1  ;;  %v1105_v57 = vadd.f32 %v6033_v3, %v1085_v22  ;;  %1222 = vmatpush.bf16.msra.mxu3 %v4925_v47 }
  0xee   :  { %v1106_v53 = vadd.f32 %v6033_v3, %v1086_v60  ;;  %v479_v38 = vmul.f32 %v5262_v20, %v5796_v59  ;;  %v446_v49 = vrot.slane %v445_v36, 1  ;;  %v684_v52 = vrot.slane %v683_v26, 2 }
  0xef   :  { %v5268_v51 = vpop.eup %5267  ;;  %5271 = vrcp.f32 %v681_v4  ;;  %v450_v27 = vrot.slane %v5919_v11, 2  ;;  %v648_v55 = vrot.slane %v6075_v28, 1  ;;  %v6086_v25 = vadd.f32 %v694_v61, %v646_v35  ;;  %v1041_v35 = vpop.f32.mrf.mxu2 }
  0xf0   :  { %5273 = vtanh.f32 %v1105_v57  ;;  %v718_v44 = vmul.f32 %v5268_v51, %v5985_v32  ;;  %v719_v41 = vmul.f32 %v5268_v51, %v5992_v30  ;;  %v447_v43 = vadd.f32 %v446_v49, %v445_v36 }
  0xf1   :  { %5275 = vtanh.f32 %v1106_v53  ;;  %v685_v59 = vadd.f32 %v684_v52, %v683_v26  ;;  %v1070_v33 = vrot.slane %v6073_v7, 7  ;;  %v451_v8 = vadd.f32 %v450_v27, %v5919_v11  ;;  %v919_v52 = vpop.f32.mrf.mxu0 }
  0xf2   :  { %v734_v62 = vadd.f32 %v718_v44, %v478_v54  ;;  %v735_v23 = vadd.f32 %v719_v41, %v479_v38  ;;  %v6094_v32 = vsel %vm385_vm4, %v1151_v40, %v1152_v29  ;;  %5277 = vrcp.f32 %v447_v43 }
  0xf3   :  { %v5270_v13 = vpop.eup %5269  ;;  %8230 = vst [vmem:[#allocation5_spill] sm:$0xff] %v6094_v32  ;;  %v686_v30 = vrot.slane %v685_v59, 1  ;;  %v690_v61 = vrot.slane %v6064_v37, 2  ;;  %v6098_v26 = vsel %vm385_vm4, %v647_v58, %v648_v55  ;;  %v977_v56 = vadd.f32 %v976_v46, %v917_v42 }
  0xf4   :  { %v750_v20 = vmul.f32 0.5, %v734_v62  ;;  %v751_v31 = vmul.f32 0.5, %v735_v23  ;;  %v480_v22 = vmul.f32 %v5270_v13, %v5835_v45  ;;  %v481_v11 = vmul.f32 %v5270_v13, %v5839_v48  ;;  %v978_v27 = vpop.f32.mrf.mxu1 }
  0xf5   :  { %v5272_v36 = vpop.eup %5271  ;;  %v687_v60 = vadd.f32 %v686_v30, %v685_v59  ;;  %v452_v40 = vrot.slane %v451_v8, 1  ;;  %v691_v51 = vadd.f32 %v690_v61, %v6064_v37  ;;  %v1055_v41 = vadd.f32 %v1041_v35, %v977_v56 }
  0xf6   :  { %v5274_v7 = vpop.eup %5273  ;;  %v1087_v29 = vmul.f32 %v1069_v50, %v750_v20  ;;  %v1088_v54 = vmul.f32 %v1069_v50, %v751_v31  ;;  %v720_v4 = vmul.f32 %v5272_v36, %v5971_v0  ;;  %v721_v57 = vmul.f32 %v5272_v36, %v5974_v34  ;;  %v4924_v50 = vld [vmem:[%s8116_s7] sm:$0xff] }
  0xf7   :  { %v5276_v58 = vpop.eup %5275  ;;  %v1154_v53 = vrot.slane %v5274_v7, 1  ;;  %5279 = vrcp.f32 %v687_v60  ;;  %v453_v38 = vadd.f32 %v452_v40, %v451_v8  ;;  %v700_v0 = vrot.slane %v6098_v26, 4  ;;  %1223 = vmatpush.bf16.msra.mxu3 %v4924_v50  ;;  %v1043_v20 = vpop.f32.mrf.mxu2 }
  0xf8   :  { %v1155_v42 = vrot.slane %v5276_v58, 1  ;;  %v1107_v45 = vadd.f32 %v6033_v3, %v1087_v29  ;;  %v1108_v48 = vadd.f32 %v6033_v3, %v1088_v54  ;;  %v736_v46 = vadd.f32 %v720_v4, %v480_v22  ;;  %v5278_v49 = vpop.eup %5277 }
  0xf9   :  { %v737_v34 = vadd.f32 %v721_v57, %v481_v11  ;;  %5281 = vrcp.f32 %v453_v38  ;;  %v692_v55 = vrot.slane %v691_v51, 1  ;;  %v482_v59 = vmul.f32 %v5278_v49, %v5867_v5 }
  0xfa   :  { %v6112_v37 = vsel %vm385_vm4, %v1154_v53, %v1155_v42  ;;  %5283 = vtanh.f32 %v1107_v45  ;;  %v752_v44 = vmul.f32 0.5, %v736_v46  ;;  %v979_v62 = vadd.f32 %v978_v27, %v919_v52  ;;  %v922_v42 = vpop.f32.mrf.mxu0 }
  0xfb   :  { %8231 = vst [vmem:[#allocation6_spill] sm:$0xff] %v6112_v37  ;;  %v753_v43 = vmul.f32 0.5, %v737_v34  ;;  %v693_v23 = vadd.f32 %v692_v55, %v691_v51  ;;  %5285 = vtanh.f32 %v1108_v48  ;;  %v1183_v8 = vpack.c.bf16 %v6112_v37, %v6094_v32 }
  0xfc   :  { %v1089_v47 = vmul.f32 %v1070_v33, %v752_v44  ;;  %v483_v61 = vmul.f32 %v5278_v49, %v5869_v39  ;;  %v456_v35 = vrot.slane %v5939_v18, 2  ;;  %v696_v36 = vrot.slane %v6086_v25, 2  ;;  %v981_v45 = vpop.f32.mrf.mxu1 }
  0xfd   :  { %v5280_v13 = vpop.eup %5279  ;;  %v1090_v30 = vmul.f32 %v1070_v33, %v753_v43  ;;  %5287 = vrcp.f32 %v693_v23  ;;  %4909 = vmatmul.msk.bf16.vlgmr.msra.gmra.mxu3 %vm1203_vm7, %v1183_v8  ;;  %v462_v39 = vrot.slane %v6026_v63, 2  ;;  %v1071_v29 = vrot.slane %v1055_v41, 7 }
  0xfe   :  { %v1109_v31 = vadd.f32 %v6033_v3, %v1089_v47  ;;  %v722_v5 = vmul.f32 %v5280_v13, %v6004_v1  ;;  %v723_v56 = vmul.f32 %v5280_v13, %v6007_v14  ;;  %v457_v33 = vadd.f32 %v456_v35, %v5939_v18 }
  0xff   :  { %v5282_v22 = vpop.eup %5281  ;;  %v1110_v11 = vadd.f32 %v6033_v3, %v1090_v30  ;;  %v701_v1 = vadd.f32 %v700_v0, %v6098_v26  ;;  %v1056_v58 = vadd.f32 %v1043_v20, %v979_v62  ;;  %v697_v53 = vadd.f32 %v696_v36, %v6086_v25  ;;  %v1046_v23 = vpop.f32.mrf.mxu2 }
 0x100   :  { %v5284_v60 = vpop.eup %5283  ;;  %5289 = vtanh.f32 %v1109_v31  ;;  %v738_v40 = vadd.f32 %v722_v5, %v482_v59  ;;  %v739_v7 = vadd.f32 %v723_v56, %v483_v61  ;;  %v458_v14 = vrot.slane %v457_v33, 1 }
 0x101   :  { %5291 = vtanh.f32 %v1110_v11  ;;  %v5286_v54 = vpop.eup %5285  ;;  %v1157_v51 = vrot.slane %v5284_v60, 1  ;;  %v484_v18 = vmul.f32 %v5282_v22, %v5855_v12  ;;  %v463_v46 = vadd.f32 %v462_v39, %v6026_v63 }
 0x102   :  { %v754_v4 = vmul.f32 0.5, %v738_v40  ;;  %v755_v57 = vmul.f32 0.5, %v739_v7  ;;  %v459_v48 = vadd.f32 %v458_v14, %v457_v33  ;;  %v485_v26 = vmul.f32 %v5282_v22, %v5860_v19  ;;  %v924_v39 = vpop.f32.mrf.mxu0 }
 0x103   :  { %v5288_v38 = vpop.eup %5287  ;;  %v1158_v34 = vrot.slane %v5286_v54, 1  ;;  %v698_v27 = vrot.slane %v697_v53, 1  ;;  %v464_v25 = vrot.slane %v463_v46, 1  ;;  %v1072_v41 = vrot.slane %v1056_v58, 7 }
 0x104   :  { %v1091_v50 = vmul.f32 %v1071_v29, %v754_v4  ;;  %v1092_v49 = vmul.f32 %v1071_v29, %v755_v57  ;;  %v724_v0 = vmul.f32 %v5288_v38, %v6041_v15  ;;  %v725_v52 = vmul.f32 %v5288_v38, %v6046_v2  ;;  %v983_v60 = vpop.f32.mrf.mxu1 }
 0x105   :  { %5293 = vrcp.f32 %v459_v48  ;;  %v699_v62 = vadd.f32 %v698_v27, %v697_v53  ;;  %v702_v8 = vrot.slane %v701_v1, 2  ;;  %v6137_v2 = vsel %vm385_vm4, %v1157_v51, %v1158_v34 }
 0x106   :  { %v5290_v55 = vpop.eup %5289  ;;  %v740_v44 = vadd.f32 %v724_v0, %v484_v18  ;;  %v1111_v59 = vadd.f32 %v6033_v3, %v1091_v50  ;;  %v741_v63 = vadd.f32 %v725_v52, %v485_v26  ;;  %v1112_v19 = vadd.f32 %v6033_v3, %v1092_v49  ;;  %8232 = vst [vmem:[#allocation7_spill] sm:$0xff] %v6137_v2 }
 0x107   :  { %v5292_v12 = vpop.eup %5291  ;;  %v1160_v43 = vrot.slane %v5290_v55, 1  ;;  %v465_v30 = vadd.f32 %v464_v25, %v463_v46  ;;  %5295 = vrcp.f32 %v699_v62  ;;  %v703_v35 = vadd.f32 %v702_v8, %v701_v1  ;;  %v1048_v53 = vpop.f32.mrf.mxu2 }
 0x108   :  { %v1161_v47 = vrot.slane %v5292_v12, 1  ;;  %v756_v15 = vmul.f32 0.5, %v740_v44  ;;  %v757_v13 = vmul.f32 0.5, %v741_v63  ;;  %5297 = vtanh.f32 %v1111_v59 }
 0x109   :  { %v982_v5 = vadd.f32 %v981_v45, %v922_v42  ;;  %5299 = vtanh.f32 %v1112_v19  ;;  %v704_v22 = vrot.slane %v703_v35, 1  ;;  %v984_v1 = vadd.f32 %v983_v60, %v924_v39 }
 0x10a   :  { %v6140_v61 = vsel %vm385_vm4, %v1160_v43, %v1161_v47  ;;  %v1093_v20 = vmul.f32 %v1072_v41, %v756_v15  ;;  %v1094_v31 = vmul.f32 %v1072_v41, %v757_v13  ;;  %5301 = vrcp.f32 %v465_v30 }
 0x10b   :  { %8233 = vst [vmem:[#allocation8_spill] sm:$0xff] %v6140_v61  ;;  %v5294_v56 = vpop.eup %5293  ;;  %v1184_v11 = vpack.c.bf16 %v6140_v61, %v6137_v2  ;;  %v705_v40 = vadd.f32 %v704_v22, %v703_v35  ;;  %v1057_v7 = vadd.f32 %v1046_v23, %v982_v5  ;;  %v1058_v46 = vadd.f32 %v1048_v53, %v984_v1 }
 0x10c   :  { %v1113_v36 = vadd.f32 %v6033_v3, %v1093_v20  ;;  %v1114_v33 = vadd.f32 %v6033_v3, %v1094_v31  ;;  %v486_v54 = vmul.f32 %v5294_v56, %v5896_v6  ;;  %v487_v4 = vmul.f32 %v5294_v56, %v5899_v16 }
 0x10d   :  { %4910 = vmatmul.msk.bf16.gmra.mxu3 %vm1203_vm7, %v1184_v11  ;;  %v5296_v29 = vpop.eup %5295  ;;  %v1073_v45 = vrot.slane %v1057_v7, 7  ;;  %v1074_v41 = vrot.slane %v1058_v46, 7 }
 0x10e   :  { %5303 = vtanh.f32 %v1113_v36  ;;  %v5298_v14 = vpop.eup %5297  ;;  %v726_v57 = vmul.f32 %v5296_v29, %v6028_v9  ;;  %v727_v58 = vmul.f32 %v5296_v29, %v6035_v17 }
 0x10f   :  { %5305 = vtanh.f32 %v1114_v33  ;;  %v5300_v38 = vpop.eup %5299  ;;  %v1163_v49 = vrot.slane %v5298_v14, 1 }
 0x110   :  { %5307 = vrcp.f32 %v705_v40  ;;  %v5302_v51 = vpop.eup %5301  ;;  %v742_v18 = vadd.f32 %v726_v57, %v486_v54  ;;  %v743_v42 = vadd.f32 %v727_v58, %v487_v4  ;;  %v1164_v52 = vrot.slane %v5300_v38, 1 }
 0x111   :  { %v488_v9 = vmul.f32 %v5302_v51, %v5930_v10  ;;  %v489_v17 = vmul.f32 %v5302_v51, %v5937_v21 }
 0x112   :  { %v758_v0 = vmul.f32 0.5, %v742_v18  ;;  %v759_v34 = vmul.f32 0.5, %v743_v42  ;;  %v6161_v10 = vsel %vm385_vm4, %v1163_v49, %v1164_v52 }
 0x113   :  { %8235 = vst [vmem:[#allocation10_spill] sm:$0xff] %v6161_v10 }
 0x114   :  { %v5304_v48 = vpop.eup %5303  ;;  %v1095_v27 = vmul.f32 %v1073_v45, %v758_v0  ;;  %v1096_v25 = vmul.f32 %v1073_v45, %v759_v34 }
 0x115   :  { %v5306_v50 = vpop.eup %5305  ;;  %v1166_v26 = vrot.slane %v5304_v48, 1 }
 0x116   :  { %v5308_v6 = vpop.eup %5307  ;;  %v1167_v16 = vrot.slane %v5306_v50, 1  ;;  %v1115_v43 = vadd.f32 %v6033_v3, %v1095_v27  ;;  %v1116_v62 = vadd.f32 %v6033_v3, %v1096_v25 }
 0x117   :  { %v728_v55 = vmul.f32 %v5308_v6, %v6067_v24  ;;  %v729_v44 = vmul.f32 %v5308_v6, %v6075_v28 }
 0x118   :  { %v6156_v12 = vsel %vm385_vm4, %v1166_v26, %v1167_v16  ;;  %5309 = vtanh.f32 %v1115_v43 }
 0x119   :  { %8234 = vst [vmem:[#allocation9_spill] sm:$0xff] %v6156_v12  ;;  %v744_v59 = vadd.f32 %v728_v55, %v488_v9  ;;  %v745_v63 = vadd.f32 %v729_v44, %v489_v17  ;;  %v1185_v24 = vpack.c.bf16 %v6156_v12, %v6161_v10  ;;  %5311 = vtanh.f32 %v1116_v62 }
 0x11b   :  { %v760_v21 = vmul.f32 0.5, %v744_v59  ;;  %v761_v23 = vmul.f32 0.5, %v745_v63 }
 0x11d   :  { %v1097_v28 = vmul.f32 %v1074_v41, %v760_v21  ;;  %v1098_v47 = vmul.f32 %v1074_v41, %v761_v23  ;;  %4911 = vmatmul.msk.bf16.gmra.mxu3 %vm1203_vm7, %v1185_v24 }
 0x11e   :  { %v5310_v8 = vpop.eup %5309 }
 0x11f   :  { %v1117_v19 = vadd.f32 %v6033_v3, %v1097_v28  ;;  %v1118_v15 = vadd.f32 %v6033_v3, %v1098_v47  ;;  %v5312_v13 = vpop.eup %5311  ;;  %v1169_v20 = vrot.slane %v5310_v8, 1 }
 0x120   :  { %v1170_v35 = vrot.slane %v5312_v13, 1 }
 0x121   :  { %5313 = vtanh.f32 %v1117_v19 }
 0x122   :  { %5315 = vtanh.f32 %v1118_v15  ;;  %v6169_v36 = vsel %vm385_vm4, %v1169_v20, %v1170_v35 }
 0x123   :  { %8236 = vst [vmem:[#allocation11_spill] sm:$0xff] %v6169_v36 }
 0x127   :  { %v5314_v30 = vpop.eup %5313 }
 0x128   :  { %v5316_v31 = vpop.eup %5315  ;;  %v1172_v5 = vrot.slane %v5314_v30, 1 }
 0x129   :  { %v1173_v56 = vrot.slane %v5316_v31, 1 }
 0x12b   :  { %v6172_v22 = vsel %vm385_vm4, %v1172_v5, %v1173_v56 }
 0x12c   :  { %v1186_v11 = vpack.c.bf16 %v6172_v22, %v6169_v36 }
 0x12e   :  { %4912 = vmatmul.msk.bf16.gmra.mxu3 %vm1203_vm7, %v1186_v11 }
 0x180   :  { %v1225_v3 = vpop.f32.mrf.mxu3 }
 0x181   :  { %v1245_v33 = vsel %vm1203_vm7, %v1225_v3, -inf }
 0x182   :  { %1246 = vmax.xlane.f32.xlu2 %v1245_v33  ;;  %v8132_v33 = vmov 0  }
 0x183   :  { %4959 = vset.pattern.permute.xlu0 %v8132_v33  ;;  %4979 = vset.pattern.permute.xlu1 %v8132_v33 }
 0x188   :  { %v1227_v39 = vpop.f32.mrf.mxu3 }
 0x189   :  { %v1248_v60 = vsel %vm1203_vm7, %v1227_v39, -inf }
 0x18a   :  { %1249 = vmax.xlane.f32.xlu0 %v1248_v60 }
 0x190   :  { %v1230_v40 = vpop.f32.mrf.mxu3 }
 0x191   :  { %v1251_v7 = vsel %vm1203_vm7, %v1230_v40, -inf }
 0x192   :  { %1252 = vmax.xlane.f32.xlu1 %v1251_v7 }
 0x198   :  { %v1232_v29 = vpop.f32.mrf.mxu3 }
 0x199   :  { %v1254_v1 = vsel %vm1203_vm7, %v1232_v29, -inf }
 0x19a   :  { %1255 = vmax.xlane.f32.xlu2 %v1254_v1 }
 0x1a0   :  { %v1235_v14 = vpop.f32.mrf.mxu3 }
 0x1a1   :  { %v1257_v54 = vsel %vm1203_vm7, %v1235_v14, -inf }
 0x1a2   :  { %1258 = vmax.xlane.f32.xlu0 %v1257_v54  ;;  %v8142_v54 = vmov 2  }
 0x1a8   :  { %v1237_v4 = vpop.f32.mrf.mxu3 }
 0x1a9   :  { %v1260_v57 = vsel %vm1203_vm7, %v1237_v4, -inf }
 0x1aa   :  { %1261 = vmax.xlane.f32.xlu1 %v1260_v57 }
 0x1b1   :  { %v1240_v58 = vpop.f32.mrf.mxu3 }
 0x1b2   :  { %v1263_v53 = vsel %vm1203_vm7, %v1240_v58, -inf }
 0x1b3   :  { %1264 = vmax.xlane.f32.xlu2 %v1263_v53  ;;  %v8162_v53 = vmov 4  }
 0x1b9   :  { %v1242_v38 = vpop.f32.mrf.mxu3 }
 0x1ba   :  { %v1266_v51 = vsel %vm1203_vm7, %v1242_v38, -inf }
 0x1bb   :  { %1267 = vmax.xlane.f32.xlu0 %v1266_v51  ;;  %v8152_v51 = vmov 6  }
 0x1f5   :  { %v1247_v18 = vpop.xlane.xlu2 %1246 }
 0x1f6   :  { %v1269_v42 = vsub.f32 %v1225_v3, %v1247_v18  ;;  %v8134_v3 = vmov 1   ;;  %v8150_v18 = vmov 7  }
 0x1f7   :  { %4960 = vset.pattern.permute.xlu2 %v8134_v3 }
 0x1f8   :  { %v1277_v45 = vmul.f32 1.442695, %v1269_v42  ;;  %v8148_v42 = vmov 8  }
 0x1fa   :  { %5317 = vpow2.f32 %v1277_v45  ;;  %v8146_v45 = vmov 9  }
 0x1fd   :  { %v1250_v48 = vpop.xlane.xlu0 %1249 }
 0x1fe   :  { %v1270_v46 = vsub.f32 %v1227_v39, %v1250_v48 }
 0x200   :  { %v5318_v50 = vpop.eup %5317  ;;  %v1279_v49 = vmul.f32 1.442695, %v1270_v46  ;;  %v8144_v46 = vmov 10  }
 0x201   :  { %v1293_v26 = vsel %vm1203_vm7, %v5318_v50, 0.0 }
 0x202   :  { %5319 = vpow2.f32 %v1279_v49  ;;  %1294 = vadd.xlane.f32.xlu1 %v1293_v26  ;;  %v8140_v49 = vmov 11  }
 0x205   :  { %v1253_v0 = vpop.xlane.xlu1 %1252 }
 0x206   :  { %v1271_v34 = vsub.f32 %v1230_v40, %v1253_v0  ;;  %v8138_v0 = vmov 12  }
 0x208   :  { %v5320_v6 = vpop.eup %5319  ;;  %v1281_v52 = vmul.f32 1.442695, %v1271_v34 }
 0x209   :  { %v1296_v16 = vsel %vm1203_vm7, %v5320_v6, 0.0 }
 0x20a   :  { %5321 = vpow2.f32 %v1281_v52  ;;  %1297 = vadd.xlane.f32.xlu2 %v1296_v16  ;;  %v8136_v52 = vmov 13  }
 0x20d   :  { %v1256_v9 = vpop.xlane.xlu2 %1255 }
 0x20e   :  { %v1272_v17 = vsub.f32 %v1232_v29, %v1256_v9 }
 0x210   :  { %v5322_v27 = vpop.eup %5321  ;;  %v1283_v25 = vmul.f32 1.442695, %v1272_v17 }
 0x211   :  { %v1299_v55 = vsel %vm1203_vm7, %v5322_v27, 0.0 }
 0x212   :  { %5323 = vpow2.f32 %v1283_v25  ;;  %1300 = vadd.xlane.f32.xlu0 %v1299_v55 }
 0x215   :  { %v1259_v44 = vpop.xlane.xlu0 %1258 }
 0x216   :  { %v1273_v41 = vsub.f32 %v1235_v14, %v1259_v44 }
 0x218   :  { %v6188_v43 = vpop.eup %5323  ;;  %v1285_v59 = vmul.f32 1.442695, %v1273_v41  ;;  %v8126_v41 = vmov 15  }
 0x219   :  { %v1302_v63 = vsel %vm1203_vm7, %v6188_v43, 0.0 }
 0x21a   :  { %5325 = vpow2.f32 %v1285_v59  ;;  %1303 = vadd.xlane.f32.xlu1 %v1302_v63 }
 0x21d   :  { %v1262_v62 = vpop.xlane.xlu1 %1261 }
 0x21e   :  { %v1274_v21 = vsub.f32 %v1237_v4, %v1262_v62 }
 0x220   :  { %v6192_v23 = vpop.eup %5325  ;;  %v1287_v24 = vmul.f32 1.442695, %v1274_v21  ;;  %v8122_v21 = vmov 16  }
 0x221   :  { %v1305_v28 = vsel %vm1203_vm7, %v6192_v23, 0.0 }
 0x222   :  { %5327 = vpow2.f32 %v1287_v24  ;;  %1306 = vadd.xlane.f32.xlu2 %v1305_v28 }
 0x226   :  { %v1265_v47 = vpop.xlane.xlu2 %1264 }
 0x227   :  { %v1275_v19 = vsub.f32 %v1240_v58, %v1265_v47  ;;  %v8156_v58 = vmov 3  }
 0x228   :  { %v6196_v15 = vpop.eup %5327 }
 0x229   :  { %v1289_v8 = vmul.f32 1.442695, %v1275_v19  ;;  %v1308_v13 = vsel %vm1203_vm7, %v6196_v15, 0.0  ;;  %v8120_v19 = vmov 17  }
 0x22a   :  { %1309 = vadd.xlane.f32.xlu0 %v1308_v13 }
 0x22b   :  { %5329 = vpow2.f32 %v1289_v8 }
 0x22e   :  { %v1268_v30 = vpop.xlane.xlu0 %1267 }
 0x22f   :  { %v1276_v20 = vsub.f32 %v1242_v38, %v1268_v30  ;;  %v8154_v38 = vmov 5  }
 0x231   :  { %v6200_v35 = vpop.eup %5329  ;;  %v1291_v31 = vmul.f32 1.442695, %v1276_v20  ;;  %v8124_v20 = vmov 18  }
 0x232   :  { %8237 = vst [vmem:[#allocation12_spill] sm:$0xff] %v6200_v35  ;;  %v1311_v5 = vsel %vm1203_vm7, %v6200_v35, 0.0 }
 0x233   :  { %5331 = vpow2.f32 %v1291_v31  ;;  %1312 = vadd.xlane.f32.xlu1 %v1311_v5 }
 0x239   :  { %v6204_v56 = vpop.eup %5331 }
 0x23a   :  { %v1314_v11 = vsel %vm1203_vm7, %v6204_v56, 0.0 }
 0x23b   :  { %1315 = vadd.xlane.f32.xlu2 %v1314_v11 }
 0x275   :  { %v1295_v39 = vpop.xlane.xlu1 %1294 }
 0x276   :  { %5333 = vrcp.f32 %v1295_v39  ;;  %v8130_v39 = vmov 19  }
 0x27c   :  { %v5334_v60 = vpop.eup %5333 }
 0x27d   :  { %v6211_v40 = vmul.f32 %v5334_v60, %v5318_v50  ;;  %v1298_v7 = vpop.xlane.xlu2 %1297 }
 0x27e   :  { %5335 = vrcp.f32 %v1298_v7 }
 0x27f   :  { %8238 = vst [vmem:[#allocation13_spill] sm:$0xff] %v6211_v40  ;;  %1335 = vperm.xlu0 %4959, %v6211_v40   ;;  %1438 = vperm.xlu2 %4960, %v6211_v40  }
 0x284   :  { %v5336_v29 = vpop.eup %5335 }
 0x285   :  { %v6215_v1 = vmul.f32 %v5336_v29, %v5320_v6  ;;  %v1301_v14 = vpop.xlane.xlu0 %1300 }
 0x286   :  { %5337 = vrcp.f32 %v1301_v14 }
 0x287   :  { %8239 = vst [vmem:[#allocation14_spill] sm:$0xff] %v6215_v1  ;;  %1340 = vperm.xlu1 %4979, %v6215_v1   ;;  %4961 = vset.pattern.permute.xlu2 %v8142_v54 }
 0x288   :  { %1542 = vperm.xlu2 %4961, %v6211_v40   ;;  %5000 = vset.pattern.permute.xlu0 %v8134_v3 }
 0x28c   :  { %v5338_v4 = vpop.eup %5337 }
 0x28d   :  { %v6221_v57 = vmul.f32 %v5338_v4, %v5322_v27  ;;  %v6291_v6 = vpop.xlane.xlu1 %1303  ;;  %v8128_v27 = vmov 14  }
 0x28e   :  { %5339 = vrcp.f32 %v6291_v6 }
 0x28f   :  { %8240 = vst [vmem:[#allocation15_spill] sm:$0xff] %v6221_v57  ;;  %4980 = vset.pattern.permute.xlu1 %v8134_v3  ;;  %1446 = vperm.xlu0 %5000, %v6221_v57  }
 0x290   :  { %1442 = vperm.xlu1 %4980, %v6215_v1   ;;  %4962 = vset.pattern.permute.xlu2 %v8156_v58 }
 0x291   :  { %1646 = vperm.xlu2 %4962, %v6211_v40  }
 0x294   :  { %v5340_v4 = vpop.eup %5339 }
 0x295   :  { %v6264_v48 = vpop.xlane.xlu2 %1306  ;;  %v6389_v6 = vmul.f32 %v5340_v4, %v6188_v43 }
 0x297   :  { %5001 = vset.pattern.permute.xlu0 %v8142_v54  ;;  %8244 = vst [vmem:[#allocation19_spill] sm:$0xff] %v6389_v6 }
 0x298   :  { %4981 = vset.pattern.permute.xlu1 %v8142_v54  ;;  %1550 = vperm.xlu0 %5001, %v6221_v57  }
 0x299   :  { %1546 = vperm.xlu1 %4981, %v6215_v1   ;;  %4963 = vset.pattern.permute.xlu2 %v8162_v53 }
 0x29a   :  { %1750 = vperm.xlu2 %4963, %v6211_v40  }
 0x29d   :  { %v6300_v9 = vpop.xlane.xlu0 %1309 }
 0x2a0   :  { %5002 = vset.pattern.permute.xlu0 %v8156_v58 }
 0x2a1   :  { %4982 = vset.pattern.permute.xlu1 %v8156_v58  ;;  %1654 = vperm.xlu0 %5002, %v6221_v57  }
 0x2a2   :  { %1650 = vperm.xlu1 %4982, %v6215_v1   ;;  %4964 = vset.pattern.permute.xlu2 %v8154_v38 }
 0x2a3   :  { %1854 = vperm.xlu2 %4964, %v6211_v40  }
 0x2a6   :  { %v6302_v17 = vpop.xlane.xlu1 %1312 }
 0x2a9   :  { %5003 = vset.pattern.permute.xlu0 %v8162_v53 }
 0x2aa   :  { %4983 = vset.pattern.permute.xlu1 %v8162_v53  ;;  %1758 = vperm.xlu0 %5003, %v6221_v57  }
 0x2ab   :  { %1754 = vperm.xlu1 %4983, %v6215_v1   ;;  %4965 = vset.pattern.permute.xlu2 %v8152_v51 }
 0x2ac   :  { %1958 = vperm.xlu2 %4965, %v6211_v40  }
 0x2ae   :  { %v6272_v50 = vpop.xlane.xlu2 %1315 }
 0x2af   :  { %5341 = vrcp.f32 %v6272_v50 }
 0x2b0   :  { %5343 = vrcp.f32 %v6264_v48 }
 0x2b1   :  { %5345 = vrcp.f32 %v6300_v9 }
 0x2b2   :  { %5004 = vset.pattern.permute.xlu0 %v8154_v38  ;;  %5347 = vrcp.f32 %v6302_v17 }
 0x2b3   :  { %4984 = vset.pattern.permute.xlu1 %v8154_v38  ;;  %1862 = vperm.xlu0 %5004, %v6221_v57  }
 0x2b4   :  { %1858 = vperm.xlu1 %4984, %v6215_v1   ;;  %4966 = vset.pattern.permute.xlu2 %v8150_v18 }
 0x2b5   :  { %2062 = vperm.xlu2 %4966, %v6211_v40   ;;  %v5342_v50 = vpop.eup %5341 }
 0x2b6   :  { %v6400_v43 = vmul.f32 %v5342_v50, %v6204_v56 }
 0x2bb   :  { %5005 = vset.pattern.permute.xlu0 %v8152_v51 }
 0x2bc   :  { %4985 = vset.pattern.permute.xlu1 %v8152_v51  ;;  %1966 = vperm.xlu0 %5005, %v6221_v57  }
 0x2bd   :  { %1962 = vperm.xlu1 %4985, %v6215_v1   ;;  %4967 = vset.pattern.permute.xlu2 %v8148_v42 }
 0x2be   :  { %2166 = vperm.xlu2 %4967, %v6211_v40  }
 0x2c4   :  { %5006 = vset.pattern.permute.xlu0 %v8150_v18 }
 0x2c5   :  { %4986 = vset.pattern.permute.xlu1 %v8150_v18  ;;  %2070 = vperm.xlu0 %5006, %v6221_v57  }
 0x2c6   :  { %2066 = vperm.xlu1 %4986, %v6215_v1   ;;  %4968 = vset.pattern.permute.xlu2 %v8146_v45 }
 0x2c7   :  { %2270 = vperm.xlu2 %4968, %v6211_v40  }
 0x2cd   :  { %5007 = vset.pattern.permute.xlu0 %v8148_v42 }
 0x2ce   :  { %4987 = vset.pattern.permute.xlu1 %v8148_v42  ;;  %2174 = vperm.xlu0 %5007, %v6221_v57  }
 0x2cf   :  { %2170 = vperm.xlu1 %4987, %v6215_v1   ;;  %4969 = vset.pattern.permute.xlu2 %v8144_v46 }
 0x2d0   :  { %2374 = vperm.xlu2 %4969, %v6211_v40  }
 0x2d6   :  { %5008 = vset.pattern.permute.xlu0 %v8146_v45 }
 0x2d7   :  { %4988 = vset.pattern.permute.xlu1 %v8146_v45  ;;  %2278 = vperm.xlu0 %5008, %v6221_v57  }
 0x2d8   :  { %2274 = vperm.xlu1 %4988, %v6215_v1   ;;  %4970 = vset.pattern.permute.xlu2 %v8140_v49 }
 0x2d9   :  { %2478 = vperm.xlu2 %4970, %v6211_v40   ;;  %v6280_v26 = vpop.permute.xlu2 %1438 }
 0x2df   :  { %5009 = vset.pattern.permute.xlu0 %v8144_v46 }
 0x2e0   :  { %4989 = vset.pattern.permute.xlu1 %v8144_v46  ;;  %2382 = vperm.xlu0 %5009, %v6221_v57  }
 0x2e1   :  { %2378 = vperm.xlu1 %4989, %v6215_v1   ;;  %4971 = vset.pattern.permute.xlu2 %v8138_v0 }
 0x2e2   :  { %2582 = vperm.xlu2 %4971, %v6211_v40   ;;  %v6288_v34 = vpop.permute.xlu2 %1542 }
 0x2e8   :  { %5010 = vset.pattern.permute.xlu0 %v8140_v49 }
 0x2e9   :  { %4990 = vset.pattern.permute.xlu1 %v8140_v49  ;;  %2486 = vperm.xlu0 %5010, %v6221_v57  }
 0x2ea   :  { %2482 = vperm.xlu1 %4990, %v6215_v1   ;;  %4972 = vset.pattern.permute.xlu2 %v8136_v52 }
 0x2eb   :  { %2686 = vperm.xlu2 %4972, %v6211_v40   ;;  %v6298_v16 = vpop.permute.xlu2 %1646 }
 0x2f1   :  { %5011 = vset.pattern.permute.xlu0 %v8138_v0  ;;  %v6312_v55 = vpop.permute.xlu0 %1335 }
 0x2f2   :  { %4991 = vset.pattern.permute.xlu1 %v8138_v0  ;;  %2590 = vperm.xlu0 %5011, %v6221_v57  }
 0x2f3   :  { %2586 = vperm.xlu1 %4991, %v6215_v1   ;;  %4973 = vset.pattern.permute.xlu2 %v8128_v27 }
 0x2f4   :  { %2790 = vperm.xlu2 %4973, %v6211_v40   ;;  %v6310_v25 = vpop.permute.xlu2 %1750 }
 0x2f9   :  { %v6314_v44 = vpop.permute.xlu1 %1340 }
 0x2fa   :  { %5012 = vset.pattern.permute.xlu0 %v8136_v52 }
 0x2fb   :  { %4992 = vset.pattern.permute.xlu1 %v8136_v52  ;;  %2694 = vperm.xlu0 %5012, %v6221_v57  }
 0x2fc   :  { %2690 = vperm.xlu1 %4992, %v6215_v1   ;;  %4974 = vset.pattern.permute.xlu2 %v8126_v41 }
 0x2fd   :  { %2894 = vperm.xlu2 %4974, %v6211_v40   ;;  %v6322_v59 = vpop.permute.xlu2 %1854 }
 0x301   :  { %v6324_v63 = vpop.permute.xlu0 %1446 }
 0x302   :  { %v6326_v62 = vpop.permute.xlu1 %1442  ;;  %v1471_v0 = vmul.f32 %v6324_v63, %v6137_v2 }
 0x303   :  { %5013 = vset.pattern.permute.xlu0 %v8128_v27 }
 0x304   :  { %4993 = vset.pattern.permute.xlu1 %v8128_v27  ;;  %2798 = vperm.xlu0 %5013, %v6221_v57  }
 0x305   :  { %2794 = vperm.xlu1 %4993, %v6215_v1   ;;  %4975 = vset.pattern.permute.xlu2 %v8122_v21 }
 0x306   :  { %2998 = vperm.xlu2 %4975, %v6211_v40   ;;  %v6334_v24 = vpop.permute.xlu2 %1958 }
 0x30a   :  { %v6336_v28 = vpop.permute.xlu0 %1550 }
 0x30b   :  { %v6338_v47 = vpop.permute.xlu1 %1546 }
 0x30c   :  { %5014 = vset.pattern.permute.xlu0 %v8126_v41  ;;  %v1574_v9 = vmul.f32 %v6338_v47, %v6112_v37 }
 0x30d   :  { %4994 = vset.pattern.permute.xlu1 %v8126_v41  ;;  %2902 = vperm.xlu0 %5014, %v6221_v57   ;;  %v5344_v41 = vpop.eup %5343 }
 0x30e   :  { %2898 = vperm.xlu1 %4994, %v6215_v1   ;;  %4976 = vset.pattern.permute.xlu2 %v8120_v19  ;;  %v6405_v48 = vmul.f32 %v5344_v41, %v6192_v23 }
 0x30f   :  { %3102 = vperm.xlu2 %4976, %v6211_v40   ;;  %v6346_v8 = vpop.permute.xlu2 %2062 }
 0x310   :  { %8247 = vst [vmem:[#allocation22_spill] sm:$0xff] %v6405_v48 }
 0x313   :  { %v6348_v13 = vpop.permute.xlu0 %1654 }
 0x314   :  { %v6350_v30 = vpop.permute.xlu1 %1650  ;;  %v1679_v49 = vmul.f32 %v6348_v13, %v6137_v2 }
 0x315   :  { %5015 = vset.pattern.permute.xlu0 %v8122_v21 }
 0x316   :  { %4995 = vset.pattern.permute.xlu1 %v8122_v21  ;;  %3006 = vperm.xlu0 %5015, %v6221_v57   ;;  %v1699_v51 = vsel %vm1203_vm7, %v1679_v49, 0.0 }
 0x317   :  { %3002 = vperm.xlu1 %4995, %v6215_v1   ;;  %4977 = vset.pattern.permute.xlu2 %v8124_v20  ;;  %v1700_v49 = vrot.slane %v1699_v51, 4 }
 0x318   :  { %3206 = vperm.xlu2 %4977, %v6211_v40   ;;  %v6358_v31 = vpop.permute.xlu2 %2166 }
 0x319   :  { %v1701_v10 = vadd.f32 %v1700_v49, %v1699_v51  ;;  %v8257_v51 = vmov 5  }
 0x31c   :  { %v6360_v5 = vpop.permute.xlu0 %1758 }
 0x31d   :  { %v6362_v11 = vpop.permute.xlu1 %1754  ;;  %v1783_v45 = vmul.f32 %v6360_v5, %v6137_v2 }
 0x31e   :  { %5016 = vset.pattern.permute.xlu0 %v8120_v19 }
 0x31f   :  { %4996 = vset.pattern.permute.xlu1 %v8120_v19  ;;  %3110 = vperm.xlu0 %5016, %v6221_v57   ;;  %v1803_v13 = vsel %vm1203_vm7, %v1783_v45, 0.0 }
 0x320   :  { %3106 = vperm.xlu1 %4996, %v6215_v1   ;;  %4978 = vset.pattern.permute.xlu2 %v8130_v39 }
 0x321   :  { %3310 = vperm.xlu2 %4978, %v6211_v40   ;;  %v6370_v60 = vpop.permute.xlu2 %2270 }
 0x325   :  { %v6372_v7 = vpop.permute.xlu0 %1862 }
 0x326   :  { %v6374_v29 = vpop.permute.xlu1 %1858  ;;  %v1887_v63 = vmul.f32 %v6372_v7, %v6137_v2 }
 0x327   :  { %8241 = vst [vmem:[#allocation16_spill] sm:$0xff] %v6374_v29  ;;  %5017 = vset.pattern.permute.xlu0 %v8124_v20 }
 0x328   :  { %4997 = vset.pattern.permute.xlu1 %v8124_v20  ;;  %3214 = vperm.xlu0 %5017, %v6221_v57   ;;  %v1907_v7 = vsel %vm1203_vm7, %v1887_v63, 0.0 }
 0x329   :  { %3210 = vperm.xlu1 %4997, %v6215_v1   ;;  %4999 = vset.pattern.permute.xlu2 %v8132_v33  ;;  %v1908_v61 = vrot.slane %v1907_v7, 4 }
 0x32a   :  { %v6382_v14 = vpop.permute.xlu2 %2374  ;;  %1345 = vperm.xlu2 %4999, %v6221_v57  }
 0x32b   :  { %8242 = vst [vmem:[#allocation17_spill] sm:$0xff] %v6382_v14 }
 0x32e   :  { %v1967_v19 = vpop.permute.xlu0 %1966 }
 0x32f   :  { %v6386_v21 = vpop.permute.xlu1 %1962 }
 0x330   :  { %8243 = vst [vmem:[#allocation18_spill] sm:$0xff] %v6386_v21  ;;  %5018 = vset.pattern.permute.xlu0 %v8130_v39 }
 0x331   :  { %4998 = vset.pattern.permute.xlu1 %v8130_v39  ;;  %3318 = vperm.xlu0 %5018, %v6221_v57  }
 0x332   :  { %3314 = vperm.xlu1 %4998, %v6215_v1   ;;  %1350 = vperm.xlu2 %4999, %v6389_v6  }
 0x333   :  { %v6397_v20 = vpop.permute.xlu2 %2478 }
 0x334   :  { %8245 = vst [vmem:[#allocation20_spill] sm:$0xff] %v6397_v20 }
 0x337   :  { %v2071_v27 = vpop.permute.xlu0 %2070 }
 0x338   :  { %v6402_v4 = vpop.permute.xlu1 %2066  ;;  %v2095_v36 = vmul.f32 %v2071_v27, %v6137_v2 }
 0x339   :  { %8246 = vst [vmem:[#allocation21_spill] sm:$0xff] %v6402_v4  ;;  %5100 = vset.pattern.permute.xlu0 %v8132_v33 }
 0x33a   :  { %5038 = vset.pattern.permute.xlu1 %v8132_v33  ;;  %1370 = vperm.xlu0 %5100, %v6400_v43  }
 0x33b   :  { %5019 = vset.pattern.permute.xlu2 %v8134_v3  ;;  %1355 = vperm.xlu1 %5038, %v6405_v48  }
 0x33c   :  { %1450 = vperm.xlu2 %5019, %v6389_v6   ;;  %v6413_v39 = vpop.permute.xlu2 %2582 }
 0x33d   :  { %8248 = vst [vmem:[#allocation23_spill] sm:$0xff] %v6413_v39 }
 0x340   :  { %v2175_v56 = vpop.permute.xlu0 %2174 }
 0x341   :  { %v6415_v50 = vpop.permute.xlu1 %2170  ;;  %v2199_v45 = vmul.f32 %v2175_v56, %v6137_v2  ;;  %v1702_v56 = vrot.slane %v1701_v10, 2 }
 0x342   :  { %8249 = vst [vmem:[#allocation24_spill] sm:$0xff] %v6415_v50  ;;  %5101 = vset.pattern.permute.xlu0 %v8134_v3 }
 0x343   :  { %5039 = vset.pattern.permute.xlu1 %v8134_v3  ;;  %1466 = vperm.xlu0 %5101, %v6400_v43   ;;  %v1575_v3 = vmul.f32 %v6336_v28, %v6137_v2  ;;  %v1491_v28 = vsel %vm1203_vm7, %v1471_v0, 0.0  ;;  %v1991_v0 = vmul.f32 %v1967_v19, %v6137_v2  ;;  %v1703_v50 = vadd.f32 %v1702_v56, %v1701_v10 }
 0x344   :  { %5020 = vset.pattern.permute.xlu2 %v8142_v54  ;;  %1454 = vperm.xlu1 %5039, %v6405_v48   ;;  %v8260_v56 = vmov 6  }
 0x345   :  { %1554 = vperm.xlu2 %5020, %v6389_v6   ;;  %v6423_v23 = vpop.permute.xlu2 %2686 }
 0x346   :  { %8250 = vst [vmem:[#allocation25_spill] sm:$0xff] %v6423_v23 }
 0x349   :  { %v2279_v41 = vpop.permute.xlu0 %2278 }
 0x34a   :  { %v6425_v33 = vpop.permute.xlu1 %2274  ;;  %v2303_v63 = vmul.f32 %v2279_v41, %v6137_v2 }
 0x34b   :  { %8251 = vst [vmem:[#allocation26_spill] sm:$0xff] %v6425_v33  ;;  %5102 = vset.pattern.permute.xlu0 %v8142_v54 }
 0x34c   :  { %5040 = vset.pattern.permute.xlu1 %v8142_v54  ;;  %1570 = vperm.xlu0 %5102, %v6400_v43   ;;  %v1595_v54 = vsel %vm1203_vm7, %v1575_v3, 0.0  ;;  %v1492_v3 = vrot.slane %v1491_v28, 4 }
 0x34d   :  { %5021 = vset.pattern.permute.xlu2 %v8156_v58  ;;  %1558 = vperm.xlu1 %5040, %v6405_v48   ;;  %v1596_v18 = vrot.slane %v1595_v54, 4 }
 0x34e   :  { %1658 = vperm.xlu2 %5021, %v6389_v6   ;;  %v6435_v52 = vpop.permute.xlu2 %2790  ;;  %v1493_v40 = vadd.f32 %v1492_v3, %v1491_v28  ;;  %v1909_v28 = vadd.f32 %v1908_v61, %v1907_v7  ;;  %v2219_v3 = vsel %vm1203_vm7, %v2199_v45, 0.0 }
 0x34f   :  { %8252 = vst [vmem:[#allocation27_spill] sm:$0xff] %v6435_v52  ;;  %v1597_v38 = vadd.f32 %v1596_v18, %v1595_v54  ;;  %v8256_v52 = vmov 4   ;;  %v2115_v18 = vsel %vm1203_vm7, %v2095_v36, 0.0  ;;  %v2220_v33 = vrot.slane %v2219_v3, 4 }
 0x350   :  { %v1494_v27 = vrot.slane %v1493_v40, 2  ;;  %v1910_v61 = vrot.slane %v1909_v28, 2 }
 0x352   :  { %v2383_v46 = vpop.permute.xlu0 %2382  ;;  %v1495_v23 = vadd.f32 %v1494_v27, %v1493_v40 }
 0x353   :  { %v6444_v42 = vpop.permute.xlu1 %2378 }
 0x354   :  { %8253 = vst [vmem:[#allocation28_spill] sm:$0xff] %v6444_v42  ;;  %5103 = vset.pattern.permute.xlu0 %v8156_v58  ;;  %v1598_v42 = vrot.slane %v1597_v38, 2  ;;  %v1496_v10 = vrot.slane %v1495_v23, 1 }
 0x355   :  { %5041 = vset.pattern.permute.xlu1 %v8156_v58  ;;  %1674 = vperm.xlu0 %5103, %v6400_v43   ;;  %v1804_v58 = vrot.slane %v1803_v13, 4 }
 0x356   :  { %5022 = vset.pattern.permute.xlu2 %v8162_v53  ;;  %1662 = vperm.xlu1 %5041, %v6405_v48   ;;  %v2011_v53 = vsel %vm1203_vm7, %v1991_v0, 0.0  ;;  %v1599_v41 = vadd.f32 %v1598_v42, %v1597_v38 }
 0x357   :  { %1762 = vperm.xlu2 %5022, %v6389_v6   ;;  %v6458_v5 = vpop.permute.xlu2 %2894  ;;  %v2012_v54 = vrot.slane %v2011_v53, 4 }
 0x358   :  { %8254 = vst [vmem:[#allocation29_spill] sm:$0xff] %v6458_v5  ;;  %v1805_v5 = vadd.f32 %v1804_v58, %v1803_v13  ;;  %v2407_v58 = vmul.f32 %v2383_v46, %v6137_v2  ;;  %v2116_v13 = vrot.slane %v2115_v18, 4  ;;  %v1600_v46 = vrot.slane %v1599_v41, 1 }
 0x359   :  { %v2013_v49 = vadd.f32 %v2012_v54, %v2011_v53 }
 0x35a   :  { %v1806_v0 = vrot.slane %v1805_v5, 2  ;;  %v2427_v7 = vsel %vm1203_vm7, %v2407_v58, 0.0  ;;  %v2117_v35 = vadd.f32 %v2116_v13, %v2115_v18  ;;  %v1911_v18 = vadd.f32 %v1910_v61, %v1909_v28 }
 0x35b   :  { %v2487_v12 = vpop.permute.xlu0 %2486  ;;  %v2014_v42 = vrot.slane %v2013_v49, 2  ;;  %v2428_v40 = vrot.slane %v2427_v7, 4  ;;  %v1497_v28 = vadd.f32 %v1496_v10, %v1495_v23 }
 0x35c   :  { %v6464_v19 = vpop.permute.xlu1 %2482  ;;  %v1807_v38 = vadd.f32 %v1806_v0, %v1805_v5  ;;  %v2118_v5 = vrot.slane %v2117_v35, 2 }
 0x35d   :  { %8255 = vst [vmem:[#allocation30_spill] sm:$0xff] %v6464_v19  ;;  %5104 = vset.pattern.permute.xlu0 %v8256_v52  ;;  %v2511_v19 = vmul.f32 %v2487_v12, %v6137_v2  ;;  %v2221_v12 = vadd.f32 %v2220_v33, %v2219_v3  ;;  %v1601_v3 = vadd.f32 %v1600_v46, %v1599_v41 }
 0x35e   :  { %5042 = vset.pattern.permute.xlu1 %v8256_v52  ;;  %1778 = vperm.xlu0 %5104, %v6400_v43   ;;  %v2323_v52 = vsel %vm1203_vm7, %v2303_v63, 0.0  ;;  %v1704_v63 = vrot.slane %v1703_v50, 1  ;;  %v1808_v13 = vrot.slane %v1807_v38, 1  ;;  %v2015_v0 = vadd.f32 %v2014_v42, %v2013_v49 }
 0x35f   :  { %5023 = vset.pattern.permute.xlu2 %v8257_v51  ;;  %1766 = vperm.xlu1 %5042, %v6405_v48   ;;  %v2324_v39 = vrot.slane %v2323_v52, 4  ;;  %v2531_v53 = vsel %vm1203_vm7, %v2511_v19, 0.0  ;;  %v1535_v21 = vmax.f32 %v1601_v3, %v1497_v28 }
 0x360   :  { %1866 = vperm.xlu2 %5023, %v6389_v6   ;;  %v6476_v36 = vpop.permute.xlu2 %2998  ;;  %v2532_v58 = vrot.slane %v2531_v53, 4  ;;  %v1705_v61 = vadd.f32 %v1704_v63, %v1703_v50 }
 0x361   :  { %8258 = vst [vmem:[#allocation31_spill] sm:$0xff] %v6476_v36  ;;  %v2325_v19 = vadd.f32 %v2324_v39, %v2323_v52  ;;  %v2119_v36 = vadd.f32 %v2118_v5, %v2117_v35  ;;  %v1809_v52 = vadd.f32 %v1808_v13, %v1807_v38  ;;  %v2016_v39 = vrot.slane %v2015_v0, 1 }
 0x362   :  { %v2533_v57 = vadd.f32 %v2532_v58, %v2531_v53 }
 0x363   :  { %v2326_v1 = vrot.slane %v2325_v19, 2  ;;  %v2120_v35 = vrot.slane %v2119_v36, 1 }
 0x364   :  { %v2591_v45 = vpop.permute.xlu0 %2590  ;;  %v2534_v42 = vrot.slane %v2533_v57, 2 }
 0x365   :  { %v6481_v4 = vpop.permute.xlu1 %2586  ;;  %v2615_v54 = vmul.f32 %v2591_v45, %v6137_v2  ;;  %v2222_v45 = vrot.slane %v2221_v12, 2  ;;  %v2327_v38 = vadd.f32 %v2326_v1, %v2325_v19 }
 0x366   :  { %8259 = vst [vmem:[#allocation32_spill] sm:$0xff] %v6481_v4  ;;  %5105 = vset.pattern.permute.xlu0 %v8257_v51  ;;  %v2535_v1 = vadd.f32 %v2534_v42, %v2533_v57 }
 0x367   :  { %5043 = vset.pattern.permute.xlu1 %v8257_v51  ;;  %1882 = vperm.xlu0 %5105, %v6400_v43   ;;  %v2635_v27 = vsel %vm1203_vm7, %v2615_v54, 0.0  ;;  %v2429_v51 = vadd.f32 %v2428_v40, %v2427_v7  ;;  %v1912_v54 = vrot.slane %v1911_v18, 1  ;;  %v2223_v41 = vadd.f32 %v2222_v45, %v2221_v12 }
 0x368   :  { %5024 = vset.pattern.permute.xlu2 %v8260_v56  ;;  %1870 = vperm.xlu1 %5043, %v6405_v48   ;;  %v2636_v4 = vrot.slane %v2635_v27, 4  ;;  %v1639_v7 = vmax.f32 %v1535_v21, %v1705_v61  ;;  %v2328_v5 = vrot.slane %v2327_v38, 1 }
 0x369   :  { %1970 = vperm.xlu2 %5024, %v6389_v6   ;;  %v6492_v33 = vpop.permute.xlu2 %3102  ;;  %v2430_v46 = vrot.slane %v2429_v51, 2  ;;  %v1913_v23 = vadd.f32 %v1912_v54, %v1911_v18  ;;  %v2224_v40 = vrot.slane %v2223_v41, 1 }
 0x36a   :  { %v2637_v49 = vadd.f32 %v2636_v4, %v2635_v27  ;;  %v1743_v12 = vmax.f32 %v1639_v7, %v1809_v52  ;;  %v2017_v4 = vadd.f32 %v2016_v39, %v2015_v0  ;;  %v2121_v27 = vadd.f32 %v2120_v35, %v2119_v36 }
 0x36b   :  { %v2225_v13 = vadd.f32 %v2224_v40, %v2223_v41  ;;  %v2536_v52 = vrot.slane %v2535_v1, 1  ;;  %v8262_v36 = vmov 8  }
 0x36c   :  { %v2638_v10 = vrot.slane %v2637_v49, 2  ;;  %v1847_v18 = vmax.f32 %v1743_v12, %v1913_v23 }
 0x36d   :  { %v2695_v20 = vpop.permute.xlu0 %2694  ;;  %v2537_v35 = vadd.f32 %v2536_v52, %v2535_v1 }
 0x36e   :  { %v2719_v14 = vmul.f32 %v2695_v20, %v6137_v2  ;;  %v6495_v29 = vpop.permute.xlu1 %2690  ;;  %v8261_v20 = vmov 7   ;;  %v1951_v3 = vmax.f32 %v1847_v18, %v2017_v4  ;;  %v2639_v28 = vadd.f32 %v2638_v10, %v2637_v49 }
 0x36f   :  { %5106 = vset.pattern.permute.xlu0 %v8260_v56 }
 0x370   :  { %v2739_v50 = vsel %vm1203_vm7, %v2719_v14, 0.0  ;;  %5044 = vset.pattern.permute.xlu1 %v8260_v56  ;;  %1986 = vperm.xlu0 %5106, %v6400_v43   ;;  %v2431_v14 = vadd.f32 %v2430_v46, %v2429_v51  ;;  %v2055_v54 = vmax.f32 %v1951_v3, %v2121_v27  ;;  %v2329_v51 = vadd.f32 %v2328_v5, %v2327_v38 }
 0x371   :  { %v2740_v53 = vrot.slane %v2739_v50, 4  ;;  %5025 = vset.pattern.permute.xlu2 %v8261_v20  ;;  %1974 = vperm.xlu1 %5044, %v6405_v48   ;;  %v2640_v49 = vrot.slane %v2639_v28, 1  ;;  %v8263_v3 = vmov 9  }
 0x372   :  { %2074 = vperm.xlu2 %5025, %v6389_v6   ;;  %v6504_v21 = vpop.permute.xlu2 %3206  ;;  %v2432_v45 = vrot.slane %v2431_v14, 1  ;;  %v2159_v41 = vmax.f32 %v2055_v54, %v2225_v13 }
 0x373   :  { %v2741_v63 = vadd.f32 %v2740_v53, %v2739_v50  ;;  %v2641_v12 = vadd.f32 %v2640_v49, %v2639_v28 }
 0x374   :  { %v2433_v46 = vadd.f32 %v2432_v45, %v2431_v14  ;;  %v2263_v50 = vmax.f32 %v2159_v41, %v2329_v51 }
 0x375   :  { %v2742_v19 = vrot.slane %v2741_v63, 2 }
 0x376   :  { %v2799_v58 = vpop.permute.xlu0 %2798  ;;  %v2367_v53 = vmax.f32 %v2263_v50, %v2433_v46 }
 0x377   :  { %v6506_v61 = vpop.permute.xlu1 %2794  ;;  %v2823_v0 = vmul.f32 %v2799_v58, %v6137_v2  ;;  %v2743_v39 = vadd.f32 %v2742_v19, %v2741_v63 }
 0x378   :  { %5107 = vset.pattern.permute.xlu0 %v8261_v20  ;;  %v2471_v18 = vmax.f32 %v2367_v53, %v2537_v35 }
 0x379   :  { %5045 = vset.pattern.permute.xlu1 %v8261_v20  ;;  %2090 = vperm.xlu0 %5107, %v6400_v43   ;;  %v2843_v57 = vsel %vm1203_vm7, %v2823_v0, 0.0  ;;  %v2744_v38 = vrot.slane %v2743_v39, 1 }
 0x37a   :  { %5026 = vset.pattern.permute.xlu2 %v8262_v36  ;;  %2078 = vperm.xlu1 %5045, %v6405_v48   ;;  %v2844_v7 = vrot.slane %v2843_v57, 4  ;;  %v2575_v1 = vmax.f32 %v2471_v18, %v2641_v12 }
 0x37b   :  { %2178 = vperm.xlu2 %5026, %v6389_v6   ;;  %v6516_v23 = vpop.permute.xlu2 %3310  ;;  %v2745_v14 = vadd.f32 %v2744_v38, %v2743_v39 }
 0x37c   :  { %v2845_v42 = vadd.f32 %v2844_v7, %v2843_v57 }
 0x37d   :  { %v2679_v45 = vmax.f32 %v2575_v1, %v2745_v14 }
 0x37e   :  { %v2846_v4 = vrot.slane %v2845_v42, 2 }
 0x37f   :  { %v2903_v40 = vpop.permute.xlu0 %2902 }
 0x380   :  { %v2927_v10 = vmul.f32 %v2903_v40, %v6137_v2  ;;  %v6519_v63 = vpop.permute.xlu1 %2898  ;;  %v2847_v27 = vadd.f32 %v2846_v4, %v2845_v42  ;;  %v8264_v42 = vmov 10  }
 0x381   :  { %5108 = vset.pattern.permute.xlu0 %v8262_v36 }
 0x382   :  { %v2947_v5 = vsel %vm1203_vm7, %v2927_v10, 0.0  ;;  %5046 = vset.pattern.permute.xlu1 %v8262_v36  ;;  %2194 = vperm.xlu0 %5108, %v6400_v43   ;;  %v2848_v19 = vrot.slane %v2847_v27, 1 }
 0x383   :  { %v2948_v58 = vrot.slane %v2947_v5, 4  ;;  %5027 = vset.pattern.permute.xlu2 %v8263_v3  ;;  %2182 = vperm.xlu1 %5046, %v6405_v48  }
 0x384   :  { %2282 = vperm.xlu2 %5027, %v6389_v6   ;;  %v1346_v13 = vpop.permute.xlu2 %1345  ;;  %v2849_v28 = vadd.f32 %v2848_v19, %v2847_v27 }
 0x385   :  { %v2949_v0 = vadd.f32 %v2948_v58, %v2947_v5  ;;  %v1375_v54 = vmul.f32 %v1346_v13, %v6137_v2 }
 0x386   :  { %v2783_v51 = vmax.f32 %v2679_v45, %v2849_v28 }
 0x387   :  { %v2950_v52 = vrot.slane %v2949_v0, 2  ;;  %v1395_v39 = vsel %vm1203_vm7, %v1375_v54, 0.0 }
 0x388   :  { %v3007_v57 = vpop.permute.xlu0 %3006  ;;  %v1396_v46 = vrot.slane %v1395_v39, 4 }
 0x389   :  { %v2951_v41 = vadd.f32 %v2950_v52, %v2949_v0  ;;  %v6530_v49 = vpop.permute.xlu1 %3002  ;;  %v3031_v7 = vmul.f32 %v3007_v57, %v6137_v2 }
 0x38a   :  { %5109 = vset.pattern.permute.xlu0 %v8263_v3  ;;  %v1397_v35 = vadd.f32 %v1396_v46, %v1395_v39 }
 0x38b   :  { %v2952_v50 = vrot.slane %v2951_v41, 1  ;;  %5047 = vset.pattern.permute.xlu1 %v8263_v3  ;;  %2298 = vperm.xlu0 %5109, %v6400_v43   ;;  %v3051_v38 = vsel %vm1203_vm7, %v3031_v7, 0.0 }
 0x38c   :  { %5028 = vset.pattern.permute.xlu2 %v8264_v42  ;;  %2286 = vperm.xlu1 %5047, %v6405_v48   ;;  %v6539_v53 = vpop.permute.xlu2 %1350  ;;  %v1398_v4 = vrot.slane %v1397_v35, 2  ;;  %v3052_v40 = vrot.slane %v3051_v38, 4 }
 0x38d   :  { %v2953_v12 = vadd.f32 %v2952_v50, %v2951_v41  ;;  %2386 = vperm.xlu2 %5028, %v6389_v6  }
 0x38e   :  { %v1399_v18 = vadd.f32 %v1398_v4, %v1397_v35  ;;  %v3053_v14 = vadd.f32 %v3052_v40, %v3051_v38 }
 0x38f   :  { %v2887_v10 = vmax.f32 %v2783_v51, %v2953_v12  ;;  %v8265_v51 = vmov 11  }
 0x390   :  { %v1400_v27 = vrot.slane %v1399_v18, 1  ;;  %v3054_v5 = vrot.slane %v3053_v14, 2 }
 0x391   :  { %v3111_v1 = vpop.permute.xlu0 %3110 }
 0x392   :  { %v3135_v19 = vmul.f32 %v3111_v1, %v6137_v2  ;;  %v6543_v58 = vpop.permute.xlu1 %3106  ;;  %v1401_v13 = vadd.f32 %v1400_v27, %v1399_v18  ;;  %v3055_v45 = vadd.f32 %v3054_v5, %v3053_v14 }
 0x393   :  { %5110 = vset.pattern.permute.xlu0 %v8264_v42 }
 0x394   :  { %v3155_v28 = vsel %vm1203_vm7, %v3135_v19, 0.0  ;;  %5048 = vset.pattern.permute.xlu1 %v8264_v42  ;;  %2402 = vperm.xlu0 %5110, %v6400_v43   ;;  %v3056_v0 = vrot.slane %v3055_v45, 1  ;;  %v2991_v39 = vmax.f32 %v2887_v10, %v1401_v13  ;;  %v8266_v10 = vmov 12  }
 0x395   :  { %v3156_v54 = vrot.slane %v3155_v28, 4  ;;  %5029 = vset.pattern.permute.xlu2 %v8265_v51  ;;  %2390 = vperm.xlu1 %5048, %v6405_v48  }
 0x396   :  { %2490 = vperm.xlu2 %5029, %v6389_v6   ;;  %v6552_v52 = vpop.permute.xlu2 %1450  ;;  %v3057_v57 = vadd.f32 %v3056_v0, %v3055_v45 }
 0x397   :  { %v3157_v41 = vadd.f32 %v3156_v54, %v3155_v28 }
 0x398   :  { %v3095_v46 = vmax.f32 %v2991_v39, %v3057_v57 }
 0x399   :  { %v3158_v7 = vrot.slane %v3157_v41, 2 }
 0x39a   :  { %v3215_v50 = vpop.permute.xlu0 %3214 }
 0x39b   :  { %v3159_v35 = vadd.f32 %v3158_v7, %v3157_v41  ;;  %v6554_v38 = vpop.permute.xlu1 %3210  ;;  %v3239_v12 = vmul.f32 %v3215_v50, %v6137_v2  ;;  %v8268_v41 = vmov 13  }
 0x39c   :  { %5111 = vset.pattern.permute.xlu0 %v8265_v51 }
 0x39d   :  { %v3160_v4 = vrot.slane %v3159_v35, 1  ;;  %5049 = vset.pattern.permute.xlu1 %v8265_v51  ;;  %2506 = vperm.xlu0 %5111, %v6400_v43   ;;  %v3259_v40 = vsel %vm1203_vm7, %v3239_v12, 0.0 }
 0x39e   :  { %5030 = vset.pattern.permute.xlu2 %v8266_v10  ;;  %2494 = vperm.xlu1 %5049, %v6405_v48   ;;  %v3260_v14 = vrot.slane %v3259_v40, 4 }
 0x39f   :  { %v3161_v18 = vadd.f32 %v3160_v4, %v3159_v35  ;;  %2594 = vperm.xlu2 %5030, %v6389_v6   ;;  %v6564_v27 = vpop.permute.xlu2 %1554 }
 0x3a0   :  { %v3261_v1 = vadd.f32 %v3260_v14, %v3259_v40 }
 0x3a1   :  { %v3199_v5 = vmax.f32 %v3095_v46, %v3161_v18 }
 0x3a2   :  { %v3262_v19 = vrot.slane %v3261_v1, 2 }
 0x3a3   :  { %v3319_v13 = vpop.permute.xlu0 %3318 }
 0x3a4   :  { %v3343_v45 = vmul.f32 %v3319_v13, %v6137_v2  ;;  %v6567_v28 = vpop.permute.xlu1 %3314  ;;  %v3263_v0 = vadd.f32 %v3262_v19, %v3261_v1  ;;  %v8272_v13 = vmov 14  }
 0x3a5   :  { %8267 = vst [vmem:[#allocation33_spill] sm:$0xff] %v6567_v28  ;;  %5112 = vset.pattern.permute.xlu0 %v8266_v10 }
 0x3a6   :  { %v3363_v54 = vsel %vm1203_vm7, %v3343_v45, 0.0  ;;  %5050 = vset.pattern.permute.xlu1 %v8266_v10  ;;  %2610 = vperm.xlu0 %5112, %v6400_v43   ;;  %v3264_v39 = vrot.slane %v3263_v0, 1 }
 0x3a7   :  { %v3364_v57 = vrot.slane %v3363_v54, 4  ;;  %5031 = vset.pattern.permute.xlu2 %v8268_v41  ;;  %2598 = vperm.xlu1 %5050, %v6405_v48  }
 0x3a8   :  { %2698 = vperm.xlu2 %5031, %v6389_v6   ;;  %v6576_v46 = vpop.permute.xlu2 %1658  ;;  %v3265_v7 = vadd.f32 %v3264_v39, %v3263_v0 }
 0x3a9   :  { %8269 = vst [vmem:[#allocation34_spill] sm:$0xff] %v6576_v46  ;;  %v3365_v50 = vadd.f32 %v3364_v57, %v3363_v54  ;;  %v1373_v57 = vmul.f32 %v6312_v55, %v6094_v32 }
 0x3aa   :  { %v6578_v35 = vmax.f32 %v3199_v5, %v3265_v7 }
 0x3ab   :  { %v3366_v12 = vrot.slane %v3365_v50, 2 }
 0x3ac   :  { %8270 = vst [vmem:[#allocation35_spill] sm:$0xff] %v6578_v35  ;;  %v1371_v4 = vpop.permute.xlu0 %1370 }
 0x3ad   :  { %v3367_v40 = vadd.f32 %v3366_v12, %v3365_v50  ;;  %v6580_v18 = vpop.permute.xlu1 %1355  ;;  %v1380_v14 = vmul.f32 %v1371_v4, %v6172_v22  ;;  %v1469_v50 = vmul.f32 %v6280_v26, %v6094_v32 }
 0x3ae   :  { %8271 = vst [vmem:[#allocation36_spill] sm:$0xff] %v6580_v18  ;;  %5113 = vset.pattern.permute.xlu0 %v8268_v41 }
 0x3af   :  { %v3368_v1 = vrot.slane %v3367_v40, 1  ;;  %5051 = vset.pattern.permute.xlu1 %v8268_v41  ;;  %2714 = vperm.xlu0 %5113, %v6400_v43   ;;  %v1430_v19 = vsel %vm1203_vm7, %v1380_v14, 0.0  ;;  %v1477_v26 = vsel %vm1203_vm7, %v1469_v50, 0.0 }
 0x3b0   :  { %5032 = vset.pattern.permute.xlu2 %v8272_v13  ;;  %2702 = vperm.xlu1 %5051, %v6405_v48   ;;  %v1431_v45 = vrot.slane %v1430_v19, 4  ;;  %v1478_v35 = vrot.slane %v1477_v26, 4 }
 0x3b1   :  { %v6589_v5 = vadd.f32 %v3368_v1, %v3367_v40  ;;  %2802 = vperm.xlu2 %5032, %v6389_v6   ;;  %v6592_v0 = vpop.permute.xlu2 %1762  ;;  %v1381_v1 = vsel %vm1203_vm7, %v1373_v57, 0.0  ;;  %v1677_v57 = vmul.f32 %v6298_v16, %v6094_v32 }
 0x3b2   :  { %8274 = vst [vmem:[#allocation38_spill] sm:$0xff] %v6592_v0  ;;  %v1432_v39 = vadd.f32 %v1431_v45, %v1430_v19  ;;  %v8276_v19 = vmov 15  }
 0x3b3   :  { %8273 = vst [vmem:[#allocation37_spill] sm:$0xff] %v6589_v5  ;;  %v1382_v5 = vrot.slane %v1381_v1, 4  ;;  %v1685_v16 = vsel %vm1203_vm7, %v1677_v57, 0.0 }
 0x3b4   :  { %v1433_v40 = vrot.slane %v1432_v39, 2 }
 0x3b5   :  { %v1467_v7 = vpop.permute.xlu0 %1466 }
 0x3b6   :  { %v1476_v12 = vmul.f32 %v1467_v7, %v6172_v22  ;;  %v6601_v4 = vpop.permute.xlu1 %1454  ;;  %v1573_v7 = vmul.f32 %v6288_v34, %v6094_v32  ;;  %v1479_v34 = vadd.f32 %v1478_v35, %v1477_v26 }
 0x3b7   :  { %8275 = vst [vmem:[#allocation39_spill] sm:$0xff] %v6601_v4  ;;  %5114 = vset.pattern.permute.xlu0 %v8272_v13  ;;  %v1383_v4 = vadd.f32 %v1382_v5, %v1381_v1 }
 0x3b8   :  { %v1526_v14 = vsel %vm1203_vm7, %v1476_v12, 0.0  ;;  %5052 = vset.pattern.permute.xlu1 %v8272_v13  ;;  %2818 = vperm.xlu0 %5114, %v6400_v43   ;;  %v1434_v12 = vadd.f32 %v1433_v40, %v1432_v39  ;;  %v1581_v41 = vsel %vm1203_vm7, %v1573_v7, 0.0  ;;  %v1480_v26 = vrot.slane %v1479_v34, 2 }
 0x3b9   :  { %v1527_v55 = vrot.slane %v1526_v14, 4  ;;  %5033 = vset.pattern.permute.xlu2 %v8276_v19  ;;  %2806 = vperm.xlu1 %5052, %v6405_v48   ;;  %v1582_v40 = vrot.slane %v1581_v41, 4  ;;  %v1384_v1 = vrot.slane %v1383_v4, 2  ;;  %v1374_v7 = vmul.f32 %v6314_v44, %v6112_v37 }
 0x3ba   :  { %2906 = vperm.xlu2 %5033, %v6389_v6   ;;  %v6612_v45 = vpop.permute.xlu2 %1866  ;;  %v1435_v10 = vrot.slane %v1434_v12, 1  ;;  %v1481_v18 = vadd.f32 %v1480_v26, %v1479_v34  ;;  %v1470_v44 = vmul.f32 %v6326_v62, %v6112_v37 }
 0x3bb   :  { %8277 = vst [vmem:[#allocation40_spill] sm:$0xff] %v6612_v45  ;;  %v1528_v54 = vadd.f32 %v1527_v55, %v1526_v14  ;;  %v8279_v55 = vmov 16   ;;  %v1388_v42 = vsel %vm1203_vm7, %v1374_v7, 0.0 }
 0x3bd   :  { %v1529_v13 = vrot.slane %v1528_v54, 2 }
 0x3be   :  { %v1571_v2 = vpop.permute.xlu0 %1570 }
 0x3bf   :  { %v1530_v50 = vadd.f32 %v1529_v13, %v1528_v54  ;;  %v6619_v51 = vpop.permute.xlu1 %1558  ;;  %v1580_v45 = vmul.f32 %v1571_v2, %v6172_v22  ;;  %v1781_v2 = vmul.f32 %v6310_v25, %v6094_v32  ;;  %v1436_v13 = vadd.f32 %v1435_v10, %v1434_v12 }
 0x3c0   :  { %8278 = vst [vmem:[#allocation41_spill] sm:$0xff] %v6619_v51  ;;  %5115 = vset.pattern.permute.xlu0 %v8276_v19  ;;  %v1686_v51 = vrot.slane %v1685_v16, 4  ;;  %v1885_v25 = vmul.f32 %v6322_v59, %v6094_v32 }
 0x3c1   :  { %v1531_v39 = vrot.slane %v1530_v50, 1  ;;  %5053 = vset.pattern.permute.xlu1 %v8276_v19  ;;  %2922 = vperm.xlu0 %5115, %v6400_v43   ;;  %v1630_v14 = vsel %vm1203_vm7, %v1580_v45, 0.0  ;;  %v1583_v19 = vadd.f32 %v1582_v40, %v1581_v41  ;;  %v1789_v0 = vsel %vm1203_vm7, %v1781_v2, 0.0 }
 0x3c2   :  { %5034 = vset.pattern.permute.xlu2 %v8279_v55  ;;  %2910 = vperm.xlu1 %5053, %v6405_v48   ;;  %v1631_v35 = vrot.slane %v1630_v14, 4  ;;  %v1790_v2 = vrot.slane %v1789_v0, 4 }
 0x3c3   :  { %v1532_v5 = vadd.f32 %v1531_v39, %v1530_v50  ;;  %3010 = vperm.xlu2 %5034, %v6389_v6   ;;  %v6632_v54 = vpop.permute.xlu2 %1970  ;;  %v1385_v50 = vadd.f32 %v1384_v1, %v1383_v4  ;;  %v1584_v40 = vrot.slane %v1583_v19, 2  ;;  %v1893_v4 = vsel %vm1203_vm7, %v1885_v25, 0.0 }
 0x3c4   :  { %8280 = vst [vmem:[#allocation42_spill] sm:$0xff] %v6632_v54  ;;  %v1632_v57 = vadd.f32 %v1631_v35, %v1630_v14  ;;  %v1687_v14 = vadd.f32 %v1686_v51, %v1685_v16  ;;  %v1389_v35 = vrot.slane %v1388_v42, 4  ;;  %v1482_v16 = vrot.slane %v1481_v18, 1 }
 0x3c5   :  { %v1540_v45 = vmax.f32 %v1436_v13, %v1532_v5  ;;  %v8282_v5 = vmov 17   ;;  %v1386_v62 = vrot.slane %v1385_v50, 1  ;;  %v1484_v1 = vsel %vm1203_vm7, %v1470_v44, 0.0 }
 0x3c6   :  { %v1633_v10 = vrot.slane %v1632_v57, 2  ;;  %v1688_v25 = vrot.slane %v1687_v14, 2  ;;  %v1485_v46 = vrot.slane %v1484_v1, 4  ;;  %v1483_v44 = vadd.f32 %v1482_v16, %v1481_v18 }
 0x3c7   :  { %v1675_v12 = vpop.permute.xlu0 %1674  ;;  %v1387_v3 = vadd.f32 %v1386_v62, %v1385_v50  ;;  %v1588_v50 = vsel %vm1203_vm7, %v1574_v9, 0.0 }
 0x3c8   :  { %v1684_v39 = vmul.f32 %v1675_v12, %v6172_v22  ;;  %v6640_v54 = vpop.permute.xlu1 %1662  ;;  %v1634_v41 = vadd.f32 %v1633_v10, %v1632_v57  ;;  %v1585_v57 = vadd.f32 %v1584_v40, %v1583_v19  ;;  %v1791_v10 = vadd.f32 %v1790_v2, %v1789_v0  ;;  %v5346_v19 = vpop.eup %5345 }
 0x3c9   :  { %8281 = vst [vmem:[#allocation43_spill] sm:$0xff] %v6640_v54  ;;  %5116 = vset.pattern.permute.xlu0 %v8279_v55  ;;  %v1894_v12 = vrot.slane %v1893_v4, 4  ;;  %v1689_v40 = vadd.f32 %v1688_v25, %v1687_v14  ;;  %v1533_v18 = vmax.f32 %v1387_v3, %v1483_v44 }
 0x3ca   :  { %v1734_v59 = vsel %vm1203_vm7, %v1684_v39, 0.0  ;;  %5054 = vset.pattern.permute.xlu1 %v8279_v55  ;;  %3026 = vperm.xlu0 %5116, %v6400_v43   ;;  %v1635_v34 = vrot.slane %v1634_v41, 1  ;;  %v1989_v39 = vmul.f32 %v6334_v24, %v6094_v32  ;;  %v1586_v0 = vrot.slane %v1585_v57, 1 }
 0x3cb   :  { %v1735_v13 = vrot.slane %v1734_v59, 4  ;;  %5035 = vset.pattern.permute.xlu2 %v8282_v5  ;;  %3014 = vperm.xlu1 %5054, %v6405_v48   ;;  %v1792_v2 = vrot.slane %v1791_v10, 2  ;;  %v1895_v47 = vadd.f32 %v1894_v12, %v1893_v4  ;;  %v1678_v4 = vmul.f32 %v6350_v30, %v6112_v37 }
 0x3cc   :  { %3114 = vperm.xlu2 %5035, %v6389_v6   ;;  %v6654_v51 = vpop.permute.xlu2 %2074  ;;  %v1636_v26 = vadd.f32 %v1635_v34, %v1634_v41  ;;  %v1486_v34 = vadd.f32 %v1485_v46, %v1484_v1  ;;  %v1587_v3 = vadd.f32 %v1586_v0, %v1585_v57  ;;  %v1690_v46 = vrot.slane %v1689_v40, 1 }
 0x3cd   :  { %8283 = vst [vmem:[#allocation44_spill] sm:$0xff] %v6654_v51  ;;  %v1736_v7 = vadd.f32 %v1735_v13, %v1734_v59  ;;  %v1390_v51 = vadd.f32 %v1389_v35, %v1388_v42  ;;  %v8285_v13 = vmov 18   ;;  %v1896_v25 = vrot.slane %v1895_v47, 2 }
 0x3ce   :  { %v6661_v55 = vmax.f32 %v1540_v45, %v1636_v26  ;;  %v1997_v45 = vsel %vm1203_vm7, %v1989_v39, 0.0  ;;  %v1589_v26 = vrot.slane %v1588_v50, 4  ;;  %v1637_v30 = vmax.f32 %v1533_v18, %v1587_v3 }
 0x3cf   :  { %v1737_v54 = vrot.slane %v1736_v7, 2  ;;  %v1998_v1 = vrot.slane %v1997_v45, 4  ;;  %v1487_v9 = vrot.slane %v1486_v34, 2  ;;  %v1692_v57 = vsel %vm1203_vm7, %v1678_v4, 0.0 }
 0x3d0   :  { %v1779_v28 = vpop.permute.xlu0 %1778  ;;  %v1897_v18 = vadd.f32 %v1896_v25, %v1895_v47  ;;  %v6701_v47 = vpop.eup %5347 }
 0x3d1   :  { %v1738_v41 = vadd.f32 %v1737_v54, %v1736_v7  ;;  %v6663_v59 = vpop.permute.xlu1 %1766  ;;  %v1788_v24 = vmul.f32 %v1779_v28, %v6172_v22  ;;  %v1391_v54 = vrot.slane %v1390_v51, 2  ;;  %v2093_v28 = vmul.f32 %v6346_v8, %v6094_v32 }
 0x3d2   :  { %8284 = vst [vmem:[#allocation45_spill] sm:$0xff] %v6663_v59  ;;  %5117 = vset.pattern.permute.xlu0 %v8282_v5  ;;  %v1793_v7 = vadd.f32 %v1792_v2, %v1791_v10  ;;  %v6683_v8 = vmul.f32 %v5346_v19, %v6196_v15  ;;  %v1590_v10 = vadd.f32 %v1589_v26, %v1588_v50  ;;  %v1898_v26 = vrot.slane %v1897_v18, 1 }
 0x3d3   :  { %v1739_v42 = vrot.slane %v1738_v41, 1  ;;  %5055 = vset.pattern.permute.xlu1 %v8282_v5  ;;  %3130 = vperm.xlu0 %5117, %v6400_v43   ;;  %v1838_v14 = vsel %vm1203_vm7, %v1788_v24, 0.0  ;;  %v1392_v44 = vadd.f32 %v1391_v54, %v1390_v51  ;;  %v1691_v19 = vadd.f32 %v1690_v46, %v1689_v40 }
 0x3d4   :  { %5036 = vset.pattern.permute.xlu2 %v8285_v13  ;;  %3118 = vperm.xlu1 %5055, %v6405_v48   ;;  %v1839_v35 = vrot.slane %v1838_v14, 4  ;;  %v1794_v17 = vrot.slane %v1793_v7, 1  ;;  %v1488_v51 = vadd.f32 %v1487_v9, %v1486_v34  ;;  %v1591_v3 = vrot.slane %v1590_v10, 2 }
 0x3d5   :  { %v1740_v62 = vadd.f32 %v1739_v42, %v1738_v41  ;;  %3218 = vperm.xlu2 %5036, %v6389_v6   ;;  %v6679_v16 = vpop.permute.xlu2 %2178  ;;  %v2101_v41 = vsel %vm1203_vm7, %v2093_v28, 0.0  ;;  %v1999_v42 = vadd.f32 %v1998_v1, %v1997_v45  ;;  %v1693_v28 = vrot.slane %v1692_v57, 4 }
 0x3d6   :  { %8286 = vst [vmem:[#allocation46_spill] sm:$0xff] %v6679_v16  ;;  %v1840_v39 = vadd.f32 %v1839_v35, %v1838_v14  ;;  %v2102_v54 = vrot.slane %v2101_v41, 4  ;;  %v1782_v45 = vmul.f32 %v6362_v11, %v6112_v37  ;;  %v1393_v34 = vrot.slane %v1392_v44, 1 }
 0x3d7   :  { %v1748_v12 = vmax.f32 %v6661_v55, %v1740_v62  ;;  %v2197_v55 = vmul.f32 %v6358_v31, %v6094_v32  ;;  %v1741_v31 = vmax.f32 %v1637_v30, %v1691_v19  ;;  %v8288_v62 = vmov 19  }
 0x3d8   :  { %v1841_v0 = vrot.slane %v1840_v39, 2  ;;  %v2000_v35 = vrot.slane %v1999_v42, 2  ;;  %v2301_v11 = vmul.f32 %v6370_v60, %v6094_v32  ;;  %v1795_v30 = vadd.f32 %v1794_v17, %v1793_v7  ;;  %v8290_v7 = vld [vmem:[#allocation16_spill] sm:$0xff] }
 0x3d9   :  { %v1883_v24 = vpop.permute.xlu0 %1882  ;;  %v2205_v46 = vsel %vm1203_vm7, %v2197_v55, 0.0  ;;  %v1489_v9 = vrot.slane %v1488_v51, 1  ;;  %v1796_v19 = vsel %vm1203_vm7, %v1782_v45, 0.0  ;;  %v1899_v60 = vadd.f32 %v1898_v26, %v1897_v18 }
 0x3da   :  { %v1892_v2 = vmul.f32 %v1883_v24, %v6172_v22  ;;  %v6691_v15 = vpop.permute.xlu1 %1870  ;;  %v1842_v14 = vadd.f32 %v1841_v0, %v1840_v39  ;;  %v2103_v0 = vadd.f32 %v2102_v54, %v2101_v41  ;;  %v1694_v24 = vadd.f32 %v1693_v28, %v1692_v57 }
 0x3db   :  { %8287 = vst [vmem:[#allocation47_spill] sm:$0xff] %v6691_v15  ;;  %5118 = vset.pattern.permute.xlu0 %v8285_v13  ;;  %v6712_v5 = vmax.f32 %v1741_v31, %v1795_v30  ;;  %v1592_v15 = vadd.f32 %v1591_v3, %v1590_v10  ;;  %v1886_v41 = vmul.f32 %v8290_v7, %v6112_v37  ;;  %v1797_v28 = vrot.slane %v1796_v19, 4  ;;  %v8292_v10 = vld [vmem:[#allocation17_spill] sm:$0xff] }
 0x3dc   :  { %v1942_v4 = vsel %vm1203_vm7, %v1892_v2, 0.0  ;;  %5056 = vset.pattern.permute.xlu1 %v8285_v13  ;;  %3234 = vperm.xlu0 %5118, %v6400_v43   ;;  %v1843_v50 = vrot.slane %v1842_v14, 1  ;;  %v2206_v2 = vrot.slane %v2205_v46, 4  ;;  %v2104_v54 = vrot.slane %v2103_v0, 2 }
 0x3dd   :  { %v1943_v40 = vrot.slane %v1942_v4, 4  ;;  %5037 = vset.pattern.permute.xlu2 %v8288_v62  ;;  %3222 = vperm.xlu1 %5056, %v6405_v48   ;;  %v2405_v18 = vmul.f32 %v8292_v10, %v6094_v32 }
 0x3de   :  { %3322 = vperm.xlu2 %5037, %v6389_v6   ;;  %v6705_v1 = vpop.permute.xlu2 %2282  ;;  %v1844_v25 = vadd.f32 %v1843_v50, %v1842_v14  ;;  %v6714_v6 = vadd.f32 %v1393_v34, %v1392_v44  ;;  %v2309_v14 = vsel %vm1203_vm7, %v2301_v11, 0.0  ;;  %v1490_v44 = vadd.f32 %v1489_v9, %v1488_v51  ;;  %v8294_v51 = vld [vmem:[#allocation18_spill] sm:$0xff] }
 0x3df   :  { %8289 = vst [vmem:[#allocation48_spill] sm:$0xff] %v6705_v1  ;;  %v1944_v39 = vadd.f32 %v1943_v40, %v1942_v4  ;;  %v2001_v1 = vadd.f32 %v2000_v35, %v1999_v42  ;;  %v2207_v42 = vadd.f32 %v2206_v2, %v2205_v46  ;;  %v1593_v50 = vrot.slane %v1592_v15, 1 }
 0x3e0   :  { %v6710_v13 = vmax.f32 %v1748_v12, %v1844_v25  ;;  %v1695_v12 = vrot.slane %v1694_v24, 2  ;;  %v2310_v40 = vrot.slane %v2309_v14, 4  ;;  %v8293_v35 = vmov 0  }
 0x3e1   :  { %v1945_v55 = vrot.slane %v1944_v39, 2  ;;  %v2002_v45 = vrot.slane %v2001_v1, 1  ;;  %v1990_v3 = vmul.f32 %v8294_v51, %v6112_v37  ;;  %v1949_v25 = vmax.f32 %v6712_v5, %v1899_v60 }
 0x3e2   :  { %v1987_v16 = vpop.permute.xlu0 %1986  ;;  %v1696_v30 = vadd.f32 %v1695_v12, %v1694_v24  ;;  %v1798_v9 = vadd.f32 %v1797_v28, %v1796_v19  ;;  %v2208_v2 = vrot.slane %v2207_v42, 2  ;;  %v2311_v10 = vadd.f32 %v2310_v40, %v2309_v14  ;;  %v8297_v12 = vld [vmem:[#allocation20_spill] sm:$0xff] }
 0x3e3   :  { %v1946_v57 = vadd.f32 %v1945_v55, %v1944_v39  ;;  %v6719_v17 = vpop.permute.xlu1 %1974  ;;  %v1996_v4 = vmul.f32 %v1987_v16, %v6172_v22  ;;  %v1900_v16 = vsel %vm1203_vm7, %v1886_v41, 0.0  ;;  %v2105_v39 = vadd.f32 %v2104_v54, %v2103_v0 }
 0x3e4   :  { %8291 = vst [vmem:[#allocation16_spill] sm:$0xff] %v6719_v17  ;;  %5119 = vset.pattern.permute.xlu0 %v8288_v62  ;;  %v2413_v55 = vsel %vm1203_vm7, %v2405_v18, 0.0  ;;  %v1594_v51 = vadd.f32 %v1593_v50, %v1592_v15  ;;  %v1799_v0 = vrot.slane %v1798_v9, 2  ;;  %v1697_v54 = vrot.slane %v1696_v30, 1 }
 0x3e5   :  { %v1947_v31 = vrot.slane %v1946_v57, 1  ;;  %5057 = vset.pattern.permute.xlu1 %v8288_v62  ;;  %3338 = vperm.xlu0 %5119, %v6400_v43   ;;  %v2046_v34 = vsel %vm1203_vm7, %v1996_v4, 0.0  ;;  %v1534_v4 = vmax.f32 %v6714_v6, %v1490_v44  ;;  %v2004_v62 = vsel %vm1203_vm7, %v1990_v3, 0.0  ;;  %v8300_v3 = vld [vmem:[#allocation14_spill] sm:$0xff] }
 0x3e6   :  { %5058 = vset.pattern.permute.xlu2 %v8293_v35  ;;  %3326 = vperm.xlu1 %5057, %v6405_v48   ;;  %v2047_v26 = vrot.slane %v2046_v34, 4  ;;  %v2106_v5 = vrot.slane %v2105_v39, 1  ;;  %v2414_v24 = vrot.slane %v2413_v55, 4  ;;  %v2509_v6 = vmul.f32 %v8297_v12, %v6094_v32 }
 0x3e7   :  { %v1948_v46 = vadd.f32 %v1947_v31, %v1946_v57  ;;  %v6733_v11 = vpop.permute.xlu2 %2386  ;;  %1360 = vperm.xlu2 %5058, %v6683_v8   ;;  %v1901_v57 = vrot.slane %v1900_v16, 4  ;;  %v2003_v31 = vadd.f32 %v2002_v45, %v2001_v1  ;;  %v8196_v28 = vmov 20   ;;  %v8298_v45 = vld [vmem:[#allocation15_spill] sm:$0xff] }
 0x3e8   :  { %8295 = vst [vmem:[#allocation17_spill] sm:$0xff] %v6733_v11  ;;  %v2048_v41 = vadd.f32 %v2047_v26, %v2046_v34  ;;  %v2312_v15 = vrot.slane %v2311_v10, 2  ;;  %v2005_v44 = vrot.slane %v2004_v62, 4  ;;  %v1800_v26 = vadd.f32 %v1799_v0, %v1798_v9 }
 0x3e9   :  { %v1956_v7 = vmax.f32 %v6710_v13, %v1948_v46  ;;  %v2209_v13 = vadd.f32 %v2208_v2, %v2207_v42  ;;  %v1902_v1 = vadd.f32 %v1901_v57, %v1900_v16  ;;  %v2053_v50 = vmax.f32 %v1949_v25, %v2003_v31 }
 0x3ea   :  { %v2049_v48 = vrot.slane %v2048_v41, 2  ;;  %v8299_v42 = vmov 1   ;;  %v2107_v46 = vadd.f32 %v2106_v5, %v2105_v39  ;;  %v1698_v16 = vadd.f32 %v1697_v54, %v1696_v30  ;;  %v8303_v39 = vld [vmem:[#allocation23_spill] sm:$0xff] }
 0x3eb   :  { %v2091_v11 = vpop.permute.xlu0 %2090  ;;  %v2210_v25 = vrot.slane %v2209_v13, 1  ;;  %v2313_v31 = vadd.f32 %v2312_v15, %v2311_v10  ;;  %v1903_v12 = vrot.slane %v1902_v1, 2  ;;  %v2613_v9 = vmul.f32 %v8303_v39, %v6094_v32 }
 0x3ec   :  { %v2100_v19 = vmul.f32 %v2091_v11, %v6172_v22  ;;  %v6742_v60 = vpop.permute.xlu1 %2078  ;;  %v2050_v14 = vadd.f32 %v2049_v48, %v2048_v41  ;;  %v1638_v48 = vmax.f32 %v1534_v4, %v1594_v51  ;;  %v2415_v11 = vadd.f32 %v2414_v24, %v2413_v55  ;;  %v8304_v24 = vld [vmem:[#allocation12_spill] sm:$0xff] }
 0x3ed   :  { %8296 = vst [vmem:[#allocation18_spill] sm:$0xff] %v6742_v60  ;;  %5120 = vset.pattern.permute.xlu0 %v8196_v28  ;;  %v2517_v41 = vsel %vm1203_vm7, %v2509_v6, 0.0  ;;  %v8302_v60 = vld [vmem:[#allocation21_spill] sm:$0xff]  ;;  %v1801_v51 = vrot.slane %v1800_v26, 1  ;;  %v6764_v54 = vmul.f32 %v6701_v47, %v8304_v24  ;;  %v2157_v10 = vmax.f32 %v2053_v50, %v2107_v46 }
 0x3ee   :  { %v2150_v18 = vsel %vm1203_vm7, %v2100_v19, 0.0  ;;  %5079 = vset.pattern.permute.xlu1 %v8196_v28  ;;  %3422 = vperm.xlu0 %5120, %v8298_v45   ;;  %v2051_v40 = vrot.slane %v2050_v14, 1  ;;  %v2006_v28 = vadd.f32 %v2005_v44, %v2004_v62  ;;  %v2094_v17 = vmul.f32 %v8302_v60, %v6112_v37 }
 0x3ef   :  { %v2151_v34 = vrot.slane %v2150_v18, 4  ;;  %5059 = vset.pattern.permute.xlu2 %v8299_v42  ;;  %3418 = vperm.xlu1 %5079, %v8300_v3   ;;  %v2416_v5 = vrot.slane %v2415_v11, 2  ;;  %v2518_v30 = vrot.slane %v2517_v41, 4  ;;  %v1742_v6 = vmax.f32 %v1638_v48, %v1698_v16 }
 0x3f0   :  { %v6752_v2 = vpop.permute.xlu2 %2490  ;;  %1458 = vperm.xlu2 %5059, %v6683_v8   ;;  %v2052_v57 = vadd.f32 %v2051_v40, %v2050_v14  ;;  %v2211_v60 = vadd.f32 %v2210_v25, %v2209_v13  ;;  %v2314_v15 = vrot.slane %v2313_v31, 1  ;;  %v1904_v44 = vadd.f32 %v1903_v12, %v1902_v1  ;;  %v8307_v1 = vld [vmem:[#allocation24_spill] sm:$0xff] }
 0x3f1   :  { %8301 = vst [vmem:[#allocation20_spill] sm:$0xff] %v6752_v2  ;;  %v2152_v19 = vadd.f32 %v2151_v34, %v2150_v18  ;;  %v2007_v18 = vrot.slane %v2006_v28, 2  ;;  %v2108_v40 = vsel %vm1203_vm7, %v2094_v17, 0.0  ;;  %v2621_v34 = vsel %vm1203_vm7, %v2613_v9, 0.0 }
 0x3f2   :  { %v6760_v55 = vmax.f32 %v1956_v7, %v2052_v57  ;;  %v1802_v47 = vadd.f32 %v1801_v51, %v1800_v26  ;;  %v2417_v50 = vadd.f32 %v2416_v5, %v2415_v11  ;;  %v2519_v48 = vadd.f32 %v2518_v30, %v2517_v41 }
 0x3f3   :  { %v2153_v4 = vrot.slane %v2152_v19, 2  ;;  %v8306_v13 = vmov 2   ;;  %v2198_v16 = vmul.f32 %v8307_v1, %v6112_v37  ;;  %v1905_v26 = vrot.slane %v1904_v44, 1 }
 0x3f4   :  { %v2195_v0 = vpop.permute.xlu0 %2194  ;;  %v2109_v11 = vrot.slane %v2108_v40, 4  ;;  %v2622_v41 = vrot.slane %v2621_v34, 4  ;;  %v2008_v9 = vadd.f32 %v2007_v18, %v2006_v28  ;;  %v2261_v5 = vmax.f32 %v2157_v10, %v2211_v60  ;;  %v8311_v28 = vld [vmem:[#allocation27_spill] sm:$0xff] }
 0x3f5   :  { %v2154_v62 = vadd.f32 %v2153_v4, %v2152_v19  ;;  %v6766_v14 = vpop.permute.xlu1 %2182  ;;  %v2204_v7 = vmul.f32 %v2195_v0, %v6172_v22  ;;  %v8308_v19 = vld [vmem:[#allocation25_spill] sm:$0xff]  ;;  %v1846_v30 = vmax.f32 %v1742_v6, %v1802_v47  ;;  %v2418_v0 = vrot.slane %v2417_v50, 1 }
 0x3f6   :  { %8305 = vst [vmem:[#allocation21_spill] sm:$0xff] %v6766_v14  ;;  %3442 = vperm.xlu0 %5120, %v6400_v43   ;;  %v2717_v17 = vmul.f32 %v8308_v19, %v6094_v32  ;;  %v2520_v24 = vrot.slane %v2519_v48, 2  ;;  %v2821_v18 = vmul.f32 %v8311_v28, %v6094_v32  ;;  %v8198_v6 = vmov 21  }
 0x3f7   :  { %v2155_v57 = vrot.slane %v2154_v62, 1  ;;  %5080 = vset.pattern.permute.xlu1 %v8293_v35  ;;  %v2254_v46 = vsel %vm1203_vm7, %v2204_v7, 0.0  ;;  %v2315_v35 = vadd.f32 %v2314_v15, %v2313_v31  ;;  %v2212_v7 = vsel %vm1203_vm7, %v2198_v16, 0.0 }
 0x3f8   :  { %5060 = vset.pattern.permute.xlu2 %v8306_v13  ;;  %1365 = vperm.xlu1 %5080, %v6764_v54   ;;  %v2255_v12 = vrot.slane %v2254_v46, 4  ;;  %v2110_v15 = vadd.f32 %v2109_v11, %v2108_v40  ;;  %v1906_v47 = vadd.f32 %v1905_v26, %v1904_v44  ;;  %v2829_v26 = vsel %vm1203_vm7, %v2821_v18, 0.0 }
 0x3f9   :  { %v2156_v25 = vadd.f32 %v2155_v57, %v2154_v62  ;;  %v6780_v39 = vpop.permute.xlu2 %2594  ;;  %1562 = vperm.xlu2 %5060, %v6683_v8   ;;  %v2725_v62 = vsel %vm1203_vm7, %v2717_v17, 0.0  ;;  %v8310_v57 = vld [vmem:[#allocation26_spill] sm:$0xff]  ;;  %v2365_v60 = vmax.f32 %v2261_v5, %v2315_v35  ;;  %v2419_v17 = vadd.f32 %v2418_v0, %v2417_v50  ;;  %v8314_v50 = vld [vmem:[#allocation28_spill] sm:$0xff] }
 0x3fa   :  { %8309 = vst [vmem:[#allocation23_spill] sm:$0xff] %v6780_v39  ;;  %v2256_v51 = vadd.f32 %v2255_v12, %v2254_v46  ;;  %v2302_v1 = vmul.f32 %v8310_v57, %v6112_v37  ;;  %v2623_v39 = vadd.f32 %v2622_v41, %v2621_v34  ;;  %v2009_v46 = vrot.slane %v2008_v9, 1 }
 0x3fb   :  { %v2164_v4 = vmax.f32 %v6760_v55, %v2156_v25  ;;  %v2213_v25 = vrot.slane %v2212_v7, 4  ;;  %v2726_v40 = vrot.slane %v2725_v62, 4  ;;  %v2521_v12 = vadd.f32 %v2520_v24, %v2519_v48  ;;  %v8316_v48 = vld [vmem:[#allocation29_spill] sm:$0xff] }
 0x3fc   :  { %v2257_v19 = vrot.slane %v2256_v51, 2  ;;  %v2316_v11 = vsel %vm1203_vm7, %v2302_v1, 0.0  ;;  %v2111_v44 = vrot.slane %v2110_v15, 2  ;;  %v2624_v35 = vrot.slane %v2623_v39, 2 }
 0x3fd   :  { %v2299_v31 = vpop.permute.xlu0 %2298  ;;  %v2925_v0 = vmul.f32 %v8316_v48, %v6094_v32  ;;  %v2214_v28 = vadd.f32 %v2213_v25, %v2212_v7  ;;  %v2830_v14 = vrot.slane %v2829_v26, 4 }
 0x3fe   :  { %v2308_v55 = vmul.f32 %v2299_v31, %v6172_v22  ;;  %v6791_v10 = vpop.permute.xlu1 %2286  ;;  %5124 = vset.pattern.permute.xlu0 %v8198_v6  ;;  %v2258_v16 = vadd.f32 %v2257_v19, %v2256_v51  ;;  %v8313_v31 = vmov 3   ;;  %v2406_v51 = vmul.f32 %v8314_v50, %v6112_v37 }
 0x3ff   :  { %8312 = vst [vmem:[#allocation12_spill] sm:$0xff] %v6791_v10  ;;  %3526 = vperm.xlu0 %5124, %v8298_v45   ;;  %v1950_v19 = vmax.f32 %v1846_v30, %v1906_v47  ;;  %v2317_v6 = vrot.slane %v2316_v11, 4  ;;  %v2522_v10 = vrot.slane %v2521_v12, 1  ;;  %v6810_v50 = vmax.f32 %v2365_v60, %v2419_v17  ;;  %v8317_v30 = vld [vmem:[#allocation30_spill] sm:$0xff] }
 0x400   :  { %v2358_v34 = vsel %vm1203_vm7, %v2308_v55, 0.0  ;;  %5081 = vset.pattern.permute.xlu1 %v8299_v42  ;;  %v2259_v41 = vrot.slane %v2258_v16, 1  ;;  %v2010_v42 = vadd.f32 %v2009_v46, %v2008_v9  ;;  %v2727_v55 = vadd.f32 %v2726_v40, %v2725_v62 }
 0x401   :  { %v2359_v57 = vrot.slane %v2358_v34, 4  ;;  %5061 = vset.pattern.permute.xlu2 %v8313_v31  ;;  %1462 = vperm.xlu1 %5081, %v6764_v54   ;;  %v2625_v59 = vadd.f32 %v2624_v35, %v2623_v39  ;;  %v2420_v9 = vsel %vm1203_vm7, %v2406_v51, 0.0  ;;  %v2510_v7 = vmul.f32 %v8317_v30, %v6112_v37 }
 0x402   :  { %v6803_v5 = vpop.permute.xlu2 %2698  ;;  %1666 = vperm.xlu2 %5061, %v6683_v8   ;;  %v2260_v24 = vadd.f32 %v2259_v41, %v2258_v16  ;;  %v6813_v3 = vmax.f32 %v1950_v19, %v2010_v42  ;;  %v2933_v16 = vsel %vm1203_vm7, %v2925_v0, 0.0  ;;  %v2728_v60 = vrot.slane %v2727_v55, 2 }
 0x403   :  { %8315 = vst [vmem:[#allocation24_spill] sm:$0xff] %v6803_v5  ;;  %v2360_v1 = vadd.f32 %v2359_v57, %v2358_v34  ;;  %v2112_v5 = vadd.f32 %v2111_v44, %v2110_v15  ;;  %v2318_v17 = vadd.f32 %v2317_v6, %v2316_v11  ;;  %v2523_v15 = vadd.f32 %v2522_v10, %v2521_v12  ;;  %v8319_v6 = vld [vmem:[#allocation31_spill] sm:$0xff] }
 0x404   :  { %v6808_v18 = vmax.f32 %v2164_v4, %v2260_v24  ;;  %v2215_v4 = vrot.slane %v2214_v28, 2  ;;  %v2831_v25 = vadd.f32 %v2830_v14, %v2829_v26  ;;  %v2421_v40 = vrot.slane %v2420_v9, 4 }
 0x405   :  { %v2361_v2 = vrot.slane %v2360_v1, 2  ;;  %v2113_v41 = vrot.slane %v2112_v5, 1  ;;  %v2626_v57 = vrot.slane %v2625_v59, 1  ;;  %v2934_v44 = vrot.slane %v2933_v16, 4 }
 0x406   :  { %v2403_v46 = vpop.permute.xlu0 %2402  ;;  %v8318_v35 = vmov 4   ;;  %v2524_v51 = vsel %vm1203_vm7, %v2510_v7, 0.0  ;;  %v3029_v11 = vmul.f32 %v8319_v6, %v6094_v32  ;;  %v2729_v26 = vadd.f32 %v2728_v60, %v2727_v55 }
 0x407   :  { %v2362_v62 = vadd.f32 %v2361_v2, %v2360_v1  ;;  %v6818_v47 = vpop.permute.xlu1 %2390  ;;  %3546 = vperm.xlu0 %5124, %v6400_v43   ;;  %v2412_v39 = vmul.f32 %v2403_v46, %v6172_v22  ;;  %v2319_v42 = vrot.slane %v2318_v17, 2  ;;  %v2832_v48 = vrot.slane %v2831_v25, 2 }
 0x408   :  { %v2422_v0 = vadd.f32 %v2421_v40, %v2420_v9  ;;  %v2573_v19 = vmax.f32 %v6810_v50, %v2523_v15  ;;  %v2114_v46 = vadd.f32 %v2113_v41, %v2112_v5  ;;  %v2935_v30 = vadd.f32 %v2934_v44, %v2933_v16 }
 0x409   :  { %v2363_v34 = vrot.slane %v2362_v62, 1  ;;  %5082 = vset.pattern.permute.xlu1 %v8306_v13  ;;  %v2462_v2 = vsel %vm1203_vm7, %v2412_v39, 0.0  ;;  %v2216_v13 = vadd.f32 %v2215_v4, %v2214_v28  ;;  %v2525_v7 = vrot.slane %v2524_v51, 4  ;;  %v8321_v39 = vld [vmem:[#allocation32_spill] sm:$0xff] }
 0x40a   :  { %5062 = vset.pattern.permute.xlu2 %v8318_v35  ;;  %1566 = vperm.xlu1 %5082, %v6764_v54   ;;  %v2463_v14 = vrot.slane %v2462_v2, 4  ;;  %v3133_v28 = vmul.f32 %v6492_v33, %v6094_v32  ;;  %v8200_v4 = vmov 22   ;;  %v2730_v40 = vrot.slane %v2729_v26, 1 }
 0x40b   :  { %v2364_v10 = vadd.f32 %v2363_v34, %v2362_v62  ;;  %v6829_v12 = vpop.permute.xlu2 %2802  ;;  %1770 = vperm.xlu2 %5062, %v6683_v8   ;;  %v3037_v62 = vsel %vm1203_vm7, %v3029_v11, 0.0  ;;  %v2614_v34 = vmul.f32 %v8321_v39, %v6112_v37  ;;  %v2217_v60 = vrot.slane %v2216_v13, 1 }
 0x40c   :  { %8320 = vst [vmem:[#allocation25_spill] sm:$0xff] %v6829_v12  ;;  %v2464_v1 = vadd.f32 %v2463_v14, %v2462_v2  ;;  %v2320_v16 = vadd.f32 %v2319_v42, %v2318_v17  ;;  %v2833_v15 = vadd.f32 %v2832_v48, %v2831_v25  ;;  %v2423_v41 = vrot.slane %v2422_v0, 2 }
 0x40d   :  { %v2372_v24 = vmax.f32 %v6808_v18, %v2364_v10  ;;  %v2627_v18 = vadd.f32 %v2626_v57, %v2625_v59  ;;  %v2936_v2 = vrot.slane %v2935_v30, 2  ;;  %v2526_v33 = vadd.f32 %v2525_v7, %v2524_v51 }
 0x40e   :  { %v2465_v55 = vrot.slane %v2464_v1, 2  ;;  %v3038_v6 = vrot.slane %v3037_v62, 4  ;;  %v2628_v59 = vsel %vm1203_vm7, %v2614_v34, 0.0  ;;  %v3141_v57 = vsel %vm1203_vm7, %v3133_v28, 0.0 }
 0x40f   :  { %5127 = vset.pattern.permute.xlu0 %v8200_v4  ;;  %v2507_v9 = vpop.permute.xlu0 %2506  ;;  %v8323_v39 = vmov 5   ;;  %v2158_v17 = vmax.f32 %v6813_v3, %v2114_v46  ;;  %v2677_v25 = vmax.f32 %v2573_v19, %v2627_v18  ;;  %v2218_v42 = vadd.f32 %v2217_v60, %v2216_v13 }
 0x410   :  { %v2516_v5 = vmul.f32 %v2507_v9, %v6172_v22  ;;  %v6841_v50 = vpop.permute.xlu1 %2494  ;;  %3630 = vperm.xlu0 %5127, %v8298_v45   ;;  %v2466_v44 = vadd.f32 %v2465_v55, %v2464_v1  ;;  %v2731_v51 = vadd.f32 %v2730_v40, %v2729_v26  ;;  %v2834_v1 = vrot.slane %v2833_v15, 1 }
 0x411   :  { %8322 = vst [vmem:[#allocation26_spill] sm:$0xff] %v6841_v50  ;;  %v2424_v28 = vadd.f32 %v2423_v41, %v2422_v0  ;;  %v3039_v55 = vadd.f32 %v3038_v6, %v3037_v62  ;;  %v2629_v9 = vrot.slane %v2628_v59, 4  ;;  %v2937_v4 = vadd.f32 %v2936_v2, %v2935_v30 }
 0x412   :  { %v2566_v11 = vsel %vm1203_vm7, %v2516_v5, 0.0  ;;  %5083 = vset.pattern.permute.xlu1 %v8313_v31  ;;  %v2467_v10 = vrot.slane %v2466_v44, 1  ;;  %v2321_v31 = vrot.slane %v2320_v16, 1  ;;  %v3142_v5 = vrot.slane %v3141_v57, 4 }
 0x413   :  { %v2567_v14 = vrot.slane %v2566_v11, 4  ;;  %5063 = vset.pattern.permute.xlu2 %v8323_v39  ;;  %1670 = vperm.xlu1 %5083, %v6764_v54   ;;  %v2527_v50 = vrot.slane %v2526_v33, 2  ;;  %v2262_v19 = vmax.f32 %v2158_v17, %v2218_v42  ;;  %v2718_v13 = vmul.f32 %v6495_v29, %v6112_v37 }
 0x414   :  { %v6851_v48 = vpop.permute.xlu2 %2906  ;;  %1874 = vperm.xlu2 %5063, %v6683_v8   ;;  %v2468_v7 = vadd.f32 %v2467_v10, %v2466_v44  ;;  %v3237_v26 = vmul.f32 %v6504_v21, %v6094_v32  ;;  %v2781_v18 = vmax.f32 %v2677_v25, %v2731_v51  ;;  %v2322_v0 = vadd.f32 %v2321_v31, %v2320_v16 }
 0x415   :  { %8324 = vst [vmem:[#allocation27_spill] sm:$0xff] %v6851_v48  ;;  %v2568_v34 = vadd.f32 %v2567_v14, %v2566_v11  ;;  %v2835_v62 = vadd.f32 %v2834_v1, %v2833_v15  ;;  %v3040_v30 = vrot.slane %v3039_v55, 2  ;;  %v3143_v41 = vadd.f32 %v3142_v5, %v3141_v57 }
 0x416   :  { %v6854_v12 = vmax.f32 %v2372_v24, %v2468_v7  ;;  %v2630_v24 = vadd.f32 %v2629_v9, %v2628_v59  ;;  %v2425_v2 = vrot.slane %v2424_v28, 1  ;;  %v2938_v6 = vrot.slane %v2937_v4, 1 }
 0x417   :  { %v2569_v3 = vrot.slane %v2568_v34, 2  ;;  %v2528_v29 = vadd.f32 %v2527_v50, %v2526_v33  ;;  %v2732_v21 = vsel %vm1203_vm7, %v2718_v13, 0.0  ;;  %v3245_v10 = vsel %vm1203_vm7, %v3237_v26, 0.0 }
 0x418   :  { %3650 = vperm.xlu0 %5127, %v6400_v43   ;;  %v2611_v46 = vpop.permute.xlu0 %2610  ;;  %v2822_v16 = vmul.f32 %v6506_v61, %v6112_v37  ;;  %v2926_v59 = vmul.f32 %v6519_v63, %v6112_v37  ;;  %v3041_v14 = vadd.f32 %v3040_v30, %v3039_v55  ;;  %v2631_v17 = vrot.slane %v2630_v24, 2 }
 0x419   :  { %v2570_v60 = vadd.f32 %v2569_v3, %v2568_v34  ;;  %v6861_v40 = vpop.permute.xlu1 %2598  ;;  %v2620_v44 = vmul.f32 %v2611_v46, %v6172_v22  ;;  %v3144_v25 = vrot.slane %v3143_v41, 2  ;;  %v2426_v61 = vadd.f32 %v2425_v2, %v2424_v28 }
 0x41a   :  { %8325 = vst [vmem:[#allocation28_spill] sm:$0xff] %v6861_v40  ;;  %v2733_v42 = vrot.slane %v2732_v21, 4  ;;  %v2885_v1 = vmax.f32 %v2781_v18, %v2835_v62  ;;  %v2939_v7 = vadd.f32 %v2938_v6, %v2937_v4  ;;  %v3246_v34 = vrot.slane %v3245_v10, 4 }
 0x41b   :  { %v2571_v11 = vrot.slane %v2570_v60, 1  ;;  %5084 = vset.pattern.permute.xlu1 %v8318_v35  ;;  %v2670_v15 = vsel %vm1203_vm7, %v2620_v44, 0.0  ;;  %v2366_v35 = vmax.f32 %v2262_v19, %v2322_v0  ;;  %v2836_v63 = vsel %vm1203_vm7, %v2822_v16, 0.0 }
 0x41c   :  { %5064 = vset.pattern.permute.xlu2 %v8260_v56  ;;  %1774 = vperm.xlu1 %5084, %v6764_v54   ;;  %v2671_v33 = vrot.slane %v2670_v15, 4  ;;  %v8208_v9 = vmov 23   ;;  %v2529_v5 = vrot.slane %v2528_v29, 1  ;;  %v3341_v3 = vmul.f32 %v6516_v23, %v6094_v32 }
 0x41d   :  { %v2572_v50 = vadd.f32 %v2571_v11, %v2570_v60  ;;  %v6874_v57 = vpop.permute.xlu2 %3010  ;;  %1978 = vperm.xlu2 %5064, %v6683_v8   ;;  %v2940_v55 = vsel %vm1203_vm7, %v2926_v59, 0.0  ;;  %v2632_v13 = vadd.f32 %v2631_v17, %v2630_v24  ;;  %v3145_v26 = vadd.f32 %v3144_v25, %v3143_v41 }
 0x41e   :  { %8326 = vst [vmem:[#allocation29_spill] sm:$0xff] %v6874_v57  ;;  %v2672_v31 = vadd.f32 %v2671_v33, %v2670_v15  ;;  %v6887_v18 = vmax.f32 %v2366_v35, %v2426_v61  ;;  %v2734_v0 = vadd.f32 %v2733_v42, %v2732_v21  ;;  %v2837_v62 = vrot.slane %v2836_v63, 4  ;;  %v8329_v42 = vld [vmem:[#allocation8_spill] sm:$0xff]  ;;  %v8386_v57 = vld [vmem:[#allocation23_spill] sm:$0xff] }
 0x41f   :  { %v2580_v51 = vmax.f32 %v6854_v12, %v2572_v50  ;;  %v3042_v12 = vrot.slane %v3041_v14, 1  ;;  %v3247_v30 = vadd.f32 %v3246_v34, %v3245_v10  ;;  %v2941_v23 = vrot.slane %v2940_v55, 4 }
 0x420   :  { %5130 = vset.pattern.permute.xlu0 %v8208_v9  ;;  %v2673_v19 = vrot.slane %v2672_v31, 2  ;;  %v3030_v44 = vmul.f32 %v6530_v49, %v6112_v37  ;;  %v2989_v24 = vmax.f32 %v2885_v1, %v2939_v7  ;;  %v3349_v41 = vsel %vm1203_vm7, %v3341_v3, 0.0 }
 0x421   :  { %3734 = vperm.xlu0 %5130, %v8298_v45   ;;  %v2715_v28 = vpop.permute.xlu0 %2714  ;;  %v2530_v21 = vadd.f32 %v2529_v5, %v2528_v29  ;;  %v3043_v16 = vadd.f32 %v3042_v12, %v3041_v14  ;;  %v2633_v10 = vrot.slane %v2632_v13, 1  ;;  %v3146_v15 = vrot.slane %v3145_v26, 1 }
 0x422   :  { %v2724_v4 = vmul.f32 %v2715_v28, %v6172_v22  ;;  %v6885_v46 = vpop.permute.xlu1 %2702  ;;  %v2674_v60 = vadd.f32 %v2673_v19, %v2672_v31  ;;  %v2735_v49 = vrot.slane %v2734_v0, 2  ;;  %v2838_v50 = vadd.f32 %v2837_v62, %v2836_v63 }
 0x423   :  { %8327 = vst [vmem:[#allocation30_spill] sm:$0xff] %v6885_v46  ;;  %v3248_v35 = vrot.slane %v3247_v30, 2  ;;  %v3350_v17 = vrot.slane %v3349_v41, 4  ;;  %v2942_v25 = vadd.f32 %v2941_v23, %v2940_v55  ;;  %v3044_v61 = vsel %vm1203_vm7, %v3030_v44, 0.0 }
 0x424   :  { %v2774_v2 = vsel %vm1203_vm7, %v2724_v4, 0.0  ;;  %5085 = vset.pattern.permute.xlu1 %v8323_v39  ;;  %v2675_v6 = vrot.slane %v2674_v60, 1  ;;  %v1376_v31 = vmul.f32 %v6539_v53, %v8329_v42  ;;  %v3134_v29 = vmul.f32 %v6543_v58, %v6112_v37 }
 0x425   :  { %v2775_v11 = vrot.slane %v2774_v2, 4  ;;  %5065 = vset.pattern.permute.xlu2 %v8261_v20  ;;  %1878 = vperm.xlu1 %5085, %v6764_v54   ;;  %v2574_v7 = vmax.f32 %v6887_v18, %v2530_v21  ;;  %v6908_v34 = vmax.f32 %v2989_v24, %v3043_v16  ;;  %v2634_v63 = vadd.f32 %v2633_v10, %v2632_v13 }
 0x426   :  { %v6896_v59 = vpop.permute.xlu2 %3114  ;;  %2082 = vperm.xlu2 %5065, %v6683_v8   ;;  %v2676_v39 = vadd.f32 %v2675_v6, %v2674_v60  ;;  %v6910_v3 = vadd.f32 %v3146_v15, %v3145_v26  ;;  %v2736_v55 = vadd.f32 %v2735_v49, %v2734_v0  ;;  %v2839_v19 = vrot.slane %v2838_v50, 2 }
 0x427   :  { %8328 = vst [vmem:[#allocation31_spill] sm:$0xff] %v6896_v59  ;;  %v2776_v33 = vadd.f32 %v2775_v11, %v2774_v2  ;;  %v3249_v12 = vadd.f32 %v3248_v35, %v3247_v30  ;;  %v3351_v58 = vadd.f32 %v3350_v17, %v3349_v41  ;;  %v2943_v62 = vrot.slane %v2942_v25, 2 }
 0x428   :  { %v6904_v14 = vmax.f32 %v2580_v51, %v2676_v39  ;;  %v3045_v51 = vrot.slane %v3044_v61, 4  ;;  %v1402_v60 = vsel %vm1203_vm7, %v1376_v31, 0.0  ;;  %v3148_v18 = vsel %vm1203_vm7, %v3134_v29, 0.0 }
 0x429   :  { %v2777_v1 = vrot.slane %v2776_v33, 2  ;;  %3754 = vperm.xlu0 %5130, %v6400_v43   ;;  %v1472_v13 = vmul.f32 %v6552_v52, %v8329_v42  ;;  %v3238_v26 = vmul.f32 %v6554_v38, %v6112_v37  ;;  %v2737_v30 = vrot.slane %v2736_v55, 1 }
 0x42a   :  { %v2819_v5 = vpop.permute.xlu0 %2818  ;;  %v2840_v44 = vadd.f32 %v2839_v19, %v2838_v50  ;;  %v3046_v52 = vadd.f32 %v3045_v51, %v3044_v61  ;;  %v1403_v6 = vrot.slane %v1402_v60, 4  ;;  %v3149_v11 = vrot.slane %v3148_v18, 4 }
 0x42b   :  { %v2778_v28 = vadd.f32 %v2777_v1, %v2776_v33  ;;  %v6912_v53 = vpop.permute.xlu1 %2806  ;;  %v2828_v4 = vmul.f32 %v2819_v5, %v6172_v22  ;;  %v3250_v38 = vrot.slane %v3249_v12, 1  ;;  %v3352_v21 = vrot.slane %v3351_v58, 2 }
 0x42c   :  { %8330 = vst [vmem:[#allocation32_spill] sm:$0xff] %v6912_v53  ;;  %v8206_v15 = vmov 24   ;;  %v2944_v49 = vadd.f32 %v2943_v62, %v2942_v25  ;;  %v1498_v50 = vsel %vm1203_vm7, %v1472_v13, 0.0  ;;  %v3252_v39 = vsel %vm1203_vm7, %v3238_v26, 0.0 }
 0x42d   :  { %v2779_v23 = vrot.slane %v2778_v28, 1  ;;  %5086 = vset.pattern.permute.xlu1 %v8260_v56  ;;  %v2878_v0 = vsel %vm1203_vm7, %v2828_v4, 0.0  ;;  %v6928_v56 = vmax.f32 %v2574_v7, %v2634_v63  ;;  %v1576_v33 = vmul.f32 %v6564_v27, %v8329_v42 }
 0x42e   :  { %5066 = vset.pattern.permute.xlu2 %v8262_v36  ;;  %1982 = vperm.xlu1 %5086, %v6764_v54   ;;  %v2879_v24 = vrot.slane %v2878_v0, 4  ;;  %v3197_v35 = vmax.f32 %v6908_v34, %v6910_v3  ;;  %v2738_v17 = vadd.f32 %v2737_v30, %v2736_v55  ;;  %v2841_v61 = vrot.slane %v2840_v44, 1  ;;  %v8333_v3 = vld [vmem:[#allocation33_spill] sm:$0xff] }
 0x42f   :  { %v2780_v2 = vadd.f32 %v2779_v23, %v2778_v28  ;;  %v6925_v41 = vpop.permute.xlu2 %3218  ;;  %2186 = vperm.xlu2 %5066, %v6683_v8   ;;  %v1404_v1 = vadd.f32 %v1403_v6, %v1402_v60  ;;  %v3150_v7 = vadd.f32 %v3149_v11, %v3148_v18  ;;  %v3251_v5 = vadd.f32 %v3250_v38, %v3249_v12  ;;  %v8334_v60 = vld [vmem:[#allocation34_spill] sm:$0xff] }
 0x430   :  { %8331 = vst [vmem:[#allocation8_spill] sm:$0xff] %v6925_v41  ;;  %v2880_v10 = vadd.f32 %v2879_v24, %v2878_v0  ;;  %v1499_v19 = vrot.slane %v1498_v50, 4  ;;  %v3253_v28 = vrot.slane %v3252_v39, 4  ;;  %v3353_v51 = vadd.f32 %v3352_v21, %v3351_v58 }
 0x431   :  { %v2788_v16 = vmax.f32 %v6904_v14, %v2780_v2  ;;  %5133 = vset.pattern.permute.xlu0 %v8206_v15  ;;  %v3047_v14 = vrot.slane %v3046_v52, 2  ;;  %v2945_v4 = vrot.slane %v2944_v49, 1  ;;  %v1602_v62 = vsel %vm1203_vm7, %v1576_v33, 0.0 }
 0x432   :  { %3838 = vperm.xlu0 %5133, %v8298_v45   ;;  %v2881_v31 = vrot.slane %v2880_v10, 2  ;;  %v3342_v55 = vmul.f32 %v8333_v3, %v6112_v37  ;;  %v1680_v18 = vmul.f32 %v8334_v60, %v8329_v42  ;;  %v8335_v12 = vmov 9  }
 0x433   :  { %v2923_v29 = vpop.permute.xlu0 %2922  ;;  %v2842_v58 = vadd.f32 %v2841_v61, %v2840_v44  ;;  %v3048_v26 = vadd.f32 %v3047_v14, %v3046_v52  ;;  %v1405_v0 = vrot.slane %v1404_v1, 2  ;;  %v3151_v30 = vrot.slane %v3150_v7, 2 }
 0x434   :  { %v2932_v25 = vmul.f32 %v2923_v29, %v6172_v22  ;;  %v6940_v63 = vpop.permute.xlu1 %2910  ;;  %v2882_v27 = vadd.f32 %v2881_v31, %v2880_v10  ;;  %v3254_v24 = vadd.f32 %v3253_v28, %v3252_v39  ;;  %v2782_v38 = vmax.f32 %v6928_v56, %v2738_v17 }
 0x435   :  { %8332 = vst [vmem:[#allocation49_spill] sm:$0xff] %v6940_v63  ;;  %v3354_v21 = vrot.slane %v3353_v51, 1  ;;  %v2946_v10 = vadd.f32 %v2945_v4, %v2944_v49  ;;  %v1603_v33 = vrot.slane %v1602_v62, 4  ;;  %v3356_v44 = vsel %vm1203_vm7, %v3342_v55, 0.0 }
 0x436   :  { %v2982_v34 = vsel %vm1203_vm7, %v2932_v25, 0.0  ;;  %5087 = vset.pattern.permute.xlu1 %v8261_v20  ;;  %v2883_v23 = vrot.slane %v2882_v27, 1  ;;  %v1500_v20 = vadd.f32 %v1499_v19, %v1498_v50  ;;  %v1706_v52 = vsel %vm1203_vm7, %v1680_v18, 0.0 }
 0x437   :  { %v2983_v13 = vrot.slane %v2982_v34, 4  ;;  %5067 = vset.pattern.permute.xlu2 %v8335_v12  ;;  %2086 = vperm.xlu1 %5087, %v6764_v54   ;;  %v6960_v29 = vmax.f32 %v3197_v35, %v3251_v5  ;;  %v3049_v50 = vrot.slane %v3048_v26, 1  ;;  %v1406_v39 = vadd.f32 %v1405_v0, %v1404_v1 }
 0x438   :  { %v6951_v2 = vpop.permute.xlu2 %3322  ;;  %2290 = vperm.xlu2 %5067, %v6683_v8   ;;  %v2884_v6 = vadd.f32 %v2883_v23, %v2882_v27  ;;  %v3152_v14 = vadd.f32 %v3151_v30, %v3150_v7  ;;  %v2886_v19 = vmax.f32 %v2782_v38, %v2842_v58  ;;  %v1501_v56 = vrot.slane %v1500_v20, 2  ;;  %v8341_v23 = vld [vmem:[#allocation10_spill] sm:$0xff] }
 0x439   :  { %8336 = vst [vmem:[#allocation33_spill] sm:$0xff] %v6951_v2  ;;  %v2984_v11 = vadd.f32 %v2983_v13, %v2982_v34  ;;  %v3255_v17 = vrot.slane %v3254_v24, 2  ;;  %v1604_v27 = vadd.f32 %v1603_v33, %v1602_v62  ;;  %v3357_v4 = vrot.slane %v3356_v44, 4  ;;  %v8342_v13 = vld [vmem:[#allocation36_spill] sm:$0xff] }
 0x43a   :  { %3858 = vperm.xlu0 %5133, %v6400_v43   ;;  %v6958_v61 = vmax.f32 %v2788_v16, %v2884_v6  ;;  %8337 = vst [vmem:[#allocation34_spill] sm:$0xff] %v6960_v29  ;;  %v1707_v34 = vrot.slane %v1706_v52, 4  ;;  %v6965_v16 = vadd.f32 %v3354_v21, %v3353_v51  ;;  %v2990_v55 = vmax.f32 %v2886_v19, %v2946_v10  ;;  %v8343_v21 = vld [vmem:[#allocation38_spill] sm:$0xff] }
 0x43b   :  { %v2985_v31 = vrot.slane %v2984_v11, 2  ;;  %v3050_v1 = vadd.f32 %v3049_v50, %v3048_v26  ;;  %v1407_v7 = vrot.slane %v1406_v39, 1  ;;  %v3153_v5 = vrot.slane %v3152_v14, 1 }
 0x43c   :  { %v3027_v25 = vpop.permute.xlu0 %3026  ;;  %8339 = vst [vmem:[#allocation51_spill] sm:$0xff] %v6965_v16  ;;  %v8340_v18 = vmov 10   ;;  %v1502_v62 = vadd.f32 %v1501_v56, %v1500_v20  ;;  %v1377_v58 = vmul.f32 %v8342_v13, %v8341_v23  ;;  %v1605_v26 = vrot.slane %v1604_v27, 2  ;;  %v8344_v20 = vld [vmem:[#allocation39_spill] sm:$0xff] }
 0x43d   :  { %v2986_v49 = vadd.f32 %v2985_v31, %v2984_v11  ;;  %v6962_v28 = vpop.permute.xlu1 %3014  ;;  %v3036_v3 = vmul.f32 %v3027_v25, %v6172_v22  ;;  %v3358_v6 = vadd.f32 %v3357_v4, %v3356_v44  ;;  %v1708_v11 = vadd.f32 %v1707_v34, %v1706_v52  ;;  %v8345_v25 = vld [vmem:[#allocation14_spill] sm:$0xff] }
 0x43e   :  { %8338 = vst [vmem:[#allocation50_spill] sm:$0xff] %v6962_v28  ;;  %v8202_v38 = vmov 26   ;;  %v1784_v10 = vmul.f32 %v8343_v21, %v8329_v42  ;;  %v1473_v33 = vmul.f32 %v8344_v20, %v8341_v23  ;;  %v3094_v19 = vmax.f32 %v2990_v55, %v3050_v1 }
 0x43f   :  { %v2987_v35 = vrot.slane %v2986_v49, 1  ;;  %5088 = vset.pattern.permute.xlu1 %v8262_v36  ;;  %v3086_v60 = vsel %vm1203_vm7, %v3036_v3, 0.0  ;;  %v3256_v36 = vadd.f32 %v3255_v17, %v3254_v24  ;;  %v6985_v44 = vadd.f32 %v1407_v7, %v1406_v39 }
 0x440   :  { %5068 = vset.pattern.permute.xlu2 %v8340_v18  ;;  %2190 = vperm.xlu1 %5088, %v6764_v54   ;;  %v3087_v51 = vrot.slane %v3086_v60, 4  ;;  %v3154_v52 = vadd.f32 %v3153_v5, %v3152_v14  ;;  %v1503_v56 = vrot.slane %v1502_v62, 1  ;;  %v1409_v17 = vsel %vm1203_vm7, %v1377_v58, 0.0  ;;  %v8347_v14 = vld [vmem:[#allocation40_spill] sm:$0xff] }
 0x441   :  { %v2988_v0 = vadd.f32 %v2987_v35, %v2986_v49  ;;  %2394 = vperm.xlu2 %5068, %v6683_v8   ;;  %v6974_v30 = vpop.permute.xlu2 %1360  ;;  %v3257_v34 = vrot.slane %v3256_v36, 1  ;;  %v1606_v3 = vadd.f32 %v1605_v26, %v1604_v27  ;;  %v3359_v35 = vrot.slane %v3358_v6, 2 }
 0x442   :  { %5137 = vset.pattern.permute.xlu0 %v8202_v38  ;;  %v3088_v50 = vadd.f32 %v3087_v51, %v3086_v60  ;;  %v1709_v13 = vrot.slane %v1708_v11, 2  ;;  %v1505_v55 = vsel %vm1203_vm7, %v1473_v33, 0.0  ;;  %v1410_v1 = vrot.slane %v1409_v17, 4 }
 0x443   :  { %v2996_v31 = vmax.f32 %v6958_v61, %v2988_v0  ;;  %4042 = vperm.xlu0 %5137, %v8345_v25   ;;  %v1810_v0 = vsel %vm1203_vm7, %v1784_v10, 0.0  ;;  %v1888_v7 = vmul.f32 %v8347_v14, %v8329_v42  ;;  %v3198_v27 = vmax.f32 %v3094_v19, %v3154_v52 }
 0x444   :  { %v3089_v49 = vrot.slane %v3088_v50, 2  ;;  %v1504_v58 = vadd.f32 %v1503_v56, %v1502_v62  ;;  %v8348_v21 = vmov 11   ;;  %v3258_v10 = vadd.f32 %v3257_v34, %v3256_v36  ;;  %v8350_v34 = vld [vmem:[#allocation42_spill] sm:$0xff] }
 0x445   :  { %v3131_v4 = vpop.permute.xlu0 %3130  ;;  %v1607_v20 = vrot.slane %v1606_v3, 1  ;;  %v1811_v33 = vrot.slane %v1810_v0, 4  ;;  %v8204_v52 = vmov 25   ;;  %v3360_v56 = vadd.f32 %v3359_v35, %v3358_v6 }
 0x446   :  { %v3140_v61 = vmul.f32 %v3131_v4, %v6172_v22  ;;  %v6989_v60 = vpop.permute.xlu1 %3118  ;;  %v3090_v39 = vadd.f32 %v3089_v49, %v3088_v50  ;;  %v1506_v50 = vrot.slane %v1505_v55, 4  ;;  %v1710_v4 = vadd.f32 %v1709_v13, %v1708_v11  ;;  %v8351_v11 = vld [vmem:[#allocation43_spill] sm:$0xff] }
 0x447   :  { %8346 = vst [vmem:[#allocation10_spill] sm:$0xff] %v6989_v60  ;;  %v1411_v14 = vadd.f32 %v1410_v1, %v1409_v17  ;;  %v1914_v36 = vsel %vm1203_vm7, %v1888_v7, 0.0  ;;  %v1992_v38 = vmul.f32 %v8350_v34, %v8329_v42  ;;  %v1536_v24 = vmax.f32 %v6985_v44, %v1504_v58  ;;  %v8363_v60 = vld [vmem:[#allocation19_spill] sm:$0xff] }
 0x448   :  { %v3190_v5 = vsel %vm1203_vm7, %v3140_v61, 0.0  ;;  %5089 = vset.pattern.permute.xlu1 %v8335_v12  ;;  %v3091_v51 = vrot.slane %v3090_v39, 1  ;;  %v8349_v61 = vld [vmem:[#allocation41_spill] sm:$0xff]  ;;  %v1681_v13 = vmul.f32 %v8351_v11, %v8341_v23  ;;  %v1812_v6 = vadd.f32 %v1811_v33, %v1810_v0 }
 0x449   :  { %v3191_v26 = vrot.slane %v3190_v5, 4  ;;  %5069 = vset.pattern.permute.xlu2 %v8348_v21  ;;  %2294 = vperm.xlu1 %5089, %v6764_v54   ;;  %v1577_v12 = vmul.f32 %v8349_v61, %v8341_v23  ;;  %v1507_v17 = vadd.f32 %v1506_v50, %v1505_v55  ;;  %v1711_v1 = vrot.slane %v1710_v4, 1  ;;  %v8355_v55 = vld [vmem:[#allocation45_spill] sm:$0xff] }
 0x44a   :  { %2498 = vperm.xlu2 %5069, %v6683_v8   ;;  %v7000_v49 = vpop.permute.xlu2 %1458  ;;  %v3092_v19 = vadd.f32 %v3091_v51, %v3090_v39  ;;  %v1608_v51 = vadd.f32 %v1607_v20, %v1606_v3  ;;  %v1915_v7 = vrot.slane %v1914_v36, 4  ;;  %v3361_v44 = vrot.slane %v3360_v56, 1  ;;  %v8354_v3 = vld [vmem:[#allocation44_spill] sm:$0xff] }
 0x44b   :  { %v3192_v62 = vadd.f32 %v3191_v26, %v3190_v5  ;;  %5138 = vset.pattern.permute.xlu0 %v8204_v52  ;;  %v7014_v5 = vmax.f32 %v3198_v27, %v3258_v10  ;;  %v1609_v26 = vsel %vm1203_vm7, %v1577_v12, 0.0  ;;  %v1412_v58 = vrot.slane %v1411_v14, 2 }
 0x44c   :  { %3942 = vperm.xlu0 %5138, %v8298_v45   ;;  %v7012_v61 = vmax.f32 %v2996_v31, %v3092_v19  ;;  %v2018_v11 = vsel %vm1203_vm7, %v1992_v38, 0.0  ;;  %v1713_v27 = vsel %vm1203_vm7, %v1681_v13, 0.0  ;;  %v2096_v0 = vmul.f32 %v8354_v3, %v8329_v42 }
 0x44d   :  { %v3193_v39 = vrot.slane %v3192_v62, 2  ;;  %8352 = vst [vmem:[#allocation36_spill] sm:$0xff] %v7014_v5  ;;  %v1785_v10 = vmul.f32 %v8355_v55, %v8341_v23  ;;  %v1813_v33 = vrot.slane %v1812_v6, 2  ;;  %v1508_v50 = vrot.slane %v1507_v17, 2 }
 0x44e   :  { %v3235_v35 = vpop.permute.xlu0 %3234  ;;  %v1610_v12 = vrot.slane %v1609_v26, 4  ;;  %v7030_v38 = vadd.f32 %v1711_v1, %v1710_v4  ;;  %v1916_v13 = vadd.f32 %v1915_v7, %v1914_v36  ;;  %v7035_v55 = vmax.f32 %v1536_v24, %v1608_v51  ;;  %v8358_v51 = vld [vmem:[#allocation46_spill] sm:$0xff] }
 0x44f   :  { %v3194_v34 = vadd.f32 %v3193_v39, %v3192_v62  ;;  %v7017_v52 = vpop.permute.xlu1 %3222  ;;  %v3244_v31 = vmul.f32 %v3235_v35, %v6172_v22  ;;  %v8356_v62 = vmov 12   ;;  %v2019_v15 = vrot.slane %v2018_v11, 4 }
 0x450   :  { %8353 = vst [vmem:[#allocation38_spill] sm:$0xff] %v7017_v52  ;;  %v1714_v9 = vrot.slane %v1713_v27, 4  ;;  %v1817_v52 = vsel %vm1203_vm7, %v1785_v10, 0.0  ;;  %v7041_v1 = vadd.f32 %v3361_v44, %v3360_v56  ;;  %v1814_v7 = vadd.f32 %v1813_v33, %v1812_v6 }
 0x451   :  { %v3195_v20 = vrot.slane %v3194_v34, 1  ;;  %5090 = vset.pattern.permute.xlu1 %v8340_v18  ;;  %v3294_v19 = vsel %vm1203_vm7, %v3244_v31, 0.0  ;;  %v1413_v18 = vadd.f32 %v1412_v58, %v1411_v14  ;;  %v2122_v31 = vsel %vm1203_vm7, %v2096_v0, 0.0 }
 0x452   :  { %5070 = vset.pattern.permute.xlu2 %v8356_v62  ;;  %2398 = vperm.xlu1 %5090, %v6764_v54   ;;  %v3295_v35 = vrot.slane %v3294_v19, 4  ;;  %8357 = vst [vmem:[#allocation39_spill] sm:$0xff] %v7041_v1  ;;  %v1917_v14 = vrot.slane %v1916_v13, 2  ;;  %v2200_v58 = vmul.f32 %v8358_v51, %v8329_v42  ;;  %v2020_v0 = vadd.f32 %v2019_v15, %v2018_v11  ;;  %v8360_v15 = vld [vmem:[#allocation47_spill] sm:$0xff] }
 0x453   :  { %v3196_v39 = vadd.f32 %v3195_v20, %v3194_v34  ;;  %2602 = vperm.xlu2 %5070, %v6683_v8   ;;  %v7033_v3 = vpop.permute.xlu2 %1562  ;;  %v1509_v34 = vadd.f32 %v1508_v50, %v1507_v17  ;;  %v1611_v20 = vadd.f32 %v1610_v12, %v1609_v26  ;;  %v2123_v37 = vrot.slane %v2122_v31, 4 }
 0x454   :  { %3958 = vperm.xlu0 %5138, %v6764_v54   ;;  %v3296_v36 = vadd.f32 %v3295_v35, %v3294_v19  ;;  %v1818_v10 = vrot.slane %v1817_v52, 4  ;;  %v1414_v56 = vrot.slane %v1413_v18, 1  ;;  %v1715_v6 = vadd.f32 %v1714_v9, %v1713_v27 }
 0x455   :  { %v3204_v4 = vmax.f32 %v7012_v61, %v3196_v39  ;;  %v1815_v26 = vrot.slane %v1814_v7, 1  ;;  %v1510_v44 = vrot.slane %v1509_v34, 1  ;;  %v1612_v33 = vrot.slane %v1611_v20, 2 }
 0x456   :  { %v3297_v16 = vrot.slane %v3296_v36, 2  ;;  %v2226_v12 = vsel %vm1203_vm7, %v2200_v58, 0.0  ;;  %v1889_v11 = vmul.f32 %v8360_v15, %v8341_v23  ;;  %v1918_v9 = vadd.f32 %v1917_v14, %v1916_v13  ;;  %v8364_v14 = vld [vmem:[#allocation16_spill] sm:$0xff] }
 0x457   :  { %v3339_v29 = vpop.permute.xlu0 %3338  ;;  %v2124_v27 = vadd.f32 %v2123_v37, %v2122_v31  ;;  %v1716_v58 = vrot.slane %v1715_v6, 2  ;;  %v7064_v5 = vadd.f32 %v1414_v56, %v1413_v18  ;;  %v1816_v13 = vadd.f32 %v1815_v26, %v1814_v7  ;;  %v8366_v26 = vld [vmem:[#allocation17_spill] sm:$0xff] }
 0x458   :  { %v3348_v61 = vmul.f32 %v3339_v29, %v6172_v22  ;;  %v7048_v19 = vpop.permute.xlu1 %3326  ;;  %v3298_v17 = vadd.f32 %v3297_v16, %v3296_v36  ;;  %v8361_v29 = vmov 13   ;;  %v2021_v16 = vrot.slane %v2020_v0, 2 }
 0x459   :  { %8359 = vst [vmem:[#allocation14_spill] sm:$0xff] %v7048_v19  ;;  %v1819_v36 = vadd.f32 %v1818_v10, %v1817_v52  ;;  %v1613_v37 = vadd.f32 %v1612_v33, %v1611_v20  ;;  %v2227_v52 = vrot.slane %v2226_v12, 4  ;;  %v1921_v31 = vsel %vm1203_vm7, %v1889_v11, 0.0  ;;  %v8367_v11 = vld [vmem:[#allocation7_spill] sm:$0xff] }
 0x45a   :  { %v3398_v50 = vsel %vm1203_vm7, %v3348_v61, 0.0  ;;  %5091 = vset.pattern.permute.xlu1 %v8348_v21  ;;  %v3299_v39 = vrot.slane %v3298_v17, 1  ;;  %v8216_v21 = vmov 27   ;;  %v8362_v61 = vld [vmem:[#allocation48_spill] sm:$0xff]  ;;  %v1993_v10 = vmul.f32 %v8364_v14, %v8341_v23 }
 0x45b   :  { %v3399_v35 = vrot.slane %v3398_v50, 4  ;;  %5071 = vset.pattern.permute.xlu2 %v8361_v29  ;;  %2502 = vperm.xlu1 %5091, %v6764_v54   ;;  %v2304_v15 = vmul.f32 %v8362_v61, %v8329_v42  ;;  %v1511_v28 = vadd.f32 %v1510_v44, %v1509_v34  ;;  %v1919_v32 = vrot.slane %v1918_v9, 1 }
 0x45c   :  { %2706 = vperm.xlu2 %5071, %v6683_v8   ;;  %v7058_v51 = vpop.permute.xlu2 %1666  ;;  %5145 = vset.pattern.permute.xlu0 %v8216_v21  ;;  %v3300_v24 = vadd.f32 %v3299_v39, %v3298_v17  ;;  %v2125_v61 = vrot.slane %v2124_v27, 2  ;;  %v1820_v17 = vrot.slane %v1819_v36, 2  ;;  %v2022_v39 = vadd.f32 %v2021_v16, %v2020_v0 }
 0x45d   :  { %v3400_v19 = vadd.f32 %v3399_v35, %v3398_v50  ;;  %4154 = vperm.xlu0 %5145, %v8363_v60   ;;  %v1717_v35 = vadd.f32 %v1716_v58, %v1715_v6  ;;  %v2330_v18 = vsel %vm1203_vm7, %v2304_v15, 0.0  ;;  %v1922_v56 = vrot.slane %v1921_v31, 4 }
 0x45e   :  { %v7069_v1 = vmax.f32 %v3204_v4, %v3300_v24  ;;  %v2408_v33 = vmul.f32 %v8366_v26, %v8329_v42  ;;  %v1614_v24 = vrot.slane %v1613_v37, 1  ;;  %v2228_v14 = vadd.f32 %v2227_v52, %v2226_v12 }
 0x45f   :  { %v3401_v21 = vrot.slane %v3400_v19, 2  ;;  %v2025_v34 = vsel %vm1203_vm7, %v1993_v10, 0.0  ;;  %v2126_v0 = vadd.f32 %v2125_v61, %v2124_v27  ;;  %v1821_v6 = vadd.f32 %v1820_v17, %v1819_v36 }
 0x460   :  { %v3423_v50 = vpop.permute.xlu0 %3422  ;;  %v2331_v16 = vrot.slane %v2330_v18, 4  ;;  %v1920_v58 = vadd.f32 %v1919_v32, %v1918_v9  ;;  %v2023_v15 = vrot.slane %v2022_v39, 1  ;;  %v8220_v52 = vmov 28  }
 0x461   :  { %v3402_v7 = vadd.f32 %v3401_v21, %v3400_v19  ;;  %v7072_v20 = vpop.permute.xlu1 %3418  ;;  %v3447_v4 = vmul.f32 %v3423_v50, %v8367_v11  ;;  %v8368_v21 = vmov 14   ;;  %v1923_v27 = vadd.f32 %v1922_v56, %v1921_v31 }
 0x462   :  { %8365 = vst [vmem:[#allocation40_spill] sm:$0xff] %v7072_v20  ;;  %v2026_v36 = vrot.slane %v2025_v34, 4  ;;  %v2434_v10 = vsel %vm1203_vm7, %v2408_v33, 0.0  ;;  %v1615_v61 = vadd.f32 %v1614_v24, %v1613_v37  ;;  %v2229_v32 = vrot.slane %v2228_v14, 2 }
 0x463   :  { %v3403_v44 = vrot.slane %v3402_v7, 1  ;;  %5092 = vset.pattern.permute.xlu1 %v8356_v62  ;;  %v3467_v19 = vsel %vm1203_vm7, %v3447_v4, 0.0  ;;  %v1718_v62 = vrot.slane %v1717_v35, 1  ;;  %v1822_v20 = vrot.slane %v1821_v6, 1 }
 0x464   :  { %5072 = vset.pattern.permute.xlu2 %v8368_v21  ;;  %2606 = vperm.xlu1 %5092, %v6764_v54   ;;  %v3468_v50 = vrot.slane %v3467_v19, 4  ;;  %v1537_v31 = vmax.f32 %v7064_v5, %v1511_v28  ;;  %v2024_v56 = vadd.f32 %v2023_v15, %v2022_v39  ;;  %v2435_v33 = vrot.slane %v2434_v10, 4 }
 0x465   :  { %v7082_v26 = vadd.f32 %v3403_v44, %v3402_v7  ;;  %2810 = vperm.xlu2 %5072, %v6683_v8   ;;  %v7085_v12 = vpop.permute.xlu2 %1770  ;;  %5150 = vset.pattern.permute.xlu0 %v8220_v52  ;;  %v8369_v7 = vmax.f32 %v7035_v55, %v7030_v38  ;;  %v2127_v44 = vrot.slane %v2126_v0, 1  ;;  %v2332_v52 = vadd.f32 %v2331_v16, %v2330_v18 }
 0x466   :  { %4254 = vperm.xlu0 %5150, %v8298_v45   ;;  %v3469_v17 = vadd.f32 %v3468_v50, %v3467_v19  ;;  %v1719_v45 = vadd.f32 %v1718_v62, %v1717_v35  ;;  %v1924_v37 = vrot.slane %v1923_v27, 2  ;;  %v2027_v24 = vadd.f32 %v2026_v36, %v2025_v34 }
 0x467   :  { %v1848_v4 = vmax.f32 %v8369_v7, %v1816_v13  ;;  %v1641_v50 = vmax.f32 %v1537_v31, %v1615_v61  ;;  %v2230_v38 = vadd.f32 %v2229_v32, %v2228_v14  ;;  %v7099_v13 = vadd.f32 %v2127_v44, %v2126_v0  ;;  %v8374_v7 = vld [vmem:[#allocation37_spill] sm:$0xff] }
 0x468   :  { %v3443_v63 = vpop.permute.xlu0 %3442  ;;  %v3470_v2 = vrot.slane %v3469_v17, 2  ;;  %v1823_v18 = vadd.f32 %v1822_v20, %v1821_v6  ;;  %v2333_v16 = vrot.slane %v2332_v52, 2  ;;  %v2436_v39 = vadd.f32 %v2435_v33, %v2434_v10  ;;  %v8372_v10 = vld [vmem:[#allocation18_spill] sm:$0xff] }
 0x469   :  { %v3452_v41 = vmul.f32 %v3443_v63, %v6172_v22  ;;  %v1952_v19 = vmax.f32 %v1848_v4, %v1920_v58  ;;  %v8370_v15 = vmov 15   ;;  %v1745_v63 = vmax.f32 %v1641_v50, %v1719_v45 }
 0x46a   :  { %v7097_v9 = vpop.permute.xlu1 %1365  ;;  %v3471_v55 = vadd.f32 %v3470_v2, %v3469_v17  ;;  %v1925_v58 = vadd.f32 %v1924_v37, %v1923_v27  ;;  %v2028_v14 = vrot.slane %v2027_v24, 2  ;;  %v8371_v2 = vld [vmem:[#allocation9_spill] sm:$0xff]  ;;  %v2334_v27 = vadd.f32 %v2333_v16, %v2332_v52  ;;  %v8373_v17 = vld [vmem:[#allocation35_spill] sm:$0xff] }
 0x46b   :  { %v3502_v28 = vsel %vm1203_vm7, %v3452_v41, 0.0  ;;  %v2056_v5 = vmax.f32 %v1952_v19, %v2024_v56  ;;  %v1474_v0 = vmul.f32 %v7000_v49, %v8371_v2  ;;  %v2231_v41 = vrot.slane %v2230_v38, 1 }
 0x46c   :  { %5093 = vset.pattern.permute.xlu1 %v8361_v29  ;;  %v3472_v35 = vrot.slane %v3471_v55, 1  ;;  %v3503_v34 = vrot.slane %v3502_v28, 4  ;;  %v1378_v29 = vmul.f32 %v6974_v30, %v8371_v2  ;;  %v7114_v45 = vmax.f32 %v1745_v63, %v1823_v18 }
 0x46d   :  { %5073 = vset.pattern.permute.xlu2 %v8370_v15  ;;  %2710 = vperm.xlu1 %5093, %v6764_v54   ;;  %v2160_v36 = vmax.f32 %v2056_v5, %v7099_v13  ;;  %v2097_v49 = vmul.f32 %v8372_v10, %v8341_v23  ;;  %v2437_v61 = vrot.slane %v2436_v39, 2  ;;  %v1578_v32 = vmul.f32 %v7033_v3, %v8371_v2 }
 0x46e   :  { %2914 = vperm.xlu2 %5073, %v6683_v8   ;;  %v7108_v20 = vpop.permute.xlu2 %1874  ;;  %4266 = vperm.xlu0 %5150, %v6683_v8   ;;  %v3473_v6 = vadd.f32 %v3472_v35, %v3471_v55  ;;  %v3504_v62 = vadd.f32 %v3503_v34, %v3502_v28  ;;  %v8375_v4 = vmax.f32 %v8373_v17, %v8374_v7  ;;  %v1926_v56 = vrot.slane %v1925_v58, 1  ;;  %v8378_v17 = vld [vmem:[#allocation13_spill] sm:$0xff] }
 0x46f   :  { %v2029_v33 = vadd.f32 %v2028_v14, %v2027_v24  ;;  %v1512_v37 = vsel %vm1203_vm7, %v1474_v0, 0.0  ;;  %v2232_v19 = vadd.f32 %v2231_v41, %v2230_v38  ;;  %v1416_v50 = vsel %vm1203_vm7, %v1378_v29, 0.0  ;;  %v8377_v29 = vld [vmem:[#allocation20_spill] sm:$0xff] }
 0x470   :  { %v7123_v44 = vmax.f32 %v8375_v4, %v3473_v6  ;;  %v3505_v30 = vrot.slane %v3504_v62, 2  ;;  %v1682_v55 = vmul.f32 %v7058_v51, %v8371_v2  ;;  %v2335_v18 = vrot.slane %v2334_v27, 1 }
 0x471   :  { %v3527_v31 = vpop.permute.xlu0 %3526  ;;  %v2129_v16 = vsel %vm1203_vm7, %v2097_v49, 0.0  ;;  %v2438_v5 = vadd.f32 %v2437_v61, %v2436_v39  ;;  %v1513_v24 = vrot.slane %v1512_v37, 4  ;;  %v1616_v35 = vsel %vm1203_vm7, %v1578_v32, 0.0 }
 0x472   :  { %v3551_v52 = vmul.f32 %v3527_v31, %v8367_v11  ;;  %v3506_v3 = vadd.f32 %v3505_v30, %v3504_v62  ;;  %v1927_v38 = vadd.f32 %v1926_v56, %v1925_v58  ;;  %v2030_v63 = vrot.slane %v2029_v33, 1 }
 0x473   :  { %v7130_v13 = vpop.permute.xlu1 %1462  ;;  %v1417_v14 = vrot.slane %v1416_v50, 4  ;;  %v8376_v51 = vmov 16   ;;  %v2130_v41 = vrot.slane %v2129_v16, 4  ;;  %v2512_v6 = vmul.f32 %v8377_v29, %v8329_v42 }
 0x474   :  { %v3571_v28 = vsel %vm1203_vm7, %v3551_v52, 0.0  ;;  %v3507_v34 = vrot.slane %v3506_v3, 1  ;;  %v1720_v39 = vsel %vm1203_vm7, %v1682_v55, 0.0  ;;  %v8225_v49 = vmov 31  }
 0x475   :  { %5094 = vset.pattern.permute.xlu1 %v8368_v21  ;;  %v3572_v0 = vrot.slane %v3571_v28, 4  ;;  %v2264_v21 = vmax.f32 %v2160_v36, %v2232_v19  ;;  %v1617_v58 = vrot.slane %v1616_v35, 4  ;;  %v1786_v61 = vmul.f32 %v7085_v12, %v8371_v2 }
 0x476   :  { %5074 = vset.pattern.permute.xlu2 %v8376_v51  ;;  %2814 = vperm.xlu1 %5094, %v6764_v54   ;;  %v3508_v62 = vadd.f32 %v3507_v34, %v3506_v3  ;;  %v2336_v7 = vadd.f32 %v2335_v18, %v2334_v27  ;;  %v2439_v4 = vrot.slane %v2438_v5, 1  ;;  %v1514_v30 = vadd.f32 %v1513_v24, %v1512_v37 }
 0x477   :  { %3018 = vperm.xlu2 %5074, %v6683_v8   ;;  %v1979_v10 = vpop.permute.xlu2 %1978  ;;  %5162 = vset.pattern.permute.xlu0 %v8225_v49  ;;  %v3573_v32 = vadd.f32 %v3572_v0, %v3571_v28  ;;  %v8379_v31 = vmax.f32 %v7069_v1, %v7082_v26  ;;  %v1418_v55 = vadd.f32 %v1417_v14, %v1416_v50  ;;  %v1721_v3 = vrot.slane %v1720_v39, 4 }
 0x478   :  { %4558 = vperm.xlu0 %5162, %v8378_v17   ;;  %v1953_v19 = vmax.f32 %v7114_v45, %v1927_v38  ;;  %v2031_v12 = vadd.f32 %v2030_v63, %v2029_v33  ;;  %v2131_v28 = vadd.f32 %v2130_v41, %v2129_v16  ;;  %v2538_v0 = vsel %vm1203_vm7, %v2512_v6, 0.0 }
 0x479   :  { %v7149_v56 = vmax.f32 %v8379_v31, %v3508_v62  ;;  %v3547_v52 = vpop.permute.xlu0 %3546  ;;  %v3574_v34 = vrot.slane %v3573_v32, 2  ;;  %v1618_v27 = vadd.f32 %v1617_v58, %v1616_v35  ;;  %v1824_v37 = vsel %vm1203_vm7, %v1786_v61, 0.0  ;;  %v8382_v58 = vld [vmem:[#allocation21_spill] sm:$0xff] }
 0x47a   :  { %v3556_v36 = vmul.f32 %v3547_v52, %v6172_v22  ;;  %v2440_v24 = vadd.f32 %v2439_v4, %v2438_v5  ;;  %v1515_v50 = vrot.slane %v1514_v30, 2  ;;  %v2368_v29 = vmax.f32 %v2264_v21, %v2336_v7 }
 0x47b   :  { %v3575_v18 = vadd.f32 %v3574_v34, %v3573_v32  ;;  %v1419_v62 = vrot.slane %v1418_v55, 2  ;;  %v1722_v31 = vadd.f32 %v1721_v3, %v1720_v39  ;;  %v2132_v45 = vrot.slane %v2131_v28, 2 }
 0x47c   :  { %v3606_v1 = vsel %vm1203_vm7, %v3556_v36, 0.0  ;;  %v7156_v26 = vpop.permute.xlu1 %1566  ;;  %v2539_v33 = vrot.slane %v2538_v0, 4  ;;  %v1825_v16 = vrot.slane %v1824_v37, 4  ;;  %v8380_v38 = vmov 17  }
 0x47d   :  { %v3607_v14 = vrot.slane %v3606_v1, 4  ;;  %v3576_v52 = vrot.slane %v3575_v18, 1  ;;  %v7161_v63 = vmax.f32 %v1953_v19, %v2031_v12  ;;  %v1619_v41 = vrot.slane %v1618_v27, 2 }
 0x47e   :  { %5095 = vset.pattern.permute.xlu1 %v8370_v15  ;;  %v1890_v5 = vmul.f32 %v7108_v20, %v8371_v2  ;;  %v8223_v15 = vmov 29   ;;  %v7169_v21 = vmax.f32 %v2368_v29, %v2440_v24  ;;  %v2201_v61 = vmul.f32 %v8382_v58, %v8341_v23 }
 0x47f   :  { %v3608_v35 = vadd.f32 %v3607_v14, %v3606_v1  ;;  %5075 = vset.pattern.permute.xlu2 %v8380_v38  ;;  %2918 = vperm.xlu1 %5095, %v6764_v54   ;;  %v7165_v6 = vadd.f32 %v3576_v52, %v3575_v18  ;;  %v1516_v32 = vadd.f32 %v1515_v50, %v1514_v30  ;;  %v1723_v3 = vrot.slane %v1722_v31, 2  ;;  %v8383_v14 = vld [vmem:[#allocation11_spill] sm:$0xff] }
 0x480   :  { %3122 = vperm.xlu2 %5075, %v6683_v8   ;;  %v2083_v39 = vpop.permute.xlu2 %2082  ;;  %5163 = vset.pattern.permute.xlu0 %v8223_v15  ;;  %8381 = vst [vmem:[#allocation41_spill] sm:$0xff] %v7169_v21  ;;  %v1420_v4 = vadd.f32 %v1419_v62, %v1418_v55  ;;  %v1994_v34 = vmul.f32 %v1979_v10, %v8371_v2  ;;  %v1928_v50 = vsel %vm1203_vm7, %v1890_v5, 0.0  ;;  %v2233_v29 = vsel %vm1203_vm7, %v2201_v61, 0.0 }
 0x481   :  { %v3609_v7 = vrot.slane %v3608_v35, 2  ;;  %4354 = vperm.xlu0 %5163, %v8345_v25   ;;  %v2133_v19 = vadd.f32 %v2132_v45, %v2131_v28  ;;  %v7177_v12 = vadd.f32 %v2539_v33, %v2538_v0  ;;  %v1826_v18 = vadd.f32 %v1825_v16, %v1824_v37 }
 0x482   :  { %v3631_v36 = vpop.permute.xlu0 %3630  ;;  %v1620_v24 = vadd.f32 %v1619_v41, %v1618_v27  ;;  %v1379_v30 = vmul.f32 %v7097_v9, %v8383_v14  ;;  %v1517_v62 = vrot.slane %v1516_v32, 1  ;;  %v2098_v10 = vmul.f32 %v2083_v39, %v8371_v2 }
 0x483   :  { %v3610_v1 = vadd.f32 %v3609_v7, %v3608_v35  ;;  %v3655_v55 = vmul.f32 %v3631_v36, %v8367_v11  ;;  %v1421_v28 = vrot.slane %v1420_v4, 1  ;;  %v1724_v0 = vadd.f32 %v1723_v3, %v1722_v31  ;;  %v8385_v36 = vld [vmem:[#allocation22_spill] sm:$0xff] }
 0x484   :  { %v2032_v37 = vsel %vm1203_vm7, %v1994_v34, 0.0  ;;  %v2134_v45 = vrot.slane %v2133_v19, 1  ;;  %v1827_v9 = vrot.slane %v1826_v18, 2  ;;  %v1929_v33 = vrot.slane %v1928_v50, 4 }
 0x485   :  { %v3611_v52 = vrot.slane %v3610_v1, 1  ;;  %v7185_v58 = vpop.permute.xlu1 %1670  ;;  %v3675_v27 = vsel %vm1203_vm7, %v3655_v55, 0.0  ;;  %v2541_v35 = vrot.slane %v7177_v12, 2  ;;  %v1621_v41 = vrot.slane %v1620_v24, 1 }
 0x486   :  { %v1423_v5 = vsel %vm1203_vm7, %v1379_v30, 0.0  ;;  %v3676_v39 = vrot.slane %v3675_v27, 4  ;;  %v8384_v61 = vmov 18   ;;  %v1518_v31 = vadd.f32 %v1517_v62, %v1516_v32 }
 0x487   :  { %v7189_v16 = vadd.f32 %v3611_v52, %v3610_v1  ;;  %5096 = vset.pattern.permute.xlu1 %v8376_v51  ;;  %v2033_v7 = vrot.slane %v2032_v37, 4  ;;  %v2136_v34 = vsel %vm1203_vm7, %v2098_v10, 0.0  ;;  %v1422_v1 = vadd.f32 %v1421_v28, %v1420_v4 }
 0x488   :  { %5076 = vset.pattern.permute.xlu2 %v8384_v61  ;;  %3022 = vperm.xlu1 %5096, %v6764_v54   ;;  %v1725_v55 = vrot.slane %v1724_v0, 1  ;;  %v3677_v30 = vadd.f32 %v3676_v39, %v3675_v27  ;;  %v1828_v49 = vadd.f32 %v1827_v9, %v1826_v18  ;;  %v1424_v20 = vrot.slane %v1423_v5, 4 }
 0x489   :  { %3226 = vperm.xlu2 %5076, %v6683_v8   ;;  %v2187_v51 = vpop.permute.xlu2 %2186  ;;  %4366 = vperm.xlu0 %5163, %v8385_v36   ;;  %v1930_v32 = vadd.f32 %v1929_v33, %v1928_v50  ;;  %v1622_v53 = vadd.f32 %v1621_v41, %v1620_v24  ;;  %v2137_v3 = vrot.slane %v2136_v34, 4  ;;  %v2234_v46 = vrot.slane %v2233_v29, 4 }
 0x48a   :  { %v2202_v52 = vmul.f32 %v2187_v51, %v8371_v2  ;;  %v3651_v15 = vpop.permute.xlu0 %3650  ;;  %v3678_v59 = vrot.slane %v3677_v30, 2  ;;  %v2616_v40 = vmul.f32 %v8386_v57, %v8329_v42  ;;  %v1538_v4 = vmax.f32 %v1422_v1, %v1518_v31 }
 0x48b   :  { %v3660_v62 = vmul.f32 %v3651_v15, %v6172_v22  ;;  %v2034_v28 = vadd.f32 %v2033_v7, %v2032_v37  ;;  %v1726_v27 = vadd.f32 %v1725_v55, %v1724_v0  ;;  %v1829_v50 = vrot.slane %v1828_v49, 1 }
 0x48c   :  { %v2240_v10 = vsel %vm1203_vm7, %v2202_v52, 0.0  ;;  %v3679_v39 = vadd.f32 %v3678_v59, %v3677_v30  ;;  %v1425_v15 = vadd.f32 %v1424_v20, %v1423_v5  ;;  %v1931_v24 = vrot.slane %v1930_v32, 2 }
 0x48d   :  { %v2241_v51 = vrot.slane %v2240_v10, 4  ;;  %v3710_v18 = vsel %vm1203_vm7, %v3660_v62, 0.0  ;;  %v7209_v41 = vadd.f32 %v2134_v45, %v2133_v19  ;;  %v1642_v52 = vmax.f32 %v1538_v4, %v1622_v53 }
 0x48e   :  { %v7207_v9 = vpop.permute.xlu1 %1774  ;;  %v3711_v33 = vrot.slane %v3710_v18, 4  ;;  %v2138_v48 = vadd.f32 %v2137_v3, %v2136_v34  ;;  %v3680_v21 = vrot.slane %v3679_v39, 1  ;;  %v7213_v57 = vadd.f32 %v2541_v35, %v7177_v12 }
 0x48f   :  { %v7215_v59 = vadd.f32 %v2234_v46, %v2233_v29  ;;  %v2035_v0 = vrot.slane %v2034_v28, 2  ;;  %v8387_v31 = vmov 19   ;;  %v1746_v20 = vmax.f32 %v1642_v52, %v1726_v27 }
 0x490   :  { %5097 = vset.pattern.permute.xlu1 %v8380_v38  ;;  %v3712_v37 = vadd.f32 %v3711_v33, %v3710_v18  ;;  %v3681_v5 = vadd.f32 %v3680_v21, %v3679_v39  ;;  %v2242_v19 = vadd.f32 %v2241_v51, %v2240_v10  ;;  %v1830_v38 = vadd.f32 %v1829_v50, %v1828_v49 }
 0x491   :  { %5077 = vset.pattern.permute.xlu2 %v8387_v31  ;;  %4378 = vperm.xlu0 %5163, %v6400_v43   ;;  %v1426_v45 = vrot.slane %v1425_v15, 2  ;;  %v1932_v12 = vadd.f32 %v1931_v24, %v1930_v32  ;;  %v2139_v29 = vrot.slane %v2138_v48, 2  ;;  %v8388_v7 = vmax.f32 %v7123_v44, %v7165_v6 }
 0x492   :  { %3126 = vperm.xlu1 %5097, %v6764_v54   ;;  %3330 = vperm.xlu2 %5077, %v6683_v8   ;;  %v2291_v53 = vpop.permute.xlu2 %2290  ;;  %v3713_v35 = vrot.slane %v3712_v37, 2  ;;  %v1475_v1 = vmul.f32 %v7130_v13, %v8383_v14  ;;  %v2036_v55 = vadd.f32 %v2035_v0, %v2034_v28  ;;  %v1579_v49 = vmul.f32 %v7156_v26, %v8383_v14 }
 0x493   :  { %v3735_v46 = vpop.permute.xlu0 %3734  ;;  %v7224_v3 = vmax.f32 %v8388_v7, %v3681_v5  ;;  %v2306_v34 = vmul.f32 %v2291_v53, %v8371_v2  ;;  %v2243_v32 = vrot.slane %v2242_v19, 2  ;;  %v7235_v44 = vsel %vm1203_vm7, %v2616_v40, 0.0 }
 0x494   :  { %v3759_v21 = vmul.f32 %v3735_v46, %v8367_v11  ;;  %v3714_v30 = vadd.f32 %v3713_v35, %v3712_v37  ;;  %v1933_v6 = vrot.slane %v1932_v12, 1  ;;  %v1850_v13 = vmax.f32 %v1746_v20, %v1830_v38 }
 0x495   :  { %v2344_v62 = vsel %vm1203_vm7, %v2306_v34, 0.0  ;;  %v2140_v28 = vadd.f32 %v2139_v29, %v2138_v48  ;;  %v7238_v50 = vadd.f32 %v1426_v45, %v1425_v15  ;;  %v2037_v26 = vrot.slane %v2036_v55, 1 }
 0x496   :  { %v3779_v10 = vsel %vm1203_vm7, %v3759_v21, 0.0  ;;  %v3715_v4 = vrot.slane %v3714_v30, 1  ;;  %v2345_v27 = vrot.slane %v2344_v62, 4  ;;  %v8227_v52 = vmov 30  }
 0x497   :  { %v1879_v39 = vpop.permute.xlu1 %1878  ;;  %v3780_v18 = vrot.slane %v3779_v10, 4  ;;  %v1519_v40 = vsel %vm1203_vm7, %v1475_v1, 0.0  ;;  %v1623_v0 = vsel %vm1203_vm7, %v1579_v49, 0.0  ;;  %v2244_v37 = vadd.f32 %v2243_v32, %v2242_v19 }
 0x498   :  { %v3716_v24 = vadd.f32 %v3715_v4, %v3714_v30  ;;  %v2346_v33 = vadd.f32 %v2345_v27, %v2344_v62  ;;  %v8389_v53 = vmov 20   ;;  %v1934_v48 = vadd.f32 %v1933_v6, %v1932_v12 }
 0x499   :  { %5168 = vset.pattern.permute.xlu0 %v8227_v52  ;;  %v3781_v5 = vadd.f32 %v3780_v18, %v3779_v10  ;;  %v1683_v15 = vmul.f32 %v7185_v58, %v8383_v14  ;;  %v8390_v20 = vmax.f32 %v7149_v56, %v7189_v16  ;;  %v2141_v46 = vrot.slane %v2140_v28, 1 }
 0x49a   :  { %5098 = vset.pattern.permute.xlu1 %v8384_v61  ;;  %5078 = vset.pattern.permute.xlu2 %v8389_v53  ;;  %v2347_v45 = vrot.slane %v2346_v33, 2  ;;  %v1520_v29 = vrot.slane %v1519_v40, 4  ;;  %v2038_v7 = vadd.f32 %v2037_v26, %v2036_v55  ;;  %v1624_v56 = vrot.slane %v1623_v0, 4 }
 0x49b   :  { %v7250_v38 = vmax.f32 %v8390_v20, %v3716_v24  ;;  %4482 = vperm.xlu0 %5168, %v6400_v43   ;;  %3230 = vperm.xlu1 %5098, %v6764_v54   ;;  %v2395_v19 = vpop.permute.xlu2 %2394  ;;  %v3755_v35 = vpop.permute.xlu0 %3754  ;;  %v3782_v61 = vrot.slane %v3781_v5, 2  ;;  %v2245_v34 = vrot.slane %v2244_v37, 1  ;;  %v1954_v30 = vmax.f32 %v1850_v13, %v1934_v48 }
 0x49c   :  { %3414 = vperm.xlu2 %5078, %v8378_v17   ;;  %v2410_v12 = vmul.f32 %v2395_v19, %v8371_v2  ;;  %v3764_v58 = vmul.f32 %v3755_v35, %v6172_v22  ;;  %v2348_v16 = vadd.f32 %v2347_v45, %v2346_v33  ;;  %v1727_v32 = vsel %vm1203_vm7, %v1683_v15, 0.0 }
 0x49d   :  { %v3783_v21 = vadd.f32 %v3782_v61, %v3781_v5  ;;  %v1787_v62 = vmul.f32 %v7207_v9, %v8383_v14  ;;  %v2142_v6 = vadd.f32 %v2141_v46, %v2140_v28  ;;  %v1428_v26 = vrot.slane %v7238_v50, 1 }
 0x49e   :  { %v2448_v1 = vsel %vm1203_vm7, %v2410_v12, 0.0  ;;  %v3814_v49 = vsel %vm1203_vm7, %v3764_v58, 0.0  ;;  %v2349_v4 = vrot.slane %v2348_v16, 1  ;;  %v1521_v24 = vadd.f32 %v1520_v29, %v1519_v40 }
 0x49f   :  { %v2449_v10 = vrot.slane %v2448_v1, 4  ;;  %v3784_v27 = vrot.slane %v3783_v21, 1  ;;  %v3815_v18 = vrot.slane %v3814_v49, 4  ;;  %v1625_v33 = vadd.f32 %v1624_v56, %v1623_v0 }
 0x4a0   :  { %v1983_v55 = vpop.permute.xlu1 %1982  ;;  %v2058_v20 = vmax.f32 %v1954_v30, %v2038_v7  ;;  %v2246_v45 = vadd.f32 %v2245_v34, %v2244_v37  ;;  %v1728_v48 = vrot.slane %v1727_v32, 4  ;;  %v1831_v15 = vsel %vm1203_vm7, %v1787_v62, 0.0 }
 0x4a1   :  { %v2450_v5 = vadd.f32 %v2449_v10, %v2448_v1  ;;  %v7263_v19 = vadd.f32 %v3784_v27, %v3783_v21  ;;  %v3816_v13 = vadd.f32 %v3815_v18, %v3814_v49  ;;  %v1891_v9 = vmul.f32 %v1879_v39, %v8383_v14 }
 0x4a2   :  { %v8391_v35 = vmov 31   ;;  %v2162_v46 = vmax.f32 %v2058_v20, %v2142_v6  ;;  %v2350_v61 = vadd.f32 %v2349_v4, %v2348_v16  ;;  %v1995_v39 = vmul.f32 %v1983_v55, %v8383_v14 }
 0x4a3   :  { %v2451_v28 = vrot.slane %v2450_v5, 2  ;;  %5099 = vset.pattern.permute.xlu1 %v8387_v31  ;;  %5170 = vset.pattern.permute.xlu0 %v8391_v35  ;;  %v3823_v40 = vmax.f32 %v7224_v3, %v7263_v19  ;;  %v3817_v0 = vrot.slane %v3816_v13, 2  ;;  %v1522_v7 = vrot.slane %v1521_v24, 2 }
 0x4a4   :  { %3426 = vperm.xlu2 %5078, %v8363_v60   ;;  %3334 = vperm.xlu1 %5099, %v6764_v54   ;;  %v2499_v37 = vpop.permute.xlu2 %2498  ;;  %v3839_v12 = vpop.permute.xlu0 %3838  ;;  %v2266_v56 = vmax.f32 %v2162_v46, %v2246_v45  ;;  %v1832_v16 = vrot.slane %v1831_v15, 4  ;;  %v1935_v21 = vsel %vm1203_vm7, %v1891_v9, 0.0  ;;  %v1626_v62 = vrot.slane %v1625_v33, 2 }
 0x4a5   :  { %v2452_v58 = vadd.f32 %v2451_v28, %v2450_v5  ;;  %v2514_v29 = vmul.f32 %v2499_v37, %v8371_v2  ;;  %v3863_v31 = vmul.f32 %v3839_v12, %v8367_v11  ;;  %v3818_v34 = vadd.f32 %v3817_v0, %v3816_v13 }
 0x4a6   :  { %v1729_v27 = vadd.f32 %v1728_v48, %v1727_v32  ;;  %v2370_v18 = vmax.f32 %v2266_v56, %v2350_v61  ;;  %v2039_v5 = vsel %vm1203_vm7, %v1995_v39, 0.0  ;;  %v1936_v45 = vrot.slane %v1935_v21, 4 }
 0x4a7   :  { %v2453_v1 = vrot.slane %v2452_v58, 1  ;;  %v2552_v49 = vsel %vm1203_vm7, %v2514_v29, 0.0  ;;  %v3883_v30 = vsel %vm1203_vm7, %v3863_v31, 0.0  ;;  %v3819_v10 = vrot.slane %v3818_v34, 1 }
 0x4a8   :  { %v2553_v6 = vrot.slane %v2552_v49, 4  ;;  %v3884_v4 = vrot.slane %v3883_v30, 4  ;;  %v1523_v46 = vadd.f32 %v1522_v7, %v1521_v24  ;;  %v1833_v0 = vadd.f32 %v1832_v16, %v1831_v15 }
 0x4a9   :  { %v2454_v55 = vadd.f32 %v2453_v1, %v2452_v58  ;;  %v2087_v20 = vpop.permute.xlu1 %2086  ;;  %v7280_v28 = vadd.f32 %v3819_v10, %v3818_v34  ;;  %v2040_v32 = vrot.slane %v2039_v5, 4  ;;  %v1627_v39 = vadd.f32 %v1626_v62, %v1625_v33 }
 0x4aa   :  { %v2554_v13 = vadd.f32 %v2553_v6, %v2552_v49  ;;  %v3885_v9 = vadd.f32 %v3884_v4, %v3883_v30  ;;  %v2099_v12 = vmul.f32 %v2087_v20, %v8383_v14  ;;  %v1730_v31 = vrot.slane %v1729_v27, 2 }
 0x4ab   :  { %v7282_v37 = vmax.f32 %v2370_v18, %v2454_v55  ;;  %v1429_v56 = vadd.f32 %v1428_v26, %v7238_v50  ;;  %v1937_v16 = vadd.f32 %v1936_v45, %v1935_v21  ;;  %v1834_v49 = vrot.slane %v1833_v0, 2 }
 0x4ac   :  { %v2555_v48 = vrot.slane %v2554_v13, 2  ;;  %v3886_v61 = vrot.slane %v3885_v9, 2  ;;  %3434 = vperm.xlu2 %5078, %v6683_v8   ;;  %5121 = vset.pattern.permute.xlu1 %v8389_v53  ;;  %v3859_v58 = vpop.permute.xlu0 %3858  ;;  %v2143_v24 = vsel %vm1203_vm7, %v2099_v12, 0.0  ;;  %v1524_v62 = vrot.slane %v1523_v46, 1 }
 0x4ad   :  { %3430 = vperm.xlu1 %5121, %v8385_v36   ;;  %v2603_v15 = vpop.permute.xlu2 %2602  ;;  %v3868_v7 = vmul.f32 %v3859_v58, %v6172_v22  ;;  %v2144_v30 = vrot.slane %v2143_v24, 4  ;;  %v2041_v10 = vadd.f32 %v2040_v32, %v2039_v5  ;;  %v1628_v18 = vrot.slane %v1627_v39, 1 }
 0x4ae   :  { %v2556_v34 = vadd.f32 %v2555_v48, %v2554_v13  ;;  %v3887_v1 = vadd.f32 %v3886_v61, %v3885_v9  ;;  %v2618_v53 = vmul.f32 %v2603_v15, %v8371_v2  ;;  %v1731_v55 = vadd.f32 %v1730_v31, %v1729_v27 }
 0x4af   :  { %v3918_v33 = vsel %vm1203_vm7, %v3868_v7, 0.0  ;;  %v1938_v58 = vrot.slane %v1937_v16, 2  ;;  %v1835_v13 = vadd.f32 %v1834_v49, %v1833_v0  ;;  %v2145_v9 = vadd.f32 %v2144_v30, %v2143_v24 }
 0x4b0   :  { %v2557_v6 = vrot.slane %v2556_v34, 1  ;;  %v3888_v4 = vrot.slane %v3887_v1, 1  ;;  %v2656_v20 = vsel %vm1203_vm7, %v2618_v53, 0.0  ;;  %v3919_v12 = vrot.slane %v3918_v33, 4 }
 0x4b1   :  { %v2657_v21 = vrot.slane %v2656_v20, 4  ;;  %v2042_v15 = vrot.slane %v2041_v10, 2  ;;  %v8392_v31 = vmov 21   ;;  %v1525_v7 = vadd.f32 %v1524_v62, %v1523_v46  ;;  %v8393_v62 = vld [vmem:[#allocation12_spill] sm:$0xff] }
 0x4b2   :  { %v2558_v50 = vadd.f32 %v2557_v6, %v2556_v34  ;;  %v3889_v26 = vadd.f32 %v3888_v4, %v3887_v1  ;;  %v2191_v45 = vpop.permute.xlu1 %2190  ;;  %v3920_v48 = vadd.f32 %v3919_v12, %v3918_v33  ;;  %v1732_v34 = vrot.slane %v1731_v55, 1 }
 0x4b3   :  { %v2203_v61 = vmul.f32 %v2191_v45, %v8383_v14  ;;  %v2658_v32 = vadd.f32 %v2657_v21, %v2656_v20  ;;  %v1939_v49 = vadd.f32 %v1938_v58, %v1937_v16  ;;  %v2146_v53 = vrot.slane %v2145_v9, 2 }
 0x4b4   :  { %v2578_v5 = vmax.f32 %v7282_v37, %v2558_v50  ;;  %v7303_v27 = vmax.f32 %v3823_v40, %v3889_v26  ;;  %5122 = vset.pattern.permute.xlu2 %v8392_v31  ;;  %v3921_v1 = vrot.slane %v3920_v48, 2  ;;  %v1629_v37 = vadd.f32 %v1628_v18, %v1627_v39 }
 0x4b5   :  { %v2247_v0 = vsel %vm1203_vm7, %v2203_v61, 0.0  ;;  %3518 = vperm.xlu2 %5122, %v8378_v17   ;;  %3438 = vperm.xlu1 %5121, %v6764_v54   ;;  %v7309_v24 = vpop.permute.xlu0 %4042  ;;  %v2659_v30 = vrot.slane %v2658_v32, 2  ;;  %v1836_v40 = vrot.slane %v1835_v13, 1  ;;  %v2305_v6 = vmul.f32 %v8393_v62, %v8341_v23 }
 0x4b6   :  { %v2248_v3 = vrot.slane %v2247_v0, 4  ;;  %v2707_v19 = vpop.permute.xlu2 %2706  ;;  %v3922_v33 = vadd.f32 %v3921_v1, %v3920_v48  ;;  %v2043_v4 = vadd.f32 %v2042_v15, %v2041_v10  ;;  %v1539_v50 = vmax.f32 %v1429_v56, %v1525_v7 }
 0x4b7   :  { %v2722_v46 = vmul.f32 %v2707_v19, %v8371_v2  ;;  %v2660_v20 = vadd.f32 %v2659_v30, %v2658_v32  ;;  %v1733_v26 = vadd.f32 %v1732_v34, %v1731_v55  ;;  %v1940_v16 = vrot.slane %v1939_v49, 1 }
 0x4b8   :  { %v2249_v12 = vadd.f32 %v2248_v3, %v2247_v0  ;;  %v3923_v21 = vrot.slane %v3922_v33, 1  ;;  %v1643_v61 = vmax.f32 %v1539_v50, %v1629_v37  ;;  %v1837_v52 = vadd.f32 %v1836_v40, %v1835_v13 }
 0x4b9   :  { %v2760_v39 = vsel %vm1203_vm7, %v2722_v46, 0.0  ;;  %v2661_v18 = vrot.slane %v2660_v20, 1  ;;  %v2147_v48 = vadd.f32 %v2146_v53, %v2145_v9  ;;  %v2044_v51 = vrot.slane %v2043_v4, 1 }
 0x4ba   :  { %v2250_v58 = vrot.slane %v2249_v12, 2  ;;  %v2761_v45 = vrot.slane %v2760_v39, 4  ;;  %v3924_v1 = vadd.f32 %v3923_v21, %v3922_v33  ;;  %v2643_v56 = vrot.slane %v7235_v44, 4 }
 0x4bb   :  { %v2295_v19 = vpop.permute.xlu1 %2294  ;;  %v2662_v29 = vadd.f32 %v2661_v18, %v2660_v20  ;;  %v1747_v55 = vmax.f32 %v1643_v61, %v1733_v26  ;;  %v8394_v15 = vmax.f32 %v7250_v38, %v7280_v28  ;;  %v1941_v13 = vadd.f32 %v1940_v16, %v1939_v49 }
 0x4bc   :  { %v2762_v62 = vadd.f32 %v2761_v45, %v2760_v39  ;;  %v2307_v10 = vmul.f32 %v2295_v19, %v8383_v14  ;;  %v2251_v7 = vadd.f32 %v2250_v58, %v2249_v12  ;;  %v2337_v30 = vsel %vm1203_vm7, %v2305_v6, 0.0 }
 0x4bd   :  { %v7320_v32 = vmax.f32 %v8394_v15, %v3924_v1  ;;  %3530 = vperm.xlu2 %5122, %v8363_v60   ;;  %5123 = vset.pattern.permute.xlu1 %v8392_v31  ;;  %v7324_v9 = vmax.f32 %v2578_v5, %v2662_v29  ;;  %v2148_v3 = vrot.slane %v2147_v48, 1  ;;  %v1851_v53 = vmax.f32 %v1747_v55, %v1837_v52  ;;  %v8396_v29 = vld [vmem:[#allocation24_spill] sm:$0xff] }
 0x4be   :  { %v2763_v34 = vrot.slane %v2762_v62, 2  ;;  %v2351_v0 = vsel %vm1203_vm7, %v2307_v10, 0.0  ;;  %3522 = vperm.xlu1 %5123, %v8345_v25   ;;  %v3943_v37 = vpop.permute.xlu0 %3942  ;;  %v2045_v33 = vadd.f32 %v2044_v51, %v2043_v4  ;;  %v2720_v5 = vmul.f32 %v8396_v29, %v8329_v42 }
 0x4bf   :  { %8395 = vst [vmem:[#allocation42_spill] sm:$0xff] %v7320_v32  ;;  %v2352_v38 = vrot.slane %v2351_v0, 4  ;;  %v2811_v28 = vpop.permute.xlu2 %2810  ;;  %v3967_v40 = vmul.f32 %v3943_v37, %v8367_v11  ;;  %v2252_v49 = vrot.slane %v2251_v7, 1  ;;  %v1955_v50 = vmax.f32 %v1851_v53, %v1941_v13  ;;  %v8426_v32 = vld [vmem:[#allocation14_spill] sm:$0xff] }
 0x4c0   :  { %v2764_v46 = vadd.f32 %v2763_v34, %v2762_v62  ;;  %v2826_v31 = vmul.f32 %v2811_v28, %v8371_v2  ;;  %v2338_v39 = vrot.slane %v2337_v30, 4  ;;  %v2149_v16 = vadd.f32 %v2148_v3, %v2147_v48 }
 0x4c1   :  { %v2353_v20 = vadd.f32 %v2352_v38, %v2351_v0  ;;  %v3987_v12 = vsel %vm1203_vm7, %v3967_v40, 0.0  ;;  %v2409_v51 = vmul.f32 %v6818_v47, %v8341_v23  ;;  %v2059_v4 = vmax.f32 %v1955_v50, %v2045_v33 }
 0x4c2   :  { %v2765_v26 = vrot.slane %v2764_v46, 1  ;;  %v2864_v6 = vsel %vm1203_vm7, %v2826_v31, 0.0  ;;  %v3988_v21 = vrot.slane %v3987_v12, 4  ;;  %v2253_v1 = vadd.f32 %v2252_v49, %v2251_v7 }
 0x4c3   :  { %v2354_v18 = vrot.slane %v2353_v20, 2  ;;  %v2865_v52 = vrot.slane %v2864_v6, 4  ;;  %v2644_v55 = vadd.f32 %v2643_v56, %v7235_v44  ;;  %v2746_v48 = vsel %vm1203_vm7, %v2720_v5, 0.0 }
 0x4c4   :  { %v2766_v58 = vadd.f32 %v2765_v26, %v2764_v46  ;;  %v3989_v45 = vadd.f32 %v3988_v21, %v3987_v12  ;;  %v2399_v61 = vpop.permute.xlu1 %2398  ;;  %v2163_v47 = vmax.f32 %v2059_v4, %v2149_v16  ;;  %v2339_v37 = vadd.f32 %v2338_v39, %v2337_v30  ;;  %v8397_v46 = vld [vmem:[#allocation25_spill] sm:$0xff] }
 0x4c5   :  { %v2355_v19 = vadd.f32 %v2354_v18, %v2353_v20  ;;  %v2866_v62 = vadd.f32 %v2865_v52, %v2864_v6  ;;  %3538 = vperm.xlu2 %5122, %v6683_v8   ;;  %v2411_v10 = vmul.f32 %v2399_v61, %v8383_v14  ;;  %v2441_v3 = vsel %vm1203_vm7, %v2409_v51, 0.0 }
 0x4c6   :  { %v2786_v15 = vmax.f32 %v7324_v9, %v2766_v58  ;;  %v3990_v13 = vrot.slane %v3989_v45, 2  ;;  %3534 = vperm.xlu1 %5123, %v8385_v36   ;;  %v2267_v53 = vmax.f32 %v2163_v47, %v2253_v1  ;;  %v2747_v9 = vrot.slane %v2746_v48, 4 }
 0x4c7   :  { %v2356_v34 = vrot.slane %v2355_v19, 1  ;;  %v2867_v0 = vrot.slane %v2866_v62, 2  ;;  %v2455_v7 = vsel %vm1203_vm7, %v2411_v10, 0.0  ;;  %v2824_v31 = vmul.f32 %v8397_v46, %v8329_v42 }
 0x4c8   :  { %v3991_v38 = vadd.f32 %v3990_v13, %v3989_v45  ;;  %v2456_v28 = vrot.slane %v2455_v7, 4  ;;  %v2915_v40 = vpop.permute.xlu2 %2914  ;;  %v2442_v49 = vrot.slane %v2441_v3, 4  ;;  %v2236_v50 = vrot.slane %v7215_v59, 2 }
 0x4c9   :  { %v2357_v44 = vadd.f32 %v2356_v34, %v2355_v19  ;;  %v2868_v56 = vadd.f32 %v2867_v0, %v2866_v62  ;;  %v2930_v33 = vmul.f32 %v2915_v40, %v8371_v2  ;;  %v8398_v39 = vrot.slane %v7213_v57, 1 }
 0x4ca   :  { %v3992_v29 = vrot.slane %v3991_v38, 1  ;;  %v2457_v5 = vadd.f32 %v2456_v28, %v2455_v7  ;;  %v2645_v18 = vrot.slane %v2644_v55, 2  ;;  %v2340_v52 = vrot.slane %v2339_v37, 2 }
 0x4cb   :  { %v2371_v20 = vmax.f32 %v2267_v53, %v2357_v44  ;;  %v2869_v12 = vrot.slane %v2868_v56, 1  ;;  %v2968_v30 = vsel %vm1203_vm7, %v2930_v33, 0.0  ;;  %v7355_v16 = vadd.f32 %v8398_v39, %v7213_v57  ;;  %v7371_v44 = vpop.permute.xlu0 %3958 }
 0x4cc   :  { %v7350_v26 = vadd.f32 %v3992_v29, %v3991_v38  ;;  %v2458_v6 = vrot.slane %v2457_v5, 2  ;;  %v2969_v21 = vrot.slane %v2968_v30, 4  ;;  %v8399_v4 = vmov 22   ;;  %v8400_v38 = vld [vmem:[#allocation41_spill] sm:$0xff]  ;;  %8401 = vst [vmem:[#allocation43_spill] sm:$0xff] %v7371_v44 }
 0x4cd   :  { %v2870_v51 = vadd.f32 %v2869_v12, %v2868_v56  ;;  %5125 = vset.pattern.permute.xlu2 %v8399_v4  ;;  %v2503_v58 = vpop.permute.xlu1 %2502  ;;  %v2850_v45 = vsel %vm1203_vm7, %v2824_v31, 0.0  ;;  %v2748_v62 = vadd.f32 %v2747_v9, %v2746_v48  ;;  %v2443_v57 = vadd.f32 %v2442_v49, %v2441_v3 }
 0x4ce   :  { %v2459_v1 = vadd.f32 %v2458_v6, %v2457_v5  ;;  %v2970_v19 = vadd.f32 %v2969_v21, %v2968_v30  ;;  %3622 = vperm.xlu2 %5125, %v8378_v17   ;;  %3542 = vperm.xlu1 %5123, %v6764_v54   ;;  %v2515_v13 = vmul.f32 %v2503_v58, %v8383_v14  ;;  %v2851_v53 = vrot.slane %v2850_v45, 4 }
 0x4cf   :  { %v7363_v10 = vmax.f32 %v2786_v15, %v2870_v51  ;;  %v2161_v47 = vmax.f32 %v7161_v63, %v7209_v41  ;;  %v2237_v34 = vadd.f32 %v2236_v50, %v7215_v59  ;;  %v2576_v28 = vmax.f32 %v8400_v38, %v7355_v16  ;;  %v8402_v41 = vld [vmem:[#allocation26_spill] sm:$0xff]  ;;  %v8403_v50 = vld [vmem:[#allocation27_spill] sm:$0xff] }
 0x4d0   :  { %v2460_v0 = vrot.slane %v2459_v1, 1  ;;  %v2971_v7 = vrot.slane %v2970_v19, 2  ;;  %v2646_v40 = vadd.f32 %v2645_v18, %v2644_v55  ;;  %v2559_v48 = vsel %vm1203_vm7, %v2515_v13, 0.0 }
 0x4d1   :  { %v3019_v15 = vpop.permute.xlu2 %3018  ;;  %v2341_v3 = vadd.f32 %v2340_v52, %v2339_v37  ;;  %v2560_v9 = vrot.slane %v2559_v48, 4  ;;  %v2749_v46 = vrot.slane %v2748_v62, 2  ;;  %v2444_v63 = vrot.slane %v2443_v57, 2 }
 0x4d2   :  { %v2461_v56 = vadd.f32 %v2460_v0, %v2459_v1  ;;  %v2972_v33 = vadd.f32 %v2971_v7, %v2970_v19  ;;  %v2513_v59 = vmul.f32 %v8402_v41, %v8341_v23  ;;  %v3034_v31 = vmul.f32 %v3019_v15, %v8371_v2 }
 0x4d3   :  { %v2238_v29 = vrot.slane %v2237_v34, 1  ;;  %v2561_v49 = vadd.f32 %v2560_v9, %v2559_v48  ;;  %v2647_v12 = vrot.slane %v2646_v40, 1  ;;  %v2852_v30 = vadd.f32 %v2851_v53, %v2850_v45 }
 0x4d4   :  { %v7377_v5 = vmax.f32 %v2371_v20, %v2461_v56  ;;  %v2973_v55 = vrot.slane %v2972_v33, 1  ;;  %v2928_v37 = vmul.f32 %v8403_v50, %v8329_v42  ;;  %v3072_v6 = vsel %vm1203_vm7, %v3034_v31, 0.0 }
 0x4d5   :  { %v2342_v21 = vrot.slane %v2341_v3, 1  ;;  %v2562_v16 = vrot.slane %v2561_v49, 2  ;;  %v3073_v18 = vrot.slane %v3072_v6, 4  ;;  %v2750_v20 = vadd.f32 %v2749_v46, %v2748_v62 }
 0x4d6   :  { %v2974_v39 = vadd.f32 %v2973_v55, %v2972_v33  ;;  %3634 = vperm.xlu2 %5125, %v8363_v60   ;;  %5126 = vset.pattern.permute.xlu1 %v8399_v4  ;;  %v2607_v52 = vpop.permute.xlu1 %2606  ;;  %v2445_v51 = vadd.f32 %v2444_v63, %v2443_v57  ;;  %v2545_v58 = vsel %vm1203_vm7, %v2513_v59, 0.0  ;;  %v2239_v1 = vadd.f32 %v2238_v29, %v2237_v34  ;;  %v7390_v63 = vpop.permute.xlu0 %4154 }
 0x4d7   :  { %3626 = vperm.xlu1 %5126, %v8345_v25   ;;  %v2619_v45 = vmul.f32 %v2607_v52, %v8383_v14  ;;  %v2563_v13 = vadd.f32 %v2562_v16, %v2561_v49  ;;  %v3074_v0 = vadd.f32 %v3073_v18, %v3072_v6  ;;  %v2648_v7 = vadd.f32 %v2647_v12, %v2646_v40 }
 0x4d8   :  { %v2994_v19 = vmax.f32 %v7363_v10, %v2974_v39  ;;  %v2853_v38 = vrot.slane %v2852_v30, 2  ;;  %v2954_v53 = vsel %vm1203_vm7, %v2928_v37, 0.0  ;;  %v2546_v48 = vrot.slane %v2545_v58, 4 }
 0x4d9   :  { %v2663_v4 = vsel %vm1203_vm7, %v2619_v45, 0.0  ;;  %v2564_v62 = vrot.slane %v2563_v13, 1  ;;  %v3075_v57 = vrot.slane %v3074_v0, 2  ;;  %v2343_v33 = vadd.f32 %v2342_v21, %v2341_v3 }
 0x4da   :  { %v2664_v15 = vrot.slane %v2663_v4, 4  ;;  %v3123_v56 = vpop.permute.xlu2 %3122  ;;  %v2751_v9 = vrot.slane %v2750_v20, 1  ;;  %v2446_v46 = vrot.slane %v2445_v51, 1  ;;  %v2955_v34 = vrot.slane %v2954_v53, 4 }
 0x4db   :  { %v3138_v10 = vmul.f32 %v3123_v56, %v8371_v2  ;;  %v2565_v41 = vadd.f32 %v2564_v62, %v2563_v13  ;;  %v3076_v40 = vadd.f32 %v3075_v57, %v3074_v0  ;;  %v2265_v31 = vmax.f32 %v2161_v47, %v2239_v1  ;;  %v8405_v1 = vld [vmem:[#allocation29_spill] sm:$0xff] }
 0x4dc   :  { %v2665_v59 = vadd.f32 %v2664_v15, %v2663_v4  ;;  %v7393_v29 = vmax.f32 %v2576_v28, %v2648_v7  ;;  %v2854_v55 = vadd.f32 %v2853_v38, %v2852_v30  ;;  %v2547_v12 = vadd.f32 %v2546_v48, %v2545_v58  ;;  %v8406_v4 = vld [vmem:[#allocation30_spill] sm:$0xff] }
 0x4dd   :  { %v3176_v49 = vsel %vm1203_vm7, %v3138_v10, 0.0  ;;  %v2579_v50 = vmax.f32 %v7377_v5, %v2565_v41  ;;  %v3077_v3 = vrot.slane %v3076_v40, 1  ;;  %v2369_v6 = vmax.f32 %v2265_v31, %v2343_v33  ;;  %v8404_v5 = vld [vmem:[#allocation28_spill] sm:$0xff] }
 0x4de   :  { %v2666_v37 = vrot.slane %v2665_v59, 2  ;;  %3642 = vperm.xlu2 %5125, %v6683_v8   ;;  %v7398_v21 = vadd.f32 %v2751_v9, %v2750_v20  ;;  %v2447_v39 = vadd.f32 %v2446_v46, %v2445_v51  ;;  %v3177_v16 = vrot.slane %v3176_v49, 4 }
 0x4df   :  { %3638 = vperm.xlu1 %5126, %v8385_v36   ;;  %v2711_v47 = vpop.permute.xlu1 %2710  ;;  %v2956_v28 = vadd.f32 %v2955_v34, %v2954_v53  ;;  %v3078_v18 = vadd.f32 %v3077_v3, %v3076_v40  ;;  %v2855_v58 = vrot.slane %v2854_v55, 1  ;;  %v2617_v45 = vmul.f32 %v8404_v5, %v8341_v23  ;;  %v7418_v34 = vpop.permute.xlu0 %4254 }
 0x4e0   :  { %v2667_v30 = vadd.f32 %v2666_v37, %v2665_v59  ;;  %v2723_v52 = vmul.f32 %v2711_v47, %v8383_v14  ;;  %v3032_v13 = vmul.f32 %v8405_v1, %v8329_v42  ;;  %v3178_v0 = vadd.f32 %v3177_v16, %v3176_v49 }
 0x4e1   :  { %v2548_v20 = vrot.slane %v2547_v12, 2  ;;  %v7406_v7 = vmax.f32 %v2994_v19, %v3078_v18  ;;  %v2784_v53 = vmax.f32 %v7393_v29, %v7398_v21  ;;  %v2721_v48 = vmul.f32 %v8406_v4, %v8341_v23 }
 0x4e2   :  { %v2668_v51 = vrot.slane %v2667_v30, 1  ;;  %v2767_v38 = vsel %vm1203_vm7, %v2723_v52, 0.0  ;;  %v3179_v62 = vrot.slane %v3178_v0, 2  ;;  %v7413_v56 = vmax.f32 %v2369_v6, %v2447_v39 }
 0x4e3   :  { %v2768_v57 = vrot.slane %v2767_v38, 4  ;;  %v3227_v15 = vpop.permute.xlu2 %3226  ;;  %v2957_v33 = vrot.slane %v2956_v28, 2  ;;  %v2649_v19 = vsel %vm1203_vm7, %v2617_v45, 0.0  ;;  %v3058_v10 = vsel %vm1203_vm7, %v3032_v13, 0.0  ;;  %v8409_v13 = vld [vmem:[#allocation32_spill] sm:$0xff] }
 0x4e4   :  { %v2669_v9 = vadd.f32 %v2668_v51, %v2667_v30  ;;  %v3242_v46 = vmul.f32 %v3227_v15, %v8371_v2  ;;  %v3180_v41 = vadd.f32 %v3179_v62, %v3178_v0  ;;  %v2856_v59 = vadd.f32 %v2855_v58, %v2854_v55  ;;  %v8408_v55 = vld [vmem:[#allocation31_spill] sm:$0xff] }
 0x4e5   :  { %v2769_v40 = vadd.f32 %v2768_v57, %v2767_v38  ;;  %v2549_v31 = vadd.f32 %v2548_v20, %v2547_v12  ;;  %v8407_v3 = vmov 23   ;;  %v2753_v37 = vsel %vm1203_vm7, %v2721_v48, 0.0  ;;  %v8410_v20 = vld [vmem:[#allocation8_spill] sm:$0xff] }
 0x4e6   :  { %v7420_v29 = vmax.f32 %v2579_v50, %v2669_v9  ;;  %v3280_v49 = vsel %vm1203_vm7, %v3242_v46, 0.0  ;;  %5128 = vset.pattern.permute.xlu2 %v8407_v3  ;;  %v3181_v6 = vrot.slane %v3180_v41, 1  ;;  %v2958_v16 = vadd.f32 %v2957_v33, %v2956_v28 }
 0x4e7   :  { %v2770_v21 = vrot.slane %v2769_v40, 2  ;;  %v3281_v39 = vrot.slane %v3280_v49, 4  ;;  %3726 = vperm.xlu2 %5128, %v8378_v17   ;;  %3646 = vperm.xlu1 %5126, %v6764_v54   ;;  %v2650_v47 = vrot.slane %v2649_v19, 4  ;;  %v3059_v18 = vrot.slane %v3058_v10, 4 }
 0x4e8   :  { %v3136_v12 = vmul.f32 %v8408_v55, %v8329_v42  ;;  %v2815_v50 = vpop.permute.xlu1 %2814  ;;  %v3182_v30 = vadd.f32 %v3181_v6, %v3180_v41  ;;  %v2550_v45 = vrot.slane %v2549_v31, 1  ;;  %v2754_v1 = vrot.slane %v2753_v37, 4 }
 0x4e9   :  { %v2771_v52 = vadd.f32 %v2770_v21, %v2769_v40  ;;  %v3282_v58 = vadd.f32 %v3281_v39, %v3280_v49  ;;  %v2827_v5 = vmul.f32 %v2815_v50, %v8383_v14  ;;  %v2825_v0 = vmul.f32 %v8409_v13, %v8341_v23 }
 0x4ea   :  { %v3240_v51 = vmul.f32 %v8410_v20, %v8329_v42  ;;  %v3202_v28 = vmax.f32 %v7406_v7, %v3182_v30  ;;  %v2959_v62 = vrot.slane %v2958_v16, 1  ;;  %v2651_v57 = vadd.f32 %v2650_v47, %v2649_v19  ;;  %v4267_v30 = vpop.permute.xlu0 %4266 }
 0x4eb   :  { %v2772_v38 = vrot.slane %v2771_v52, 1  ;;  %v3283_v4 = vrot.slane %v3282_v58, 2  ;;  %v2871_v48 = vsel %vm1203_vm7, %v2827_v5, 0.0  ;;  %v3162_v15 = vsel %vm1203_vm7, %v3136_v12, 0.0 }
 0x4ec   :  { %v2872_v33 = vrot.slane %v2871_v48, 4  ;;  %v3331_v9 = vpop.permute.xlu2 %3330  ;;  %v3060_v46 = vadd.f32 %v3059_v18, %v3058_v10  ;;  %v2755_v6 = vadd.f32 %v2754_v1, %v2753_v37  ;;  %v2857_v21 = vsel %vm1203_vm7, %v2825_v0, 0.0 }
 0x4ed   :  { %v2773_v41 = vadd.f32 %v2772_v38, %v2771_v52  ;;  %v3284_v40 = vadd.f32 %v3283_v4, %v3282_v58  ;;  %v3346_v49 = vmul.f32 %v3331_v9, %v8371_v2  ;;  %v3266_v7 = vsel %vm1203_vm7, %v3240_v51, 0.0 }
 0x4ee   :  { %v2873_v39 = vadd.f32 %v2872_v33, %v2871_v48  ;;  %v3163_v55 = vrot.slane %v3162_v15, 4  ;;  %v7444_v10 = vmax.f32 %v2784_v53, %v2856_v59  ;;  %v2652_v18 = vrot.slane %v2651_v57, 2 }
 0x4ef   :  { %v2787_v50 = vmax.f32 %v7420_v29, %v2773_v41  ;;  %v3285_v19 = vrot.slane %v3284_v40, 1  ;;  %v3384_v47 = vsel %vm1203_vm7, %v3346_v49, 0.0  ;;  %3738 = vperm.xlu2 %5128, %v8363_v60   ;;  %5129 = vset.pattern.permute.xlu1 %v8407_v3  ;;  %v3061_v52 = vrot.slane %v3060_v46, 2 }
 0x4f0   :  { %v2874_v37 = vrot.slane %v2873_v39, 2  ;;  %v3385_v12 = vrot.slane %v3384_v47, 4  ;;  %3730 = vperm.xlu1 %5129, %v8345_v25   ;;  %v2858_v58 = vrot.slane %v2857_v21, 4  ;;  %v3267_v5 = vrot.slane %v3266_v7, 4 }
 0x4f1   :  { %v3286_v1 = vadd.f32 %v3285_v19, %v3284_v40  ;;  %v2919_v29 = vpop.permute.xlu1 %2918  ;;  %v7447_v13 = vadd.f32 %v2550_v45, %v2549_v31  ;;  %v7450_v38 = vadd.f32 %v2959_v62, %v2958_v16  ;;  %v2756_v53 = vrot.slane %v2755_v6, 2  ;;  %v8411_v45 = vld [vmem:[#allocation33_spill] sm:$0xff] }
 0x4f2   :  { %v2875_v0 = vadd.f32 %v2874_v37, %v2873_v39  ;;  %v3386_v20 = vadd.f32 %v3385_v12, %v3384_v47  ;;  %v2931_v51 = vmul.f32 %v2919_v29, %v8383_v14  ;;  %v3164_v59 = vadd.f32 %v3163_v55, %v3162_v15 }
 0x4f3   :  { %v7452_v3 = vmax.f32 %v3202_v28, %v3286_v1  ;;  %v2653_v4 = vadd.f32 %v2652_v18, %v2651_v57  ;;  %v3062_v41 = vadd.f32 %v3061_v52, %v3060_v46  ;;  %v2859_v40 = vadd.f32 %v2858_v58, %v2857_v21  ;;  %v8412_v21 = vld [vmem:[#allocation49_spill] sm:$0xff] }
 0x4f4   :  { %v2876_v48 = vrot.slane %v2875_v0, 1  ;;  %v3387_v33 = vrot.slane %v3386_v20, 2  ;;  %v2975_v9 = vsel %vm1203_vm7, %v2931_v51, 0.0  ;;  %v3268_v49 = vadd.f32 %v3267_v5, %v3266_v7 }
 0x4f5   :  { %v2976_v31 = vrot.slane %v2975_v9, 4  ;;  %v3344_v39 = vmul.f32 %v8411_v45, %v8329_v42  ;;  %v4282_v19 = vmul.f32 %v4267_v30, %v8371_v2  ;;  %v2577_v28 = vmax.f32 %v7413_v56, %v7447_v13  ;;  %v4559_v56 = vpop.permute.xlu0 %4558 }
 0x4f6   :  { %v2877_v16 = vadd.f32 %v2876_v48, %v2875_v0  ;;  %v3388_v62 = vadd.f32 %v3387_v33, %v3386_v20  ;;  %v3415_v47 = vpop.permute.xlu2 %3414  ;;  %v2757_v57 = vadd.f32 %v2756_v53, %v2755_v6  ;;  %v3165_v15 = vrot.slane %v3164_v59, 2 }
 0x4f7   :  { %v2977_v55 = vadd.f32 %v2976_v31, %v2975_v9  ;;  %3746 = vperm.xlu2 %5128, %v6683_v8   ;;  %v2654_v46 = vrot.slane %v2653_v4, 1  ;;  %v2929_v7 = vmul.f32 %v8412_v21, %v8341_v23  ;;  %v2992_v30 = vmax.f32 %v7444_v10, %v7450_v38  ;;  %v8413_v38 = vld [vmem:[#allocation5_spill] sm:$0xff] }
 0x4f8   :  { %v7463_v18 = vmax.f32 %v2787_v50, %v2877_v16  ;;  %v3389_v37 = vrot.slane %v3388_v62, 1  ;;  %3742 = vperm.xlu1 %5129, %v8385_v36   ;;  %v3063_v12 = vrot.slane %v3062_v41, 1  ;;  %v2860_v52 = vrot.slane %v2859_v40, 2 }
 0x4f9   :  { %v2978_v6 = vrot.slane %v2977_v55, 2  ;;  %v3269_v58 = vrot.slane %v3268_v49, 2  ;;  %v3370_v5 = vsel %vm1203_vm7, %v3344_v39, 0.0  ;;  %v4320_v1 = vsel %vm1203_vm7, %v4282_v19, 0.0 }
 0x4fa   :  { %v7470_v29 = vadd.f32 %v3389_v37, %v3388_v62  ;;  %v3023_v13 = vpop.permute.xlu1 %3022  ;;  %v2758_v50 = vrot.slane %v2757_v57, 1  ;;  %v3166_v0 = vadd.f32 %v3165_v15, %v3164_v59  ;;  %v2655_v53 = vadd.f32 %v2654_v46, %v2653_v4 }
 0x4fb   :  { %v2979_v20 = vadd.f32 %v2978_v6, %v2977_v55  ;;  %v3035_v51 = vmul.f32 %v3023_v13, %v8383_v14  ;;  %v2961_v10 = vsel %vm1203_vm7, %v2929_v7, 0.0  ;;  %v4589_v48 = vmul.f32 %v4559_v56, %v8413_v38  ;;  %v8415_v56 = vld [vmem:[#allocation50_spill] sm:$0xff] }
 0x4fc   :  { %v3410_v33 = vmax.f32 %v7452_v3, %v7470_v29  ;;  %v3371_v9 = vrot.slane %v3370_v5, 4  ;;  %v4321_v31 = vrot.slane %v4320_v1, 4  ;;  %v2861_v19 = vadd.f32 %v2860_v52, %v2859_v40 }
 0x4fd   :  { %v2980_v45 = vrot.slane %v2979_v20, 1  ;;  %v3079_v39 = vsel %vm1203_vm7, %v3035_v51, 0.0  ;;  %v3270_v16 = vadd.f32 %v3269_v58, %v3268_v49  ;;  %v3445_v59 = vmul.f32 %v3415_v47, %v8413_v38 }
 0x4fe   :  { %v3080_v62 = vrot.slane %v3079_v39, 4  ;;  %v3427_v15 = vpop.permute.xlu2 %3426  ;;  %v3064_v55 = vadd.f32 %v3063_v12, %v3062_v41  ;;  %v2759_v4 = vadd.f32 %v2758_v50, %v2757_v57  ;;  %v3167_v46 = vrot.slane %v3166_v0, 1 }
 0x4ff   :  { %v2981_v21 = vadd.f32 %v2980_v45, %v2979_v20  ;;  %v8414_v7 = vmov 24   ;;  %v2962_v37 = vrot.slane %v2961_v10, 4  ;;  %v3033_v6 = vmul.f32 %v8415_v56, %v8341_v23 }
 0x500   :  { %5131 = vset.pattern.permute.xlu2 %v8414_v7  ;;  %v4597_v13 = vsel %vm1203_vm7, %v4589_v48, 0.0  ;;  %v3081_v61 = vadd.f32 %v3080_v62, %v3079_v39  ;;  %3750 = vperm.xlu1 %5129, %v6764_v54   ;;  %v2681_v40 = vmax.f32 %v2577_v28, %v2655_v53  ;;  %v3372_v49 = vadd.f32 %v3371_v9, %v3370_v5 }
 0x501   :  { %3830 = vperm.xlu2 %5131, %v8378_v17   ;;  %v4322_v47 = vadd.f32 %v4321_v31, %v4320_v1  ;;  %v2995_v41 = vmax.f32 %v7463_v18, %v2981_v21  ;;  %v2862_v57 = vrot.slane %v2861_v19, 1  ;;  %v3271_v12 = vrot.slane %v3270_v16, 1 }
 0x502   :  { %v3453_v52 = vsel %vm1203_vm7, %v3445_v59, 0.0  ;;  %v3082_v58 = vrot.slane %v3081_v61, 2  ;;  %v3096_v50 = vmax.f32 %v2992_v30, %v3064_v55  ;;  %v2785_v20 = vmax.f32 %v2681_v40, %v2759_v4 }
 0x503   :  { %v3168_v51 = vadd.f32 %v3167_v46, %v3166_v0  ;;  %v4598_v45 = vrot.slane %v4597_v13, 4  ;;  %v2963_v48 = vadd.f32 %v2962_v37, %v2961_v10  ;;  %v3065_v39 = vsel %vm1203_vm7, %v3033_v6, 0.0 }
 0x504   :  { %v4176_v62 = vmul.f32 %v7390_v63, %v8329_v42  ;;  %v3083_v28 = vadd.f32 %v3082_v58, %v3081_v61  ;;  %v3127_v5 = vpop.permute.xlu1 %3126  ;;  %v3373_v1 = vrot.slane %v3372_v49, 2  ;;  %v4323_v53 = vrot.slane %v4322_v47, 2 }
 0x505   :  { %v3454_v18 = vrot.slane %v3453_v52, 4  ;;  %v3139_v9 = vmul.f32 %v3127_v5, %v8383_v14  ;;  %v2863_v31 = vadd.f32 %v2862_v57, %v2861_v19  ;;  %v3272_v59 = vadd.f32 %v3271_v12, %v3270_v16  ;;  %v8416_v5 = vld [vmem:[#allocation39_spill] sm:$0xff] }
 0x506   :  { %v3084_v21 = vrot.slane %v3083_v28, 1  ;;  %v3448_v30 = vmul.f32 %v3427_v15, %v8329_v42  ;;  %v3435_v0 = vpop.permute.xlu2 %3434  ;;  %v3066_v55 = vrot.slane %v3065_v39, 4  ;;  %v4599_v10 = vadd.f32 %v4598_v45, %v4597_v13 }
 0x507   :  { %v3183_v4 = vsel %vm1203_vm7, %v3139_v9, 0.0  ;;  %v3450_v46 = vmul.f32 %v3435_v0, %v8371_v2  ;;  %v2964_v63 = vrot.slane %v2963_v48, 2  ;;  %v4202_v61 = vsel %vm1203_vm7, %v4176_v62, 0.0  ;;  %v8417_v9 = vld [vmem:[#allocation36_spill] sm:$0xff] }
 0x508   :  { %v3085_v37 = vadd.f32 %v3084_v21, %v3083_v28  ;;  %v3184_v56 = vrot.slane %v3183_v4, 4  ;;  %5132 = vset.pattern.permute.xlu1 %v8414_v7  ;;  %v3374_v19 = vadd.f32 %v3373_v1, %v3372_v49  ;;  %v4324_v16 = vadd.f32 %v4323_v53, %v4322_v47 }
 0x509   :  { %3842 = vperm.xlu2 %5131, %v8363_v60   ;;  %v3455_v6 = vadd.f32 %v3454_v18, %v3453_v52  ;;  %v3488_v15 = vsel %vm1203_vm7, %v3450_v46, 0.0  ;;  %3834 = vperm.xlu1 %5132, %v8345_v25   ;;  %v3474_v40 = vsel %vm1203_vm7, %v3448_v30, 0.0  ;;  %v3200_v58 = vmax.f32 %v3096_v50, %v3168_v51 }
 0x50a   :  { %v7499_v13 = vmax.f32 %v2995_v41, %v3085_v37  ;;  %v3185_v57 = vadd.f32 %v3184_v56, %v3183_v4  ;;  %v3489_v12 = vrot.slane %v3488_v15, 4  ;;  %v3067_v45 = vadd.f32 %v3066_v55, %v3065_v39 }
 0x50b   :  { %v4203_v62 = vrot.slane %v4202_v61, 4  ;;  %v4600_v28 = vrot.slane %v4599_v10, 2  ;;  %v7504_v49 = vmax.f32 %v2785_v20, %v2863_v31  ;;  %v7506_v1 = vmax.f32 %v3200_v58, %v3272_v59  ;;  %v8418_v31 = vld [vmem:[#allocation10_spill] sm:$0xff] }
 0x50c   :  { %v3186_v47 = vrot.slane %v3185_v57, 2  ;;  %v3490_v52 = vadd.f32 %v3489_v12, %v3488_v15  ;;  %v4325_v53 = vrot.slane %v4324_v16, 1  ;;  %v3456_v41 = vrot.slane %v3455_v6, 2 }
 0x50d   :  { %v3475_v18 = vrot.slane %v3474_v40, 4  ;;  %v3231_v21 = vpop.permute.xlu1 %3230  ;;  %v7508_v30 = vadd.f32 %v2964_v63, %v2963_v48  ;;  %v3375_v0 = vrot.slane %v3374_v19, 1  ;;  %v3068_v39 = vrot.slane %v3067_v45, 2 }
 0x50e   :  { %v3187_v50 = vadd.f32 %v3186_v47, %v3185_v57  ;;  %v3491_v51 = vrot.slane %v3490_v52, 2  ;;  %v4204_v55 = vadd.f32 %v4203_v62, %v4202_v61  ;;  %v4601_v4 = vadd.f32 %v4600_v28, %v4599_v10  ;;  %v8425_v28 = vld [vmem:[#allocation38_spill] sm:$0xff] }
 0x50f   :  { %v3243_v46 = vmul.f32 %v3231_v21, %v8383_v14  ;;  %v3519_v20 = vpop.permute.xlu2 %3518  ;;  %v3137_v37 = vmul.f32 %v8418_v31, %v8341_v23  ;;  %v4326_v48 = vadd.f32 %v4325_v53, %v4324_v16  ;;  %v3457_v63 = vadd.f32 %v3456_v41, %v3455_v6 }
 0x510   :  { %v3188_v59 = vrot.slane %v3187_v50, 1  ;;  %v3492_v56 = vadd.f32 %v3491_v51, %v3490_v52  ;;  %v3549_v15 = vmul.f32 %v3519_v20, %v8413_v38  ;;  %v3476_v12 = vadd.f32 %v3475_v18, %v3474_v40 }
 0x511   :  { %3850 = vperm.xlu2 %5131, %v6683_v8   ;;  %v3287_v57 = vsel %vm1203_vm7, %v3243_v46, 0.0  ;;  %3846 = vperm.xlu1 %5132, %v8385_v36   ;;  %v4205_v47 = vrot.slane %v4204_v55, 2  ;;  %v4602_v52 = vrot.slane %v4601_v4, 1  ;;  %v7522_v16 = vmax.f32 %v3410_v33, %v4326_v48 }
 0x512   :  { %v3189_v10 = vadd.f32 %v3188_v59, %v3187_v50  ;;  %v3493_v61 = vrot.slane %v3492_v56, 1  ;;  %v3288_v58 = vrot.slane %v3287_v57, 4  ;;  %v3557_v62 = vsel %vm1203_vm7, %v3549_v15, 0.0 }
 0x513   :  { %v3558_v21 = vrot.slane %v3557_v62, 4  ;;  %v3169_v41 = vsel %vm1203_vm7, %v3137_v37, 0.0  ;;  %v3458_v18 = vrot.slane %v3457_v63, 1  ;;  %v3477_v50 = vrot.slane %v3476_v12, 2 }
 0x514   :  { %v3203_v6 = vmax.f32 %v7499_v13, %v3189_v10  ;;  %v7525_v40 = vadd.f32 %v3493_v61, %v3492_v56  ;;  %v3289_v53 = vadd.f32 %v3288_v58, %v3287_v57  ;;  %v7528_v46 = vadd.f32 %v3375_v0, %v3374_v19  ;;  %v4355_v13 = vpop.permute.xlu0 %4354  ;;  %v8419_v57 = vld [vmem:[#allocation6_spill] sm:$0xff]  ;;  %v8420_v10 = vld [vmem:[#allocation40_spill] sm:$0xff] }
 0x515   :  { %v3559_v51 = vadd.f32 %v3558_v21, %v3557_v62  ;;  %v7530_v20 = vadd.f32 %v3068_v39, %v3067_v45  ;;  %v4206_v33 = vadd.f32 %v4205_v47, %v4204_v55  ;;  %v4603_v59 = vadd.f32 %v4602_v52, %v4601_v4 }
 0x516   :  { %v3290_v3 = vrot.slane %v3289_v53, 2  ;;  %v3335_v29 = vpop.permute.xlu1 %3334  ;;  %v3170_v37 = vrot.slane %v3169_v41, 4  ;;  %v3446_v61 = vmul.f32 %v8420_v10, %v8419_v57  ;;  %v8421_v0 = vmov 25  }
 0x517   :  { %v3560_v56 = vrot.slane %v3559_v51, 2  ;;  %v3347_v15 = vmul.f32 %v3335_v29, %v8383_v14  ;;  %v3531_v48 = vpop.permute.xlu2 %3530  ;;  %v3459_v39 = vadd.f32 %v3458_v18, %v3457_v63  ;;  %v3478_v58 = vadd.f32 %v3477_v50, %v3476_v12  ;;  %v8423_v29 = vld [vmem:[#allocation51_spill] sm:$0xff] }
 0x518   :  { %v3291_v19 = vadd.f32 %v3290_v3, %v3289_v53  ;;  %v3552_v45 = vmul.f32 %v3531_v48, %v8329_v42  ;;  %v4070_v4 = vmul.f32 %v7309_v24, %v8419_v57  ;;  %v4207_v53 = vrot.slane %v4206_v33, 1  ;;  %v8422_v3 = vld [vmem:[#allocation34_spill] sm:$0xff] }
 0x519   :  { %5134 = vset.pattern.permute.xlu2 %v8421_v0  ;;  %v3561_v62 = vadd.f32 %v3560_v56, %v3559_v51  ;;  %v3391_v55 = vsel %vm1203_vm7, %v3347_v15, 0.0  ;;  %3854 = vperm.xlu1 %5132, %v6764_v54   ;;  %v8424_v48 = vmax.f32 %v8422_v3, %v8423_v29  ;;  %v3460_v50 = vsel %vm1203_vm7, %v3446_v61, 0.0 }
 0x51a   :  { %3934 = vperm.xlu2 %5134, %v8378_v17   ;;  %v3292_v47 = vrot.slane %v3291_v19, 1  ;;  %v3392_v52 = vrot.slane %v3391_v55, 4  ;;  %v3578_v21 = vsel %vm1203_vm7, %v3552_v45, 0.0  ;;  %v4382_v51 = vmul.f32 %v4355_v13, %v8419_v57 }
 0x51b   :  { %v3509_v63 = vmax.f32 %v8424_v48, %v4603_v59  ;;  %v3562_v12 = vrot.slane %v3561_v62, 1  ;;  %v3579_v18 = vrot.slane %v3578_v21, 4  ;;  %v3479_v7 = vrot.slane %v3478_v58, 1 }
 0x51c   :  { %v3293_v56 = vadd.f32 %v3292_v47, %v3291_v19  ;;  %v3393_v15 = vadd.f32 %v3392_v52, %v3391_v55  ;;  %v3241_v45 = vmul.f32 %v8425_v28, %v8341_v23  ;;  %v3345_v35 = vmul.f32 %v8426_v32, %v8341_v23 }
 0x51d   :  { %v3613_v10 = vmax.f32 %v3509_v63, %v3459_v39  ;;  %v3563_v24 = vadd.f32 %v3562_v12, %v3561_v62  ;;  %v3580_v31 = vadd.f32 %v3579_v18, %v3578_v21  ;;  %v4084_v29 = vsel %vm1203_vm7, %v4070_v4, 0.0 }
 0x51e   :  { %v7554_v3 = vmax.f32 %v3203_v6, %v3293_v56  ;;  %v3394_v59 = vrot.slane %v3393_v15, 2  ;;  %v4208_v61 = vadd.f32 %v4207_v53, %v4206_v33  ;;  %v3408_v62 = vmax.f32 %v7506_v1, %v7528_v46  ;;  %v4367_v6 = vpop.permute.xlu0 %4366 }
 0x51f   :  { %v7557_v48 = vmax.f32 %v3613_v10, %v3563_v24  ;;  %v3581_v13 = vrot.slane %v3580_v31, 2  ;;  %v3539_v19 = vpop.permute.xlu2 %3538  ;;  %v3431_v39 = vpop.permute.xlu1 %3430  ;;  %v3461_v55 = vrot.slane %v3460_v50, 4  ;;  %v3171_v52 = vadd.f32 %v3170_v37, %v3169_v41 }
 0x520   :  { %v3395_v47 = vadd.f32 %v3394_v59, %v3393_v15  ;;  %v3554_v28 = vmul.f32 %v3539_v19, %v8371_v2  ;;  %v4396_v32 = vsel %vm1203_vm7, %v4382_v51, 0.0  ;;  %v3480_v21 = vadd.f32 %v3479_v7, %v3478_v58 }
 0x521   :  { %v3582_v63 = vadd.f32 %v3581_v13, %v3580_v31  ;;  %5135 = vset.pattern.permute.xlu1 %v8421_v0  ;;  %v3273_v33 = vsel %vm1203_vm7, %v3241_v45, 0.0  ;;  %v4085_v4 = vrot.slane %v4084_v29, 4  ;;  %v3377_v46 = vsel %vm1203_vm7, %v3345_v35, 0.0 }
 0x522   :  { %3946 = vperm.xlu2 %5134, %v8363_v60   ;;  %v3396_v53 = vrot.slane %v3395_v47, 1  ;;  %v3592_v1 = vsel %vm1203_vm7, %v3554_v28, 0.0  ;;  %3938 = vperm.xlu1 %5135, %v8345_v25   ;;  %v3512_v41 = vmax.f32 %v3408_v62, %v4208_v61  ;;  %v3462_v18 = vadd.f32 %v3461_v55, %v3460_v50 }
 0x523   :  { %v3583_v37 = vrot.slane %v3582_v63, 1  ;;  %v3593_v12 = vrot.slane %v3592_v1, 4  ;;  %v4397_v7 = vrot.slane %v4396_v32, 4  ;;  %v4385_v31 = vmul.f32 %v4367_v6, %v8341_v23 }
 0x524   :  { %v7570_v58 = vadd.f32 %v3396_v53, %v3395_v47  ;;  %v3274_v51 = vrot.slane %v3273_v33, 4  ;;  %v3616_v56 = vmax.f32 %v3512_v41, %v3480_v21  ;;  %v3378_v24 = vrot.slane %v3377_v46, 4 }
 0x525   :  { %v3584_v15 = vadd.f32 %v3583_v37, %v3582_v63  ;;  %v3594_v10 = vadd.f32 %v3593_v12, %v3592_v1  ;;  %v4086_v45 = vadd.f32 %v4085_v4, %v4084_v29  ;;  %v3449_v35 = vmul.f32 %v3431_v39, %v8341_v23 }
 0x526   :  { %v8427_v61 = vrot.slane %v7508_v30, 1  ;;  %v3172_v13 = vrot.slane %v3171_v52, 2  ;;  %v3463_v47 = vrot.slane %v3462_v18, 2  ;;  %v4398_v28 = vadd.f32 %v4397_v7, %v4396_v32 }
 0x527   :  { %v7580_v19 = vmax.f32 %v3616_v56, %v3584_v15  ;;  %v3595_v62 = vrot.slane %v3594_v10, 2  ;;  %v3439_v55 = vpop.permute.xlu1 %3438  ;;  %v4417_v6 = vsel %vm1203_vm7, %v4385_v31, 0.0  ;;  %v3070_v63 = vrot.slane %v7530_v20, 1 }
 0x528   :  { %v7578_v50 = vadd.f32 %v8427_v61, %v7508_v30  ;;  %v3451_v29 = vmul.f32 %v3439_v55, %v8383_v14  ;;  %v3623_v21 = vpop.permute.xlu2 %3622  ;;  %v3275_v39 = vadd.f32 %v3274_v51, %v3273_v33  ;;  %v3379_v30 = vadd.f32 %v3378_v24, %v3377_v46 }
 0x529   :  { %v3596_v4 = vadd.f32 %v3595_v62, %v3594_v10  ;;  %v3653_v53 = vmul.f32 %v3623_v21, %v8413_v38  ;;  %v4087_v1 = vrot.slane %v4086_v45, 2  ;;  %v3481_v41 = vsel %vm1203_vm7, %v3449_v35, 0.0 }
 0x52a   :  { %3954 = vperm.xlu2 %5134, %v6683_v8   ;;  %v3495_v37 = vsel %vm1203_vm7, %v3451_v29, 0.0  ;;  %3950 = vperm.xlu1 %5135, %v8385_v36   ;;  %v4418_v32 = vrot.slane %v4417_v6, 4  ;;  %v3173_v56 = vadd.f32 %v3172_v13, %v3171_v52  ;;  %v3464_v33 = vadd.f32 %v3463_v47, %v3462_v18 }
 0x52b   :  { %v3597_v12 = vrot.slane %v3596_v4, 1  ;;  %v3496_v7 = vrot.slane %v3495_v37, 4  ;;  %v3661_v31 = vsel %vm1203_vm7, %v3653_v53, 0.0  ;;  %v4399_v51 = vrot.slane %v4398_v28, 2 }
 0x52c   :  { %v3662_v15 = vrot.slane %v3661_v31, 4  ;;  %v2993_v10 = vmax.f32 %v7504_v49, %v7578_v50  ;;  %v3482_v24 = vrot.slane %v3481_v41, 4  ;;  %v3276_v35 = vrot.slane %v3275_v39, 2 }
 0x52d   :  { %v3598_v46 = vadd.f32 %v3597_v12, %v3596_v4  ;;  %v3497_v61 = vadd.f32 %v3496_v7, %v3495_v37  ;;  %v3380_v62 = vrot.slane %v3379_v30, 2  ;;  %v4088_v55 = vadd.f32 %v4087_v1, %v4086_v45 }
 0x52e   :  { %v3663_v29 = vadd.f32 %v3662_v15, %v3661_v31  ;;  %v3071_v21 = vadd.f32 %v3070_v63, %v7530_v20  ;;  %v4419_v59 = vadd.f32 %v4418_v32, %v4417_v6  ;;  %v8428_v53 = vmax.f32 %v7522_v16, %v7525_v40  ;;  %v8430_v32 = vld [vmem:[#allocation15_spill] sm:$0xff] }
 0x52f   :  { %v3498_v18 = vrot.slane %v3497_v61, 2  ;;  %v3174_v13 = vrot.slane %v3173_v56, 1  ;;  %v3465_v47 = vrot.slane %v3464_v33, 1  ;;  %v4400_v44 = vadd.f32 %v4399_v51, %v4398_v28 }
 0x530   :  { %v7597_v52 = vmax.f32 %v8428_v53, %v3598_v46  ;;  %v3664_v49 = vrot.slane %v3663_v29, 2  ;;  %v3635_v50 = vpop.permute.xlu2 %3634  ;;  %v3523_v4 = vpop.permute.xlu1 %3522  ;;  %v3483_v37 = vadd.f32 %v3482_v24, %v3481_v41  ;;  %v8429_v20 = vmov 26  }
 0x531   :  { %v3499_v12 = vadd.f32 %v3498_v18, %v3497_v61  ;;  %v3656_v45 = vmul.f32 %v3635_v50, %v8329_v42  ;;  %v3550_v1 = vmul.f32 %v3523_v4, %v8419_v57  ;;  %v3277_v6 = vadd.f32 %v3276_v35, %v3275_v39 }
 0x532   :  { %5139 = vset.pattern.permute.xlu2 %v8429_v20  ;;  %v3381_v63 = vadd.f32 %v3380_v62, %v3379_v30  ;;  %v4089_v16 = vrot.slane %v4088_v55, 1  ;;  %v3665_v40 = vadd.f32 %v3664_v49, %v3663_v29  ;;  %5136 = vset.pattern.permute.xlu1 %v8429_v20  ;;  %v4420_v28 = vrot.slane %v4419_v59, 2 }
 0x533   :  { %4046 = vperm.xlu2 %5139, %v8430_v32   ;;  %v3500_v7 = vrot.slane %v3499_v12, 1  ;;  %v3682_v31 = vsel %vm1203_vm7, %v3656_v45, 0.0  ;;  %v3564_v41 = vsel %vm1203_vm7, %v3550_v1, 0.0  ;;  %4038 = vperm.xlu1 %5136, %v8378_v17   ;;  %v3466_v51 = vadd.f32 %v3465_v47, %v3464_v33 }
 0x534   :  { %v3666_v15 = vrot.slane %v3665_v40, 1  ;;  %v3683_v46 = vrot.slane %v3682_v31, 4  ;;  %v3565_v24 = vrot.slane %v3564_v41, 4  ;;  %v3175_v39 = vadd.f32 %v3174_v13, %v3173_v56 }
 0x535   :  { %v4401_v30 = vrot.slane %v4400_v44, 1  ;;  %v3484_v61 = vrot.slane %v3483_v37, 2  ;;  %v3501_v35 = vadd.f32 %v3500_v7, %v3499_v12  ;;  %v3278_v62 = vrot.slane %v3277_v6, 1 }
 0x536   :  { %v7607_v29 = vadd.f32 %v3666_v15, %v3665_v40  ;;  %v3684_v53 = vadd.f32 %v3683_v46, %v3682_v31  ;;  %v3566_v18 = vadd.f32 %v3565_v24, %v3564_v41  ;;  %v3382_v49 = vrot.slane %v3381_v63, 1 }
 0x537   :  { %v4090_v50 = vadd.f32 %v4089_v16, %v4088_v55  ;;  %v4421_v4 = vadd.f32 %v4420_v28, %v4419_v59  ;;  %v8431_v45 = vmax.f32 %v7554_v3, %v7570_v58  ;;  %v8432_v33 = vmax.f32 %v8417_v9, %v8416_v5 }
 0x538   :  { %v3821_v13 = vmax.f32 %v7557_v48, %v7607_v29  ;;  %v3685_v47 = vrot.slane %v3684_v53, 2  ;;  %v3567_v12 = vrot.slane %v3566_v18, 2  ;;  %v3643_v40 = vpop.permute.xlu2 %3642  ;;  %v3535_v7 = vpop.permute.xlu1 %3534  ;;  %v4402_v31 = vadd.f32 %v4401_v30, %v4400_v44 }
 0x539   :  { %v7612_v1 = vmax.f32 %v8431_v45, %v3501_v35  ;;  %v3510_v56 = vmax.f32 %v8432_v33, %v3466_v51  ;;  %v3485_v41 = vadd.f32 %v3484_v61, %v3483_v37  ;;  %v3658_v59 = vmul.f32 %v3643_v40, %v8371_v2 }
 0x53a   :  { %v3553_v55 = vmul.f32 %v3535_v7, %v8341_v23  ;;  %v3097_v3 = vmax.f32 %v2993_v10, %v3071_v21  ;;  %v3279_v58 = vadd.f32 %v3278_v62, %v3277_v6  ;;  %v3686_v16 = vadd.f32 %v3685_v47, %v3684_v53 }
 0x53b   :  { %v3568_v28 = vadd.f32 %v3567_v12, %v3566_v18  ;;  %v8433_v15 = vmov 27   ;;  %v3614_v5 = vmax.f32 %v3510_v56, %v4090_v50  ;;  %v4422_v9 = vrot.slane %v4421_v4, 1  ;;  %4050 = vperm.xlu1 %5136, %v8363_v60  }
 0x53c   :  { %5140 = vset.pattern.permute.xlu2 %v8433_v15  ;;  %v3696_v51 = vsel %vm1203_vm7, %v3658_v59, 0.0  ;;  %v3585_v46 = vsel %vm1203_vm7, %v3553_v55, 0.0  ;;  %v3687_v44 = vrot.slane %v3686_v16, 1  ;;  %v3201_v10 = vmax.f32 %v3097_v3, %v3175_v39 }
 0x53d   :  { %4142 = vperm.xlu2 %5140, %v8378_v17   ;;  %v3569_v37 = vrot.slane %v3568_v28, 1  ;;  %v3697_v24 = vrot.slane %v3696_v51, 4  ;;  %v3586_v30 = vrot.slane %v3585_v46, 4  ;;  %v3383_v21 = vadd.f32 %v3382_v49, %v3381_v63 }
 0x53e   :  { %v7626_v6 = vmax.f32 %v3614_v5, %v4402_v31  ;;  %v3486_v61 = vrot.slane %v3485_v41, 1  ;;  %v7628_v35 = vadd.f32 %v3687_v44, %v3686_v16  ;;  %v3305_v50 = vmax.f32 %v3201_v10, %v3279_v58 }
 0x53f   :  { %v7630_v62 = vadd.f32 %v3569_v37, %v3568_v28  ;;  %v3698_v53 = vadd.f32 %v3697_v24, %v3696_v51  ;;  %v3587_v18 = vadd.f32 %v3586_v30, %v3585_v46  ;;  %v4423_v45 = vadd.f32 %v4422_v9, %v4421_v4 }
 0x540   :  { %v3824_v33 = vmax.f32 %v7580_v19, %v7628_v35  ;;  %v3543_v63 = vpop.permute.xlu1 %3542  ;;  %v3409_v49 = vmax.f32 %v3305_v50, %v3383_v21  ;;  %v3487_v7 = vadd.f32 %v3486_v61, %v3485_v41 }
 0x541   :  { %v3822_v56 = vmax.f32 %v7626_v6, %v7630_v62  ;;  %v3699_v47 = vrot.slane %v3698_v53, 2  ;;  %v3588_v39 = vrot.slane %v3587_v18, 2  ;;  %v3555_v12 = vmul.f32 %v3543_v63, %v8383_v14  ;;  %v3727_v40 = vpop.permute.xlu2 %3726 }
 0x542   :  { %v3757_v55 = vmul.f32 %v3727_v40, %v8413_v38  ;;  %v3513_v3 = vmax.f32 %v3409_v49, %v4423_v45 }
 0x543   :  { %v3700_v31 = vadd.f32 %v3699_v47, %v3698_v53  ;;  %v3589_v59 = vadd.f32 %v3588_v39, %v3587_v18  ;;  %v3599_v4 = vsel %vm1203_vm7, %v3555_v12, 0.0  ;;  %5141 = vset.pattern.permute.xlu1 %v8433_v15 }
 0x544   :  { %v3600_v28 = vrot.slane %v3599_v4, 4  ;;  %v3765_v5 = vsel %vm1203_vm7, %v3757_v55, 0.0  ;;  %4146 = vperm.xlu1 %5141, %v8345_v25   ;;  %v3617_v9 = vmax.f32 %v3513_v3, %v3487_v7 }
 0x545   :  { %5142 = vset.pattern.permute.xlu2 %v8429_v20  ;;  %v3701_v58 = vrot.slane %v3700_v31, 1  ;;  %v3590_v16 = vrot.slane %v3589_v59, 1  ;;  %v3766_v41 = vrot.slane %v3765_v5, 4 }
 0x546   :  { %4054 = vperm.xlu2 %5142, %v8385_v36   ;;  %v3601_v44 = vadd.f32 %v3600_v28, %v3599_v4 }
 0x547   :  { %v7644_v51 = vadd.f32 %v3701_v58, %v3700_v31  ;;  %v3591_v46 = vadd.f32 %v3590_v16, %v3589_v59  ;;  %v3767_v37 = vadd.f32 %v3766_v41, %v3765_v5 }
 0x548   :  { %v3602_v10 = vrot.slane %v3601_v44, 2 }
 0x549   :  { %v3826_v24 = vmax.f32 %v7597_v52, %v7644_v51  ;;  %v7648_v30 = vmax.f32 %v3617_v9, %v3591_v46  ;;  %v3768_v21 = vrot.slane %v3767_v37, 2  ;;  %v3739_v61 = vpop.permute.xlu2 %3738  ;;  %v3627_v53 = vpop.permute.xlu1 %3626 }
 0x54a   :  { %v3603_v18 = vadd.f32 %v3602_v10, %v3601_v44  ;;  %v3760_v50 = vmul.f32 %v3739_v61, %v8329_v42  ;;  %v3654_v45 = vmul.f32 %v3627_v53, %v8419_v57  ;;  %v8434_v61 = vmov 28  }
 0x54b   :  { %v3769_v47 = vadd.f32 %v3768_v21, %v3767_v37 }
 0x54c   :  { %v3604_v39 = vrot.slane %v3603_v18, 1  ;;  %v3786_v63 = vsel %vm1203_vm7, %v3760_v50, 0.0  ;;  %v3668_v49 = vsel %vm1203_vm7, %v3654_v45, 0.0  ;;  %4150 = vperm.xlu1 %5141, %v8430_v32  }
 0x54d   :  { %v3770_v12 = vrot.slane %v3769_v47, 1  ;;  %v3787_v40 = vrot.slane %v3786_v63, 4  ;;  %v3669_v7 = vrot.slane %v3668_v49, 4 }
 0x54e   :  { %5143 = vset.pattern.permute.xlu2 %v8421_v0  ;;  %v7657_v31 = vadd.f32 %v3604_v39, %v3603_v18 }
 0x54f   :  { %3962 = vperm.xlu2 %5143, %v6400_v43   ;;  %v3771_v59 = vadd.f32 %v3770_v12, %v3769_v47  ;;  %v3788_v55 = vadd.f32 %v3787_v40, %v3786_v63  ;;  %v3670_v3 = vadd.f32 %v3669_v7, %v3668_v49 }
 0x550   :  { %v3619_v4 = vmax.f32 %v7612_v1, %v7657_v31 }
 0x551   :  { %v7664_v58 = vmax.f32 %v3821_v13, %v3771_v59  ;;  %v3789_v0 = vrot.slane %v3788_v55, 2  ;;  %v3671_v16 = vrot.slane %v3670_v3, 2  ;;  %v3747_v28 = vpop.permute.xlu2 %3746  ;;  %v3639_v5 = vpop.permute.xlu1 %3638 }
 0x552   :  { %v3762_v41 = vmul.f32 %v3747_v28, %v8371_v2  ;;  %v3657_v9 = vmul.f32 %v3639_v5, %v8341_v23 }
 0x553   :  { %v3790_v46 = vadd.f32 %v3789_v0, %v3788_v55  ;;  %v3672_v44 = vadd.f32 %v3671_v16, %v3670_v3 }
 0x554   :  { %v3800_v37 = vsel %vm1203_vm7, %v3762_v41, 0.0  ;;  %v3689_v10 = vsel %vm1203_vm7, %v3657_v9, 0.0  ;;  %5144 = vset.pattern.permute.xlu1 %v8429_v20 }
 0x555   :  { %v3791_v21 = vrot.slane %v3790_v46, 1  ;;  %v3673_v48 = vrot.slane %v3672_v44, 1  ;;  %v3801_v29 = vrot.slane %v3800_v37, 4  ;;  %v3690_v13 = vrot.slane %v3689_v10, 4  ;;  %4058 = vperm.xlu1 %5144, %v6683_v8  }
 0x557   :  { %5146 = vset.pattern.permute.xlu2 %v8434_v61  ;;  %v3792_v53 = vadd.f32 %v3791_v21, %v3790_v46  ;;  %v3674_v18 = vadd.f32 %v3673_v48, %v3672_v44  ;;  %v3802_v50 = vadd.f32 %v3801_v29, %v3800_v37  ;;  %v3691_v45 = vadd.f32 %v3690_v13, %v3689_v10 }
 0x558   :  { %4246 = vperm.xlu2 %5146, %v8378_v17  }
 0x559   :  { %v7677_v47 = vmax.f32 %v3824_v33, %v3792_v53  ;;  %v7682_v39 = vmax.f32 %v3822_v56, %v3674_v18  ;;  %v3803_v63 = vrot.slane %v3802_v50, 2  ;;  %v3692_v49 = vrot.slane %v3691_v45, 2  ;;  %v3647_v12 = vpop.permute.xlu1 %3646 }
 0x55a   :  { %v3659_v40 = vmul.f32 %v3647_v12, %v8383_v14 }
 0x55b   :  { %v3831_v7 = vpop.permute.xlu2 %3830  ;;  %v3804_v59 = vadd.f32 %v3803_v63, %v3802_v50  ;;  %v3693_v55 = vadd.f32 %v3692_v49, %v3691_v45 }
 0x55c   :  { %v3861_v3 = vmul.f32 %v3831_v7, %v8413_v38  ;;  %v3703_v0 = vsel %vm1203_vm7, %v3659_v40, 0.0 }
 0x55d   :  { %v3805_v19 = vrot.slane %v3804_v59, 1  ;;  %v3694_v35 = vrot.slane %v3693_v55, 1  ;;  %v3704_v33 = vrot.slane %v3703_v0, 4  ;;  %5147 = vset.pattern.permute.xlu1 %v8434_v61 }
 0x55e   :  { %v3869_v16 = vsel %vm1203_vm7, %v3861_v3, 0.0  ;;  %4250 = vperm.xlu1 %5147, %v8345_v25  }
 0x55f   :  { %v3870_v6 = vrot.slane %v3869_v16, 4  ;;  %v3806_v62 = vadd.f32 %v3805_v19, %v3804_v59  ;;  %v7691_v56 = vadd.f32 %v3694_v35, %v3693_v55  ;;  %v3705_v28 = vadd.f32 %v3704_v33, %v3703_v0 }
 0x560   :  { %5148 = vset.pattern.permute.xlu2 %v8429_v20 }
 0x561   :  { %4062 = vperm.xlu2 %5148, %v6764_v54   ;;  %v3871_v5 = vadd.f32 %v3870_v6, %v3869_v16  ;;  %v7697_v41 = vmax.f32 %v3826_v24, %v3806_v62  ;;  %v3825_v9 = vmax.f32 %v7648_v30, %v7691_v56  ;;  %v3706_v46 = vrot.slane %v3705_v28, 2 }
 0x562   :  { %v3731_v37 = vpop.permute.xlu1 %3730 }
 0x563   :  { %v3872_v44 = vrot.slane %v3871_v5, 2  ;;  %v3843_v20 = vpop.permute.xlu2 %3842  ;;  %v3707_v10 = vadd.f32 %v3706_v46, %v3705_v28  ;;  %v3758_v48 = vmul.f32 %v3731_v37, %v8419_v57 }
 0x564   :  { %v3864_v21 = vmul.f32 %v3843_v20, %v8329_v42 }
 0x565   :  { %v3873_v29 = vadd.f32 %v3872_v44, %v3871_v5  ;;  %v3708_v13 = vrot.slane %v3707_v10, 1  ;;  %v3772_v52 = vsel %vm1203_vm7, %v3758_v48, 0.0 }
 0x566   :  { %v3890_v53 = vsel %vm1203_vm7, %v3864_v21, 0.0  ;;  %v3773_v18 = vrot.slane %v3772_v52, 4  ;;  %5149 = vset.pattern.permute.xlu1 %v8433_v15 }
 0x567   :  { %v3874_v51 = vrot.slane %v3873_v29, 1  ;;  %v3891_v24 = vrot.slane %v3890_v53, 4  ;;  %v3709_v50 = vadd.f32 %v3708_v13, %v3707_v10  ;;  %4158 = vperm.xlu1 %5149, %v8385_v36  }
 0x568   :  { %v3774_v49 = vadd.f32 %v3773_v18, %v3772_v52 }
 0x569   :  { %4066 = vperm.xlu2 %5148, %v6400_v43   ;;  %v7708_v45 = vadd.f32 %v3874_v51, %v3873_v29  ;;  %v3892_v63 = vadd.f32 %v3891_v24, %v3890_v53  ;;  %v7713_v12 = vmax.f32 %v3619_v4, %v3709_v50 }
 0x56a   :  { %v3775_v59 = vrot.slane %v3774_v49, 2  ;;  %v3743_v3 = vpop.permute.xlu1 %3742 }
 0x56b   :  { %v4029_v40 = vmax.f32 %v7664_v58, %v7708_v45  ;;  %v3893_v7 = vrot.slane %v3892_v63, 2  ;;  %v3851_v55 = vpop.permute.xlu2 %3850  ;;  %v3761_v19 = vmul.f32 %v3743_v3, %v8341_v23 }
 0x56c   :  { %v3866_v0 = vmul.f32 %v3851_v55, %v8371_v2  ;;  %v3776_v33 = vadd.f32 %v3775_v59, %v3774_v49  ;;  %v8435_v59 = vmov 29  }
 0x56d   :  { %v3894_v35 = vadd.f32 %v3893_v7, %v3892_v63  ;;  %v3793_v6 = vsel %vm1203_vm7, %v3761_v19, 0.0 }
 0x56e   :  { %v3904_v16 = vsel %vm1203_vm7, %v3866_v0, 0.0  ;;  %v3777_v31 = vrot.slane %v3776_v33, 1  ;;  %v3794_v62 = vrot.slane %v3793_v6, 4 }
 0x56f   :  { %v3895_v1 = vrot.slane %v3894_v35, 1  ;;  %v3905_v4 = vrot.slane %v3904_v16, 4  ;;  %4162 = vperm.xlu1 %5149, %v6683_v8  }
 0x570   :  { %v7725_v5 = vadd.f32 %v3777_v31, %v3776_v33  ;;  %v3795_v44 = vadd.f32 %v3794_v62, %v3793_v6  ;;  %v4279_v6 = vmul.f32 %v7418_v34, %v8367_v11 }
 0x571   :  { %5151 = vset.pattern.permute.xlu2 %v8434_v61  ;;  %v7723_v28 = vadd.f32 %v3895_v1, %v3894_v35  ;;  %v3906_v46 = vadd.f32 %v3905_v4, %v3904_v16 }
 0x572   :  { %4258 = vperm.xlu2 %5151, %v8363_v60   ;;  %v4030_v37 = vmax.f32 %v7682_v39, %v7725_v5  ;;  %v3796_v21 = vrot.slane %v3795_v44, 2  ;;  %v3751_v48 = vpop.permute.xlu1 %3750  ;;  %v4299_v56 = vsel %vm1203_vm7, %v4279_v6, 0.0 }
 0x573   :  { %v4032_v20 = vmax.f32 %v7677_v47, %v7723_v28  ;;  %v3907_v10 = vrot.slane %v3906_v46, 2  ;;  %v3763_v29 = vmul.f32 %v3751_v48, %v8383_v14 }
 0x574   :  { %v3935_v13 = vpop.permute.xlu2 %3934  ;;  %v3797_v52 = vadd.f32 %v3796_v21, %v3795_v44 }
 0x575   :  { %v3908_v53 = vadd.f32 %v3907_v10, %v3906_v46  ;;  %v3965_v51 = vmul.f32 %v3935_v13, %v8413_v38  ;;  %v3807_v24 = vsel %vm1203_vm7, %v3763_v29, 0.0 }
 0x576   :  { %v3798_v50 = vrot.slane %v3797_v52, 1  ;;  %v3808_v63 = vrot.slane %v3807_v24, 4 }
 0x577   :  { %v3909_v18 = vrot.slane %v3908_v53, 1  ;;  %v3973_v49 = vsel %vm1203_vm7, %v3965_v51, 0.0  ;;  %5152 = vset.pattern.permute.xlu1 %v8435_v59 }
 0x578   :  { %v3974_v7 = vrot.slane %v3973_v49, 4  ;;  %v3799_v3 = vadd.f32 %v3798_v50, %v3797_v52  ;;  %v3809_v0 = vadd.f32 %v3808_v63, %v3807_v24  ;;  %4350 = vperm.xlu1 %5152, %v8378_v17   ;;  %v4300_v24 = vrot.slane %v4299_v56, 4 }
 0x579   :  { %v7737_v55 = vadd.f32 %v3909_v18, %v3908_v53 }
 0x57a   :  { %5153 = vset.pattern.permute.xlu2 %v8433_v15  ;;  %v3975_v19 = vadd.f32 %v3974_v7, %v3973_v49  ;;  %v7747_v33 = vmax.f32 %v3825_v9, %v3799_v3  ;;  %v3810_v16 = vrot.slane %v3809_v0, 2 }
 0x57b   :  { %4166 = vperm.xlu2 %5153, %v6764_v54   ;;  %v4034_v35 = vmax.f32 %v7697_v41, %v7737_v55  ;;  %v3835_v4 = vpop.permute.xlu1 %3834 }
 0x57c   :  { %v3976_v1 = vrot.slane %v3975_v19, 2  ;;  %v3947_v31 = vpop.permute.xlu2 %3946  ;;  %v3811_v62 = vadd.f32 %v3810_v16, %v3809_v0  ;;  %v3862_v44 = vmul.f32 %v3835_v4, %v8419_v57 }
 0x57d   :  { %v3968_v46 = vmul.f32 %v3947_v31, %v8329_v42 }
 0x57e   :  { %v3977_v10 = vadd.f32 %v3976_v1, %v3975_v19  ;;  %v3812_v21 = vrot.slane %v3811_v62, 1  ;;  %v3876_v30 = vsel %vm1203_vm7, %v3862_v44, 0.0  ;;  %v4301_v1 = vadd.f32 %v4300_v24, %v4299_v56 }
 0x57f   :  { %v3994_v48 = vsel %vm1203_vm7, %v3968_v46, 0.0  ;;  %v3877_v13 = vrot.slane %v3876_v30, 4 }
 0x580   :  { %v3978_v9 = vrot.slane %v3977_v10, 1  ;;  %v3995_v29 = vrot.slane %v3994_v48, 4  ;;  %v7756_v34 = vadd.f32 %v3812_v21, %v3811_v62  ;;  %5154 = vset.pattern.permute.xlu1 %v8434_v61  ;;  %v4379_v62 = vpop.permute.xlu0 %4378 }
 0x581   :  { %v3878_v51 = vadd.f32 %v3877_v13, %v3876_v30  ;;  %4262 = vperm.xlu1 %5154, %v8385_v36   ;;  %v4302_v30 = vrot.slane %v4301_v1, 2 }
 0x582   :  { %v3979_v53 = vadd.f32 %v3978_v9, %v3977_v10  ;;  %v3996_v52 = vadd.f32 %v3995_v29, %v3994_v48  ;;  %v3827_v18 = vmax.f32 %v7713_v12, %v7756_v34 }
 0x583   :  { %5155 = vset.pattern.permute.xlu2 %v8435_v59  ;;  %v3879_v49 = vrot.slane %v3878_v51, 2  ;;  %v3847_v3 = vpop.permute.xlu1 %3846 }
 0x584   :  { %4358 = vperm.xlu2 %5155, %v8430_v32   ;;  %v7767_v50 = vmax.f32 %v4029_v40, %v3979_v53  ;;  %v3997_v63 = vrot.slane %v3996_v52, 2  ;;  %v3955_v7 = vpop.permute.xlu2 %3954  ;;  %v3865_v19 = vmul.f32 %v3847_v3, %v8341_v23 }
 0x585   :  { %v3970_v0 = vmul.f32 %v3955_v7, %v8371_v2  ;;  %v3880_v6 = vadd.f32 %v3879_v49, %v3878_v51  ;;  %v4303_v49 = vadd.f32 %v4302_v30, %v4301_v1  ;;  %v4388_v1 = vmul.f32 %v4379_v62, %v6172_v22 }
 0x586   :  { %v3998_v16 = vadd.f32 %v3997_v63, %v3996_v52  ;;  %v3897_v4 = vsel %vm1203_vm7, %v3865_v19, 0.0 }
 0x587   :  { %v4008_v31 = vsel %vm1203_vm7, %v3970_v0, 0.0  ;;  %v3881_v58 = vrot.slane %v3880_v6, 1  ;;  %v3898_v40 = vrot.slane %v3897_v4, 4 }
 0x588   :  { %v3999_v46 = vrot.slane %v3998_v16, 1  ;;  %v4009_v45 = vrot.slane %v4008_v31, 4 }
 0x589   :  { %v3882_v10 = vadd.f32 %v3881_v58, %v3880_v6  ;;  %v3899_v48 = vadd.f32 %v3898_v40, %v3897_v4  ;;  %5156 = vset.pattern.permute.xlu1 %v8433_v15 }
 0x58a   :  { %v4000_v44 = vadd.f32 %v3999_v46, %v3998_v16  ;;  %v4010_v21 = vadd.f32 %v4009_v45, %v4008_v31  ;;  %4170 = vperm.xlu1 %5156, %v6400_v43   ;;  %v4304_v16 = vrot.slane %v4303_v49, 1  ;;  %v8436_v31 = vmov 30  }
 0x58b   :  { %v7784_v9 = vmax.f32 %v4030_v37, %v3882_v10  ;;  %v3900_v13 = vrot.slane %v3899_v48, 2  ;;  %v3855_v53 = vpop.permute.xlu1 %3854  ;;  %v4483_v37 = vpop.permute.xlu0 %4482 }
 0x58c   :  { %4362 = vperm.xlu2 %5155, %v8363_v60   ;;  %v7779_v56 = vmax.f32 %v4032_v20, %v4000_v44  ;;  %v4011_v29 = vrot.slane %v4010_v21, 2  ;;  %v3867_v15 = vmul.f32 %v3855_v53, %v8383_v14  ;;  %v4492_v45 = vmul.f32 %v4483_v37, %v6172_v22 }
 0x58d   :  { %v4047_v52 = vpop.permute.xlu2 %4046  ;;  %v3901_v24 = vadd.f32 %v3900_v13, %v3899_v48  ;;  %v4305_v48 = vadd.f32 %v4304_v16, %v4303_v49 }
 0x58e   :  { %v4012_v51 = vadd.f32 %v4011_v29, %v4010_v21  ;;  %v4071_v63 = vmul.f32 %v4047_v52, %v8367_v11  ;;  %v3911_v47 = vsel %vm1203_vm7, %v3867_v15, 0.0  ;;  %v4542_v13 = vsel %vm1203_vm7, %v4492_v45, 0.0 }
 0x58f   :  { %v3902_v20 = vrot.slane %v3901_v24, 1  ;;  %v3912_v7 = vrot.slane %v3911_v47, 4 }
 0x590   :  { %v4013_v28 = vrot.slane %v4012_v51, 1  ;;  %v4091_v39 = vsel %vm1203_vm7, %v4071_v63, 0.0 }
 0x591   :  { %v4092_v5 = vrot.slane %v4091_v39, 4  ;;  %v7790_v0 = vadd.f32 %v3902_v20, %v3901_v24  ;;  %v3913_v19 = vadd.f32 %v3912_v7, %v3911_v47  ;;  %v8437_v24 = vmax.f32 %v7303_v27, %v7350_v26 }
 0x592   :  { %v4014_v3 = vadd.f32 %v4013_v28, %v4012_v51  ;;  %5157 = vset.pattern.permute.xlu1 %v8436_v31  ;;  %v4543_v20 = vrot.slane %v4542_v13, 4 }
 0x593   :  { %v4093_v6 = vadd.f32 %v4092_v5, %v4091_v39  ;;  %v4033_v46 = vmax.f32 %v7747_v33, %v7790_v0  ;;  %v3914_v58 = vrot.slane %v3913_v19, 2  ;;  %4454 = vperm.xlu1 %5157, %v8378_v17   ;;  %v7814_v63 = vmax.f32 %v8437_v24, %v4305_v48 }
 0x594   :  { %5158 = vset.pattern.permute.xlu2 %v8436_v31  ;;  %v7798_v4 = vmax.f32 %v4034_v35, %v4014_v3  ;;  %v3939_v44 = vpop.permute.xlu1 %3938  ;;  %v4438_v35 = vsel %vm1203_vm7, %v4388_v1, 0.0  ;;  %v4544_v34 = vadd.f32 %v4543_v20, %v4542_v13 }
 0x595   :  { %4458 = vperm.xlu2 %5158, %v8345_v25   ;;  %v4094_v40 = vrot.slane %v4093_v6, 2  ;;  %v3915_v10 = vadd.f32 %v3914_v58, %v3913_v19  ;;  %v3966_v62 = vmul.f32 %v3939_v44, %v8419_v57  ;;  %v4439_v49 = vrot.slane %v4438_v35, 4 }
 0x596   :  { %v4545_v48 = vrot.slane %v4544_v34, 2 }
 0x597   :  { %v4143_v21 = vpop.permute.xlu2 %4142  ;;  %v4095_v41 = vadd.f32 %v4094_v40, %v4093_v6  ;;  %v3916_v30 = vrot.slane %v3915_v10, 1  ;;  %v3980_v29 = vsel %vm1203_vm7, %v3966_v62, 0.0  ;;  %v4440_v19 = vadd.f32 %v4439_v49, %v4438_v35 }
 0x598   :  { %v4173_v55 = vmul.f32 %v4143_v21, %v8413_v38  ;;  %v3981_v53 = vrot.slane %v3980_v29, 4 }
 0x599   :  { %v4096_v17 = vrot.slane %v4095_v41, 1  ;;  %v3917_v52 = vadd.f32 %v3916_v30, %v3915_v10  ;;  %v4441_v44 = vrot.slane %v4440_v19, 2 }
 0x59a   :  { %v4181_v15 = vsel %vm1203_vm7, %v4173_v55, 0.0  ;;  %v3982_v28 = vadd.f32 %v3981_v53, %v3980_v29 }
 0x59b   :  { %v4182_v51 = vrot.slane %v4181_v15, 4  ;;  %v7816_v47 = vadd.f32 %v4096_v17, %v4095_v41  ;;  %v7821_v7 = vmax.f32 %v3827_v18, %v3917_v52  ;;  %5159 = vset.pattern.permute.xlu1 %v8434_v61  ;;  %v4442_v17 = vadd.f32 %v4441_v44, %v4440_v19 }
 0x59c   :  { %v3983_v26 = vrot.slane %v3982_v28, 2  ;;  %v3951_v5 = vpop.permute.xlu1 %3950  ;;  %4270 = vperm.xlu1 %5159, %v6764_v54  }
 0x59d   :  { %v4183_v39 = vadd.f32 %v4182_v51, %v4181_v15  ;;  %4462 = vperm.xlu2 %5158, %v8430_v32   ;;  %v4239_v27 = vmax.f32 %v7814_v63, %v7816_v47  ;;  %v3969_v3 = vmul.f32 %v3951_v5, %v8341_v23  ;;  %v4546_v51 = vadd.f32 %v4545_v48, %v4544_v34 }
 0x59e   :  { %v3984_v16 = vadd.f32 %v3983_v26, %v3982_v28  ;;  %v8438_v26 = vld [vmem:[#allocation43_spill] sm:$0xff] }
 0x59f   :  { %v4184_v37 = vrot.slane %v4183_v39, 2  ;;  %v4001_v6 = vsel %vm1203_vm7, %v3969_v3, 0.0  ;;  %v3971_v5 = vmul.f32 %v8438_v26, %v8383_v14  ;;  %v4443_v3 = vrot.slane %v4442_v17, 1 }
 0x5a0   :  { %v4055_v12 = vpop.permute.xlu2 %4054  ;;  %v3985_v61 = vrot.slane %v3984_v16, 1  ;;  %v4002_v58 = vrot.slane %v4001_v6, 4 }
 0x5a1   :  { %v4185_v18 = vadd.f32 %v4184_v37, %v4183_v39  ;;  %v4073_v1 = vmul.f32 %v4055_v12, %v8341_v23 }
 0x5a2   :  { %v7832_v10 = vadd.f32 %v3985_v61, %v3984_v16  ;;  %v4003_v62 = vadd.f32 %v4002_v58, %v4001_v6  ;;  %v4547_v6 = vrot.slane %v4546_v51, 1  ;;  %v8439_v61 = vmov 31  }
 0x5a3   :  { %v4186_v45 = vrot.slane %v4185_v18, 1  ;;  %v4105_v40 = vsel %vm1203_vm7, %v4073_v1, 0.0  ;;  %v4015_v58 = vsel %vm1203_vm7, %v3971_v5, 0.0 }
 0x5a4   :  { %v4106_v21 = vrot.slane %v4105_v40, 4  ;;  %v4238_v55 = vmax.f32 %v7784_v9, %v7832_v10  ;;  %v4004_v35 = vrot.slane %v4003_v62, 2  ;;  %4274 = vperm.xlu1 %5159, %v6400_v43   ;;  %v4016_v48 = vrot.slane %v4015_v58, 4 }
 0x5a5   :  { %v4187_v41 = vadd.f32 %v4186_v45, %v4185_v18  ;;  %5160 = vset.pattern.permute.xlu2 %v8435_v59  ;;  %v4039_v13 = vpop.permute.xlu1 %4038 }
 0x5a6   :  { %v4107_v30 = vadd.f32 %v4106_v21, %v4105_v40  ;;  %4370 = vperm.xlu2 %5160, %v6683_v8   ;;  %v4005_v53 = vadd.f32 %v4004_v35, %v4003_v62  ;;  %v4069_v52 = vmul.f32 %v4039_v13, %v8413_v38  ;;  %v4444_v62 = vadd.f32 %v4443_v3, %v4442_v17 }
 0x5a7   :  { %v4237_v29 = vmax.f32 %v7767_v50, %v4187_v41  ;;  %v4548_v41 = vadd.f32 %v4547_v6, %v4546_v51 }
 0x5a8   :  { %v4108_v15 = vrot.slane %v4107_v30, 2  ;;  %v4006_v49 = vrot.slane %v4005_v53, 1  ;;  %v4077_v20 = vsel %vm1203_vm7, %v4069_v52, 0.0  ;;  %v8440_v52 = vld [vmem:[#allocation42_spill] sm:$0xff] }
 0x5a9   :  { %v3963_v24 = vpop.permute.xlu2 %3962  ;;  %v4078_v37 = vrot.slane %v4077_v20, 4 }
 0x5aa   :  { %v4109_v28 = vadd.f32 %v4108_v15, %v4107_v30  ;;  %v3972_v39 = vmul.f32 %v3963_v24, %v6172_v22  ;;  %v4007_v50 = vadd.f32 %v4006_v49, %v4005_v53  ;;  %v4036_v24 = vmax.f32 %v8440_v52, %v4444_v62 }
 0x5ab   :  { %v4079_v12 = vadd.f32 %v4078_v37, %v4077_v20 }
 0x5ac   :  { %v4110_v16 = vrot.slane %v4109_v28, 1  ;;  %v4022_v19 = vsel %vm1203_vm7, %v3972_v39, 0.0  ;;  %v7849_v34 = vmax.f32 %v4033_v46, %v4007_v50  ;;  %5161 = vset.pattern.permute.xlu1 %v8436_v31  ;;  %v4017_v39 = vadd.f32 %v4016_v48, %v4015_v58 }
 0x5ad   :  { %v4023_v18 = vrot.slane %v4022_v19, 4  ;;  %v4080_v45 = vrot.slane %v4079_v12, 2  ;;  %v4051_v44 = vpop.permute.xlu1 %4050  ;;  %4466 = vperm.xlu1 %5161, %v8363_v60   ;;  %v7865_v5 = vmax.f32 %v4036_v24, %v4548_v41 }
 0x5ae   :  { %v7851_v1 = vadd.f32 %v4110_v16, %v4109_v28  ;;  %5164 = vset.pattern.permute.xlu2 %v8439_v61  ;;  %v4072_v0 = vmul.f32 %v4051_v44, %v8329_v42  ;;  %v4018_v6 = vrot.slane %v4017_v39, 2 }
 0x5af   :  { %v4024_v40 = vadd.f32 %v4023_v18, %v4022_v19  ;;  %4562 = vperm.xlu2 %5164, %v8345_v25   ;;  %v4081_v46 = vadd.f32 %v4080_v45, %v4079_v12 }
 0x5b0   :  { %v4241_v33 = vmax.f32 %v7849_v34, %v7851_v1  ;;  %v4098_v35 = vsel %vm1203_vm7, %v4072_v0, 0.0  ;;  %v4019_v48 = vadd.f32 %v4018_v6, %v4017_v39 }
 0x5b1   :  { %v4025_v21 = vrot.slane %v4024_v40, 2  ;;  %v4082_v13 = vrot.slane %v4081_v46, 1  ;;  %v4099_v15 = vrot.slane %v4098_v35, 4 }
 0x5b2   :  { %v4247_v30 = vpop.permute.xlu2 %4246 }
 0x5b3   :  { %v4026_v53 = vadd.f32 %v4025_v21, %v4024_v40  ;;  %v4277_v25 = vmul.f32 %v4247_v30, %v8413_v38  ;;  %v4083_v17 = vadd.f32 %v4082_v13, %v4081_v46  ;;  %v4100_v28 = vadd.f32 %v4099_v15, %v4098_v35 }
 0x5b5   :  { %v4027_v49 = vrot.slane %v4026_v53, 1  ;;  %v4285_v20 = vsel %vm1203_vm7, %v4277_v25, 0.0  ;;  %v7867_v51 = vmax.f32 %v4237_v29, %v4083_v17  ;;  %v4101_v3 = vrot.slane %v4100_v28, 2  ;;  %5165 = vset.pattern.permute.xlu1 %v8435_v59 }
 0x5b6   :  { %v4286_v26 = vrot.slane %v4285_v20, 4  ;;  %v4147_v16 = vpop.permute.xlu1 %4146  ;;  %4374 = vperm.xlu1 %5165, %v6764_v54   ;;  %v4020_v17 = vrot.slane %v4019_v48, 1 }
 0x5b7   :  { %v7869_v37 = vadd.f32 %v4027_v49, %v4026_v53  ;;  %5166 = vset.pattern.permute.xlu2 %v8436_v31  ;;  %v4102_v12 = vadd.f32 %v4101_v3, %v4100_v28  ;;  %v4174_v29 = vmul.f32 %v4147_v16, %v8419_v57 }
 0x5b8   :  { %v4287_v50 = vadd.f32 %v4286_v26, %v4285_v20  ;;  %4470 = vperm.xlu2 %5166, %v8385_v36  }
 0x5b9   :  { %v4244_v19 = vmax.f32 %v7865_v5, %v7869_v37  ;;  %v4103_v58 = vrot.slane %v4102_v12, 1  ;;  %v4188_v45 = vsel %vm1203_vm7, %v4174_v29, 0.0 }
 0x5ba   :  { %v4288_v18 = vrot.slane %v4287_v50, 2  ;;  %v4189_v59 = vrot.slane %v4188_v45, 4 }
 0x5bb   :  { %v4063_v31 = vpop.permute.xlu2 %4062  ;;  %v7880_v62 = vadd.f32 %v4103_v58, %v4102_v12 }
 0x5bc   :  { %v4289_v40 = vadd.f32 %v4288_v18, %v4287_v50  ;;  %v4075_v44 = vmul.f32 %v4063_v31, %v8383_v14  ;;  %v4190_v46 = vadd.f32 %v4189_v59, %v4188_v45  ;;  %v4021_v18 = vadd.f32 %v4020_v17, %v4019_v48 }
 0x5bd   :  { %v4240_v41 = vmax.f32 %v7779_v56, %v7880_v62 }
 0x5be   :  { %v4290_v0 = vrot.slane %v4289_v40, 1  ;;  %v4119_v21 = vsel %vm1203_vm7, %v4075_v44, 0.0  ;;  %v4191_v13 = vrot.slane %v4190_v46, 2  ;;  %v4151_v53 = vpop.permute.xlu1 %4150  ;;  %5167 = vset.pattern.permute.xlu1 %v8439_v61  ;;  %v4035_v31 = vmax.f32 %v7821_v7, %v4021_v18 }
 0x5bf   :  { %v4120_v35 = vrot.slane %v4119_v21, 4  ;;  %v4175_v25 = vmul.f32 %v4151_v53, %v8367_v11  ;;  %4566 = vperm.xlu1 %5167, %v8430_v32  }
 0x5c0   :  { %v7885_v30 = vadd.f32 %v4290_v0, %v4289_v40  ;;  %4474 = vperm.xlu2 %5166, %v6683_v8   ;;  %v4192_v24 = vadd.f32 %v4191_v13, %v4190_v46 }
 0x5c1   :  { %v4121_v15 = vadd.f32 %v4120_v35, %v4119_v21  ;;  %v4195_v28 = vsel %vm1203_vm7, %v4175_v25, 0.0 }
 0x5c2   :  { %v4445_v52 = vmax.f32 %v7867_v51, %v7885_v30  ;;  %v4193_v39 = vrot.slane %v4192_v24, 1  ;;  %v4196_v26 = vrot.slane %v4195_v28, 4 }
 0x5c3   :  { %v4122_v49 = vrot.slane %v4121_v15, 2  ;;  %v4067_v20 = vpop.permute.xlu2 %4066 }
 0x5c4   :  { %v4076_v3 = vmul.f32 %v4067_v20, %v6172_v22  ;;  %v4194_v16 = vadd.f32 %v4193_v39, %v4192_v24  ;;  %v4197_v12 = vadd.f32 %v4196_v26, %v4195_v28 }
 0x5c5   :  { %v4123_v50 = vadd.f32 %v4122_v49, %v4121_v15 }
 0x5c6   :  { %v4126_v29 = vsel %vm1203_vm7, %v4076_v3, 0.0  ;;  %v7899_v58 = vmax.f32 %v4238_v55, %v4194_v16  ;;  %v4198_v45 = vrot.slane %v4197_v12, 2 }
 0x5c7   :  { %v4124_v32 = vrot.slane %v4123_v50, 1  ;;  %v4127_v6 = vrot.slane %v4126_v29, 4  ;;  %4570 = vperm.xlu1 %5167, %v8363_v60   ;;  %v4059_v44 = vpop.permute.xlu1 %4058 }
 0x5c8   :  { %4478 = vperm.xlu2 %5166, %v6764_v54   ;;  %v4199_v0 = vadd.f32 %v4198_v45, %v4197_v12  ;;  %v4074_v46 = vmul.f32 %v4059_v44, %v8371_v2 }
 0x5c9   :  { %v4125_v40 = vadd.f32 %v4124_v32, %v4123_v50  ;;  %v4128_v59 = vadd.f32 %v4127_v6, %v4126_v29 }
 0x5ca   :  { %v4200_v35 = vrot.slane %v4199_v0, 1  ;;  %v4112_v9 = vsel %vm1203_vm7, %v4074_v46, 0.0 }
 0x5cb   :  { %v7905_v21 = vmax.f32 %v4035_v31, %v4125_v40  ;;  %v4129_v48 = vrot.slane %v4128_v59, 2  ;;  %v4113_v13 = vrot.slane %v4112_v9, 4 }
 0x5cc   :  { %v4259_v10 = vpop.permute.xlu2 %4258  ;;  %v4201_v7 = vadd.f32 %v4200_v35, %v4199_v0 }
 0x5cd   :  { %v4130_v55 = vadd.f32 %v4129_v48, %v4128_v59  ;;  %v4280_v53 = vmul.f32 %v4259_v10, %v8329_v42  ;;  %v4114_v25 = vadd.f32 %v4113_v13, %v4112_v9 }
 0x5ce   :  { %v7913_v24 = vmax.f32 %v4239_v27, %v4201_v7 }
 0x5cf   :  { %v4131_v15 = vrot.slane %v4130_v55, 1  ;;  %v4306_v60 = vsel %vm1203_vm7, %v4280_v53, 0.0  ;;  %v4115_v28 = vrot.slane %v4114_v25, 2  ;;  %4574 = vperm.xlu1 %5167, %v8385_v36  }
 0x5d0   :  { %v4307_v17 = vrot.slane %v4306_v60, 4  ;;  %5169 = vset.pattern.permute.xlu2 %v8439_v61  ;;  %v4251_v39 = vpop.permute.xlu1 %4250 }
 0x5d1   :  { %v4132_v49 = vadd.f32 %v4131_v15, %v4130_v55  ;;  %4578 = vperm.xlu2 %5169, %v6683_v8   ;;  %v4116_v3 = vadd.f32 %v4115_v28, %v4114_v25  ;;  %v4278_v63 = vmul.f32 %v4251_v39, %v8419_v57 }
 0x5d2   :  { %v4308_v20 = vadd.f32 %v4307_v17, %v4306_v60 }
 0x5d3   :  { %v7921_v26 = vmax.f32 %v4244_v19, %v4132_v49  ;;  %v4117_v27 = vrot.slane %v4116_v3, 1  ;;  %v4292_v61 = vsel %vm1203_vm7, %v4278_v63, 0.0 }
 0x5d4   :  { %v4309_v47 = vrot.slane %v4308_v20, 2  ;;  %v4293_v12 = vrot.slane %v4292_v61, 4 }
 0x5d5   :  { %v4167_v50 = vpop.permute.xlu2 %4166  ;;  %v7926_v36 = vadd.f32 %v4117_v27, %v4116_v3 }
 0x5d6   :  { %v4310_v16 = vadd.f32 %v4309_v47, %v4308_v20  ;;  %v4179_v8 = vmul.f32 %v4167_v50, %v8383_v14  ;;  %v4294_v18 = vadd.f32 %v4293_v12, %v4292_v61 }
 0x5d7   :  { %v4242_v37 = vmax.f32 %v7798_v4, %v7926_v36  ;;  %4582 = vperm.xlu1 %5167, %v6764_v54  }
 0x5d8   :  { %v4311_v29 = vrot.slane %v4310_v16, 1  ;;  %v4223_v5 = vsel %vm1203_vm7, %v4179_v8, 0.0  ;;  %v4295_v6 = vrot.slane %v4294_v18, 2 }
 0x5d9   :  { %v4224_v19 = vrot.slane %v4223_v5, 4  ;;  %4586 = vperm.xlu2 %5169, %v6400_v43   ;;  %v4159_v31 = vpop.permute.xlu1 %4158 }
 0x5da   :  { %v4312_v32 = vadd.f32 %v4311_v29, %v4310_v16  ;;  %v4296_v59 = vadd.f32 %v4295_v6, %v4294_v18  ;;  %v4177_v44 = vmul.f32 %v4159_v31, %v8341_v23 }
 0x5db   :  { %v4225_v45 = vadd.f32 %v4224_v19, %v4223_v5 }
 0x5dc   :  { %v7936_v40 = vmax.f32 %v4240_v41, %v4312_v32  ;;  %v4297_v46 = vrot.slane %v4296_v59, 1  ;;  %v4209_v4 = vsel %vm1203_vm7, %v4177_v44, 0.0 }
 0x5dd   :  { %v4226_v0 = vrot.slane %v4225_v45, 2  ;;  %v4210_v35 = vrot.slane %v4209_v4, 4 }
 0x5de   :  { %v4359_v48 = vpop.permute.xlu2 %4358  ;;  %v7941_v9 = vadd.f32 %v4297_v46, %v4296_v59 }
 0x5df   :  { %v4227_v43 = vadd.f32 %v4226_v0, %v4225_v45  ;;  %v4383_v54 = vmul.f32 %v4359_v48, %v8367_v11  ;;  %v4211_v55 = vadd.f32 %v4210_v35, %v4209_v4 }
 0x5e0   :  { %v4446_v62 = vmax.f32 %v7899_v58, %v7941_v9 }
 0x5e1   :  { %v4228_v10 = vrot.slane %v4227_v43, 1  ;;  %v4403_v56 = vsel %vm1203_vm7, %v4383_v54, 0.0  ;;  %v4212_v53 = vrot.slane %v4211_v55, 2  ;;  %v4163_v7 = vpop.permute.xlu1 %4162 }
 0x5e2   :  { %v4404_v41 = vrot.slane %v4403_v56, 4  ;;  %v4178_v25 = vmul.f32 %v4163_v7, %v8371_v2 }
 0x5e3   :  { %v7946_v13 = vadd.f32 %v4228_v10, %v4227_v43  ;;  %v4213_v17 = vadd.f32 %v4212_v53, %v4211_v55 }
 0x5e4   :  { %v4405_v15 = vadd.f32 %v4404_v41, %v4403_v56  ;;  %v4216_v28 = vsel %vm1203_vm7, %v4178_v25, 0.0 }
 0x5e5   :  { %v4243_v60 = vmax.f32 %v7905_v21, %v7946_v13  ;;  %v4214_v39 = vrot.slane %v4213_v17, 1  ;;  %v4217_v3 = vrot.slane %v4216_v28, 4 }
 0x5e6   :  { %v4406_v49 = vrot.slane %v4405_v15, 2  ;;  %v4363_v20 = vpop.permute.xlu2 %4362 }
 0x5e7   :  { %v4384_v63 = vmul.f32 %v4363_v20, %v8329_v42  ;;  %v4215_v27 = vadd.f32 %v4214_v39, %v4213_v17  ;;  %v4218_v61 = vadd.f32 %v4217_v3, %v4216_v28 }
 0x5e8   :  { %v4407_v47 = vadd.f32 %v4406_v49, %v4405_v15 }
 0x5e9   :  { %v4410_v50 = vsel %vm1203_vm7, %v4384_v63, 0.0  ;;  %v7957_v8 = vmax.f32 %v4241_v33, %v4215_v27  ;;  %v4219_v36 = vrot.slane %v4218_v61, 2 }
 0x5ea   :  { %v4408_v16 = vrot.slane %v4407_v47, 1  ;;  %v4411_v12 = vrot.slane %v4410_v50, 4  ;;  %v4351_v5 = vpop.permute.xlu1 %4350 }
 0x5eb   :  { %v4220_v19 = vadd.f32 %v4219_v36, %v4218_v61  ;;  %v4381_v32 = vmul.f32 %v4351_v5, %v8413_v38 }
 0x5ec   :  { %v7959_v29 = vadd.f32 %v4408_v16, %v4407_v47  ;;  %v4412_v18 = vadd.f32 %v4411_v12, %v4410_v50 }
 0x5ed   :  { %v4221_v31 = vrot.slane %v4220_v19, 1  ;;  %v4389_v59 = vsel %vm1203_vm7, %v4381_v32, 0.0 }
 0x5ee   :  { %v4447_v6 = vmax.f32 %v7913_v24, %v7959_v29  ;;  %v4413_v45 = vrot.slane %v4412_v18, 2  ;;  %v4390_v34 = vrot.slane %v4389_v59, 4 }
 0x5ef   :  { %v4459_v44 = vpop.permute.xlu2 %4458  ;;  %v4222_v1 = vadd.f32 %v4221_v31, %v4220_v19 }
 0x5f0   :  { %v4414_v0 = vadd.f32 %v4413_v45, %v4412_v18  ;;  %v4391_v46 = vadd.f32 %v4390_v34, %v4389_v59  ;;  %v4486_v45 = vmul.f32 %v4459_v44, %v8419_v57 }
 0x5f1   :  { %v7965_v4 = vmax.f32 %v4242_v37, %v4222_v1 }
 0x5f2   :  { %v4415_v33 = vrot.slane %v4414_v0, 1  ;;  %v4392_v43 = vrot.slane %v4391_v46, 2  ;;  %v4500_v59 = vsel %vm1203_vm7, %v4486_v45, 0.0 }
 0x5f3   :  { %v4263_v35 = vpop.permute.xlu1 %4262  ;;  %v4501_v34 = vrot.slane %v4500_v59, 4 }
 0x5f4   :  { %v7967_v48 = vadd.f32 %v4415_v33, %v4414_v0  ;;  %v4393_v10 = vadd.f32 %v4392_v43, %v4391_v46  ;;  %v4281_v55 = vmul.f32 %v4263_v35, %v8341_v23 }
 0x5f5   :  { %v4502_v43 = vadd.f32 %v4501_v34, %v4500_v59 }
 0x5f6   :  { %v4448_v54 = vmax.f32 %v7936_v40, %v7967_v48  ;;  %v4394_v41 = vrot.slane %v4393_v10, 1  ;;  %v4313_v53 = vsel %vm1203_vm7, %v4281_v55, 0.0 }
 0x5f7   :  { %v4463_v56 = vpop.permute.xlu2 %4462  ;;  %v4314_v7 = vrot.slane %v4313_v53, 4  ;;  %v4503_v55 = vrot.slane %v4502_v43, 2 }
 0x5f8   :  { %v4395_v15 = vadd.f32 %v4394_v41, %v4393_v10  ;;  %v4487_v0 = vmul.f32 %v4463_v56, %v8367_v11 }
 0x5f9   :  { %v4315_v25 = vadd.f32 %v4314_v7, %v4313_v53 }
 0x5fa   :  { %v7976_v37 = vmax.f32 %v4445_v52, %v4395_v15  ;;  %v4507_v33 = vsel %vm1203_vm7, %v4487_v0, 0.0  ;;  %v4504_v15 = vadd.f32 %v4503_v55, %v4502_v43 }
 0x5fb   :  { %v4316_v17 = vrot.slane %v4315_v25, 2  ;;  %v4508_v35 = vrot.slane %v4507_v33, 4 }
 0x5fc   :  { %v4171_v49 = vpop.permute.xlu1 %4170 }
 0x5fd   :  { %v4317_v28 = vadd.f32 %v4316_v17, %v4315_v25  ;;  %v4180_v20 = vmul.f32 %v4171_v49, %v6172_v22  ;;  %v4509_v41 = vadd.f32 %v4508_v35, %v4507_v33 }
 0x5ff   :  { %v4318_v3 = vrot.slane %v4317_v28, 1  ;;  %v4230_v63 = vsel %vm1203_vm7, %v4180_v20, 0.0  ;;  %v4510_v25 = vrot.slane %v4509_v41, 2 }
 0x600   :  { %v4371_v39 = vpop.permute.xlu2 %4370  ;;  %v4231_v47 = vrot.slane %v4230_v63, 4 }
 0x601   :  { %v7980_v27 = vadd.f32 %v4318_v3, %v4317_v28  ;;  %v4386_v7 = vmul.f32 %v4371_v39, %v8371_v2  ;;  %v4505_v3 = vrot.slane %v4504_v15, 1 }
 0x602   :  { %v4232_v61 = vadd.f32 %v4231_v47, %v4230_v63  ;;  %v4511_v63 = vadd.f32 %v4510_v25, %v4509_v41 }
 0x603   :  { %v4449_v50 = vmax.f32 %v7957_v8, %v7980_v27  ;;  %v4424_v28 = vsel %vm1203_vm7, %v4386_v7, 0.0 }
 0x604   :  { %v4233_v16 = vrot.slane %v4232_v61, 2  ;;  %v4512_v45 = vrot.slane %v4511_v63, 1 }
 0x605   :  { %v4455_v51 = vpop.permute.xlu1 %4454 }
 0x606   :  { %v4234_v30 = vadd.f32 %v4233_v16, %v4232_v61  ;;  %v4485_v10 = vmul.f32 %v4455_v51, %v8413_v38  ;;  %v4425_v61 = vrot.slane %v4424_v28, 4 }
 0x608   :  { %v4235_v12 = vrot.slane %v4234_v30, 1  ;;  %v4493_v44 = vsel %vm1203_vm7, %v4485_v10, 0.0  ;;  %v4426_v59 = vadd.f32 %v4425_v61, %v4424_v28 }
 0x609   :  { %v4563_v52 = vpop.permute.xlu2 %4562  ;;  %v4494_v17 = vrot.slane %v4493_v44, 4 }
 0x60a   :  { %v7984_v36 = vadd.f32 %v4235_v12, %v4234_v30  ;;  %v4590_v56 = vmul.f32 %v4563_v52, %v8419_v57  ;;  %v4506_v12 = vadd.f32 %v4505_v3, %v4504_v15  ;;  %v4427_v15 = vrot.slane %v4426_v59, 2 }
 0x60b   :  { %v4495_v39 = vadd.f32 %v4494_v17, %v4493_v44  ;;  %v4513_v44 = vadd.f32 %v4512_v45, %v4511_v63 }
 0x60c   :  { %v4452_v18 = vmax.f32 %v7921_v26, %v7984_v36  ;;  %v4604_v38 = vsel %vm1203_vm7, %v4590_v56, 0.0 }
 0x60d   :  { %v4605_v51 = vrot.slane %v4604_v38, 4  ;;  %v4496_v0 = vrot.slane %v4495_v39, 2 }
 0x60e   :  { %v4271_v5 = vpop.permute.xlu1 %4270 }
 0x60f   :  { %v4283_v30 = vmul.f32 %v4271_v5, %v8383_v14  ;;  %v4606_v35 = vadd.f32 %v4605_v51, %v4604_v38  ;;  %v4497_v25 = vadd.f32 %v4496_v0, %v4495_v39 }
 0x611   :  { %v4327_v5 = vsel %vm1203_vm7, %v4283_v30, 0.0  ;;  %v4607_v58 = vrot.slane %v4606_v35, 2  ;;  %v4498_v61 = vrot.slane %v4497_v25, 1 }
 0x612   :  { %v4471_v19 = vpop.permute.xlu2 %4470  ;;  %v4328_v56 = vrot.slane %v4327_v5, 4 }
 0x613   :  { %v4489_v20 = vmul.f32 %v4471_v19, %v8341_v23  ;;  %v4608_v45 = vadd.f32 %v4607_v58, %v4606_v35  ;;  %v4499_v29 = vadd.f32 %v4498_v61, %v4497_v25 }
 0x614   :  { %v4329_v51 = vadd.f32 %v4328_v56, %v4327_v5  ;;  %v4733_v5 = vld [vmem:[%s8117_s8] sm:$0xff] }
 0x615   :  { %v4521_v57 = vsel %vm1203_vm7, %v4489_v20, 0.0  ;;  %4913 = vmatpush.xpose.msk.msrb.mxu3 %vm1203_vm7, %v4733_v5  ;;  %v8037_v61 = vmax.f32 %v7976_v37, %v4499_v29 }
 0x616   :  { %v4275_v32 = vpop.permute.xlu1 %4274  ;;  %v4522_v33 = vrot.slane %v4521_v57, 4 }
 0x617   :  { %v4284_v41 = vmul.f32 %v4275_v32, %v6172_v22 }
 0x618   :  { %v4523_v17 = vadd.f32 %v4522_v33, %v4521_v57 }
 0x61a   :  { %v4475_v31 = vpop.permute.xlu2 %4474 }
 0x61b   :  { %v4490_v43 = vmul.f32 %v4475_v31, %v8371_v2 }
 0x61d   :  { %v4528_v28 = vsel %vm1203_vm7, %v4490_v43, 0.0 }
 0x61e   :  { %v4529_v39 = vrot.slane %v4528_v28, 4 }
 0x61f   :  { %v4467_v1 = vpop.permute.xlu1 %4466 }
 0x620   :  { %v4488_v47 = vmul.f32 %v4467_v1, %v8329_v42  ;;  %v4530_v33 = vadd.f32 %v4529_v39, %v4528_v28 }
 0x622   :  { %v4479_v46 = vpop.permute.xlu2 %4478  ;;  %v4514_v19 = vsel %vm1203_vm7, %v4488_v47, 0.0  ;;  %v4428_v47 = vadd.f32 %v4427_v15, %v4426_v59  ;;  %v8028_v59 = vmax.f32 %v4447_v6, %v4513_v44  ;;  %v4609_v6 = vrot.slane %v4608_v45, 1 }
 0x623   :  { %v4515_v10 = vrot.slane %v4514_v19, 4  ;;  %v4531_v28 = vrot.slane %v4530_v33, 2 }
 0x625   :  { %v4516_v9 = vadd.f32 %v4515_v10, %v4514_v19  ;;  %v4330_v10 = vrot.slane %v4329_v51, 2 }
 0x628   :  { %v4375_v53 = vpop.permute.xlu1 %4374 }
 0x629   :  { %v4387_v34 = vmul.f32 %v4375_v53, %v8383_v14 }
 0x62b   :  { %v4579_v49 = vpop.permute.xlu2 %4578  ;;  %v4431_v31 = vsel %vm1203_vm7, %v4387_v34, 0.0 }
 0x62c   :  { %v4594_v7 = vmul.f32 %v4579_v49, %v8371_v2  ;;  %v4334_v2 = vsel %vm1203_vm7, %v4284_v41, 0.0  ;;  %v4432_v49 = vrot.slane %v4431_v31, 4 }
 0x62e   :  { %v4632_v63 = vsel %vm1203_vm7, %v4594_v7, 0.0  ;;  %v4433_v19 = vadd.f32 %v4432_v49, %v4431_v31 }
 0x630   :  { %v4434_v44 = vrot.slane %v4433_v19, 2 }
 0x631   :  { %v4567_v16 = vpop.permute.xlu1 %4566 }
 0x632   :  { %v4591_v52 = vmul.f32 %v4567_v16, %v8367_v11  ;;  %v8011_v11 = vmax.f32 %v4446_v62, %v4506_v12  ;;  %v4491_v62 = vmul.f32 %v4479_v46, %v8383_v14  ;;  %v4517_v46 = vrot.slane %v4516_v9, 2 }
 0x633   :  { %v4587_v55 = vpop.permute.xlu2 %4586  ;;  %v4633_v12 = vrot.slane %v4632_v63, 4 }
 0x634   :  { %v4611_v1 = vsel %vm1203_vm7, %v4591_v52, 0.0  ;;  %v4596_v20 = vmul.f32 %v4587_v55, %v6172_v22  ;;  %v4524_v22 = vrot.slane %v4523_v17, 2  ;;  %v4335_v52 = vrot.slane %v4334_v2, 4 }
 0x635   :  { %v4612_v53 = vrot.slane %v4611_v1, 4  ;;  %v4518_v15 = vadd.f32 %v4517_v46, %v4516_v9  ;;  %v4634_v31 = vadd.f32 %v4633_v12, %v4632_v63  ;;  %v4610_v63 = vadd.f32 %v4609_v6, %v4608_v45 }
 0x636   :  { %v4646_v30 = vsel %vm1203_vm7, %v4596_v20, 0.0  ;;  %v4525_v55 = vadd.f32 %v4524_v22, %v4523_v17  ;;  %v4331_v17 = vadd.f32 %v4330_v10, %v4329_v51  ;;  %v4435_v22 = vadd.f32 %v4434_v44, %v4433_v19 }
 0x637   :  { %v4613_v38 = vadd.f32 %v4612_v53, %v4611_v1  ;;  %v4429_v1 = vrot.slane %v4428_v47, 1  ;;  %v4647_v43 = vrot.slane %v4646_v30, 4  ;;  %v4336_v53 = vadd.f32 %v4335_v52, %v4334_v2 }
 0x638   :  { %v4519_v2 = vrot.slane %v4518_v15, 1  ;;  %v4635_v9 = vrot.slane %v4634_v31, 2  ;;  %v4332_v52 = vrot.slane %v4331_v17, 1  ;;  %v8041_v45 = vmax.f32 %v8011_v11, %v4610_v63 }
 0x639   :  { %v4571_v3 = vpop.permute.xlu1 %4570  ;;  %v4614_v0 = vrot.slane %v4613_v38, 2  ;;  %v4648_v20 = vadd.f32 %v4647_v43, %v4646_v30  ;;  %v4430_v39 = vadd.f32 %v4429_v1, %v4428_v47  ;;  %v4436_v19 = vrot.slane %v4435_v22, 1 }
 0x63a   :  { %v4592_v32 = vmul.f32 %v4571_v3, %v8329_v42  ;;  %v4535_v42 = vsel %vm1203_vm7, %v4491_v62, 0.0  ;;  %v4526_v62 = vrot.slane %v4525_v55, 1  ;;  %v4520_v47 = vadd.f32 %v4519_v2, %v4518_v15 }
 0x63b   :  { %v4536_v41 = vrot.slane %v4535_v42, 4  ;;  %v4615_v56 = vadd.f32 %v4614_v0, %v4613_v38  ;;  %v4532_v38 = vadd.f32 %v4531_v28, %v4530_v33  ;;  %v4649_v30 = vrot.slane %v4648_v20, 2 }
 0x63c   :  { %v4618_v16 = vsel %vm1203_vm7, %v4592_v32, 0.0  ;;  %v4527_v46 = vadd.f32 %v4526_v62, %v4525_v55  ;;  %v4333_v55 = vadd.f32 %v4332_v52, %v4331_v17  ;;  %v4552_v11 = vmax.f32 %v4448_v54, %v4520_v47 }
 0x63d   :  { %v4619_v57 = vrot.slane %v4618_v16, 4  ;;  %v4537_v32 = vadd.f32 %v4536_v41, %v4535_v42  ;;  %v4533_v5 = vrot.slane %v4532_v38, 1  ;;  %v4650_v33 = vadd.f32 %v4649_v30, %v4648_v20 }
 0x63e   :  { %v4347_v8 = vmax.f32 %v4243_v60, %v4333_v55  ;;  %v4661_v54 = vmul.f32 %v8037_v61, %v8037_v61 }
 0x63f   :  { %v4620_v34 = vadd.f32 %v4619_v57, %v4618_v16  ;;  %v4337_v16 = vrot.slane %v4336_v53, 2  ;;  %v4538_v51 = vrot.slane %v4537_v32, 2  ;;  %v4534_v28 = vadd.f32 %v4533_v5, %v4532_v38 }
 0x640   :  { %v4651_v20 = vrot.slane %v4650_v33, 1 }
 0x641   :  { %v4621_v7 = vrot.slane %v4620_v34, 2  ;;  %v4575_v35 = vpop.permute.xlu1 %4574  ;;  %v4338_v0 = vadd.f32 %v4337_v16, %v4336_v53  ;;  %v4553_v53 = vmax.f32 %v4449_v50, %v4527_v46  ;;  %v4662_v50 = vmul.f32 %v8041_v45, %v8041_v45 }
 0x642   :  { %v4593_v24 = vmul.f32 %v4575_v35, %v8341_v23  ;;  %v4616_v23 = vrot.slane %v4615_v56, 1  ;;  %v4652_v13 = vadd.f32 %v4651_v20, %v4650_v33 }
 0x643   :  { %v4622_v3 = vadd.f32 %v4621_v7, %v4620_v34  ;;  %v4636_v34 = vadd.f32 %v4635_v9, %v4634_v31  ;;  %v4539_v7 = vadd.f32 %v4538_v51, %v4537_v32  ;;  %v4437_v31 = vadd.f32 %v4436_v19, %v4435_v22 }
 0x644   :  { %v4625_v58 = vsel %vm1203_vm7, %v4593_v24, 0.0  ;;  %v4617_v43 = vadd.f32 %v4616_v23, %v4615_v56  ;;  %v4450_v56 = vmax.f32 %v7965_v4, %v4430_v39  ;;  %v4678_v16 = vsel %vm4677_vm8, %v4662_v50, %v4661_v54 }
 0x645   :  { %v4626_v49 = vrot.slane %v4625_v58, 4  ;;  %v4623_v57 = vrot.slane %v4622_v3, 1  ;;  %v4637_v15 = vrot.slane %v4636_v34, 1  ;;  %v4540_v27 = vrot.slane %v4539_v7, 1 }
 0x646   :  { %v8051_v29 = vmax.f32 %v8028_v59, %v4617_v43  ;;  %v4554_v21 = vmax.f32 %v4450_v56, %v4534_v28 }
 0x647   :  { %v4627_v25 = vadd.f32 %v4626_v49, %v4625_v58  ;;  %v4624_v10 = vadd.f32 %v4623_v57, %v4622_v3  ;;  %v4638_v4 = vadd.f32 %v4637_v15, %v4636_v34  ;;  %v4451_v58 = vmax.f32 %v4347_v8, %v4437_v31 }
 0x648   :  { %v4663_v17 = vmul.f32 %v8051_v29, %v8051_v29  ;;  %v4541_v32 = vadd.f32 %v4540_v27, %v4539_v7 }
 0x649   :  { %v4628_v12 = vrot.slane %v4627_v25, 2  ;;  %v4583_v42 = vpop.permute.xlu1 %4582  ;;  %v8054_v3 = vmax.f32 %v4552_v11, %v4624_v10  ;;  %v4658_v9 = vmax.f32 %v4554_v21, %v4638_v4 }
 0x64a   :  { %v4595_v1 = vmul.f32 %v4583_v42, %v8383_v14  ;;  %v4339_v14 = vrot.slane %v4338_v0, 1  ;;  %v4555_v63 = vmax.f32 %v4451_v58, %v4541_v32  ;;  %v4680_v23 = vsel %vm4679_vm9, %v4663_v17, %v4678_v16 }
 0x64b   :  { %v4629_v37 = vadd.f32 %v4628_v12, %v4627_v25  ;;  %v4664_v60 = vmul.f32 %v8054_v3, %v8054_v3  ;;  %v4666_v52 = vmul.f32 %v4658_v9, %v4658_v9 }
 0x64c   :  { %v4639_v41 = vsel %vm1203_vm7, %v4595_v1, 0.0  ;;  %v4340_v59 = vadd.f32 %v4339_v14, %v4338_v0 }
 0x64d   :  { %v4630_v35 = vrot.slane %v4629_v37, 1  ;;  %v4640_v24 = vrot.slane %v4639_v41, 4  ;;  %v4682_v38 = vsel %vm4681_vm10, %v4664_v60, %v4680_v23 }
 0x64e   :  { %v4556_v2 = vmax.f32 %v4452_v18, %v4340_v59 }
 0x64f   :  { %v4631_v6 = vadd.f32 %v4630_v35, %v4629_v37  ;;  %v4641_v44 = vadd.f32 %v4640_v24, %v4639_v41 }
 0x650   :  { %v4660_v25 = vmax.f32 %v4556_v2, %v4652_v13 }
 0x651   :  { %v8059_v40 = vmax.f32 %v4553_v53, %v4631_v6  ;;  %v4642_v48 = vrot.slane %v4641_v44, 2 }
 0x652   :  { %v4668_v51 = vmul.f32 %v4660_v25, %v4660_v25 }
 0x653   :  { %v4643_v62 = vadd.f32 %v4642_v48, %v4641_v44  ;;  %v4665_v49 = vmul.f32 %v8059_v40, %v8059_v40 }
 0x655   :  { %v4644_v39 = vrot.slane %v4643_v62, 1  ;;  %v4684_v57 = vsel %vm4683_vm11, %v4665_v49, %v4682_v38 }
 0x656   :  { %v4686_v26 = vsel %vm4685_vm12, %v4666_v52, %v4684_v57 }
 0x657   :  { %v4645_v22 = vadd.f32 %v4644_v39, %v4643_v62 }
 0x659   :  { %v4659_v30 = vmax.f32 %v4555_v63, %v4645_v22 }
 0x65b   :  { %v4667_v46 = vmul.f32 %v4659_v30, %v4659_v30 }
 0x65d   :  { %v4688_v36 = vsel %vm4687_vm13, %v4667_v46, %v4686_v26 }
 0x65e   :  { %v4690_v18 = vsel %vm4689_vm14, %v4668_v51, %v4688_v36 }
 0x65f   :  { %v4692_v12 = vsel %vm1203_vm7, %v4690_v18, 0.0 }
 0x660   :  { %4693 = vadd.xlane.f32.xlu1 %v4692_v12 }
 0x6d3   :  { %v4694_v42 = vpop.xlane.xlu1 %4693 }
 0x6d4   :  { %5349 = vrsqrt.f32 %v4694_v42  ;;  %vm4702_vm15 = vcmp.eq.f32.partialorder %v4694_v42, inf  ;;  %v4705_v5 = vand.u32 2147483648, %v4694_v42  ;;  %vm4704_vm0 = vcmp.eq.f32.partialorder %v4694_v42, 0.0 }
 0x6da   :  { %v5350_v0 = vpop.eup %5349 }
 0x6db   :  { %v4696_v47 = vmul.f32 %v5350_v0, %v4694_v42 }
 0x6dd   :  { %v4697_v34 = vmul.f32 %v5350_v0, %v4696_v47 }
 0x6df   :  { %v4698_v1 = vmul.f32 0.5, %v4697_v34 }
 0x6e1   :  { %v4699_v19 = vsub.f32 1.5, %v4698_v1 }
 0x6e3   :  { %v4700_v43 = vmul.f32 %v5350_v0, %v4699_v19  ;;  %v5188_v0 = vld [vmem:[%s8118_s9] ss:$0 sm:$0xff] }
 0x6e5   :  { %v4701_v37 = vmul.f32 %v4700_v43, %v4694_v42 }
 0x6e7   :  { %v4703_v33 = vsel %vm4702_vm15, %v4694_v42, %v4701_v37 }
 0x6e8   :  { %v4706_v10 = vsel %vm4704_vm0, %v4705_v5, %v4703_v33 }
 0x6e9   :  { %v4707_v41 = vmax.f32 %v4706_v10, 1e-12 }
 0x6eb   :  { %5351 = vrcp.f32 %v4707_v41 }
 0x6f1   :  { %v5352_v55 = vpop.eup %5351 }
 0x6f2   :  { %v4710_v7 = vrot.slane %v5352_v55, 1  ;;  %v4711_v35 = vrot.slane %v5352_v55, 2  ;;  %v4712_v24 = vrot.slane %v5352_v55, 3  ;;  %v4713_v53 = vrot.slane %v5352_v55, 4 }
 0x6f3   :  { %v4714_v14 = vrot.slane %v5352_v55, 5  ;;  %v4715_v11 = vrot.slane %v5352_v55, 6  ;;  %v4716_v15 = vrot.slane %v5352_v55, 7  ;;  %v4725_v31 = vmul.f32 %v5352_v55, %v8037_v61 }
 0x6f4   :  { %v4726_v6 = vmul.f32 %v4710_v7, %v8041_v45  ;;  %v4727_v44 = vmul.f32 %v4711_v35, %v8051_v29  ;;  %v4728_v56 = vmul.f32 %v4712_v24, %v8054_v3  ;;  %v4729_v28 = vmul.f32 %v4713_v53, %v8059_v40 }
 0x6f5   :  { %v4730_v20 = vmul.f32 %v4714_v14, %v4658_v9  ;;  %v4731_v48 = vmul.f32 %v4715_v11, %v4659_v30  ;;  %v4732_v54 = vmul.f32 %v4716_v15, %v4660_v25  ;;  %v4781_v50 = vmul.f32 %v4725_v31, %v4725_v31 }
 0x6f6   :  { %v4742_v8 = vrot.slane %v4726_v6, 7  ;;  %v4744_v27 = vrot.slane %v4727_v44, 6  ;;  %v4782_v59 = vmul.f32 %v4726_v6, %v4726_v6  ;;  %v4746_v58 = vrot.slane %v4728_v56, 5 }
 0x6f7   :  { %v4783_v17 = vmul.f32 %v4727_v44, %v4727_v44  ;;  %v4784_v61 = vmul.f32 %v4728_v56, %v4728_v56  ;;  %v4748_v62 = vrot.slane %v4729_v28, 4  ;;  %v4750_v29 = vrot.slane %v4730_v20, 3 }
 0x6f8   :  { %v4743_v4 = vsel %vm4677_vm8, %v4742_v8, %v4725_v31  ;;  %v4785_v21 = vmul.f32 %v4729_v28, %v4729_v28  ;;  %v4786_v40 = vmul.f32 %v4730_v20, %v4730_v20  ;;  %v4797_v13 = vrot.slane %v4782_v59, 7 }
 0x6f9   :  { %v4745_v45 = vsel %vm4679_vm9, %v4744_v27, %v4743_v4  ;;  %v4799_v60 = vrot.slane %v4783_v17, 6  ;;  %v4752_v49 = vrot.slane %v4731_v48, 2  ;;  %v4754_v39 = vrot.slane %v4732_v54, 1 }
 0x6fa   :  { %v4747_v3 = vsel %vm4681_vm10, %v4746_v58, %v4745_v45  ;;  %v4787_v16 = vmul.f32 %v4731_v48, %v4731_v48  ;;  %v4788_v9 = vmul.f32 %v4732_v54, %v4732_v54  ;;  %v4798_v63 = vsel %vm4677_vm8, %v4797_v13, %v4781_v50 }
 0x6fb   :  { %v4749_v32 = vsel %vm4683_vm11, %v4748_v62, %v4747_v3  ;;  %v4801_v22 = vrot.slane %v4784_v61, 5  ;;  %v4800_v25 = vsel %vm4679_vm9, %v4799_v60, %v4798_v63  ;;  %v4803_v38 = vrot.slane %v4785_v21, 4 }
 0x6fc   :  { %v4751_v2 = vsel %vm4685_vm12, %v4750_v29, %v4749_v32  ;;  %v4805_v52 = vrot.slane %v4786_v40, 3  ;;  %v4807_v51 = vrot.slane %v4787_v16, 2  ;;  %v4809_v36 = vrot.slane %v4788_v9, 1 }
 0x6fd   :  { %v4753_v23 = vsel %vm4687_vm13, %v4752_v49, %v4751_v2  ;;  %v4802_v57 = vsel %vm4681_vm10, %v4801_v22, %v4800_v25 }
 0x6fe   :  { %v4755_v30 = vsel %vm4689_vm14, %v4754_v39, %v4753_v23  ;;  %v4804_v46 = vsel %vm4683_vm11, %v4803_v38, %v4802_v57 }
 0x6ff   :  { %4914 = vmatmul.msk.f32.vlgmr.msrb.gmra.mxu3 %vm1203_vm7, %v4755_v30  ;;  %v4806_v26 = vsel %vm4685_vm12, %v4805_v52, %v4804_v46 }
 0x700   :  { %v4808_v18 = vsel %vm4687_vm13, %v4807_v51, %v4806_v26 }
 0x701   :  { %v4810_v12 = vsel %vm4689_vm14, %v4809_v36, %v4808_v18 }
 0x702   :  { %v4812_v42 = vsel %vm1203_vm7, %v4810_v12, 0.0 }
 0x703   :  { %4813 = vadd.xlane.f32.xlu0 %v4812_v42 }
 0x776   :  { %v4814_v47 = vpop.xlane.xlu0 %4813 }
 0x777   :  { %v4819_v1 = vadd.f32 %v5188_v0, %v4814_v47 }
 0x782   :  { %v4778_v34 = vpop.f32.mrf.mxu3 }
 0x783   :  { %v4820_v19 = vmul.f32 2.0, %v4778_v34 }
 0x785   :  { %v4821_v43 = vsub.f32 %v4819_v1, %v4820_v19 }
 0x787   :  { %v4822_v37 = vmax.f32 %v4821_v43, 0.0 }
 0x789   :  { %5353 = vrsqrt.f32 %v4822_v37  ;;  %vm4830_vm1 = vcmp.eq.f32.partialorder %v4822_v37, inf  ;;  %v4833_v24 = vand.u32 2147483648, %v4822_v37  ;;  %vm4832_vm3 = vcmp.eq.f32.partialorder %v4822_v37, 0.0 }
 0x78f   :  { %v5354_v5 = vpop.eup %5353 }
 0x790   :  { %v4824_v33 = vmul.f32 %v5354_v5, %v4822_v37 }
 0x792   :  { %v4825_v10 = vmul.f32 %v5354_v5, %v4824_v33 }
 0x794   :  { %v4826_v41 = vmul.f32 0.5, %v4825_v10 }
 0x796   :  { %v4827_v55 = vsub.f32 1.5, %v4826_v41 }
 0x798   :  { %v4828_v7 = vmul.f32 %v5354_v5, %v4827_v55 }
 0x79a   :  { %v4829_v35 = vmul.f32 %v4828_v7, %v4822_v37 }
 0x79c   :  { %v4831_v53 = vsel %vm4830_vm1, %v4822_v37, %v4829_v35 }
 0x79d   :  { %v4834_v14 = vsel %vm4832_vm3, %v4833_v24, %v4831_v53 }
 0x79e   :  { %4836 = vst.msk [vmem:[#allocation2] sm:$0xff] %vm4835_vm2, %v4834_v14 }
 0x79f   :  { %4847 = dma.vmem_to_hbm [thread:$0]  %s4843_s15, 128, %s4845_s4, [#allocation3]  }
 0x7a0   :  { %5379 = dma.done.wait [#allocation3], 128  }
 0x7a1   :  { %5380 = vsyncadd [#allocation3], 4294967168 }
 0x7a2   :  { %4852 = vsyncpa [#allocation3], 1 }

</bundles_post_ra>
